<compile_context>
chip_gen: v5e
topology: v5e:2x2
jax: 0.10.0
libtpu: 0.0.40
codegen_flags: <defaults>
</compile_context>

<pallas_src>
import functools

import jax
import jax.numpy as jnp
from jax.experimental import pallas as pl
from jax.experimental.pallas import tpu as pltpu


# ---------------------------------------------------------------------------
# Geometry helpers (flat padded rows: row index = y*pitch + x, lanes = C).
# ---------------------------------------------------------------------------
_TM = 128          # conv row-chunk: live accumulator stays <= 16 f32 vregs


def _round_up(x, m):
    return (x + m - 1) // m * m


def _stage_geom(h_in):
    """Zero-padded flat-row geometry for a conv stage with (h_in x h_in) input."""
    pitch = _round_up(h_in + 2, 8)        # sublane-aligned padded-row pitch
    m = h_in * pitch                      # conv-output rows computed
    l = (h_in + 2) * pitch + 8            # buffer rows (covers tap over-reach)
    return pitch, m, l


def _chunks(total, tile):
    start, out = 0, []
    while start < total:
        out.append((start, min(tile, total - start)))
        start += tile
    return out


# ---------------------------------------------------------------------------
# In-kernel building blocks.
# ---------------------------------------------------------------------------
def _conv3x3(src_ref, w_ref, b_ref, dst_ref, pitch, m):
    """3x3 'same' conv over a zero-padded flat-row buffer.

    Per 128-row chunk: 9 accumulated MXU dots (K = Cin), bias + ReLU fused,
    result written back to the conv-output scratch."""
    cout = w_ref.shape[-1]
    for r0, rn in _chunks(m, _TM):
        acc = jnp.zeros((rn, cout), jnp.float32)
        for k in range(9):
            off = (k // 3) * pitch + (k % 3)
            acc = acc + jnp.dot(src_ref[pl.ds(r0 + off, rn), :], w_ref[k],
                                preferred_element_type=jnp.float32)
        dst_ref[pl.ds(r0, rn), :] = jnp.maximum(acc + b_ref[...], 0.0)


def _maxpool2x2(src_ref, pitch, h_out, store):
    """2x2 / stride-2 max pool of a flat-row conv output using strided-slice
    gathers (no dense selector matmul).  `store(py, rows)` scatters the
    pooled (h_out, C) row block into the next stage's layout."""
    for py in range(h_out):
        r0 = 2 * py * pitch
        p = jnp.maximum(
            jnp.maximum(src_ref[pl.ds(r0, h_out, stride=2), :],
                        src_ref[pl.ds(r0 + 1, h_out, stride=2), :]),
            jnp.maximum(src_ref[pl.ds(r0 + pitch, h_out, stride=2), :],
                        src_ref[pl.ds(r0 + pitch + 1, h_out, stride=2), :]))
        store(py, p)


# ---------------------------------------------------------------------------
# Fused per-batch kernel (one grid step == one batch element).
# ---------------------------------------------------------------------------
def _hybrid_kernel(audio_ref, x1_ref,
                   w1_ref, b1_ref, w2_ref, b2_ref, w3_ref, b3_ref,
                   wprT_ref, bpr_ref, wwv_ref, bwv_ref,
                   w1a_ref, w1c_ref, bf1_ref, wf2_ref, bf2_ref,
                   out_ref,
                   c1_ref, c2_ref, c3_ref, x2_ref, x3_ref, p4_ref,
                   *, geom):
    h1, h2, h3, hf = geom["h1"], geom["h2"], geom["h3"], geom["hf"]
    wp2, wp3 = geom["wp2"], geom["wp3"]
    f32 = jnp.float32

    # ---- stage 1: conv1 + ReLU (host-built (H*W, 9) im2col -> MXU dots) ----
    for r0, rn in _chunks(h1 * h1, _TM):
        acc = jnp.dot(x1_ref[pl.ds(r0, rn), :], w1_ref[...],
                      preferred_element_type=f32)
        c1_ref[pl.ds(r0, rn), :] = jnp.maximum(acc + b1_ref[...], 0.0)

    # ---- pool1 -> zero-padded flat-row input of stage 2 ----
    x2_ref[...] = jnp.zeros(x2_ref.shape, f32)       # zero border / pitch tail

    def store2(py, rows):
        x2_ref[pl.ds((py + 1) * wp2 + 1, h2), :] = rows
    _maxpool2x2(c1_ref, h1, h2, store2)

    # ---- stage 2: conv2 + ReLU ----
    _conv3x3(x2_ref, w2_ref, b2_ref, c2_ref, wp2, h2 * wp2)

    # ---- pool2 -> stage-3 input ----
    x3_ref[...] = jnp.zeros(x3_ref.shape, f32)

    def store3(py, rows):
        x3_ref[pl.ds((py + 1) * wp3 + 1, h3), :] = rows
    _maxpool2x2(c2_ref, wp2, h3, store3)

    # ---- stage 3: conv3 + ReLU ----
    _conv3x3(x3_ref, w3_ref, b3_ref, c3_ref, wp3, h3 * wp3)

    # ---- pool3 -> lane-dense H*W*C flatten (aligned 128-lane stores) ----
    def store4(py, rows):
        for px in range(hf):
            q = py * hf + px
            p4_ref[:, q * 128:(q + 1) * 128] = rows[px:px + 1, :]
    _maxpool2x2(c3_ref, wp3, hf, store4)

    # ---- fused head: wav2vec stub, cnn_projection, fc1 (+ReLU), fc2 ----
    wav = jnp.dot(audio_ref[...], wwv_ref[...],
                  preferred_element_type=f32) + bwv_ref[...]
    # Single deep-K projection dot; weight is passed lane-dense (hidden, 2048).
    cnnp = jnp.dot(p4_ref[...], wprT_ref[...].T,
                   preferred_element_type=f32) + bpr_ref[...]
    # fc1 over concat([wav, cnnp]) realized with a split weight.
    h = jnp.maximum(
        jnp.dot(wav, w1a_ref[...], preferred_element_type=f32)
        + jnp.dot(cnnp, w1c_ref[...], preferred_element_type=f32)
        + bf1_ref[...], 0.0)
    # TODO(synk): nn.Dropout(0.5) is identity at inference time.
    out_ref[...] = (jnp.dot(h, wf2_ref[...], preferred_element_type=f32)
                    + bf2_ref[...])


# ---------------------------------------------------------------------------
# Parameters (deterministic init) and forward.
# ---------------------------------------------------------------------------
def init_params(key, hidden_size, num_classes, audio_len, spatial):
    ks = jax.random.split(key, 7)

    def lin(k, fan_in, fan_out):
        kw, kb = jax.random.split(k)
        s = 1.0 / jnp.sqrt(jnp.float32(fan_in))
        return (jax.random.uniform(kw, (fan_in, fan_out), jnp.float32, -s, s),
                jax.random.uniform(kb, (1, fan_out), jnp.float32, -s, s))

    def conv(k, cin, cout):
        kw, kb = jax.random.split(k)
        s = 1.0 / jnp.sqrt(jnp.float32(cin * 9))
        return (jax.random.uniform(kw, (9, cin, cout), jnp.float32, -s, s),
                jax.random.uniform(kb, (1, cout), jnp.float32, -s, s))

    hf = spatial // 8
    cnn_out = 128 * hf * hf
    return {
        # TODO(synk): Wav2Vec2 backbone stub (deterministic linear projection).
        "wav2vec_proj": lin(ks[0], audio_len, hidden_size),
        "conv1": conv(ks[1], 1, 32),
        "conv2": conv(ks[2], 32, 64),
        "conv3": conv(ks[3], 64, 128),
        "cnn_projection": lin(ks[4], cnn_out, hidden_size),   # H*W*C flatten
        "fc1": lin(ks[5], hidden_size * 2, hidden_size),
        "fc2": lin(ks[6], hidden_size, num_classes),
    }


def hybrid_forward(params, inputs, spectrogram):
    B, cin, H, W = spectrogram.shape
    assert cin == 1 and H == W and H % 8 == 0
    hidden = params["fc1"][0].shape[1]
    num_classes = params["fc2"][0].shape[1]
    audio_len = inputs.shape[1]

    h1, h2, h3, hf = H, H // 2, H // 4, H // 8
    wp2, m2, l2 = _stage_geom(h2)
    wp3, m3, l3 = _stage_geom(h3)
    n1 = h1 * h1

    # Host-side glue: 3x3 im2col of the zero-padded spectrogram (stage 1 only).
    xp = jnp.pad(spectrogram[:, 0], ((0, 0), (1, 1), (1, 1)))
    x1 = jnp.stack([xp[:, ky:ky + h1, kx:kx + h1]
                    for ky in range(3) for kx in range(3)], axis=-1)
    x1 = x1.reshape(B, n1, 9)

    audio3 = inputs.reshape(B, 1, audio_len)
    w1 = params["conv1"][0].reshape(9, 32)
    wf1 = params["fc1"][0]
    wprT = params["cnn_projection"][0].T          # (hidden, 128*hf*hf), lane-dense

    kernel = functools.partial(
        _hybrid_kernel,
        geom=dict(h1=h1, h2=h2, h3=h3, hf=hf, wp2=wp2, wp3=wp3))

    out = pl.pallas_call(
        kernel,
        out_shape=jax.ShapeDtypeStruct((B, 1, num_classes), jnp.float32),
        grid_spec=pltpu.PrefetchScalarGridSpec(
            num_scalar_prefetch=0,
            grid=(B,),
            in_specs=[
                pl.BlockSpec((None, 1, audio_len), lambda b: (b, 0, 0)),
                pl.BlockSpec((None, n1, 9), lambda b: (b, 0, 0)),
                pl.BlockSpec((9, 32), lambda b: (0, 0)),
                pl.BlockSpec((1, 32), lambda b: (0, 0)),
                pl.BlockSpec((9, 32, 64), lambda b: (0, 0, 0)),
                pl.BlockSpec((1, 64), lambda b: (0, 0)),
                pl.BlockSpec((9, 64, 128), lambda b: (0, 0, 0)),
                pl.BlockSpec((1, 128), lambda b: (0, 0)),
                pl.BlockSpec((hidden, 128 * hf * hf), lambda b: (0, 0)),
                pl.BlockSpec((1, hidden), lambda b: (0, 0)),
                pl.BlockSpec((audio_len, hidden), lambda b: (0, 0)),
                pl.BlockSpec((1, hidden), lambda b: (0, 0)),
                pl.BlockSpec((hidden, hidden), lambda b: (0, 0)),
                pl.BlockSpec((hidden, hidden), lambda b: (0, 0)),
                pl.BlockSpec((1, hidden), lambda b: (0, 0)),
                pl.BlockSpec((hidden, num_classes), lambda b: (0, 0)),
                pl.BlockSpec((1, num_classes), lambda b: (0, 0)),
            ],
            out_specs=pl.BlockSpec((None, 1, num_classes), lambda b: (b, 0, 0)),
            scratch_shapes=[
                pltpu.VMEM((n1, 32), jnp.float32),             # conv1 output
                pltpu.VMEM((m2, 64), jnp.float32),             # conv2 output
                pltpu.VMEM((m3, 128), jnp.float32),            # conv3 output
                pltpu.VMEM((l2, 32), jnp.float32),             # stage-2 padded input
                pltpu.VMEM((l3, 64), jnp.float32),             # stage-3 padded input
                pltpu.VMEM((1, 128 * hf * hf), jnp.float32),   # flattened pooled conv3
            ]),
        compiler_params=pltpu.CompilerParams(
            dimension_semantics=("parallel",),
            vmem_limit_bytes=32 * 1024 * 1024),
    )(audio3, x1,
      w1, params["conv1"][1],
      params["conv2"][0], params["conv2"][1],
      params["conv3"][0], params["conv3"][1],
      wprT, params["cnn_projection"][1],
      params["wav2vec_proj"][0], params["wav2vec_proj"][1],
      wf1[:hidden], wf1[hidden:], params["fc1"][1],
      params["fc2"][0], params["fc2"][1])
    return out.reshape(B, num_classes)


# ---------------------------------------------------------------------------
# Pure-JAX reference (same parameters) for validation.
# ---------------------------------------------------------------------------
def reference_forward(params, inputs, spectrogram):
    hi = jax.lax.Precision.HIGHEST
    wwv, bwv = params["wav2vec_proj"]
    wav = jnp.dot(inputs, wwv, precision=hi) + bwv

    x = jnp.transpose(spectrogram, (0, 2, 3, 1))
    for name in ("conv1", "conv2", "conv3"):
        w, b = params[name]
        w4 = w.reshape(3, 3, w.shape[1], w.shape[2])
        x = jax.lax.conv_general_dilated(
            x, w4, window_strides=(1, 1), padding="SAME",
            dimension_numbers=("NHWC", "HWIO", "NHWC"), precision=hi)
        x = jnp.maximum(x + b.reshape(1, 1, 1, -1), 0.0)
        x = jax.lax.reduce_window(x, -jnp.inf, jax.lax.max,
                                  (1, 2, 2, 1), (1, 2, 2, 1), "VALID")
    flat = x.reshape(x.shape[0], -1)                          # H*W*C order
    wpr, bpr = params["cnn_projection"]
    cnnp = jnp.dot(flat, wpr, precision=hi) + bpr

    wf1, bf1 = params["fc1"]
    h = jnp.maximum(
        jnp.dot(jnp.concatenate([wav, cnnp], axis=1), wf1, precision=hi) + bf1,
        0.0)
    return jnp.dot(h, params["fc2"][0], precision=hi) + params["fc2"][1]


if __name__ == "__main__":
    B = 2
    hidden_size = 32
    num_classes = 2
    audio_len = 256
    spatial = 32            # 32 -> 16 -> 8 -> 4 after the three maxpools

    key = jax.random.PRNGKey(0)
    kp, ka, ksp = jax.random.split(key, 3)
    audio = jax.random.normal(ka, (B, audio_len), jnp.float32)
    spectrogram = jax.random.normal(ksp, (B, 1, spatial, spatial), jnp.float32)

    params = init_params(kp, hidden_size, num_classes, audio_len, spatial)

    out = jax.jit(hybrid_forward)(params, audio, spectrogram)
    out = jax.block_until_ready(out)

    assert out.shape == (B, num_classes)
    assert bool(jnp.all(jnp.isfinite(out)))

    ref = reference_forward(params, audio, spectrogram)
    max_err = jnp.max(jnp.abs(out - ref))
    assert jnp.allclose(out, ref, atol=2e-3, rtol=2e-3), (
        f"kernel/reference mismatch, max abs err = {max_err}")
    print("KERNEL_OK")
</pallas_src>

<mosaic_0001>
module attributes {stable_mosaic.version = 11 : i64} {
  func.func @_hybrid_kernel(%arg0: i32, %arg1: memref<1x1x256xf32, #tpu.memory_space<vmem>>, %arg2: memref<1x1024x9xf32, #tpu.memory_space<vmem>>, %arg3: memref<9x32xf32, #tpu.memory_space<vmem>>, %arg4: memref<1x32xf32, #tpu.memory_space<vmem>>, %arg5: memref<9x32x64xf32, #tpu.memory_space<vmem>>, %arg6: memref<1x64xf32, #tpu.memory_space<vmem>>, %arg7: memref<9x64x128xf32, #tpu.memory_space<vmem>>, %arg8: memref<1x128xf32, #tpu.memory_space<vmem>>, %arg9: memref<32x2048xf32, #tpu.memory_space<vmem>>, %arg10: memref<1x32xf32, #tpu.memory_space<vmem>>, %arg11: memref<256x32xf32, #tpu.memory_space<vmem>>, %arg12: memref<1x32xf32, #tpu.memory_space<vmem>>, %arg13: memref<32x32xf32, #tpu.memory_space<vmem>>, %arg14: memref<32x32xf32, #tpu.memory_space<vmem>>, %arg15: memref<1x32xf32, #tpu.memory_space<vmem>>, %arg16: memref<32x2xf32, #tpu.memory_space<vmem>>, %arg17: memref<1x2xf32, #tpu.memory_space<vmem>>, %arg18: memref<1x1x2xf32, #tpu.memory_space<vmem>>, %arg19: memref<1024x32xf32, #tpu.memory_space<vmem>>, %arg20: memref<384x64xf32, #tpu.memory_space<vmem>>, %arg21: memref<128x128xf32, #tpu.memory_space<vmem>>, %arg22: memref<440x32xf32, #tpu.memory_space<vmem>>, %arg23: memref<168x64xf32, #tpu.memory_space<vmem>>, %arg24: memref<1x2048xf32, #tpu.memory_space<vmem>>) attributes {dimension_semantics = [#tpu.dimension_semantics<parallel>], iteration_bounds = array<i64: 2>, scalar_prefetch = 0 : i64, scratch_operands = 6 : i64, tpu.core_type = #tpu.core_type<tc>, window_params = [{transform_indices = @transform_0, window_bounds = array<i64: 1, 1, 256>}, {transform_indices = @transform_1, window_bounds = array<i64: 1, 1024, 9>}, {pipeline_mode = #tpu.pipeline_mode<synchronous>, transform_indices = @transform_2, window_bounds = array<i64: 9, 32>}, {pipeline_mode = #tpu.pipeline_mode<synchronous>, transform_indices = @transform_3, window_bounds = array<i64: 1, 32>}, {pipeline_mode = #tpu.pipeline_mode<synchronous>, transform_indices = @transform_4, window_bounds = array<i64: 9, 32, 64>}, {pipeline_mode = #tpu.pipeline_mode<synchronous>, transform_indices = @transform_5, window_bounds = array<i64: 1, 64>}, {pipeline_mode = #tpu.pipeline_mode<synchronous>, transform_indices = @transform_6, window_bounds = array<i64: 9, 64, 128>}, {pipeline_mode = #tpu.pipeline_mode<synchronous>, transform_indices = @transform_7, window_bounds = array<i64: 1, 128>}, {pipeline_mode = #tpu.pipeline_mode<synchronous>, transform_indices = @transform_8, window_bounds = array<i64: 32, 2048>}, {pipeline_mode = #tpu.pipeline_mode<synchronous>, transform_indices = @transform_9, window_bounds = array<i64: 1, 32>}, {pipeline_mode = #tpu.pipeline_mode<synchronous>, transform_indices = @transform_10, window_bounds = array<i64: 256, 32>}, {pipeline_mode = #tpu.pipeline_mode<synchronous>, transform_indices = @transform_11, window_bounds = array<i64: 1, 32>}, {pipeline_mode = #tpu.pipeline_mode<synchronous>, transform_indices = @transform_12, window_bounds = array<i64: 32, 32>}, {pipeline_mode = #tpu.pipeline_mode<synchronous>, transform_indices = @transform_13, window_bounds = array<i64: 32, 32>}, {pipeline_mode = #tpu.pipeline_mode<synchronous>, transform_indices = @transform_14, window_bounds = array<i64: 1, 32>}, {pipeline_mode = #tpu.pipeline_mode<synchronous>, transform_indices = @transform_15, window_bounds = array<i64: 32, 2>}, {pipeline_mode = #tpu.pipeline_mode<synchronous>, transform_indices = @transform_16, window_bounds = array<i64: 1, 2>}, {transform_indices = @transform_17, window_bounds = array<i64: 1, 1, 2>}]} {
    %c0 = arith.constant 0 : index
    %c0_0 = arith.constant 0 : index
    %c0_1 = arith.constant 0 : index
    %0 = vector.load %arg2[%c0, %c0_0, %c0_1] : memref<1x1024x9xf32, #tpu.memory_space<vmem>>, vector<1x128x9xf32>
    %1 = vector.shape_cast %0 : vector<1x128x9xf32> to vector<128x9xf32>
    %c0_2 = arith.constant 0 : index
    %c0_3 = arith.constant 0 : index
    %2 = vector.load %arg3[%c0_2, %c0_3] : memref<9x32xf32, #tpu.memory_space<vmem>>, vector<9x32xf32>
    %cst = arith.constant dense<0.000000e+00> : vector<128x32xf32>
    %3 = tpu.matmul %1, %2, %cst {dimension_numbers = #tpu.dot_dimension_numbers<[1], [0], [0], [1], [0, 0, 1, 1], [], []>} : vector<128x9xf32>, vector<9x32xf32>, vector<128x32xf32> -> vector<128x32xf32>
    %c0_4 = arith.constant 0 : index
    %c0_5 = arith.constant 0 : index
    %4 = vector.load %arg4[%c0_4, %c0_5] : memref<1x32xf32, #tpu.memory_space<vmem>>, vector<1x32xf32>
    %5 = vector.broadcast %4 : vector<1x32xf32> to vector<128x32xf32>
    %6 = arith.addf %3, %5 : vector<128x32xf32>
    %cst_6 = arith.constant 0.000000e+00 : f32
    %7 = vector.broadcast %cst_6 : f32 to vector<128x32xf32>
    %8 = arith.maximumf %6, %7 : vector<128x32xf32>
    %c0_7 = arith.constant 0 : index
    %c0_8 = arith.constant 0 : index
    %9 = vector.load %arg19[%c0_7, %c0_8] : memref<1024x32xf32, #tpu.memory_space<vmem>>, vector<128x32xf32>
    tpu.vector_store %arg19[%c0_7, %c0_8], %8 {strides = array<i32>} : memref<1024x32xf32, #tpu.memory_space<vmem>>, vector<128x32xf32>,
    %c0_9 = arith.constant 0 : index
    %c128 = arith.constant 128 : index
    %c0_10 = arith.constant 0 : index
    %10 = vector.load %arg2[%c0_9, %c128, %c0_10] : memref<1x1024x9xf32, #tpu.memory_space<vmem>>, vector<1x128x9xf32>
    %11 = vector.shape_cast %10 : vector<1x128x9xf32> to vector<128x9xf32>
    %c0_11 = arith.constant 0 : index
    %c0_12 = arith.constant 0 : index
    %12 = vector.load %arg3[%c0_11, %c0_12] : memref<9x32xf32, #tpu.memory_space<vmem>>, vector<9x32xf32>
    %cst_13 = arith.constant dense<0.000000e+00> : vector<128x32xf32>
    %13 = tpu.matmul %11, %12, %cst_13 {dimension_numbers = #tpu.dot_dimension_numbers<[1], [0], [0], [1], [0, 0, 1, 1], [], []>} : vector<128x9xf32>, vector<9x32xf32>, vector<128x32xf32> -> vector<128x32xf32>
    %c0_14 = arith.constant 0 : index
    %c0_15 = arith.constant 0 : index
    %14 = vector.load %arg4[%c0_14, %c0_15] : memref<1x32xf32, #tpu.memory_space<vmem>>, vector<1x32xf32>
    %15 = vector.broadcast %14 : vector<1x32xf32> to vector<128x32xf32>
    %16 = arith.addf %13, %15 : vector<128x32xf32>
    %cst_16 = arith.constant 0.000000e+00 : f32
    %17 = vector.broadcast %cst_16 : f32 to vector<128x32xf32>
    %18 = arith.maximumf %16, %17 : vector<128x32xf32>
    %c128_17 = arith.constant 128 : index
    %c0_18 = arith.constant 0 : index
    %19 = vector.load %arg19[%c128_17, %c0_18] : memref<1024x32xf32, #tpu.memory_space<vmem>>, vector<128x32xf32>
    tpu.vector_store %arg19[%c128_17, %c0_18], %18 {strides = array<i32>} : memref<1024x32xf32, #tpu.memory_space<vmem>>, vector<128x32xf32>,
    %c0_19 = arith.constant 0 : index
    %c256 = arith.constant 256 : index
    %c0_20 = arith.constant 0 : index
    %20 = vector.load %arg2[%c0_19, %c256, %c0_20] : memref<1x1024x9xf32, #tpu.memory_space<vmem>>, vector<1x128x9xf32>
    %21 = vector.shape_cast %20 : vector<1x128x9xf32> to vector<128x9xf32>
    %c0_21 = arith.constant 0 : index
    %c0_22 = arith.constant 0 : index
    %22 = vector.load %arg3[%c0_21, %c0_22] : memref<9x32xf32, #tpu.memory_space<vmem>>, vector<9x32xf32>
    %cst_23 = arith.constant dense<0.000000e+00> : vector<128x32xf32>
    %23 = tpu.matmul %21, %22, %cst_23 {dimension_numbers = #tpu.dot_dimension_numbers<[1], [0], [0], [1], [0, 0, 1, 1], [], []>} : vector<128x9xf32>, vector<9x32xf32>, vector<128x32xf32> -> vector<128x32xf32>
    %c0_24 = arith.constant 0 : index
    %c0_25 = arith.constant 0 : index
    %24 = vector.load %arg4[%c0_24, %c0_25] : memref<1x32xf32, #tpu.memory_space<vmem>>, vector<1x32xf32>
    %25 = vector.broadcast %24 : vector<1x32xf32> to vector<128x32xf32>
    %26 = arith.addf %23, %25 : vector<128x32xf32>
    %cst_26 = arith.constant 0.000000e+00 : f32
    %27 = vector.broadcast %cst_26 : f32 to vector<128x32xf32>
    %28 = arith.maximumf %26, %27 : vector<128x32xf32>
    %c256_27 = arith.constant 256 : index
    %c0_28 = arith.constant 0 : index
    %29 = vector.load %arg19[%c256_27, %c0_28] : memref<1024x32xf32, #tpu.memory_space<vmem>>, vector<128x32xf32>
    tpu.vector_store %arg19[%c256_27, %c0_28], %28 {strides = array<i32>} : memref<1024x32xf32, #tpu.memory_space<vmem>>, vector<128x32xf32>,
    %c0_29 = arith.constant 0 : index
    %c384 = arith.constant 384 : index
    %c0_30 = arith.constant 0 : index
    %30 = vector.load %arg2[%c0_29, %c384, %c0_30] : memref<1x1024x9xf32, #tpu.memory_space<vmem>>, vector<1x128x9xf32>
    %31 = vector.shape_cast %30 : vector<1x128x9xf32> to vector<128x9xf32>
    %c0_31 = arith.constant 0 : index
    %c0_32 = arith.constant 0 : index
    %32 = vector.load %arg3[%c0_31, %c0_32] : memref<9x32xf32, #tpu.memory_space<vmem>>, vector<9x32xf32>
    %cst_33 = arith.constant dense<0.000000e+00> : vector<128x32xf32>
    %33 = tpu.matmul %31, %32, %cst_33 {dimension_numbers = #tpu.dot_dimension_numbers<[1], [0], [0], [1], [0, 0, 1, 1], [], []>} : vector<128x9xf32>, vector<9x32xf32>, vector<128x32xf32> -> vector<128x32xf32>
    %c0_34 = arith.constant 0 : index
    %c0_35 = arith.constant 0 : index
    %34 = vector.load %arg4[%c0_34, %c0_35] : memref<1x32xf32, #tpu.memory_space<vmem>>, vector<1x32xf32>
    %35 = vector.broadcast %34 : vector<1x32xf32> to vector<128x32xf32>
    %36 = arith.addf %33, %35 : vector<128x32xf32>
    %cst_36 = arith.constant 0.000000e+00 : f32
    %37 = vector.broadcast %cst_36 : f32 to vector<128x32xf32>
    %38 = arith.maximumf %36, %37 : vector<128x32xf32>
    %c384_37 = arith.constant 384 : index
    %c0_38 = arith.constant 0 : index
    %39 = vector.load %arg19[%c384_37, %c0_38] : memref<1024x32xf32, #tpu.memory_space<vmem>>, vector<128x32xf32>
    tpu.vector_store %arg19[%c384_37, %c0_38], %38 {strides = array<i32>} : memref<1024x32xf32, #tpu.memory_space<vmem>>, vector<128x32xf32>,
    %c0_39 = arith.constant 0 : index
    %c512 = arith.constant 512 : index
    %c0_40 = arith.constant 0 : index
    %40 = vector.load %arg2[%c0_39, %c512, %c0_40] : memref<1x1024x9xf32, #tpu.memory_space<vmem>>, vector<1x128x9xf32>
    %41 = vector.shape_cast %40 : vector<1x128x9xf32> to vector<128x9xf32>
    %c0_41 = arith.constant 0 : index
    %c0_42 = arith.constant 0 : index
    %42 = vector.load %arg3[%c0_41, %c0_42] : memref<9x32xf32, #tpu.memory_space<vmem>>, vector<9x32xf32>
    %cst_43 = arith.constant dense<0.000000e+00> : vector<128x32xf32>
    %43 = tpu.matmul %41, %42, %cst_43 {dimension_numbers = #tpu.dot_dimension_numbers<[1], [0], [0], [1], [0, 0, 1, 1], [], []>} : vector<128x9xf32>, vector<9x32xf32>, vector<128x32xf32> -> vector<128x32xf32>
    %c0_44 = arith.constant 0 : index
    %c0_45 = arith.constant 0 : index
    %44 = vector.load %arg4[%c0_44, %c0_45] : memref<1x32xf32, #tpu.memory_space<vmem>>, vector<1x32xf32>
    %45 = vector.broadcast %44 : vector<1x32xf32> to vector<128x32xf32>
    %46 = arith.addf %43, %45 : vector<128x32xf32>
    %cst_46 = arith.constant 0.000000e+00 : f32
    %47 = vector.broadcast %cst_46 : f32 to vector<128x32xf32>
    %48 = arith.maximumf %46, %47 : vector<128x32xf32>
    %c512_47 = arith.constant 512 : index
    %c0_48 = arith.constant 0 : index
    %49 = vector.load %arg19[%c512_47, %c0_48] : memref<1024x32xf32, #tpu.memory_space<vmem>>, vector<128x32xf32>
    tpu.vector_store %arg19[%c512_47, %c0_48], %48 {strides = array<i32>} : memref<1024x32xf32, #tpu.memory_space<vmem>>, vector<128x32xf32>,
    %c0_49 = arith.constant 0 : index
    %c640 = arith.constant 640 : index
    %c0_50 = arith.constant 0 : index
    %50 = vector.load %arg2[%c0_49, %c640, %c0_50] : memref<1x1024x9xf32, #tpu.memory_space<vmem>>, vector<1x128x9xf32>
    %51 = vector.shape_cast %50 : vector<1x128x9xf32> to vector<128x9xf32>
    %c0_51 = arith.constant 0 : index
    %c0_52 = arith.constant 0 : index
    %52 = vector.load %arg3[%c0_51, %c0_52] : memref<9x32xf32, #tpu.memory_space<vmem>>, vector<9x32xf32>
    %cst_53 = arith.constant dense<0.000000e+00> : vector<128x32xf32>
    %53 = tpu.matmul %51, %52, %cst_53 {dimension_numbers = #tpu.dot_dimension_numbers<[1], [0], [0], [1], [0, 0, 1, 1], [], []>} : vector<128x9xf32>, vector<9x32xf32>, vector<128x32xf32> -> vector<128x32xf32>
    %c0_54 = arith.constant 0 : index
    %c0_55 = arith.constant 0 : index
    %54 = vector.load %arg4[%c0_54, %c0_55] : memref<1x32xf32, #tpu.memory_space<vmem>>, vector<1x32xf32>
    %55 = vector.broadcast %54 : vector<1x32xf32> to vector<128x32xf32>
    %56 = arith.addf %53, %55 : vector<128x32xf32>
    %cst_56 = arith.constant 0.000000e+00 : f32
    %57 = vector.broadcast %cst_56 : f32 to vector<128x32xf32>
    %58 = arith.maximumf %56, %57 : vector<128x32xf32>
    %c640_57 = arith.constant 640 : index
    %c0_58 = arith.constant 0 : index
    %59 = vector.load %arg19[%c640_57, %c0_58] : memref<1024x32xf32, #tpu.memory_space<vmem>>, vector<128x32xf32>
    tpu.vector_store %arg19[%c640_57, %c0_58], %58 {strides = array<i32>} : memref<1024x32xf32, #tpu.memory_space<vmem>>, vector<128x32xf32>,
    %c0_59 = arith.constant 0 : index
    %c768 = arith.constant 768 : index
    %c0_60 = arith.constant 0 : index
    %60 = vector.load %arg2[%c0_59, %c768, %c0_60] : memref<1x1024x9xf32, #tpu.memory_space<vmem>>, vector<1x128x9xf32>
    %61 = vector.shape_cast %60 : vector<1x128x9xf32> to vector<128x9xf32>
    %c0_61 = arith.constant 0 : index
    %c0_62 = arith.constant 0 : index
    %62 = vector.load %arg3[%c0_61, %c0_62] : memref<9x32xf32, #tpu.memory_space<vmem>>, vector<9x32xf32>
    %cst_63 = arith.constant dense<0.000000e+00> : vector<128x32xf32>
    %63 = tpu.matmul %61, %62, %cst_63 {dimension_numbers = #tpu.dot_dimension_numbers<[1], [0], [0], [1], [0, 0, 1, 1], [], []>} : vector<128x9xf32>, vector<9x32xf32>, vector<128x32xf32> -> vector<128x32xf32>
    %c0_64 = arith.constant 0 : index
    %c0_65 = arith.constant 0 : index
    %64 = vector.load %arg4[%c0_64, %c0_65] : memref<1x32xf32, #tpu.memory_space<vmem>>, vector<1x32xf32>
    %65 = vector.broadcast %64 : vector<1x32xf32> to vector<128x32xf32>
    %66 = arith.addf %63, %65 : vector<128x32xf32>
    %cst_66 = arith.constant 0.000000e+00 : f32
    %67 = vector.broadcast %cst_66 : f32 to vector<128x32xf32>
    %68 = arith.maximumf %66, %67 : vector<128x32xf32>
    %c768_67 = arith.constant 768 : index
    %c0_68 = arith.constant 0 : index
    %69 = vector.load %arg19[%c768_67, %c0_68] : memref<1024x32xf32, #tpu.memory_space<vmem>>, vector<128x32xf32>
    tpu.vector_store %arg19[%c768_67, %c0_68], %68 {strides = array<i32>} : memref<1024x32xf32, #tpu.memory_space<vmem>>, vector<128x32xf32>,
    %c0_69 = arith.constant 0 : index
    %c896 = arith.constant 896 : index
    %c0_70 = arith.constant 0 : index
    %70 = vector.load %arg2[%c0_69, %c896, %c0_70] : memref<1x1024x9xf32, #tpu.memory_space<vmem>>, vector<1x128x9xf32>
    %71 = vector.shape_cast %70 : vector<1x128x9xf32> to vector<128x9xf32>
    %c0_71 = arith.constant 0 : index
    %c0_72 = arith.constant 0 : index
    %72 = vector.load %arg3[%c0_71, %c0_72] : memref<9x32xf32, #tpu.memory_space<vmem>>, vector<9x32xf32>
    %cst_73 = arith.constant dense<0.000000e+00> : vector<128x32xf32>
    %73 = tpu.matmul %71, %72, %cst_73 {dimension_numbers = #tpu.dot_dimension_numbers<[1], [0], [0], [1], [0, 0, 1, 1], [], []>} : vector<128x9xf32>, vector<9x32xf32>, vector<128x32xf32> -> vector<128x32xf32>
    %c0_74 = arith.constant 0 : index
    %c0_75 = arith.constant 0 : index
    %74 = vector.load %arg4[%c0_74, %c0_75] : memref<1x32xf32, #tpu.memory_space<vmem>>, vector<1x32xf32>
    %75 = vector.broadcast %74 : vector<1x32xf32> to vector<128x32xf32>
    %76 = arith.addf %73, %75 : vector<128x32xf32>
    %cst_76 = arith.constant 0.000000e+00 : f32
    %77 = vector.broadcast %cst_76 : f32 to vector<128x32xf32>
    %78 = arith.maximumf %76, %77 : vector<128x32xf32>
    %c896_77 = arith.constant 896 : index
    %c0_78 = arith.constant 0 : index
    %79 = vector.load %arg19[%c896_77, %c0_78] : memref<1024x32xf32, #tpu.memory_space<vmem>>, vector<128x32xf32>
    tpu.vector_store %arg19[%c896_77, %c0_78], %78 {strides = array<i32>} : memref<1024x32xf32, #tpu.memory_space<vmem>>, vector<128x32xf32>,
    %cst_79 = arith.constant 0.000000e+00 : f32
    %80 = vector.broadcast %cst_79 : f32 to vector<440x32xf32>
    %c0_80 = arith.constant 0 : index
    %c0_81 = arith.constant 0 : index
    %81 = vector.load %arg22[%c0_80, %c0_81] : memref<440x32xf32, #tpu.memory_space<vmem>>, vector<440x32xf32>
    tpu.vector_store %arg22[%c0_80, %c0_81], %80 {strides = array<i32>} : memref<440x32xf32, #tpu.memory_space<vmem>>, vector<440x32xf32>,
    %c0_82 = arith.constant 0 : index
    %c0_83 = arith.constant 0 : index
    %82 = tpu.strided_load %arg19[%c0_82, %c0_83] {strides = array<i32: 2, 1>} : memref<1024x32xf32, #tpu.memory_space<vmem>>, vector<16x32xf32>
    %c1 = arith.constant 1 : index
    %c0_84 = arith.constant 0 : index
    %83 = tpu.strided_load %arg19[%c1, %c0_84] {strides = array<i32: 2, 1>} : memref<1024x32xf32, #tpu.memory_space<vmem>>, vector<16x32xf32>
    %84 = arith.maximumf %82, %83 : vector<16x32xf32>
    %c32 = arith.constant 32 : index
    %c0_85 = arith.constant 0 : index
    %85 = tpu.strided_load %arg19[%c32, %c0_85] {strides = array<i32: 2, 1>} : memref<1024x32xf32, #tpu.memory_space<vmem>>, vector<16x32xf32>
    %c33 = arith.constant 33 : index
    %c0_86 = arith.constant 0 : index
    %86 = tpu.strided_load %arg19[%c33, %c0_86] {strides = array<i32: 2, 1>} : memref<1024x32xf32, #tpu.memory_space<vmem>>, vector<16x32xf32>
    %87 = arith.maximumf %85, %86 : vector<16x32xf32>
    %88 = arith.maximumf %84, %87 : vector<16x32xf32>
    %c25 = arith.constant 25 : index
    %c0_87 = arith.constant 0 : index
    %89 = vector.load %arg22[%c25, %c0_87] : memref<440x32xf32, #tpu.memory_space<vmem>>, vector<16x32xf32>
    tpu.vector_store %arg22[%c25, %c0_87], %88 {strides = array<i32>} : memref<440x32xf32, #tpu.memory_space<vmem>>, vector<16x32xf32>,
    %c64 = arith.constant 64 : index
    %c0_88 = arith.constant 0 : index
    %90 = tpu.strided_load %arg19[%c64, %c0_88] {strides = array<i32: 2, 1>} : memref<1024x32xf32, #tpu.memory_space<vmem>>, vector<16x32xf32>
    %c65 = arith.constant 65 : index
    %c0_89 = arith.constant 0 : index
    %91 = tpu.strided_load %arg19[%c65, %c0_89] {strides = array<i32: 2, 1>} : memref<1024x32xf32, #tpu.memory_space<vmem>>, vector<16x32xf32>
    %92 = arith.maximumf %90, %91 : vector<16x32xf32>
    %c96 = arith.constant 96 : index
    %c0_90 = arith.constant 0 : index
    %93 = tpu.strided_load %arg19[%c96, %c0_90] {strides = array<i32: 2, 1>} : memref<1024x32xf32, #tpu.memory_space<vmem>>, vector<16x32xf32>
    %c97 = arith.constant 97 : index
    %c0_91 = arith.constant 0 : index
    %94 = tpu.strided_load %arg19[%c97, %c0_91] {strides = array<i32: 2, 1>} : memref<1024x32xf32, #tpu.memory_space<vmem>>, vector<16x32xf32>
    %95 = arith.maximumf %93, %94 : vector<16x32xf32>
    %96 = arith.maximumf %92, %95 : vector<16x32xf32>
    %c49 = arith.constant 49 : index
    %c0_92 = arith.constant 0 : index
    %97 = vector.load %arg22[%c49, %c0_92] : memref<440x32xf32, #tpu.memory_space<vmem>>, vector<16x32xf32>
    tpu.vector_store %arg22[%c49, %c0_92], %96 {strides = array<i32>} : memref<440x32xf32, #tpu.memory_space<vmem>>, vector<16x32xf32>,
    %c128_93 = arith.constant 128 : index
    %c0_94 = arith.constant 0 : index
    %98 = tpu.strided_load %arg19[%c128_93, %c0_94] {strides = array<i32: 2, 1>} : memref<1024x32xf32, #tpu.memory_space<vmem>>, vector<16x32xf32>
    %c129 = arith.constant 129 : index
    %c0_95 = arith.constant 0 : index
    %99 = tpu.strided_load %arg19[%c129, %c0_95] {strides = array<i32: 2, 1>} : memref<1024x32xf32, #tpu.memory_space<vmem>>, vector<16x32xf32>
    %100 = arith.maximumf %98, %99 : vector<16x32xf32>
    %c160 = arith.constant 160 : index
    %c0_96 = arith.constant 0 : index
    %101 = tpu.strided_load %arg19[%c160, %c0_96] {strides = array<i32: 2, 1>} : memref<1024x32xf32, #tpu.memory_space<vmem>>, vector<16x32xf32>
    %c161 = arith.constant 161 : index
    %c0_97 = arith.constant 0 : index
    %102 = tpu.strided_load %arg19[%c161, %c0_97] {strides = array<i32: 2, 1>} : memref<1024x32xf32, #tpu.memory_space<vmem>>, vector<16x32xf32>
    %103 = arith.maximumf %101, %102 : vector<16x32xf32>
    %104 = arith.maximumf %100, %103 : vector<16x32xf32>
    %c73 = arith.constant 73 : index
    %c0_98 = arith.constant 0 : index
    %105 = vector.load %arg22[%c73, %c0_98] : memref<440x32xf32, #tpu.memory_space<vmem>>, vector<16x32xf32>
    tpu.vector_store %arg22[%c73, %c0_98], %104 {strides = array<i32>} : memref<440x32xf32, #tpu.memory_space<vmem>>, vector<16x32xf32>,
    %c192 = arith.constant 192 : index
    %c0_99 = arith.constant 0 : index
    %106 = tpu.strided_load %arg19[%c192, %c0_99] {strides = array<i32: 2, 1>} : memref<1024x32xf32, #tpu.memory_space<vmem>>, vector<16x32xf32>
    %c193 = arith.constant 193 : index
    %c0_100 = arith.constant 0 : index
    %107 = tpu.strided_load %arg19[%c193, %c0_100] {strides = array<i32: 2, 1>} : memref<1024x32xf32, #tpu.memory_space<vmem>>, vector<16x32xf32>
    %108 = arith.maximumf %106, %107 : vector<16x32xf32>
    %c224 = arith.constant 224 : index
    %c0_101 = arith.constant 0 : index
    %109 = tpu.strided_load %arg19[%c224, %c0_101] {strides = array<i32: 2, 1>} : memref<1024x32xf32, #tpu.memory_space<vmem>>, vector<16x32xf32>
    %c225 = arith.constant 225 : index
    %c0_102 = arith.constant 0 : index
    %110 = tpu.strided_load %arg19[%c225, %c0_102] {strides = array<i32: 2, 1>} : memref<1024x32xf32, #tpu.memory_space<vmem>>, vector<16x32xf32>
    %111 = arith.maximumf %109, %110 : vector<16x32xf32>
    %112 = arith.maximumf %108, %111 : vector<16x32xf32>
    %c97_103 = arith.constant 97 : index
    %c0_104 = arith.constant 0 : index
    %113 = vector.load %arg22[%c97_103, %c0_104] : memref<440x32xf32, #tpu.memory_space<vmem>>, vector<16x32xf32>
    tpu.vector_store %arg22[%c97_103, %c0_104], %112 {strides = array<i32>} : memref<440x32xf32, #tpu.memory_space<vmem>>, vector<16x32xf32>,
    %c256_105 = arith.constant 256 : index
    %c0_106 = arith.constant 0 : index
    %114 = tpu.strided_load %arg19[%c256_105, %c0_106] {strides = array<i32: 2, 1>} : memref<1024x32xf32, #tpu.memory_space<vmem>>, vector<16x32xf32>
    %c257 = arith.constant 257 : index
    %c0_107 = arith.constant 0 : index
    %115 = tpu.strided_load %arg19[%c257, %c0_107] {strides = array<i32: 2, 1>} : memref<1024x32xf32, #tpu.memory_space<vmem>>, vector<16x32xf32>
    %116 = arith.maximumf %114, %115 : vector<16x32xf32>
    %c288 = arith.constant 288 : index
    %c0_108 = arith.constant 0 : index
    %117 = tpu.strided_load %arg19[%c288, %c0_108] {strides = array<i32: 2, 1>} : memref<1024x32xf32, #tpu.memory_space<vmem>>, vector<16x32xf32>
    %c289 = arith.constant 289 : index
    %c0_109 = arith.constant 0 : index
    %118 = tpu.strided_load %arg19[%c289, %c0_109] {strides = array<i32: 2, 1>} : memref<1024x32xf32, #tpu.memory_space<vmem>>, vector<16x32xf32>
    %119 = arith.maximumf %117, %118 : vector<16x32xf32>
    %120 = arith.maximumf %116, %119 : vector<16x32xf32>
    %c121 = arith.constant 121 : index
    %c0_110 = arith.constant 0 : index
    %121 = vector.load %arg22[%c121, %c0_110] : memref<440x32xf32, #tpu.memory_space<vmem>>, vector<16x32xf32>
    tpu.vector_store %arg22[%c121, %c0_110], %120 {strides = array<i32>} : memref<440x32xf32, #tpu.memory_space<vmem>>, vector<16x32xf32>,
    %c320 = arith.constant 320 : index
    %c0_111 = arith.constant 0 : index
    %122 = tpu.strided_load %arg19[%c320, %c0_111] {strides = array<i32: 2, 1>} : memref<1024x32xf32, #tpu.memory_space<vmem>>, vector<16x32xf32>
    %c321 = arith.constant 321 : index
    %c0_112 = arith.constant 0 : index
    %123 = tpu.strided_load %arg19[%c321, %c0_112] {strides = array<i32: 2, 1>} : memref<1024x32xf32, #tpu.memory_space<vmem>>, vector<16x32xf32>
    %124 = arith.maximumf %122, %123 : vector<16x32xf32>
    %c352 = arith.constant 352 : index
    %c0_113 = arith.constant 0 : index
    %125 = tpu.strided_load %arg19[%c352, %c0_113] {strides = array<i32: 2, 1>} : memref<1024x32xf32, #tpu.memory_space<vmem>>, vector<16x32xf32>
    %c353 = arith.constant 353 : index
    %c0_114 = arith.constant 0 : index
    %126 = tpu.strided_load %arg19[%c353, %c0_114] {strides = array<i32: 2, 1>} : memref<1024x32xf32, #tpu.memory_space<vmem>>, vector<16x32xf32>
    %127 = arith.maximumf %125, %126 : vector<16x32xf32>
    %128 = arith.maximumf %124, %127 : vector<16x32xf32>
    %c145 = arith.constant 145 : index
    %c0_115 = arith.constant 0 : index
    %129 = vector.load %arg22[%c145, %c0_115] : memref<440x32xf32, #tpu.memory_space<vmem>>, vector<16x32xf32>
    tpu.vector_store %arg22[%c145, %c0_115], %128 {strides = array<i32>} : memref<440x32xf32, #tpu.memory_space<vmem>>, vector<16x32xf32>,
    %c384_116 = arith.constant 384 : index
    %c0_117 = arith.constant 0 : index
    %130 = tpu.strided_load %arg19[%c384_116, %c0_117] {strides = array<i32: 2, 1>} : memref<1024x32xf32, #tpu.memory_space<vmem>>, vector<16x32xf32>
    %c385 = arith.constant 385 : index
    %c0_118 = arith.constant 0 : index
    %131 = tpu.strided_load %arg19[%c385, %c0_118] {strides = array<i32: 2, 1>} : memref<1024x32xf32, #tpu.memory_space<vmem>>, vector<16x32xf32>
    %132 = arith.maximumf %130, %131 : vector<16x32xf32>
    %c416 = arith.constant 416 : index
    %c0_119 = arith.constant 0 : index
    %133 = tpu.strided_load %arg19[%c416, %c0_119] {strides = array<i32: 2, 1>} : memref<1024x32xf32, #tpu.memory_space<vmem>>, vector<16x32xf32>
    %c417 = arith.constant 417 : index
    %c0_120 = arith.constant 0 : index
    %134 = tpu.strided_load %arg19[%c417, %c0_120] {strides = array<i32: 2, 1>} : memref<1024x32xf32, #tpu.memory_space<vmem>>, vector<16x32xf32>
    %135 = arith.maximumf %133, %134 : vector<16x32xf32>
    %136 = arith.maximumf %132, %135 : vector<16x32xf32>
    %c169 = arith.constant 169 : index
    %c0_121 = arith.constant 0 : index
    %137 = vector.load %arg22[%c169, %c0_121] : memref<440x32xf32, #tpu.memory_space<vmem>>, vector<16x32xf32>
    tpu.vector_store %arg22[%c169, %c0_121], %136 {strides = array<i32>} : memref<440x32xf32, #tpu.memory_space<vmem>>, vector<16x32xf32>,
    %c448 = arith.constant 448 : index
    %c0_122 = arith.constant 0 : index
    %138 = tpu.strided_load %arg19[%c448, %c0_122] {strides = array<i32: 2, 1>} : memref<1024x32xf32, #tpu.memory_space<vmem>>, vector<16x32xf32>
    %c449 = arith.constant 449 : index
    %c0_123 = arith.constant 0 : index
    %139 = tpu.strided_load %arg19[%c449, %c0_123] {strides = array<i32: 2, 1>} : memref<1024x32xf32, #tpu.memory_space<vmem>>, vector<16x32xf32>
    %140 = arith.maximumf %138, %139 : vector<16x32xf32>
    %c480 = arith.constant 480 : index
    %c0_124 = arith.constant 0 : index
    %141 = tpu.strided_load %arg19[%c480, %c0_124] {strides = array<i32: 2, 1>} : memref<1024x32xf32, #tpu.memory_space<vmem>>, vector<16x32xf32>
    %c481 = arith.constant 481 : index
    %c0_125 = arith.constant 0 : index
    %142 = tpu.strided_load %arg19[%c481, %c0_125] {strides = array<i32: 2, 1>} : memref<1024x32xf32, #tpu.memory_space<vmem>>, vector<16x32xf32>
    %143 = arith.maximumf %141, %142 : vector<16x32xf32>
    %144 = arith.maximumf %140, %143 : vector<16x32xf32>
    %c193_126 = arith.constant 193 : index
    %c0_127 = arith.constant 0 : index
    %145 = vector.load %arg22[%c193_126, %c0_127] : memref<440x32xf32, #tpu.memory_space<vmem>>, vector<16x32xf32>
    tpu.vector_store %arg22[%c193_126, %c0_127], %144 {strides = array<i32>} : memref<440x32xf32, #tpu.memory_space<vmem>>, vector<16x32xf32>,
    %c512_128 = arith.constant 512 : index
    %c0_129 = arith.constant 0 : index
    %146 = tpu.strided_load %arg19[%c512_128, %c0_129] {strides = array<i32: 2, 1>} : memref<1024x32xf32, #tpu.memory_space<vmem>>, vector<16x32xf32>
    %c513 = arith.constant 513 : index
    %c0_130 = arith.constant 0 : index
    %147 = tpu.strided_load %arg19[%c513, %c0_130] {strides = array<i32: 2, 1>} : memref<1024x32xf32, #tpu.memory_space<vmem>>, vector<16x32xf32>
    %148 = arith.maximumf %146, %147 : vector<16x32xf32>
    %c544 = arith.constant 544 : index
    %c0_131 = arith.constant 0 : index
    %149 = tpu.strided_load %arg19[%c544, %c0_131] {strides = array<i32: 2, 1>} : memref<1024x32xf32, #tpu.memory_space<vmem>>, vector<16x32xf32>
    %c545 = arith.constant 545 : index
    %c0_132 = arith.constant 0 : index
    %150 = tpu.strided_load %arg19[%c545, %c0_132] {strides = array<i32: 2, 1>} : memref<1024x32xf32, #tpu.memory_space<vmem>>, vector<16x32xf32>
    %151 = arith.maximumf %149, %150 : vector<16x32xf32>
    %152 = arith.maximumf %148, %151 : vector<16x32xf32>
    %c217 = arith.constant 217 : index
    %c0_133 = arith.constant 0 : index
    %153 = vector.load %arg22[%c217, %c0_133] : memref<440x32xf32, #tpu.memory_space<vmem>>, vector<16x32xf32>
    tpu.vector_store %arg22[%c217, %c0_133], %152 {strides = array<i32>} : memref<440x32xf32, #tpu.memory_space<vmem>>, vector<16x32xf32>,
    %c576 = arith.constant 576 : index
    %c0_134 = arith.constant 0 : index
    %154 = tpu.strided_load %arg19[%c576, %c0_134] {strides = array<i32: 2, 1>} : memref<1024x32xf32, #tpu.memory_space<vmem>>, vector<16x32xf32>
    %c577 = arith.constant 577 : index
    %c0_135 = arith.constant 0 : index
    %155 = tpu.strided_load %arg19[%c577, %c0_135] {strides = array<i32: 2, 1>} : memref<1024x32xf32, #tpu.memory_space<vmem>>, vector<16x32xf32>
    %156 = arith.maximumf %154, %155 : vector<16x32xf32>
    %c608 = arith.constant 608 : index
    %c0_136 = arith.constant 0 : index
    %157 = tpu.strided_load %arg19[%c608, %c0_136] {strides = array<i32: 2, 1>} : memref<1024x32xf32, #tpu.memory_space<vmem>>, vector<16x32xf32>
    %c609 = arith.constant 609 : index
    %c0_137 = arith.constant 0 : index
    %158 = tpu.strided_load %arg19[%c609, %c0_137] {strides = array<i32: 2, 1>} : memref<1024x32xf32, #tpu.memory_space<vmem>>, vector<16x32xf32>
    %159 = arith.maximumf %157, %158 : vector<16x32xf32>
    %160 = arith.maximumf %156, %159 : vector<16x32xf32>
    %c241 = arith.constant 241 : index
    %c0_138 = arith.constant 0 : index
    %161 = vector.load %arg22[%c241, %c0_138] : memref<440x32xf32, #tpu.memory_space<vmem>>, vector<16x32xf32>
    tpu.vector_store %arg22[%c241, %c0_138], %160 {strides = array<i32>} : memref<440x32xf32, #tpu.memory_space<vmem>>, vector<16x32xf32>,
    %c640_139 = arith.constant 640 : index
    %c0_140 = arith.constant 0 : index
    %162 = tpu.strided_load %arg19[%c640_139, %c0_140] {strides = array<i32: 2, 1>} : memref<1024x32xf32, #tpu.memory_space<vmem>>, vector<16x32xf32>
    %c641 = arith.constant 641 : index
    %c0_141 = arith.constant 0 : index
    %163 = tpu.strided_load %arg19[%c641, %c0_141] {strides = array<i32: 2, 1>} : memref<1024x32xf32, #tpu.memory_space<vmem>>, vector<16x32xf32>
    %164 = arith.maximumf %162, %163 : vector<16x32xf32>
    %c672 = arith.constant 672 : index
    %c0_142 = arith.constant 0 : index
    %165 = tpu.strided_load %arg19[%c672, %c0_142] {strides = array<i32: 2, 1>} : memref<1024x32xf32, #tpu.memory_space<vmem>>, vector<16x32xf32>
    %c673 = arith.constant 673 : index
    %c0_143 = arith.constant 0 : index
    %166 = tpu.strided_load %arg19[%c673, %c0_143] {strides = array<i32: 2, 1>} : memref<1024x32xf32, #tpu.memory_space<vmem>>, vector<16x32xf32>
    %167 = arith.maximumf %165, %166 : vector<16x32xf32>
    %168 = arith.maximumf %164, %167 : vector<16x32xf32>
    %c265 = arith.constant 265 : index
    %c0_144 = arith.constant 0 : index
    %169 = vector.load %arg22[%c265, %c0_144] : memref<440x32xf32, #tpu.memory_space<vmem>>, vector<16x32xf32>
    tpu.vector_store %arg22[%c265, %c0_144], %168 {strides = array<i32>} : memref<440x32xf32, #tpu.memory_space<vmem>>, vector<16x32xf32>,
    %c704 = arith.constant 704 : index
    %c0_145 = arith.constant 0 : index
    %170 = tpu.strided_load %arg19[%c704, %c0_145] {strides = array<i32: 2, 1>} : memref<1024x32xf32, #tpu.memory_space<vmem>>, vector<16x32xf32>
    %c705 = arith.constant 705 : index
    %c0_146 = arith.constant 0 : index
    %171 = tpu.strided_load %arg19[%c705, %c0_146] {strides = array<i32: 2, 1>} : memref<1024x32xf32, #tpu.memory_space<vmem>>, vector<16x32xf32>
    %172 = arith.maximumf %170, %171 : vector<16x32xf32>
    %c736 = arith.constant 736 : index
    %c0_147 = arith.constant 0 : index
    %173 = tpu.strided_load %arg19[%c736, %c0_147] {strides = array<i32: 2, 1>} : memref<1024x32xf32, #tpu.memory_space<vmem>>, vector<16x32xf32>
    %c737 = arith.constant 737 : index
    %c0_148 = arith.constant 0 : index
    %174 = tpu.strided_load %arg19[%c737, %c0_148] {strides = array<i32: 2, 1>} : memref<1024x32xf32, #tpu.memory_space<vmem>>, vector<16x32xf32>
    %175 = arith.maximumf %173, %174 : vector<16x32xf32>
    %176 = arith.maximumf %172, %175 : vector<16x32xf32>
    %c289_149 = arith.constant 289 : index
    %c0_150 = arith.constant 0 : index
    %177 = vector.load %arg22[%c289_149, %c0_150] : memref<440x32xf32, #tpu.memory_space<vmem>>, vector<16x32xf32>
    tpu.vector_store %arg22[%c289_149, %c0_150], %176 {strides = array<i32>} : memref<440x32xf32, #tpu.memory_space<vmem>>, vector<16x32xf32>,
    %c768_151 = arith.constant 768 : index
    %c0_152 = arith.constant 0 : index
    %178 = tpu.strided_load %arg19[%c768_151, %c0_152] {strides = array<i32: 2, 1>} : memref<1024x32xf32, #tpu.memory_space<vmem>>, vector<16x32xf32>
    %c769 = arith.constant 769 : index
    %c0_153 = arith.constant 0 : index
    %179 = tpu.strided_load %arg19[%c769, %c0_153] {strides = array<i32: 2, 1>} : memref<1024x32xf32, #tpu.memory_space<vmem>>, vector<16x32xf32>
    %180 = arith.maximumf %178, %179 : vector<16x32xf32>
    %c800 = arith.constant 800 : index
    %c0_154 = arith.constant 0 : index
    %181 = tpu.strided_load %arg19[%c800, %c0_154] {strides = array<i32: 2, 1>} : memref<1024x32xf32, #tpu.memory_space<vmem>>, vector<16x32xf32>
    %c801 = arith.constant 801 : index
    %c0_155 = arith.constant 0 : index
    %182 = tpu.strided_load %arg19[%c801, %c0_155] {strides = array<i32: 2, 1>} : memref<1024x32xf32, #tpu.memory_space<vmem>>, vector<16x32xf32>
    %183 = arith.maximumf %181, %182 : vector<16x32xf32>
    %184 = arith.maximumf %180, %183 : vector<16x32xf32>
    %c313 = arith.constant 313 : index
    %c0_156 = arith.constant 0 : index
    %185 = vector.load %arg22[%c313, %c0_156] : memref<440x32xf32, #tpu.memory_space<vmem>>, vector<16x32xf32>
    tpu.vector_store %arg22[%c313, %c0_156], %184 {strides = array<i32>} : memref<440x32xf32, #tpu.memory_space<vmem>>, vector<16x32xf32>,
    %c832 = arith.constant 832 : index
    %c0_157 = arith.constant 0 : index
    %186 = tpu.strided_load %arg19[%c832, %c0_157] {strides = array<i32: 2, 1>} : memref<1024x32xf32, #tpu.memory_space<vmem>>, vector<16x32xf32>
    %c833 = arith.constant 833 : index
    %c0_158 = arith.constant 0 : index
    %187 = tpu.strided_load %arg19[%c833, %c0_158] {strides = array<i32: 2, 1>} : memref<1024x32xf32, #tpu.memory_space<vmem>>, vector<16x32xf32>
    %188 = arith.maximumf %186, %187 : vector<16x32xf32>
    %c864 = arith.constant 864 : index
    %c0_159 = arith.constant 0 : index
    %189 = tpu.strided_load %arg19[%c864, %c0_159] {strides = array<i32: 2, 1>} : memref<1024x32xf32, #tpu.memory_space<vmem>>, vector<16x32xf32>
    %c865 = arith.constant 865 : index
    %c0_160 = arith.constant 0 : index
    %190 = tpu.strided_load %arg19[%c865, %c0_160] {strides = array<i32: 2, 1>} : memref<1024x32xf32, #tpu.memory_space<vmem>>, vector<16x32xf32>
    %191 = arith.maximumf %189, %190 : vector<16x32xf32>
    %192 = arith.maximumf %188, %191 : vector<16x32xf32>
    %c337 = arith.constant 337 : index
    %c0_161 = arith.constant 0 : index
    %193 = vector.load %arg22[%c337, %c0_161] : memref<440x32xf32, #tpu.memory_space<vmem>>, vector<16x32xf32>
    tpu.vector_store %arg22[%c337, %c0_161], %192 {strides = array<i32>} : memref<440x32xf32, #tpu.memory_space<vmem>>, vector<16x32xf32>,
    %c896_162 = arith.constant 896 : index
    %c0_163 = arith.constant 0 : index
    %194 = tpu.strided_load %arg19[%c896_162, %c0_163] {strides = array<i32: 2, 1>} : memref<1024x32xf32, #tpu.memory_space<vmem>>, vector<16x32xf32>
    %c897 = arith.constant 897 : index
    %c0_164 = arith.constant 0 : index
    %195 = tpu.strided_load %arg19[%c897, %c0_164] {strides = array<i32: 2, 1>} : memref<1024x32xf32, #tpu.memory_space<vmem>>, vector<16x32xf32>
    %196 = arith.maximumf %194, %195 : vector<16x32xf32>
    %c928 = arith.constant 928 : index
    %c0_165 = arith.constant 0 : index
    %197 = tpu.strided_load %arg19[%c928, %c0_165] {strides = array<i32: 2, 1>} : memref<1024x32xf32, #tpu.memory_space<vmem>>, vector<16x32xf32>
    %c929 = arith.constant 929 : index
    %c0_166 = arith.constant 0 : index
    %198 = tpu.strided_load %arg19[%c929, %c0_166] {strides = array<i32: 2, 1>} : memref<1024x32xf32, #tpu.memory_space<vmem>>, vector<16x32xf32>
    %199 = arith.maximumf %197, %198 : vector<16x32xf32>
    %200 = arith.maximumf %196, %199 : vector<16x32xf32>
    %c361 = arith.constant 361 : index
    %c0_167 = arith.constant 0 : index
    %201 = vector.load %arg22[%c361, %c0_167] : memref<440x32xf32, #tpu.memory_space<vmem>>, vector<16x32xf32>
    tpu.vector_store %arg22[%c361, %c0_167], %200 {strides = array<i32>} : memref<440x32xf32, #tpu.memory_space<vmem>>, vector<16x32xf32>,
    %c960 = arith.constant 960 : index
    %c0_168 = arith.constant 0 : index
    %202 = tpu.strided_load %arg19[%c960, %c0_168] {strides = array<i32: 2, 1>} : memref<1024x32xf32, #tpu.memory_space<vmem>>, vector<16x32xf32>
    %c961 = arith.constant 961 : index
    %c0_169 = arith.constant 0 : index
    %203 = tpu.strided_load %arg19[%c961, %c0_169] {strides = array<i32: 2, 1>} : memref<1024x32xf32, #tpu.memory_space<vmem>>, vector<16x32xf32>
    %204 = arith.maximumf %202, %203 : vector<16x32xf32>
    %c992 = arith.constant 992 : index
    %c0_170 = arith.constant 0 : index
    %205 = tpu.strided_load %arg19[%c992, %c0_170] {strides = array<i32: 2, 1>} : memref<1024x32xf32, #tpu.memory_space<vmem>>, vector<16x32xf32>
    %c993 = arith.constant 993 : index
    %c0_171 = arith.constant 0 : index
    %206 = tpu.strided_load %arg19[%c993, %c0_171] {strides = array<i32: 2, 1>} : memref<1024x32xf32, #tpu.memory_space<vmem>>, vector<16x32xf32>
    %207 = arith.maximumf %205, %206 : vector<16x32xf32>
    %208 = arith.maximumf %204, %207 : vector<16x32xf32>
    %c385_172 = arith.constant 385 : index
    %c0_173 = arith.constant 0 : index
    %209 = vector.load %arg22[%c385_172, %c0_173] : memref<440x32xf32, #tpu.memory_space<vmem>>, vector<16x32xf32>
    tpu.vector_store %arg22[%c385_172, %c0_173], %208 {strides = array<i32>} : memref<440x32xf32, #tpu.memory_space<vmem>>, vector<16x32xf32>,
    %cst_174 = arith.constant 0.000000e+00 : f32
    %210 = vector.broadcast %cst_174 : f32 to vector<128x64xf32>
    %c0_175 = arith.constant 0 : index
    %c0_176 = arith.constant 0 : index
    %211 = vector.load %arg22[%c0_175, %c0_176] : memref<440x32xf32, #tpu.memory_space<vmem>>, vector<128x32xf32>
    %c0_177 = arith.constant 0 : index
    %c0_178 = arith.constant 0 : index
    %c0_179 = arith.constant 0 : index
    %212 = vector.load %arg5[%c0_177, %c0_178, %c0_179] : memref<9x32x64xf32, #tpu.memory_space<vmem>>, vector<1x32x64xf32>
    %213 = vector.shape_cast %212 : vector<1x32x64xf32> to vector<32x64xf32>
    %cst_180 = arith.constant dense<0.000000e+00> : vector<128x64xf32>
    %214 = tpu.matmul %211, %213, %cst_180 {dimension_numbers = #tpu.dot_dimension_numbers<[1], [0], [0], [1], [0, 0, 1, 1], [], []>} : vector<128x32xf32>, vector<32x64xf32>, vector<128x64xf32> -> vector<128x64xf32>
    %215 = arith.addf %210, %214 : vector<128x64xf32>
    %c1_181 = arith.constant 1 : index
    %c0_182 = arith.constant 0 : index
    %216 = vector.load %arg22[%c1_181, %c0_182] : memref<440x32xf32, #tpu.memory_space<vmem>>, vector<128x32xf32>
    %c1_183 = arith.constant 1 : index
    %c0_184 = arith.constant 0 : index
    %c0_185 = arith.constant 0 : index
    %217 = vector.load %arg5[%c1_183, %c0_184, %c0_185] : memref<9x32x64xf32, #tpu.memory_space<vmem>>, vector<1x32x64xf32>
    %218 = vector.shape_cast %217 : vector<1x32x64xf32> to vector<32x64xf32>
    %cst_186 = arith.constant dense<0.000000e+00> : vector<128x64xf32>
    %219 = tpu.matmul %216, %218, %cst_186 {dimension_numbers = #tpu.dot_dimension_numbers<[1], [0], [0], [1], [0, 0, 1, 1], [], []>} : vector<128x32xf32>, vector<32x64xf32>, vector<128x64xf32> -> vector<128x64xf32>
    %220 = arith.addf %215, %219 : vector<128x64xf32>
    %c2 = arith.constant 2 : index
    %c0_187 = arith.constant 0 : index
    %221 = vector.load %arg22[%c2, %c0_187] : memref<440x32xf32, #tpu.memory_space<vmem>>, vector<128x32xf32>
    %c2_188 = arith.constant 2 : index
    %c0_189 = arith.constant 0 : index
    %c0_190 = arith.constant 0 : index
    %222 = vector.load %arg5[%c2_188, %c0_189, %c0_190] : memref<9x32x64xf32, #tpu.memory_space<vmem>>, vector<1x32x64xf32>
    %223 = vector.shape_cast %222 : vector<1x32x64xf32> to vector<32x64xf32>
    %cst_191 = arith.constant dense<0.000000e+00> : vector<128x64xf32>
    %224 = tpu.matmul %221, %223, %cst_191 {dimension_numbers = #tpu.dot_dimension_numbers<[1], [0], [0], [1], [0, 0, 1, 1], [], []>} : vector<128x32xf32>, vector<32x64xf32>, vector<128x64xf32> -> vector<128x64xf32>
    %225 = arith.addf %220, %224 : vector<128x64xf32>
    %c24 = arith.constant 24 : index
    %c0_192 = arith.constant 0 : index
    %226 = vector.load %arg22[%c24, %c0_192] : memref<440x32xf32, #tpu.memory_space<vmem>>, vector<128x32xf32>
    %c3 = arith.constant 3 : index
    %c0_193 = arith.constant 0 : index
    %c0_194 = arith.constant 0 : index
    %227 = vector.load %arg5[%c3, %c0_193, %c0_194] : memref<9x32x64xf32, #tpu.memory_space<vmem>>, vector<1x32x64xf32>
    %228 = vector.shape_cast %227 : vector<1x32x64xf32> to vector<32x64xf32>
    %cst_195 = arith.constant dense<0.000000e+00> : vector<128x64xf32>
    %229 = tpu.matmul %226, %228, %cst_195 {dimension_numbers = #tpu.dot_dimension_numbers<[1], [0], [0], [1], [0, 0, 1, 1], [], []>} : vector<128x32xf32>, vector<32x64xf32>, vector<128x64xf32> -> vector<128x64xf32>
    %230 = arith.addf %225, %229 : vector<128x64xf32>
    %c25_196 = arith.constant 25 : index
    %c0_197 = arith.constant 0 : index
    %231 = vector.load %arg22[%c25_196, %c0_197] : memref<440x32xf32, #tpu.memory_space<vmem>>, vector<128x32xf32>
    %c4 = arith.constant 4 : index
    %c0_198 = arith.constant 0 : index
    %c0_199 = arith.constant 0 : index
    %232 = vector.load %arg5[%c4, %c0_198, %c0_199] : memref<9x32x64xf32, #tpu.memory_space<vmem>>, vector<1x32x64xf32>
    %233 = vector.shape_cast %232 : vector<1x32x64xf32> to vector<32x64xf32>
    %cst_200 = arith.constant dense<0.000000e+00> : vector<128x64xf32>
    %234 = tpu.matmul %231, %233, %cst_200 {dimension_numbers = #tpu.dot_dimension_numbers<[1], [0], [0], [1], [0, 0, 1, 1], [], []>} : vector<128x32xf32>, vector<32x64xf32>, vector<128x64xf32> -> vector<128x64xf32>
    %235 = arith.addf %230, %234 : vector<128x64xf32>
    %c26 = arith.constant 26 : index
    %c0_201 = arith.constant 0 : index
    %236 = vector.load %arg22[%c26, %c0_201] : memref<440x32xf32, #tpu.memory_space<vmem>>, vector<128x32xf32>
    %c5 = arith.constant 5 : index
    %c0_202 = arith.constant 0 : index
    %c0_203 = arith.constant 0 : index
    %237 = vector.load %arg5[%c5, %c0_202, %c0_203] : memref<9x32x64xf32, #tpu.memory_space<vmem>>, vector<1x32x64xf32>
    %238 = vector.shape_cast %237 : vector<1x32x64xf32> to vector<32x64xf32>
    %cst_204 = arith.constant dense<0.000000e+00> : vector<128x64xf32>
    %239 = tpu.matmul %236, %238, %cst_204 {dimension_numbers = #tpu.dot_dimension_numbers<[1], [0], [0], [1], [0, 0, 1, 1], [], []>} : vector<128x32xf32>, vector<32x64xf32>, vector<128x64xf32> -> vector<128x64xf32>
    %240 = arith.addf %235, %239 : vector<128x64xf32>
    %c48 = arith.constant 48 : index
    %c0_205 = arith.constant 0 : index
    %241 = vector.load %arg22[%c48, %c0_205] : memref<440x32xf32, #tpu.memory_space<vmem>>, vector<128x32xf32>
    %c6 = arith.constant 6 : index
    %c0_206 = arith.constant 0 : index
    %c0_207 = arith.constant 0 : index
    %242 = vector.load %arg5[%c6, %c0_206, %c0_207] : memref<9x32x64xf32, #tpu.memory_space<vmem>>, vector<1x32x64xf32>
    %243 = vector.shape_cast %242 : vector<1x32x64xf32> to vector<32x64xf32>
    %cst_208 = arith.constant dense<0.000000e+00> : vector<128x64xf32>
    %244 = tpu.matmul %241, %243, %cst_208 {dimension_numbers = #tpu.dot_dimension_numbers<[1], [0], [0], [1], [0, 0, 1, 1], [], []>} : vector<128x32xf32>, vector<32x64xf32>, vector<128x64xf32> -> vector<128x64xf32>
    %245 = arith.addf %240, %244 : vector<128x64xf32>
    %c49_209 = arith.constant 49 : index
    %c0_210 = arith.constant 0 : index
    %246 = vector.load %arg22[%c49_209, %c0_210] : memref<440x32xf32, #tpu.memory_space<vmem>>, vector<128x32xf32>
    %c7 = arith.constant 7 : index
    %c0_211 = arith.constant 0 : index
    %c0_212 = arith.constant 0 : index
    %247 = vector.load %arg5[%c7, %c0_211, %c0_212] : memref<9x32x64xf32, #tpu.memory_space<vmem>>, vector<1x32x64xf32>
    %248 = vector.shape_cast %247 : vector<1x32x64xf32> to vector<32x64xf32>
    %cst_213 = arith.constant dense<0.000000e+00> : vector<128x64xf32>
    %249 = tpu.matmul %246, %248, %cst_213 {dimension_numbers = #tpu.dot_dimension_numbers<[1], [0], [0], [1], [0, 0, 1, 1], [], []>} : vector<128x32xf32>, vector<32x64xf32>, vector<128x64xf32> -> vector<128x64xf32>
    %250 = arith.addf %245, %249 : vector<128x64xf32>
    %c50 = arith.constant 50 : index
    %c0_214 = arith.constant 0 : index
    %251 = vector.load %arg22[%c50, %c0_214] : memref<440x32xf32, #tpu.memory_space<vmem>>, vector<128x32xf32>
    %c8 = arith.constant 8 : index
    %c0_215 = arith.constant 0 : index
    %c0_216 = arith.constant 0 : index
    %252 = vector.load %arg5[%c8, %c0_215, %c0_216] : memref<9x32x64xf32, #tpu.memory_space<vmem>>, vector<1x32x64xf32>
    %253 = vector.shape_cast %252 : vector<1x32x64xf32> to vector<32x64xf32>
    %cst_217 = arith.constant dense<0.000000e+00> : vector<128x64xf32>
    %254 = tpu.matmul %251, %253, %cst_217 {dimension_numbers = #tpu.dot_dimension_numbers<[1], [0], [0], [1], [0, 0, 1, 1], [], []>} : vector<128x32xf32>, vector<32x64xf32>, vector<128x64xf32> -> vector<128x64xf32>
    %255 = arith.addf %250, %254 : vector<128x64xf32>
    %c0_218 = arith.constant 0 : index
    %c0_219 = arith.constant 0 : index
    %256 = vector.load %arg6[%c0_218, %c0_219] : memref<1x64xf32, #tpu.memory_space<vmem>>, vector<1x64xf32>
    %257 = vector.broadcast %256 : vector<1x64xf32> to vector<128x64xf32>
    %258 = arith.addf %255, %257 : vector<128x64xf32>
    %cst_220 = arith.constant 0.000000e+00 : f32
    %259 = vector.broadcast %cst_220 : f32 to vector<128x64xf32>
    %260 = arith.maximumf %258, %259 : vector<128x64xf32>
    %c0_221 = arith.constant 0 : index
    %c0_222 = arith.constant 0 : index
    %261 = vector.load %arg20[%c0_221, %c0_222] : memref<384x64xf32, #tpu.memory_space<vmem>>, vector<128x64xf32>
    tpu.vector_store %arg20[%c0_221, %c0_222], %260 {strides = array<i32>} : memref<384x64xf32, #tpu.memory_space<vmem>>, vector<128x64xf32>,
    %cst_223 = arith.constant 0.000000e+00 : f32
    %262 = vector.broadcast %cst_223 : f32 to vector<128x64xf32>
    %c128_224 = arith.constant 128 : index
    %c0_225 = arith.constant 0 : index
    %263 = vector.load %arg22[%c128_224, %c0_225] : memref<440x32xf32, #tpu.memory_space<vmem>>, vector<128x32xf32>
    %c0_226 = arith.constant 0 : index
    %c0_227 = arith.constant 0 : index
    %c0_228 = arith.constant 0 : index
    %264 = vector.load %arg5[%c0_226, %c0_227, %c0_228] : memref<9x32x64xf32, #tpu.memory_space<vmem>>, vector<1x32x64xf32>
    %265 = vector.shape_cast %264 : vector<1x32x64xf32> to vector<32x64xf32>
    %cst_229 = arith.constant dense<0.000000e+00> : vector<128x64xf32>
    %266 = tpu.matmul %263, %265, %cst_229 {dimension_numbers = #tpu.dot_dimension_numbers<[1], [0], [0], [1], [0, 0, 1, 1], [], []>} : vector<128x32xf32>, vector<32x64xf32>, vector<128x64xf32> -> vector<128x64xf32>
    %267 = arith.addf %262, %266 : vector<128x64xf32>
    %c129_230 = arith.constant 129 : index
    %c0_231 = arith.constant 0 : index
    %268 = vector.load %arg22[%c129_230, %c0_231] : memref<440x32xf32, #tpu.memory_space<vmem>>, vector<128x32xf32>
    %c1_232 = arith.constant 1 : index
    %c0_233 = arith.constant 0 : index
    %c0_234 = arith.constant 0 : index
    %269 = vector.load %arg5[%c1_232, %c0_233, %c0_234] : memref<9x32x64xf32, #tpu.memory_space<vmem>>, vector<1x32x64xf32>
    %270 = vector.shape_cast %269 : vector<1x32x64xf32> to vector<32x64xf32>
    %cst_235 = arith.constant dense<0.000000e+00> : vector<128x64xf32>
    %271 = tpu.matmul %268, %270, %cst_235 {dimension_numbers = #tpu.dot_dimension_numbers<[1], [0], [0], [1], [0, 0, 1, 1], [], []>} : vector<128x32xf32>, vector<32x64xf32>, vector<128x64xf32> -> vector<128x64xf32>
    %272 = arith.addf %267, %271 : vector<128x64xf32>
    %c130 = arith.constant 130 : index
    %c0_236 = arith.constant 0 : index
    %273 = vector.load %arg22[%c130, %c0_236] : memref<440x32xf32, #tpu.memory_space<vmem>>, vector<128x32xf32>
    %c2_237 = arith.constant 2 : index
    %c0_238 = arith.constant 0 : index
    %c0_239 = arith.constant 0 : index
    %274 = vector.load %arg5[%c2_237, %c0_238, %c0_239] : memref<9x32x64xf32, #tpu.memory_space<vmem>>, vector<1x32x64xf32>
    %275 = vector.shape_cast %274 : vector<1x32x64xf32> to vector<32x64xf32>
    %cst_240 = arith.constant dense<0.000000e+00> : vector<128x64xf32>
    %276 = tpu.matmul %273, %275, %cst_240 {dimension_numbers = #tpu.dot_dimension_numbers<[1], [0], [0], [1], [0, 0, 1, 1], [], []>} : vector<128x32xf32>, vector<32x64xf32>, vector<128x64xf32> -> vector<128x64xf32>
    %277 = arith.addf %272, %276 : vector<128x64xf32>
    %c152 = arith.constant 152 : index
    %c0_241 = arith.constant 0 : index
    %278 = vector.load %arg22[%c152, %c0_241] : memref<440x32xf32, #tpu.memory_space<vmem>>, vector<128x32xf32>
    %c3_242 = arith.constant 3 : index
    %c0_243 = arith.constant 0 : index
    %c0_244 = arith.constant 0 : index
    %279 = vector.load %arg5[%c3_242, %c0_243, %c0_244] : memref<9x32x64xf32, #tpu.memory_space<vmem>>, vector<1x32x64xf32>
    %280 = vector.shape_cast %279 : vector<1x32x64xf32> to vector<32x64xf32>
    %cst_245 = arith.constant dense<0.000000e+00> : vector<128x64xf32>
    %281 = tpu.matmul %278, %280, %cst_245 {dimension_numbers = #tpu.dot_dimension_numbers<[1], [0], [0], [1], [0, 0, 1, 1], [], []>} : vector<128x32xf32>, vector<32x64xf32>, vector<128x64xf32> -> vector<128x64xf32>
    %282 = arith.addf %277, %281 : vector<128x64xf32>
    %c153 = arith.constant 153 : index
    %c0_246 = arith.constant 0 : index
    %283 = vector.load %arg22[%c153, %c0_246] : memref<440x32xf32, #tpu.memory_space<vmem>>, vector<128x32xf32>
    %c4_247 = arith.constant 4 : index
    %c0_248 = arith.constant 0 : index
    %c0_249 = arith.constant 0 : index
    %284 = vector.load %arg5[%c4_247, %c0_248, %c0_249] : memref<9x32x64xf32, #tpu.memory_space<vmem>>, vector<1x32x64xf32>
    %285 = vector.shape_cast %284 : vector<1x32x64xf32> to vector<32x64xf32>
    %cst_250 = arith.constant dense<0.000000e+00> : vector<128x64xf32>
    %286 = tpu.matmul %283, %285, %cst_250 {dimension_numbers = #tpu.dot_dimension_numbers<[1], [0], [0], [1], [0, 0, 1, 1], [], []>} : vector<128x32xf32>, vector<32x64xf32>, vector<128x64xf32> -> vector<128x64xf32>
    %287 = arith.addf %282, %286 : vector<128x64xf32>
    %c154 = arith.constant 154 : index
    %c0_251 = arith.constant 0 : index
    %288 = vector.load %arg22[%c154, %c0_251] : memref<440x32xf32, #tpu.memory_space<vmem>>, vector<128x32xf32>
    %c5_252 = arith.constant 5 : index
    %c0_253 = arith.constant 0 : index
    %c0_254 = arith.constant 0 : index
    %289 = vector.load %arg5[%c5_252, %c0_253, %c0_254] : memref<9x32x64xf32, #tpu.memory_space<vmem>>, vector<1x32x64xf32>
    %290 = vector.shape_cast %289 : vector<1x32x64xf32> to vector<32x64xf32>
    %cst_255 = arith.constant dense<0.000000e+00> : vector<128x64xf32>
    %291 = tpu.matmul %288, %290, %cst_255 {dimension_numbers = #tpu.dot_dimension_numbers<[1], [0], [0], [1], [0, 0, 1, 1], [], []>} : vector<128x32xf32>, vector<32x64xf32>, vector<128x64xf32> -> vector<128x64xf32>
    %292 = arith.addf %287, %291 : vector<128x64xf32>
    %c176 = arith.constant 176 : index
    %c0_256 = arith.constant 0 : index
    %293 = vector.load %arg22[%c176, %c0_256] : memref<440x32xf32, #tpu.memory_space<vmem>>, vector<128x32xf32>
    %c6_257 = arith.constant 6 : index
    %c0_258 = arith.constant 0 : index
    %c0_259 = arith.constant 0 : index
    %294 = vector.load %arg5[%c6_257, %c0_258, %c0_259] : memref<9x32x64xf32, #tpu.memory_space<vmem>>, vector<1x32x64xf32>
    %295 = vector.shape_cast %294 : vector<1x32x64xf32> to vector<32x64xf32>
    %cst_260 = arith.constant dense<0.000000e+00> : vector<128x64xf32>
    %296 = tpu.matmul %293, %295, %cst_260 {dimension_numbers = #tpu.dot_dimension_numbers<[1], [0], [0], [1], [0, 0, 1, 1], [], []>} : vector<128x32xf32>, vector<32x64xf32>, vector<128x64xf32> -> vector<128x64xf32>
    %297 = arith.addf %292, %296 : vector<128x64xf32>
    %c177 = arith.constant 177 : index
    %c0_261 = arith.constant 0 : index
    %298 = vector.load %arg22[%c177, %c0_261] : memref<440x32xf32, #tpu.memory_space<vmem>>, vector<128x32xf32>
    %c7_262 = arith.constant 7 : index
    %c0_263 = arith.constant 0 : index
    %c0_264 = arith.constant 0 : index
    %299 = vector.load %arg5[%c7_262, %c0_263, %c0_264] : memref<9x32x64xf32, #tpu.memory_space<vmem>>, vector<1x32x64xf32>
    %300 = vector.shape_cast %299 : vector<1x32x64xf32> to vector<32x64xf32>
    %cst_265 = arith.constant dense<0.000000e+00> : vector<128x64xf32>
    %301 = tpu.matmul %298, %300, %cst_265 {dimension_numbers = #tpu.dot_dimension_numbers<[1], [0], [0], [1], [0, 0, 1, 1], [], []>} : vector<128x32xf32>, vector<32x64xf32>, vector<128x64xf32> -> vector<128x64xf32>
    %302 = arith.addf %297, %301 : vector<128x64xf32>
    %c178 = arith.constant 178 : index
    %c0_266 = arith.constant 0 : index
    %303 = vector.load %arg22[%c178, %c0_266] : memref<440x32xf32, #tpu.memory_space<vmem>>, vector<128x32xf32>
    %c8_267 = arith.constant 8 : index
    %c0_268 = arith.constant 0 : index
    %c0_269 = arith.constant 0 : index
    %304 = vector.load %arg5[%c8_267, %c0_268, %c0_269] : memref<9x32x64xf32, #tpu.memory_space<vmem>>, vector<1x32x64xf32>
    %305 = vector.shape_cast %304 : vector<1x32x64xf32> to vector<32x64xf32>
    %cst_270 = arith.constant dense<0.000000e+00> : vector<128x64xf32>
    %306 = tpu.matmul %303, %305, %cst_270 {dimension_numbers = #tpu.dot_dimension_numbers<[1], [0], [0], [1], [0, 0, 1, 1], [], []>} : vector<128x32xf32>, vector<32x64xf32>, vector<128x64xf32> -> vector<128x64xf32>
    %307 = arith.addf %302, %306 : vector<128x64xf32>
    %c0_271 = arith.constant 0 : index
    %c0_272 = arith.constant 0 : index
    %308 = vector.load %arg6[%c0_271, %c0_272] : memref<1x64xf32, #tpu.memory_space<vmem>>, vector<1x64xf32>
    %309 = vector.broadcast %308 : vector<1x64xf32> to vector<128x64xf32>
    %310 = arith.addf %307, %309 : vector<128x64xf32>
    %cst_273 = arith.constant 0.000000e+00 : f32
    %311 = vector.broadcast %cst_273 : f32 to vector<128x64xf32>
    %312 = arith.maximumf %310, %311 : vector<128x64xf32>
    %c128_274 = arith.constant 128 : index
    %c0_275 = arith.constant 0 : index
    %313 = vector.load %arg20[%c128_274, %c0_275] : memref<384x64xf32, #tpu.memory_space<vmem>>, vector<128x64xf32>
    tpu.vector_store %arg20[%c128_274, %c0_275], %312 {strides = array<i32>} : memref<384x64xf32, #tpu.memory_space<vmem>>, vector<128x64xf32>,
    %cst_276 = arith.constant 0.000000e+00 : f32
    %314 = vector.broadcast %cst_276 : f32 to vector<128x64xf32>
    %c256_277 = arith.constant 256 : index
    %c0_278 = arith.constant 0 : index
    %315 = vector.load %arg22[%c256_277, %c0_278] : memref<440x32xf32, #tpu.memory_space<vmem>>, vector<128x32xf32>
    %c0_279 = arith.constant 0 : index
    %c0_280 = arith.constant 0 : index
    %c0_281 = arith.constant 0 : index
    %316 = vector.load %arg5[%c0_279, %c0_280, %c0_281] : memref<9x32x64xf32, #tpu.memory_space<vmem>>, vector<1x32x64xf32>
    %317 = vector.shape_cast %316 : vector<1x32x64xf32> to vector<32x64xf32>
    %cst_282 = arith.constant dense<0.000000e+00> : vector<128x64xf32>
    %318 = tpu.matmul %315, %317, %cst_282 {dimension_numbers = #tpu.dot_dimension_numbers<[1], [0], [0], [1], [0, 0, 1, 1], [], []>} : vector<128x32xf32>, vector<32x64xf32>, vector<128x64xf32> -> vector<128x64xf32>
    %319 = arith.addf %314, %318 : vector<128x64xf32>
    %c257_283 = arith.constant 257 : index
    %c0_284 = arith.constant 0 : index
    %320 = vector.load %arg22[%c257_283, %c0_284] : memref<440x32xf32, #tpu.memory_space<vmem>>, vector<128x32xf32>
    %c1_285 = arith.constant 1 : index
    %c0_286 = arith.constant 0 : index
    %c0_287 = arith.constant 0 : index
    %321 = vector.load %arg5[%c1_285, %c0_286, %c0_287] : memref<9x32x64xf32, #tpu.memory_space<vmem>>, vector<1x32x64xf32>
    %322 = vector.shape_cast %321 : vector<1x32x64xf32> to vector<32x64xf32>
    %cst_288 = arith.constant dense<0.000000e+00> : vector<128x64xf32>
    %323 = tpu.matmul %320, %322, %cst_288 {dimension_numbers = #tpu.dot_dimension_numbers<[1], [0], [0], [1], [0, 0, 1, 1], [], []>} : vector<128x32xf32>, vector<32x64xf32>, vector<128x64xf32> -> vector<128x64xf32>
    %324 = arith.addf %319, %323 : vector<128x64xf32>
    %c258 = arith.constant 258 : index
    %c0_289 = arith.constant 0 : index
    %325 = vector.load %arg22[%c258, %c0_289] : memref<440x32xf32, #tpu.memory_space<vmem>>, vector<128x32xf32>
    %c2_290 = arith.constant 2 : index
    %c0_291 = arith.constant 0 : index
    %c0_292 = arith.constant 0 : index
    %326 = vector.load %arg5[%c2_290, %c0_291, %c0_292] : memref<9x32x64xf32, #tpu.memory_space<vmem>>, vector<1x32x64xf32>
    %327 = vector.shape_cast %326 : vector<1x32x64xf32> to vector<32x64xf32>
    %cst_293 = arith.constant dense<0.000000e+00> : vector<128x64xf32>
    %328 = tpu.matmul %325, %327, %cst_293 {dimension_numbers = #tpu.dot_dimension_numbers<[1], [0], [0], [1], [0, 0, 1, 1], [], []>} : vector<128x32xf32>, vector<32x64xf32>, vector<128x64xf32> -> vector<128x64xf32>
    %329 = arith.addf %324, %328 : vector<128x64xf32>
    %c280 = arith.constant 280 : index
    %c0_294 = arith.constant 0 : index
    %330 = vector.load %arg22[%c280, %c0_294] : memref<440x32xf32, #tpu.memory_space<vmem>>, vector<128x32xf32>
    %c3_295 = arith.constant 3 : index
    %c0_296 = arith.constant 0 : index
    %c0_297 = arith.constant 0 : index
    %331 = vector.load %arg5[%c3_295, %c0_296, %c0_297] : memref<9x32x64xf32, #tpu.memory_space<vmem>>, vector<1x32x64xf32>
    %332 = vector.shape_cast %331 : vector<1x32x64xf32> to vector<32x64xf32>
    %cst_298 = arith.constant dense<0.000000e+00> : vector<128x64xf32>
    %333 = tpu.matmul %330, %332, %cst_298 {dimension_numbers = #tpu.dot_dimension_numbers<[1], [0], [0], [1], [0, 0, 1, 1], [], []>} : vector<128x32xf32>, vector<32x64xf32>, vector<128x64xf32> -> vector<128x64xf32>
    %334 = arith.addf %329, %333 : vector<128x64xf32>
    %c281 = arith.constant 281 : index
    %c0_299 = arith.constant 0 : index
    %335 = vector.load %arg22[%c281, %c0_299] : memref<440x32xf32, #tpu.memory_space<vmem>>, vector<128x32xf32>
    %c4_300 = arith.constant 4 : index
    %c0_301 = arith.constant 0 : index
    %c0_302 = arith.constant 0 : index
    %336 = vector.load %arg5[%c4_300, %c0_301, %c0_302] : memref<9x32x64xf32, #tpu.memory_space<vmem>>, vector<1x32x64xf32>
    %337 = vector.shape_cast %336 : vector<1x32x64xf32> to vector<32x64xf32>
    %cst_303 = arith.constant dense<0.000000e+00> : vector<128x64xf32>
    %338 = tpu.matmul %335, %337, %cst_303 {dimension_numbers = #tpu.dot_dimension_numbers<[1], [0], [0], [1], [0, 0, 1, 1], [], []>} : vector<128x32xf32>, vector<32x64xf32>, vector<128x64xf32> -> vector<128x64xf32>
    %339 = arith.addf %334, %338 : vector<128x64xf32>
    %c282 = arith.constant 282 : index
    %c0_304 = arith.constant 0 : index
    %340 = vector.load %arg22[%c282, %c0_304] : memref<440x32xf32, #tpu.memory_space<vmem>>, vector<128x32xf32>
    %c5_305 = arith.constant 5 : index
    %c0_306 = arith.constant 0 : index
    %c0_307 = arith.constant 0 : index
    %341 = vector.load %arg5[%c5_305, %c0_306, %c0_307] : memref<9x32x64xf32, #tpu.memory_space<vmem>>, vector<1x32x64xf32>
    %342 = vector.shape_cast %341 : vector<1x32x64xf32> to vector<32x64xf32>
    %cst_308 = arith.constant dense<0.000000e+00> : vector<128x64xf32>
    %343 = tpu.matmul %340, %342, %cst_308 {dimension_numbers = #tpu.dot_dimension_numbers<[1], [0], [0], [1], [0, 0, 1, 1], [], []>} : vector<128x32xf32>, vector<32x64xf32>, vector<128x64xf32> -> vector<128x64xf32>
    %344 = arith.addf %339, %343 : vector<128x64xf32>
    %c304 = arith.constant 304 : index
    %c0_309 = arith.constant 0 : index
    %345 = vector.load %arg22[%c304, %c0_309] : memref<440x32xf32, #tpu.memory_space<vmem>>, vector<128x32xf32>
    %c6_310 = arith.constant 6 : index
    %c0_311 = arith.constant 0 : index
    %c0_312 = arith.constant 0 : index
    %346 = vector.load %arg5[%c6_310, %c0_311, %c0_312] : memref<9x32x64xf32, #tpu.memory_space<vmem>>, vector<1x32x64xf32>
    %347 = vector.shape_cast %346 : vector<1x32x64xf32> to vector<32x64xf32>
    %cst_313 = arith.constant dense<0.000000e+00> : vector<128x64xf32>
    %348 = tpu.matmul %345, %347, %cst_313 {dimension_numbers = #tpu.dot_dimension_numbers<[1], [0], [0], [1], [0, 0, 1, 1], [], []>} : vector<128x32xf32>, vector<32x64xf32>, vector<128x64xf32> -> vector<128x64xf32>
    %349 = arith.addf %344, %348 : vector<128x64xf32>
    %c305 = arith.constant 305 : index
    %c0_314 = arith.constant 0 : index
    %350 = vector.load %arg22[%c305, %c0_314] : memref<440x32xf32, #tpu.memory_space<vmem>>, vector<128x32xf32>
    %c7_315 = arith.constant 7 : index
    %c0_316 = arith.constant 0 : index
    %c0_317 = arith.constant 0 : index
    %351 = vector.load %arg5[%c7_315, %c0_316, %c0_317] : memref<9x32x64xf32, #tpu.memory_space<vmem>>, vector<1x32x64xf32>
    %352 = vector.shape_cast %351 : vector<1x32x64xf32> to vector<32x64xf32>
    %cst_318 = arith.constant dense<0.000000e+00> : vector<128x64xf32>
    %353 = tpu.matmul %350, %352, %cst_318 {dimension_numbers = #tpu.dot_dimension_numbers<[1], [0], [0], [1], [0, 0, 1, 1], [], []>} : vector<128x32xf32>, vector<32x64xf32>, vector<128x64xf32> -> vector<128x64xf32>
    %354 = arith.addf %349, %353 : vector<128x64xf32>
    %c306 = arith.constant 306 : index
    %c0_319 = arith.constant 0 : index
    %355 = vector.load %arg22[%c306, %c0_319] : memref<440x32xf32, #tpu.memory_space<vmem>>, vector<128x32xf32>
    %c8_320 = arith.constant 8 : index
    %c0_321 = arith.constant 0 : index
    %c0_322 = arith.constant 0 : index
    %356 = vector.load %arg5[%c8_320, %c0_321, %c0_322] : memref<9x32x64xf32, #tpu.memory_space<vmem>>, vector<1x32x64xf32>
    %357 = vector.shape_cast %356 : vector<1x32x64xf32> to vector<32x64xf32>
    %cst_323 = arith.constant dense<0.000000e+00> : vector<128x64xf32>
    %358 = tpu.matmul %355, %357, %cst_323 {dimension_numbers = #tpu.dot_dimension_numbers<[1], [0], [0], [1], [0, 0, 1, 1], [], []>} : vector<128x32xf32>, vector<32x64xf32>, vector<128x64xf32> -> vector<128x64xf32>
    %359 = arith.addf %354, %358 : vector<128x64xf32>
    %c0_324 = arith.constant 0 : index
    %c0_325 = arith.constant 0 : index
    %360 = vector.load %arg6[%c0_324, %c0_325] : memref<1x64xf32, #tpu.memory_space<vmem>>, vector<1x64xf32>
    %361 = vector.broadcast %360 : vector<1x64xf32> to vector<128x64xf32>
    %362 = arith.addf %359, %361 : vector<128x64xf32>
    %cst_326 = arith.constant 0.000000e+00 : f32
    %363 = vector.broadcast %cst_326 : f32 to vector<128x64xf32>
    %364 = arith.maximumf %362, %363 : vector<128x64xf32>
    %c256_327 = arith.constant 256 : index
    %c0_328 = arith.constant 0 : index
    %365 = vector.load %arg20[%c256_327, %c0_328] : memref<384x64xf32, #tpu.memory_space<vmem>>, vector<128x64xf32>
    tpu.vector_store %arg20[%c256_327, %c0_328], %364 {strides = array<i32>} : memref<384x64xf32, #tpu.memory_space<vmem>>, vector<128x64xf32>,
    %cst_329 = arith.constant 0.000000e+00 : f32
    %366 = vector.broadcast %cst_329 : f32 to vector<168x64xf32>
    %c0_330 = arith.constant 0 : index
    %c0_331 = arith.constant 0 : index
    %367 = vector.load %arg23[%c0_330, %c0_331] : memref<168x64xf32, #tpu.memory_space<vmem>>, vector<168x64xf32>
    tpu.vector_store %arg23[%c0_330, %c0_331], %366 {strides = array<i32>} : memref<168x64xf32, #tpu.memory_space<vmem>>, vector<168x64xf32>,
    %c0_332 = arith.constant 0 : index
    %c0_333 = arith.constant 0 : index
    %368 = tpu.strided_load %arg20[%c0_332, %c0_333] {strides = array<i32: 2, 1>} : memref<384x64xf32, #tpu.memory_space<vmem>>, vector<8x64xf32>
    %c1_334 = arith.constant 1 : index
    %c0_335 = arith.constant 0 : index
    %369 = tpu.strided_load %arg20[%c1_334, %c0_335] {strides = array<i32: 2, 1>} : memref<384x64xf32, #tpu.memory_space<vmem>>, vector<8x64xf32>
    %370 = arith.maximumf %368, %369 : vector<8x64xf32>
    %c24_336 = arith.constant 24 : index
    %c0_337 = arith.constant 0 : index
    %371 = tpu.strided_load %arg20[%c24_336, %c0_337] {strides = array<i32: 2, 1>} : memref<384x64xf32, #tpu.memory_space<vmem>>, vector<8x64xf32>
    %c25_338 = arith.constant 25 : index
    %c0_339 = arith.constant 0 : index
    %372 = tpu.strided_load %arg20[%c25_338, %c0_339] {strides = array<i32: 2, 1>} : memref<384x64xf32, #tpu.memory_space<vmem>>, vector<8x64xf32>
    %373 = arith.maximumf %371, %372 : vector<8x64xf32>
    %374 = arith.maximumf %370, %373 : vector<8x64xf32>
    %c17 = arith.constant 17 : index
    %c0_340 = arith.constant 0 : index
    %375 = vector.load %arg23[%c17, %c0_340] : memref<168x64xf32, #tpu.memory_space<vmem>>, vector<8x64xf32>
    tpu.vector_store %arg23[%c17, %c0_340], %374 {strides = array<i32>} : memref<168x64xf32, #tpu.memory_space<vmem>>, vector<8x64xf32>,
    %c48_341 = arith.constant 48 : index
    %c0_342 = arith.constant 0 : index
    %376 = tpu.strided_load %arg20[%c48_341, %c0_342] {strides = array<i32: 2, 1>} : memref<384x64xf32, #tpu.memory_space<vmem>>, vector<8x64xf32>
    %c49_343 = arith.constant 49 : index
    %c0_344 = arith.constant 0 : index
    %377 = tpu.strided_load %arg20[%c49_343, %c0_344] {strides = array<i32: 2, 1>} : memref<384x64xf32, #tpu.memory_space<vmem>>, vector<8x64xf32>
    %378 = arith.maximumf %376, %377 : vector<8x64xf32>
    %c72 = arith.constant 72 : index
    %c0_345 = arith.constant 0 : index
    %379 = tpu.strided_load %arg20[%c72, %c0_345] {strides = array<i32: 2, 1>} : memref<384x64xf32, #tpu.memory_space<vmem>>, vector<8x64xf32>
    %c73_346 = arith.constant 73 : index
    %c0_347 = arith.constant 0 : index
    %380 = tpu.strided_load %arg20[%c73_346, %c0_347] {strides = array<i32: 2, 1>} : memref<384x64xf32, #tpu.memory_space<vmem>>, vector<8x64xf32>
    %381 = arith.maximumf %379, %380 : vector<8x64xf32>
    %382 = arith.maximumf %378, %381 : vector<8x64xf32>
    %c33_348 = arith.constant 33 : index
    %c0_349 = arith.constant 0 : index
    %383 = vector.load %arg23[%c33_348, %c0_349] : memref<168x64xf32, #tpu.memory_space<vmem>>, vector<8x64xf32>
    tpu.vector_store %arg23[%c33_348, %c0_349], %382 {strides = array<i32>} : memref<168x64xf32, #tpu.memory_space<vmem>>, vector<8x64xf32>,
    %c96_350 = arith.constant 96 : index
    %c0_351 = arith.constant 0 : index
    %384 = tpu.strided_load %arg20[%c96_350, %c0_351] {strides = array<i32: 2, 1>} : memref<384x64xf32, #tpu.memory_space<vmem>>, vector<8x64xf32>
    %c97_352 = arith.constant 97 : index
    %c0_353 = arith.constant 0 : index
    %385 = tpu.strided_load %arg20[%c97_352, %c0_353] {strides = array<i32: 2, 1>} : memref<384x64xf32, #tpu.memory_space<vmem>>, vector<8x64xf32>
    %386 = arith.maximumf %384, %385 : vector<8x64xf32>
    %c120 = arith.constant 120 : index
    %c0_354 = arith.constant 0 : index
    %387 = tpu.strided_load %arg20[%c120, %c0_354] {strides = array<i32: 2, 1>} : memref<384x64xf32, #tpu.memory_space<vmem>>, vector<8x64xf32>
    %c121_355 = arith.constant 121 : index
    %c0_356 = arith.constant 0 : index
    %388 = tpu.strided_load %arg20[%c121_355, %c0_356] {strides = array<i32: 2, 1>} : memref<384x64xf32, #tpu.memory_space<vmem>>, vector<8x64xf32>
    %389 = arith.maximumf %387, %388 : vector<8x64xf32>
    %390 = arith.maximumf %386, %389 : vector<8x64xf32>
    %c49_357 = arith.constant 49 : index
    %c0_358 = arith.constant 0 : index
    %391 = vector.load %arg23[%c49_357, %c0_358] : memref<168x64xf32, #tpu.memory_space<vmem>>, vector<8x64xf32>
    tpu.vector_store %arg23[%c49_357, %c0_358], %390 {strides = array<i32>} : memref<168x64xf32, #tpu.memory_space<vmem>>, vector<8x64xf32>,
    %c144 = arith.constant 144 : index
    %c0_359 = arith.constant 0 : index
    %392 = tpu.strided_load %arg20[%c144, %c0_359] {strides = array<i32: 2, 1>} : memref<384x64xf32, #tpu.memory_space<vmem>>, vector<8x64xf32>
    %c145_360 = arith.constant 145 : index
    %c0_361 = arith.constant 0 : index
    %393 = tpu.strided_load %arg20[%c145_360, %c0_361] {strides = array<i32: 2, 1>} : memref<384x64xf32, #tpu.memory_space<vmem>>, vector<8x64xf32>
    %394 = arith.maximumf %392, %393 : vector<8x64xf32>
    %c168 = arith.constant 168 : index
    %c0_362 = arith.constant 0 : index
    %395 = tpu.strided_load %arg20[%c168, %c0_362] {strides = array<i32: 2, 1>} : memref<384x64xf32, #tpu.memory_space<vmem>>, vector<8x64xf32>
    %c169_363 = arith.constant 169 : index
    %c0_364 = arith.constant 0 : index
    %396 = tpu.strided_load %arg20[%c169_363, %c0_364] {strides = array<i32: 2, 1>} : memref<384x64xf32, #tpu.memory_space<vmem>>, vector<8x64xf32>
    %397 = arith.maximumf %395, %396 : vector<8x64xf32>
    %398 = arith.maximumf %394, %397 : vector<8x64xf32>
    %c65_365 = arith.constant 65 : index
    %c0_366 = arith.constant 0 : index
    %399 = vector.load %arg23[%c65_365, %c0_366] : memref<168x64xf32, #tpu.memory_space<vmem>>, vector<8x64xf32>
    tpu.vector_store %arg23[%c65_365, %c0_366], %398 {strides = array<i32>} : memref<168x64xf32, #tpu.memory_space<vmem>>, vector<8x64xf32>,
    %c192_367 = arith.constant 192 : index
    %c0_368 = arith.constant 0 : index
    %400 = tpu.strided_load %arg20[%c192_367, %c0_368] {strides = array<i32: 2, 1>} : memref<384x64xf32, #tpu.memory_space<vmem>>, vector<8x64xf32>
    %c193_369 = arith.constant 193 : index
    %c0_370 = arith.constant 0 : index
    %401 = tpu.strided_load %arg20[%c193_369, %c0_370] {strides = array<i32: 2, 1>} : memref<384x64xf32, #tpu.memory_space<vmem>>, vector<8x64xf32>
    %402 = arith.maximumf %400, %401 : vector<8x64xf32>
    %c216 = arith.constant 216 : index
    %c0_371 = arith.constant 0 : index
    %403 = tpu.strided_load %arg20[%c216, %c0_371] {strides = array<i32: 2, 1>} : memref<384x64xf32, #tpu.memory_space<vmem>>, vector<8x64xf32>
    %c217_372 = arith.constant 217 : index
    %c0_373 = arith.constant 0 : index
    %404 = tpu.strided_load %arg20[%c217_372, %c0_373] {strides = array<i32: 2, 1>} : memref<384x64xf32, #tpu.memory_space<vmem>>, vector<8x64xf32>
    %405 = arith.maximumf %403, %404 : vector<8x64xf32>
    %406 = arith.maximumf %402, %405 : vector<8x64xf32>
    %c81 = arith.constant 81 : index
    %c0_374 = arith.constant 0 : index
    %407 = vector.load %arg23[%c81, %c0_374] : memref<168x64xf32, #tpu.memory_space<vmem>>, vector<8x64xf32>
    tpu.vector_store %arg23[%c81, %c0_374], %406 {strides = array<i32>} : memref<168x64xf32, #tpu.memory_space<vmem>>, vector<8x64xf32>,
    %c240 = arith.constant 240 : index
    %c0_375 = arith.constant 0 : index
    %408 = tpu.strided_load %arg20[%c240, %c0_375] {strides = array<i32: 2, 1>} : memref<384x64xf32, #tpu.memory_space<vmem>>, vector<8x64xf32>
    %c241_376 = arith.constant 241 : index
    %c0_377 = arith.constant 0 : index
    %409 = tpu.strided_load %arg20[%c241_376, %c0_377] {strides = array<i32: 2, 1>} : memref<384x64xf32, #tpu.memory_space<vmem>>, vector<8x64xf32>
    %410 = arith.maximumf %408, %409 : vector<8x64xf32>
    %c264 = arith.constant 264 : index
    %c0_378 = arith.constant 0 : index
    %411 = tpu.strided_load %arg20[%c264, %c0_378] {strides = array<i32: 2, 1>} : memref<384x64xf32, #tpu.memory_space<vmem>>, vector<8x64xf32>
    %c265_379 = arith.constant 265 : index
    %c0_380 = arith.constant 0 : index
    %412 = tpu.strided_load %arg20[%c265_379, %c0_380] {strides = array<i32: 2, 1>} : memref<384x64xf32, #tpu.memory_space<vmem>>, vector<8x64xf32>
    %413 = arith.maximumf %411, %412 : vector<8x64xf32>
    %414 = arith.maximumf %410, %413 : vector<8x64xf32>
    %c97_381 = arith.constant 97 : index
    %c0_382 = arith.constant 0 : index
    %415 = vector.load %arg23[%c97_381, %c0_382] : memref<168x64xf32, #tpu.memory_space<vmem>>, vector<8x64xf32>
    tpu.vector_store %arg23[%c97_381, %c0_382], %414 {strides = array<i32>} : memref<168x64xf32, #tpu.memory_space<vmem>>, vector<8x64xf32>,
    %c288_383 = arith.constant 288 : index
    %c0_384 = arith.constant 0 : index
    %416 = tpu.strided_load %arg20[%c288_383, %c0_384] {strides = array<i32: 2, 1>} : memref<384x64xf32, #tpu.memory_space<vmem>>, vector<8x64xf32>
    %c289_385 = arith.constant 289 : index
    %c0_386 = arith.constant 0 : index
    %417 = tpu.strided_load %arg20[%c289_385, %c0_386] {strides = array<i32: 2, 1>} : memref<384x64xf32, #tpu.memory_space<vmem>>, vector<8x64xf32>
    %418 = arith.maximumf %416, %417 : vector<8x64xf32>
    %c312 = arith.constant 312 : index
    %c0_387 = arith.constant 0 : index
    %419 = tpu.strided_load %arg20[%c312, %c0_387] {strides = array<i32: 2, 1>} : memref<384x64xf32, #tpu.memory_space<vmem>>, vector<8x64xf32>
    %c313_388 = arith.constant 313 : index
    %c0_389 = arith.constant 0 : index
    %420 = tpu.strided_load %arg20[%c313_388, %c0_389] {strides = array<i32: 2, 1>} : memref<384x64xf32, #tpu.memory_space<vmem>>, vector<8x64xf32>
    %421 = arith.maximumf %419, %420 : vector<8x64xf32>
    %422 = arith.maximumf %418, %421 : vector<8x64xf32>
    %c113 = arith.constant 113 : index
    %c0_390 = arith.constant 0 : index
    %423 = vector.load %arg23[%c113, %c0_390] : memref<168x64xf32, #tpu.memory_space<vmem>>, vector<8x64xf32>
    tpu.vector_store %arg23[%c113, %c0_390], %422 {strides = array<i32>} : memref<168x64xf32, #tpu.memory_space<vmem>>, vector<8x64xf32>,
    %c336 = arith.constant 336 : index
    %c0_391 = arith.constant 0 : index
    %424 = tpu.strided_load %arg20[%c336, %c0_391] {strides = array<i32: 2, 1>} : memref<384x64xf32, #tpu.memory_space<vmem>>, vector<8x64xf32>
    %c337_392 = arith.constant 337 : index
    %c0_393 = arith.constant 0 : index
    %425 = tpu.strided_load %arg20[%c337_392, %c0_393] {strides = array<i32: 2, 1>} : memref<384x64xf32, #tpu.memory_space<vmem>>, vector<8x64xf32>
    %426 = arith.maximumf %424, %425 : vector<8x64xf32>
    %c360 = arith.constant 360 : index
    %c0_394 = arith.constant 0 : index
    %427 = tpu.strided_load %arg20[%c360, %c0_394] {strides = array<i32: 2, 1>} : memref<384x64xf32, #tpu.memory_space<vmem>>, vector<8x64xf32>
    %c361_395 = arith.constant 361 : index
    %c0_396 = arith.constant 0 : index
    %428 = tpu.strided_load %arg20[%c361_395, %c0_396] {strides = array<i32: 2, 1>} : memref<384x64xf32, #tpu.memory_space<vmem>>, vector<8x64xf32>
    %429 = arith.maximumf %427, %428 : vector<8x64xf32>
    %430 = arith.maximumf %426, %429 : vector<8x64xf32>
    %c129_397 = arith.constant 129 : index
    %c0_398 = arith.constant 0 : index
    %431 = vector.load %arg23[%c129_397, %c0_398] : memref<168x64xf32, #tpu.memory_space<vmem>>, vector<8x64xf32>
    tpu.vector_store %arg23[%c129_397, %c0_398], %430 {strides = array<i32>} : memref<168x64xf32, #tpu.memory_space<vmem>>, vector<8x64xf32>,
    %cst_399 = arith.constant 0.000000e+00 : f32
    %432 = vector.broadcast %cst_399 : f32 to vector<128x128xf32>
    %c0_400 = arith.constant 0 : index
    %c0_401 = arith.constant 0 : index
    %433 = vector.load %arg23[%c0_400, %c0_401] : memref<168x64xf32, #tpu.memory_space<vmem>>, vector<128x64xf32>
    %c0_402 = arith.constant 0 : index
    %c0_403 = arith.constant 0 : index
    %c0_404 = arith.constant 0 : index
    %434 = vector.load %arg7[%c0_402, %c0_403, %c0_404] : memref<9x64x128xf32, #tpu.memory_space<vmem>>, vector<1x64x128xf32>
    %435 = vector.shape_cast %434 : vector<1x64x128xf32> to vector<64x128xf32>
    %cst_405 = arith.constant dense<0.000000e+00> : vector<128x128xf32>
    %436 = tpu.matmul %433, %435, %cst_405 {dimension_numbers = #tpu.dot_dimension_numbers<[1], [0], [0], [1], [0, 0, 1, 1], [], []>} : vector<128x64xf32>, vector<64x128xf32>, vector<128x128xf32> -> vector<128x128xf32>
    %437 = arith.addf %432, %436 : vector<128x128xf32>
    %c1_406 = arith.constant 1 : index
    %c0_407 = arith.constant 0 : index
    %438 = vector.load %arg23[%c1_406, %c0_407] : memref<168x64xf32, #tpu.memory_space<vmem>>, vector<128x64xf32>
    %c1_408 = arith.constant 1 : index
    %c0_409 = arith.constant 0 : index
    %c0_410 = arith.constant 0 : index
    %439 = vector.load %arg7[%c1_408, %c0_409, %c0_410] : memref<9x64x128xf32, #tpu.memory_space<vmem>>, vector<1x64x128xf32>
    %440 = vector.shape_cast %439 : vector<1x64x128xf32> to vector<64x128xf32>
    %cst_411 = arith.constant dense<0.000000e+00> : vector<128x128xf32>
    %441 = tpu.matmul %438, %440, %cst_411 {dimension_numbers = #tpu.dot_dimension_numbers<[1], [0], [0], [1], [0, 0, 1, 1], [], []>} : vector<128x64xf32>, vector<64x128xf32>, vector<128x128xf32> -> vector<128x128xf32>
    %442 = arith.addf %437, %441 : vector<128x128xf32>
    %c2_412 = arith.constant 2 : index
    %c0_413 = arith.constant 0 : index
    %443 = vector.load %arg23[%c2_412, %c0_413] : memref<168x64xf32, #tpu.memory_space<vmem>>, vector<128x64xf32>
    %c2_414 = arith.constant 2 : index
    %c0_415 = arith.constant 0 : index
    %c0_416 = arith.constant 0 : index
    %444 = vector.load %arg7[%c2_414, %c0_415, %c0_416] : memref<9x64x128xf32, #tpu.memory_space<vmem>>, vector<1x64x128xf32>
    %445 = vector.shape_cast %444 : vector<1x64x128xf32> to vector<64x128xf32>
    %cst_417 = arith.constant dense<0.000000e+00> : vector<128x128xf32>
    %446 = tpu.matmul %443, %445, %cst_417 {dimension_numbers = #tpu.dot_dimension_numbers<[1], [0], [0], [1], [0, 0, 1, 1], [], []>} : vector<128x64xf32>, vector<64x128xf32>, vector<128x128xf32> -> vector<128x128xf32>
    %447 = arith.addf %442, %446 : vector<128x128xf32>
    %c16 = arith.constant 16 : index
    %c0_418 = arith.constant 0 : index
    %448 = vector.load %arg23[%c16, %c0_418] : memref<168x64xf32, #tpu.memory_space<vmem>>, vector<128x64xf32>
    %c3_419 = arith.constant 3 : index
    %c0_420 = arith.constant 0 : index
    %c0_421 = arith.constant 0 : index
    %449 = vector.load %arg7[%c3_419, %c0_420, %c0_421] : memref<9x64x128xf32, #tpu.memory_space<vmem>>, vector<1x64x128xf32>
    %450 = vector.shape_cast %449 : vector<1x64x128xf32> to vector<64x128xf32>
    %cst_422 = arith.constant dense<0.000000e+00> : vector<128x128xf32>
    %451 = tpu.matmul %448, %450, %cst_422 {dimension_numbers = #tpu.dot_dimension_numbers<[1], [0], [0], [1], [0, 0, 1, 1], [], []>} : vector<128x64xf32>, vector<64x128xf32>, vector<128x128xf32> -> vector<128x128xf32>
    %452 = arith.addf %447, %451 : vector<128x128xf32>
    %c17_423 = arith.constant 17 : index
    %c0_424 = arith.constant 0 : index
    %453 = vector.load %arg23[%c17_423, %c0_424] : memref<168x64xf32, #tpu.memory_space<vmem>>, vector<128x64xf32>
    %c4_425 = arith.constant 4 : index
    %c0_426 = arith.constant 0 : index
    %c0_427 = arith.constant 0 : index
    %454 = vector.load %arg7[%c4_425, %c0_426, %c0_427] : memref<9x64x128xf32, #tpu.memory_space<vmem>>, vector<1x64x128xf32>
    %455 = vector.shape_cast %454 : vector<1x64x128xf32> to vector<64x128xf32>
    %cst_428 = arith.constant dense<0.000000e+00> : vector<128x128xf32>
    %456 = tpu.matmul %453, %455, %cst_428 {dimension_numbers = #tpu.dot_dimension_numbers<[1], [0], [0], [1], [0, 0, 1, 1], [], []>} : vector<128x64xf32>, vector<64x128xf32>, vector<128x128xf32> -> vector<128x128xf32>
    %457 = arith.addf %452, %456 : vector<128x128xf32>
    %c18 = arith.constant 18 : index
    %c0_429 = arith.constant 0 : index
    %458 = vector.load %arg23[%c18, %c0_429] : memref<168x64xf32, #tpu.memory_space<vmem>>, vector<128x64xf32>
    %c5_430 = arith.constant 5 : index
    %c0_431 = arith.constant 0 : index
    %c0_432 = arith.constant 0 : index
    %459 = vector.load %arg7[%c5_430, %c0_431, %c0_432] : memref<9x64x128xf32, #tpu.memory_space<vmem>>, vector<1x64x128xf32>
    %460 = vector.shape_cast %459 : vector<1x64x128xf32> to vector<64x128xf32>
    %cst_433 = arith.constant dense<0.000000e+00> : vector<128x128xf32>
    %461 = tpu.matmul %458, %460, %cst_433 {dimension_numbers = #tpu.dot_dimension_numbers<[1], [0], [0], [1], [0, 0, 1, 1], [], []>} : vector<128x64xf32>, vector<64x128xf32>, vector<128x128xf32> -> vector<128x128xf32>
    %462 = arith.addf %457, %461 : vector<128x128xf32>
    %c32_434 = arith.constant 32 : index
    %c0_435 = arith.constant 0 : index
    %463 = vector.load %arg23[%c32_434, %c0_435] : memref<168x64xf32, #tpu.memory_space<vmem>>, vector<128x64xf32>
    %c6_436 = arith.constant 6 : index
    %c0_437 = arith.constant 0 : index
    %c0_438 = arith.constant 0 : index
    %464 = vector.load %arg7[%c6_436, %c0_437, %c0_438] : memref<9x64x128xf32, #tpu.memory_space<vmem>>, vector<1x64x128xf32>
    %465 = vector.shape_cast %464 : vector<1x64x128xf32> to vector<64x128xf32>
    %cst_439 = arith.constant dense<0.000000e+00> : vector<128x128xf32>
    %466 = tpu.matmul %463, %465, %cst_439 {dimension_numbers = #tpu.dot_dimension_numbers<[1], [0], [0], [1], [0, 0, 1, 1], [], []>} : vector<128x64xf32>, vector<64x128xf32>, vector<128x128xf32> -> vector<128x128xf32>
    %467 = arith.addf %462, %466 : vector<128x128xf32>
    %c33_440 = arith.constant 33 : index
    %c0_441 = arith.constant 0 : index
    %468 = vector.load %arg23[%c33_440, %c0_441] : memref<168x64xf32, #tpu.memory_space<vmem>>, vector<128x64xf32>
    %c7_442 = arith.constant 7 : index
    %c0_443 = arith.constant 0 : index
    %c0_444 = arith.constant 0 : index
    %469 = vector.load %arg7[%c7_442, %c0_443, %c0_444] : memref<9x64x128xf32, #tpu.memory_space<vmem>>, vector<1x64x128xf32>
    %470 = vector.shape_cast %469 : vector<1x64x128xf32> to vector<64x128xf32>
    %cst_445 = arith.constant dense<0.000000e+00> : vector<128x128xf32>
    %471 = tpu.matmul %468, %470, %cst_445 {dimension_numbers = #tpu.dot_dimension_numbers<[1], [0], [0], [1], [0, 0, 1, 1], [], []>} : vector<128x64xf32>, vector<64x128xf32>, vector<128x128xf32> -> vector<128x128xf32>
    %472 = arith.addf %467, %471 : vector<128x128xf32>
    %c34 = arith.constant 34 : index
    %c0_446 = arith.constant 0 : index
    %473 = vector.load %arg23[%c34, %c0_446] : memref<168x64xf32, #tpu.memory_space<vmem>>, vector<128x64xf32>
    %c8_447 = arith.constant 8 : index
    %c0_448 = arith.constant 0 : index
    %c0_449 = arith.constant 0 : index
    %474 = vector.load %arg7[%c8_447, %c0_448, %c0_449] : memref<9x64x128xf32, #tpu.memory_space<vmem>>, vector<1x64x128xf32>
    %475 = vector.shape_cast %474 : vector<1x64x128xf32> to vector<64x128xf32>
    %cst_450 = arith.constant dense<0.000000e+00> : vector<128x128xf32>
    %476 = tpu.matmul %473, %475, %cst_450 {dimension_numbers = #tpu.dot_dimension_numbers<[1], [0], [0], [1], [0, 0, 1, 1], [], []>} : vector<128x64xf32>, vector<64x128xf32>, vector<128x128xf32> -> vector<128x128xf32>
    %477 = arith.addf %472, %476 : vector<128x128xf32>
    %c0_451 = arith.constant 0 : index
    %c0_452 = arith.constant 0 : index
    %478 = vector.load %arg8[%c0_451, %c0_452] : memref<1x128xf32, #tpu.memory_space<vmem>>, vector<1x128xf32>
    %479 = vector.broadcast %478 : vector<1x128xf32> to vector<128x128xf32>
    %480 = arith.addf %477, %479 : vector<128x128xf32>
    %cst_453 = arith.constant 0.000000e+00 : f32
    %481 = vector.broadcast %cst_453 : f32 to vector<128x128xf32>
    %482 = arith.maximumf %480, %481 : vector<128x128xf32>
    %c0_454 = arith.constant 0 : index
    %c0_455 = arith.constant 0 : index
    %483 = vector.load %arg21[%c0_454, %c0_455] : memref<128x128xf32, #tpu.memory_space<vmem>>, vector<128x128xf32>
    tpu.vector_store %arg21[%c0_454, %c0_455], %482 {strides = array<i32>} : memref<128x128xf32, #tpu.memory_space<vmem>>, vector<128x128xf32>,
    %c0_456 = arith.constant 0 : index
    %c0_457 = arith.constant 0 : index
    %484 = tpu.strided_load %arg21[%c0_456, %c0_457] {strides = array<i32: 2, 1>} : memref<128x128xf32, #tpu.memory_space<vmem>>, vector<4x128xf32>
    %c1_458 = arith.constant 1 : index
    %c0_459 = arith.constant 0 : index
    %485 = tpu.strided_load %arg21[%c1_458, %c0_459] {strides = array<i32: 2, 1>} : memref<128x128xf32, #tpu.memory_space<vmem>>, vector<4x128xf32>
    %486 = arith.maximumf %484, %485 : vector<4x128xf32>
    %c16_460 = arith.constant 16 : index
    %c0_461 = arith.constant 0 : index
    %487 = tpu.strided_load %arg21[%c16_460, %c0_461] {strides = array<i32: 2, 1>} : memref<128x128xf32, #tpu.memory_space<vmem>>, vector<4x128xf32>
    %c17_462 = arith.constant 17 : index
    %c0_463 = arith.constant 0 : index
    %488 = tpu.strided_load %arg21[%c17_462, %c0_463] {strides = array<i32: 2, 1>} : memref<128x128xf32, #tpu.memory_space<vmem>>, vector<4x128xf32>
    %489 = arith.maximumf %487, %488 : vector<4x128xf32>
    %490 = arith.maximumf %486, %489 : vector<4x128xf32>
    %491 = vector.extract_strided_slice %490 {offsets = [0, 0], sizes = [1, 128], strides = [1, 1]} : vector<4x128xf32> to vector<1x128xf32>
    %c0_464 = arith.constant 0 : index
    %c0_465 = arith.constant 0 : index
    %492 = vector.load %arg24[%c0_464, %c0_465] : memref<1x2048xf32, #tpu.memory_space<vmem>>, vector<1x128xf32>
    tpu.vector_store %arg24[%c0_464, %c0_465], %491 {strides = array<i32>} : memref<1x2048xf32, #tpu.memory_space<vmem>>, vector<1x128xf32>,
    %493 = vector.extract_strided_slice %490 {offsets = [1, 0], sizes = [1, 128], strides = [1, 1]} : vector<4x128xf32> to vector<1x128xf32>
    %c0_466 = arith.constant 0 : index
    %c128_467 = arith.constant 128 : index
    %494 = vector.load %arg24[%c0_466, %c128_467] : memref<1x2048xf32, #tpu.memory_space<vmem>>, vector<1x128xf32>
    tpu.vector_store %arg24[%c0_466, %c128_467], %493 {strides = array<i32>} : memref<1x2048xf32, #tpu.memory_space<vmem>>, vector<1x128xf32>,
    %495 = vector.extract_strided_slice %490 {offsets = [2, 0], sizes = [1, 128], strides = [1, 1]} : vector<4x128xf32> to vector<1x128xf32>
    %c0_468 = arith.constant 0 : index
    %c256_469 = arith.constant 256 : index
    %496 = vector.load %arg24[%c0_468, %c256_469] : memref<1x2048xf32, #tpu.memory_space<vmem>>, vector<1x128xf32>
    tpu.vector_store %arg24[%c0_468, %c256_469], %495 {strides = array<i32>} : memref<1x2048xf32, #tpu.memory_space<vmem>>, vector<1x128xf32>,
    %497 = vector.extract_strided_slice %490 {offsets = [3, 0], sizes = [1, 128], strides = [1, 1]} : vector<4x128xf32> to vector<1x128xf32>
    %c0_470 = arith.constant 0 : index
    %c384_471 = arith.constant 384 : index
    %498 = vector.load %arg24[%c0_470, %c384_471] : memref<1x2048xf32, #tpu.memory_space<vmem>>, vector<1x128xf32>
    tpu.vector_store %arg24[%c0_470, %c384_471], %497 {strides = array<i32>} : memref<1x2048xf32, #tpu.memory_space<vmem>>, vector<1x128xf32>,
    %c32_472 = arith.constant 32 : index
    %c0_473 = arith.constant 0 : index
    %499 = tpu.strided_load %arg21[%c32_472, %c0_473] {strides = array<i32: 2, 1>} : memref<128x128xf32, #tpu.memory_space<vmem>>, vector<4x128xf32>
    %c33_474 = arith.constant 33 : index
    %c0_475 = arith.constant 0 : index
    %500 = tpu.strided_load %arg21[%c33_474, %c0_475] {strides = array<i32: 2, 1>} : memref<128x128xf32, #tpu.memory_space<vmem>>, vector<4x128xf32>
    %501 = arith.maximumf %499, %500 : vector<4x128xf32>
    %c48_476 = arith.constant 48 : index
    %c0_477 = arith.constant 0 : index
    %502 = tpu.strided_load %arg21[%c48_476, %c0_477] {strides = array<i32: 2, 1>} : memref<128x128xf32, #tpu.memory_space<vmem>>, vector<4x128xf32>
    %c49_478 = arith.constant 49 : index
    %c0_479 = arith.constant 0 : index
    %503 = tpu.strided_load %arg21[%c49_478, %c0_479] {strides = array<i32: 2, 1>} : memref<128x128xf32, #tpu.memory_space<vmem>>, vector<4x128xf32>
    %504 = arith.maximumf %502, %503 : vector<4x128xf32>
    %505 = arith.maximumf %501, %504 : vector<4x128xf32>
    %506 = vector.extract_strided_slice %505 {offsets = [0, 0], sizes = [1, 128], strides = [1, 1]} : vector<4x128xf32> to vector<1x128xf32>
    %c0_480 = arith.constant 0 : index
    %c512_481 = arith.constant 512 : index
    %507 = vector.load %arg24[%c0_480, %c512_481] : memref<1x2048xf32, #tpu.memory_space<vmem>>, vector<1x128xf32>
    tpu.vector_store %arg24[%c0_480, %c512_481], %506 {strides = array<i32>} : memref<1x2048xf32, #tpu.memory_space<vmem>>, vector<1x128xf32>,
    %508 = vector.extract_strided_slice %505 {offsets = [1, 0], sizes = [1, 128], strides = [1, 1]} : vector<4x128xf32> to vector<1x128xf32>
    %c0_482 = arith.constant 0 : index
    %c640_483 = arith.constant 640 : index
    %509 = vector.load %arg24[%c0_482, %c640_483] : memref<1x2048xf32, #tpu.memory_space<vmem>>, vector<1x128xf32>
    tpu.vector_store %arg24[%c0_482, %c640_483], %508 {strides = array<i32>} : memref<1x2048xf32, #tpu.memory_space<vmem>>, vector<1x128xf32>,
    %510 = vector.extract_strided_slice %505 {offsets = [2, 0], sizes = [1, 128], strides = [1, 1]} : vector<4x128xf32> to vector<1x128xf32>
    %c0_484 = arith.constant 0 : index
    %c768_485 = arith.constant 768 : index
    %511 = vector.load %arg24[%c0_484, %c768_485] : memref<1x2048xf32, #tpu.memory_space<vmem>>, vector<1x128xf32>
    tpu.vector_store %arg24[%c0_484, %c768_485], %510 {strides = array<i32>} : memref<1x2048xf32, #tpu.memory_space<vmem>>, vector<1x128xf32>,
    %512 = vector.extract_strided_slice %505 {offsets = [3, 0], sizes = [1, 128], strides = [1, 1]} : vector<4x128xf32> to vector<1x128xf32>
    %c0_486 = arith.constant 0 : index
    %c896_487 = arith.constant 896 : index
    %513 = vector.load %arg24[%c0_486, %c896_487] : memref<1x2048xf32, #tpu.memory_space<vmem>>, vector<1x128xf32>
    tpu.vector_store %arg24[%c0_486, %c896_487], %512 {strides = array<i32>} : memref<1x2048xf32, #tpu.memory_space<vmem>>, vector<1x128xf32>,
    %c64_488 = arith.constant 64 : index
    %c0_489 = arith.constant 0 : index
    %514 = tpu.strided_load %arg21[%c64_488, %c0_489] {strides = array<i32: 2, 1>} : memref<128x128xf32, #tpu.memory_space<vmem>>, vector<4x128xf32>
    %c65_490 = arith.constant 65 : index
    %c0_491 = arith.constant 0 : index
    %515 = tpu.strided_load %arg21[%c65_490, %c0_491] {strides = array<i32: 2, 1>} : memref<128x128xf32, #tpu.memory_space<vmem>>, vector<4x128xf32>
    %516 = arith.maximumf %514, %515 : vector<4x128xf32>
    %c80 = arith.constant 80 : index
    %c0_492 = arith.constant 0 : index
    %517 = tpu.strided_load %arg21[%c80, %c0_492] {strides = array<i32: 2, 1>} : memref<128x128xf32, #tpu.memory_space<vmem>>, vector<4x128xf32>
    %c81_493 = arith.constant 81 : index
    %c0_494 = arith.constant 0 : index
    %518 = tpu.strided_load %arg21[%c81_493, %c0_494] {strides = array<i32: 2, 1>} : memref<128x128xf32, #tpu.memory_space<vmem>>, vector<4x128xf32>
    %519 = arith.maximumf %517, %518 : vector<4x128xf32>
    %520 = arith.maximumf %516, %519 : vector<4x128xf32>
    %521 = vector.extract_strided_slice %520 {offsets = [0, 0], sizes = [1, 128], strides = [1, 1]} : vector<4x128xf32> to vector<1x128xf32>
    %c0_495 = arith.constant 0 : index
    %c1024 = arith.constant 1024 : index
    %522 = vector.load %arg24[%c0_495, %c1024] : memref<1x2048xf32, #tpu.memory_space<vmem>>, vector<1x128xf32>
    tpu.vector_store %arg24[%c0_495, %c1024], %521 {strides = array<i32>} : memref<1x2048xf32, #tpu.memory_space<vmem>>, vector<1x128xf32>,
    %523 = vector.extract_strided_slice %520 {offsets = [1, 0], sizes = [1, 128], strides = [1, 1]} : vector<4x128xf32> to vector<1x128xf32>
    %c0_496 = arith.constant 0 : index
    %c1152 = arith.constant 1152 : index
    %524 = vector.load %arg24[%c0_496, %c1152] : memref<1x2048xf32, #tpu.memory_space<vmem>>, vector<1x128xf32>
    tpu.vector_store %arg24[%c0_496, %c1152], %523 {strides = array<i32>} : memref<1x2048xf32, #tpu.memory_space<vmem>>, vector<1x128xf32>,
    %525 = vector.extract_strided_slice %520 {offsets = [2, 0], sizes = [1, 128], strides = [1, 1]} : vector<4x128xf32> to vector<1x128xf32>
    %c0_497 = arith.constant 0 : index
    %c1280 = arith.constant 1280 : index
    %526 = vector.load %arg24[%c0_497, %c1280] : memref<1x2048xf32, #tpu.memory_space<vmem>>, vector<1x128xf32>
    tpu.vector_store %arg24[%c0_497, %c1280], %525 {strides = array<i32>} : memref<1x2048xf32, #tpu.memory_space<vmem>>, vector<1x128xf32>,
    %527 = vector.extract_strided_slice %520 {offsets = [3, 0], sizes = [1, 128], strides = [1, 1]} : vector<4x128xf32> to vector<1x128xf32>
    %c0_498 = arith.constant 0 : index
    %c1408 = arith.constant 1408 : index
    %528 = vector.load %arg24[%c0_498, %c1408] : memref<1x2048xf32, #tpu.memory_space<vmem>>, vector<1x128xf32>
    tpu.vector_store %arg24[%c0_498, %c1408], %527 {strides = array<i32>} : memref<1x2048xf32, #tpu.memory_space<vmem>>, vector<1x128xf32>,
    %c96_499 = arith.constant 96 : index
    %c0_500 = arith.constant 0 : index
    %529 = tpu.strided_load %arg21[%c96_499, %c0_500] {strides = array<i32: 2, 1>} : memref<128x128xf32, #tpu.memory_space<vmem>>, vector<4x128xf32>
    %c97_501 = arith.constant 97 : index
    %c0_502 = arith.constant 0 : index
    %530 = tpu.strided_load %arg21[%c97_501, %c0_502] {strides = array<i32: 2, 1>} : memref<128x128xf32, #tpu.memory_space<vmem>>, vector<4x128xf32>
    %531 = arith.maximumf %529, %530 : vector<4x128xf32>
    %c112 = arith.constant 112 : index
    %c0_503 = arith.constant 0 : index
    %532 = tpu.strided_load %arg21[%c112, %c0_503] {strides = array<i32: 2, 1>} : memref<128x128xf32, #tpu.memory_space<vmem>>, vector<4x128xf32>
    %c113_504 = arith.constant 113 : index
    %c0_505 = arith.constant 0 : index
    %533 = tpu.strided_load %arg21[%c113_504, %c0_505] {strides = array<i32: 2, 1>} : memref<128x128xf32, #tpu.memory_space<vmem>>, vector<4x128xf32>
    %534 = arith.maximumf %532, %533 : vector<4x128xf32>
    %535 = arith.maximumf %531, %534 : vector<4x128xf32>
    %536 = vector.extract_strided_slice %535 {offsets = [0, 0], sizes = [1, 128], strides = [1, 1]} : vector<4x128xf32> to vector<1x128xf32>
    %c0_506 = arith.constant 0 : index
    %c1536 = arith.constant 1536 : index
    %537 = vector.load %arg24[%c0_506, %c1536] : memref<1x2048xf32, #tpu.memory_space<vmem>>, vector<1x128xf32>
    tpu.vector_store %arg24[%c0_506, %c1536], %536 {strides = array<i32>} : memref<1x2048xf32, #tpu.memory_space<vmem>>, vector<1x128xf32>,
    %538 = vector.extract_strided_slice %535 {offsets = [1, 0], sizes = [1, 128], strides = [1, 1]} : vector<4x128xf32> to vector<1x128xf32>
    %c0_507 = arith.constant 0 : index
    %c1664 = arith.constant 1664 : index
    %539 = vector.load %arg24[%c0_507, %c1664] : memref<1x2048xf32, #tpu.memory_space<vmem>>, vector<1x128xf32>
    tpu.vector_store %arg24[%c0_507, %c1664], %538 {strides = array<i32>} : memref<1x2048xf32, #tpu.memory_space<vmem>>, vector<1x128xf32>,
    %540 = vector.extract_strided_slice %535 {offsets = [2, 0], sizes = [1, 128], strides = [1, 1]} : vector<4x128xf32> to vector<1x128xf32>
    %c0_508 = arith.constant 0 : index
    %c1792 = arith.constant 1792 : index
    %541 = vector.load %arg24[%c0_508, %c1792] : memref<1x2048xf32, #tpu.memory_space<vmem>>, vector<1x128xf32>
    tpu.vector_store %arg24[%c0_508, %c1792], %540 {strides = array<i32>} : memref<1x2048xf32, #tpu.memory_space<vmem>>, vector<1x128xf32>,
    %542 = vector.extract_strided_slice %535 {offsets = [3, 0], sizes = [1, 128], strides = [1, 1]} : vector<4x128xf32> to vector<1x128xf32>
    %c0_509 = arith.constant 0 : index
    %c1920 = arith.constant 1920 : index
    %543 = vector.load %arg24[%c0_509, %c1920] : memref<1x2048xf32, #tpu.memory_space<vmem>>, vector<1x128xf32>
    tpu.vector_store %arg24[%c0_509, %c1920], %542 {strides = array<i32>} : memref<1x2048xf32, #tpu.memory_space<vmem>>, vector<1x128xf32>,
    %c0_510 = arith.constant 0 : index
    %c0_511 = arith.constant 0 : index
    %c0_512 = arith.constant 0 : index
    %544 = vector.load %arg1[%c0_510, %c0_511, %c0_512] : memref<1x1x256xf32, #tpu.memory_space<vmem>>, vector<1x1x256xf32>
    %545 = vector.shape_cast %544 : vector<1x1x256xf32> to vector<1x256xf32>
    %c0_513 = arith.constant 0 : index
    %c0_514 = arith.constant 0 : index
    %546 = vector.load %arg11[%c0_513, %c0_514] : memref<256x32xf32, #tpu.memory_space<vmem>>, vector<256x32xf32>
    %cst_515 = arith.constant dense<0.000000e+00> : vector<1x32xf32>
    %547 = tpu.matmul %545, %546, %cst_515 {dimension_numbers = #tpu.dot_dimension_numbers<[1], [0], [0], [1], [0, 0, 1, 1], [], []>} : vector<1x256xf32>, vector<256x32xf32>, vector<1x32xf32> -> vector<1x32xf32>
    %c0_516 = arith.constant 0 : index
    %c0_517 = arith.constant 0 : index
    %548 = vector.load %arg12[%c0_516, %c0_517] : memref<1x32xf32, #tpu.memory_space<vmem>>, vector<1x32xf32>
    %549 = arith.addf %547, %548 : vector<1x32xf32>
    %c0_518 = arith.constant 0 : index
    %c0_519 = arith.constant 0 : index
    %550 = vector.load %arg24[%c0_518, %c0_519] : memref<1x2048xf32, #tpu.memory_space<vmem>>, vector<1x2048xf32>
    %c0_520 = arith.constant 0 : index
    %c0_521 = arith.constant 0 : index
    %551 = vector.load %arg9[%c0_520, %c0_521] : memref<32x2048xf32, #tpu.memory_space<vmem>>, vector<32x2048xf32>
    %552 = tpu.transpose %551, [1, 0] : vector<32x2048xf32> -> vector<2048x32xf32>
    %cst_522 = arith.constant dense<0.000000e+00> : vector<1x32xf32>
    %553 = tpu.matmul %550, %552, %cst_522 {dimension_numbers = #tpu.dot_dimension_numbers<[1], [0], [0], [1], [0, 0, 1, 1], [], []>} : vector<1x2048xf32>, vector<2048x32xf32>, vector<1x32xf32> -> vector<1x32xf32>
    %c0_523 = arith.constant 0 : index
    %c0_524 = arith.constant 0 : index
    %554 = vector.load %arg10[%c0_523, %c0_524] : memref<1x32xf32, #tpu.memory_space<vmem>>, vector<1x32xf32>
    %555 = arith.addf %553, %554 : vector<1x32xf32>
    %c0_525 = arith.constant 0 : index
    %c0_526 = arith.constant 0 : index
    %556 = vector.load %arg13[%c0_525, %c0_526] : memref<32x32xf32, #tpu.memory_space<vmem>>, vector<32x32xf32>
    %cst_527 = arith.constant dense<0.000000e+00> : vector<1x32xf32>
    %557 = tpu.matmul %549, %556, %cst_527 {dimension_numbers = #tpu.dot_dimension_numbers<[1], [0], [0], [1], [0, 0, 1, 1], [], []>} : vector<1x32xf32>, vector<32x32xf32>, vector<1x32xf32> -> vector<1x32xf32>
    %c0_528 = arith.constant 0 : index
    %c0_529 = arith.constant 0 : index
    %558 = vector.load %arg14[%c0_528, %c0_529] : memref<32x32xf32, #tpu.memory_space<vmem>>, vector<32x32xf32>
    %cst_530 = arith.constant dense<0.000000e+00> : vector<1x32xf32>
    %559 = tpu.matmul %555, %558, %cst_530 {dimension_numbers = #tpu.dot_dimension_numbers<[1], [0], [0], [1], [0, 0, 1, 1], [], []>} : vector<1x32xf32>, vector<32x32xf32>, vector<1x32xf32> -> vector<1x32xf32>
    %560 = arith.addf %557, %559 : vector<1x32xf32>
    %c0_531 = arith.constant 0 : index
    %c0_532 = arith.constant 0 : index
    %561 = vector.load %arg15[%c0_531, %c0_532] : memref<1x32xf32, #tpu.memory_space<vmem>>, vector<1x32xf32>
    %562 = arith.addf %560, %561 : vector<1x32xf32>
    %cst_533 = arith.constant 0.000000e+00 : f32
    %563 = vector.broadcast %cst_533 : f32 to vector<1x32xf32>
    %564 = arith.maximumf %562, %563 : vector<1x32xf32>
    %c0_534 = arith.constant 0 : index
    %c0_535 = arith.constant 0 : index
    %565 = vector.load %arg16[%c0_534, %c0_535] : memref<32x2xf32, #tpu.memory_space<vmem>>, vector<32x2xf32>
    %cst_536 = arith.constant dense<0.000000e+00> : vector<1x2xf32>
    %566 = tpu.matmul %564, %565, %cst_536 {dimension_numbers = #tpu.dot_dimension_numbers<[1], [0], [0], [1], [0, 0, 1, 1], [], []>} : vector<1x32xf32>, vector<32x2xf32>, vector<1x2xf32> -> vector<1x2xf32>
    %c0_537 = arith.constant 0 : index
    %c0_538 = arith.constant 0 : index
    %567 = vector.load %arg17[%c0_537, %c0_538] : memref<1x2xf32, #tpu.memory_space<vmem>>, vector<1x2xf32>
    %568 = arith.addf %566, %567 : vector<1x2xf32>
    %c0_539 = arith.constant 0 : index
    %c0_540 = arith.constant 0 : index
    %c0_541 = arith.constant 0 : index
    %569 = vector.load %arg18[%c0_539, %c0_540, %c0_541] : memref<1x1x2xf32, #tpu.memory_space<vmem>>, vector<1x1x2xf32>
    %570 = vector.shape_cast %569 : vector<1x1x2xf32> to vector<1x2xf32>
    %571 = vector.shape_cast %568 : vector<1x2xf32> to vector<1x1x2xf32>
    tpu.vector_store %arg18[%c0_539, %c0_540, %c0_541], %571 {strides = array<i32>} : memref<1x1x2xf32, #tpu.memory_space<vmem>>, vector<1x1x2xf32>,
    return
  }
  func.func @transform_0(%arg0: i32) -> (i32, i32, i32) {
    %c0_i32 = arith.constant 0 : i32
    %c0_i32_0 = arith.constant 0 : i32
    %c0_i32_1 = arith.constant 0 : i32
    return %arg0, %c0_i32, %c0_i32_0 : i32, i32, i32
  }
  func.func @transform_1(%arg0: i32) -> (i32, i32, i32) {
    %c0_i32 = arith.constant 0 : i32
    %c0_i32_0 = arith.constant 0 : i32
    %c0_i32_1 = arith.constant 0 : i32
    return %arg0, %c0_i32, %c0_i32_0 : i32, i32, i32
  }
  func.func @transform_2(%arg0: i32) -> (i32, i32) {
    %c0_i32 = arith.constant 0 : i32
    %c0_i32_0 = arith.constant 0 : i32
    %c0_i32_1 = arith.constant 0 : i32
    return %c0_i32, %c0_i32_0 : i32, i32
  }
  func.func @transform_3(%arg0: i32) -> (i32, i32) {
    %c0_i32 = arith.constant 0 : i32
    %c0_i32_0 = arith.constant 0 : i32
    %c0_i32_1 = arith.constant 0 : i32
    return %c0_i32, %c0_i32_0 : i32, i32
  }
  func.func @transform_4(%arg0: i32) -> (i32, i32, i32) {
    %c0_i32 = arith.constant 0 : i32
    %c0_i32_0 = arith.constant 0 : i32
    %c0_i32_1 = arith.constant 0 : i32
    %c0_i32_2 = arith.constant 0 : i32
    return %c0_i32, %c0_i32_0, %c0_i32_1 : i32, i32, i32
  }
  func.func @transform_5(%arg0: i32) -> (i32, i32) {
    %c0_i32 = arith.constant 0 : i32
    %c0_i32_0 = arith.constant 0 : i32
    %c0_i32_1 = arith.constant 0 : i32
    return %c0_i32, %c0_i32_0 : i32, i32
  }
  func.func @transform_6(%arg0: i32) -> (i32, i32, i32) {
    %c0_i32 = arith.constant 0 : i32
    %c0_i32_0 = arith.constant 0 : i32
    %c0_i32_1 = arith.constant 0 : i32
    %c0_i32_2 = arith.constant 0 : i32
    return %c0_i32, %c0_i32_0, %c0_i32_1 : i32, i32, i32
  }
  func.func @transform_7(%arg0: i32) -> (i32, i32) {
    %c0_i32 = arith.constant 0 : i32
    %c0_i32_0 = arith.constant 0 : i32
    %c0_i32_1 = arith.constant 0 : i32
    return %c0_i32, %c0_i32_0 : i32, i32
  }
  func.func @transform_8(%arg0: i32) -> (i32, i32) {
    %c0_i32 = arith.constant 0 : i32
    %c0_i32_0 = arith.constant 0 : i32
    %c0_i32_1 = arith.constant 0 : i32
    return %c0_i32, %c0_i32_0 : i32, i32
  }
  func.func @transform_9(%arg0: i32) -> (i32, i32) {
    %c0_i32 = arith.constant 0 : i32
    %c0_i32_0 = arith.constant 0 : i32
    %c0_i32_1 = arith.constant 0 : i32
    return %c0_i32, %c0_i32_0 : i32, i32
  }
  func.func @transform_10(%arg0: i32) -> (i32, i32) {
    %c0_i32 = arith.constant 0 : i32
    %c0_i32_0 = arith.constant 0 : i32
    %c0_i32_1 = arith.constant 0 : i32
    return %c0_i32, %c0_i32_0 : i32, i32
  }
  func.func @transform_11(%arg0: i32) -> (i32, i32) {
    %c0_i32 = arith.constant 0 : i32
    %c0_i32_0 = arith.constant 0 : i32
    %c0_i32_1 = arith.constant 0 : i32
    return %c0_i32, %c0_i32_0 : i32, i32
  }
  func.func @transform_12(%arg0: i32) -> (i32, i32) {
    %c0_i32 = arith.constant 0 : i32
    %c0_i32_0 = arith.constant 0 : i32
    %c0_i32_1 = arith.constant 0 : i32
    return %c0_i32, %c0_i32_0 : i32, i32
  }
  func.func @transform_13(%arg0: i32) -> (i32, i32) {
    %c0_i32 = arith.constant 0 : i32
    %c0_i32_0 = arith.constant 0 : i32
    %c0_i32_1 = arith.constant 0 : i32
    return %c0_i32, %c0_i32_0 : i32, i32
  }
  func.func @transform_14(%arg0: i32) -> (i32, i32) {
    %c0_i32 = arith.constant 0 : i32
    %c0_i32_0 = arith.constant 0 : i32
    %c0_i32_1 = arith.constant 0 : i32
    return %c0_i32, %c0_i32_0 : i32, i32
  }
  func.func @transform_15(%arg0: i32) -> (i32, i32) {
    %c0_i32 = arith.constant 0 : i32
    %c0_i32_0 = arith.constant 0 : i32
    %c0_i32_1 = arith.constant 0 : i32
    return %c0_i32, %c0_i32_0 : i32, i32
  }
  func.func @transform_16(%arg0: i32) -> (i32, i32) {
    %c0_i32 = arith.constant 0 : i32
    %c0_i32_0 = arith.constant 0 : i32
    %c0_i32_1 = arith.constant 0 : i32
    return %c0_i32, %c0_i32_0 : i32, i32
  }
  func.func @transform_17(%arg0: i32) -> (i32, i32, i32) {
    %c0_i32 = arith.constant 0 : i32
    %c0_i32_0 = arith.constant 0 : i32
    %c0_i32_1 = arith.constant 0 : i32
    return %arg0, %c0_i32, %c0_i32_0 : i32, i32, i32
  }
}

</mosaic_0001>

<bundles_post_ra>
// kernel: hybrid_forward.1
= control target key start
LH: loop header
LB: loop body
LE: loop exit
PB: predicated region body
PF: predicated region fallthrough
CT: control target
= control target key end

     0   :  { %s13656_s0 = inlined_call_operand.vmem [shape: f32[2,1,256], index: 0, kind: input, shape index: {}]   ;;  %s13657_s1 = inlined_call_operand.vmem [shape: f32[2,1024,9], index: 1, kind: input, shape index: {}]   ;;  %s13658_s2 = inlined_call_operand.vmem [shape: f32[9,32], index: 2, kind: input, shape index: {}]   ;;  %s13659_s3 = inlined_call_operand.vmem [shape: f32[1,32], index: 3, kind: input, shape index: {}]   ;;  %s13660_s4 = inlined_call_operand.vmem [shape: f32[9,32,64], index: 4, kind: input, shape index: {}]   ;;  %s13661_s5 = inlined_call_operand.vmem [shape: f32[1,64], index: 5, kind: input, shape index: {}]   ;;  %s13662_s6 = inlined_call_operand.vmem [shape: f32[9,64,128], index: 6, kind: input, shape index: {}]   ;;  %s13663_s7 = inlined_call_operand.vmem [shape: f32[1,128], index: 7, kind: input, shape index: {}]   ;;  %s13664_s8 = inlined_call_operand.vmem [shape: f32[32,2048], index: 8, kind: input, shape index: {}]   ;;  %s13665_s9 = inlined_call_operand.vmem [shape: f32[1,32], index: 9, kind: input, shape index: {}]   ;;  %s13666_s10 = inlined_call_operand.vmem [shape: f32[256,32], index: 10, kind: input, shape index: {}]   ;;  %s13667_s11 = inlined_call_operand.vmem [shape: f32[1,32], index: 11, kind: input, shape index: {}]   ;;  %s13668_s12 = inlined_call_operand.vmem [shape: f32[32,32], index: 12, kind: input, shape index: {}]   ;;  %s13669_s13 = inlined_call_operand.vmem [shape: f32[32,32], index: 13, kind: input, shape index: {}]   ;;  %s13670_s14 = inlined_call_operand.vmem [shape: f32[1,32], index: 14, kind: input, shape index: {}]   ;;  %s13671_s15 = inlined_call_operand.vmem [shape: f32[32,2], index: 15, kind: input, shape index: {}]   ;;  %s13672_s16 = inlined_call_operand.vmem [shape: f32[1,2], index: 16, kind: input, shape index: {}]   ;;  %s13673_s17 = inlined_call_operand.hbm [shape: f32[2,1,2], index: 17, kind: output, shape index: {}]  }
   0x1   :  { %13678 = sst [smem:[#allocation17_spill]] %s13656_s0 }
   0x2   :  { %13679 = sst [smem:[#allocation18_spill]] %s13657_s1 }
   0x3   :  { %13680 = sst [smem:[#allocation19_spill]] %s13658_s2 }
   0x4   :  { %13681 = sst [smem:[#allocation20_spill]] %s13659_s3 }
   0x5   :  { %13682 = sst [smem:[#allocation21_spill]] %s13660_s4 }
   0x6   :  { %13683 = sst [smem:[#allocation22_spill]] %s13661_s5 }
   0x7   :  { %22 = vsyncpa [#allocation9], 0 }
   0x8   :  { %24 = vsyncpa [#allocation9 + $0x1], 0  ;;  %s9853_s24 = smov 0   ;;  %s9855_s25 = smov 0  }
   0x9   :  { %s9857_s26 = smov 0   ;;  %s9859_s27 = smov 0  }
   0xa LB: > { %13684 = sst [smem:[#allocation11_spill]] %s9756_s26  ;;  %s9874_s28 = sadd.s32 4294967295, %s9760_s27   ;;  %s9760_s27 = sphi %s9859_s27, %s13703_s27   ;;  %s9756_s26 = sphi %s9857_s26, %s13705_s26   ;;  %s9752_s25 = sphi %s9855_s25, %s13707_s25   ;;  %s9748_s24 = sphi %s9853_s24, %s13706_s24  }
   0xb   : > { %s8759_s29 = sadd.s32 4294967294, %s9760_s27   ;;  %s9878_s0 = sadd.s32 1, %s9760_s27  }
   0xc   : > { %13685 = sst [smem:[#allocation12_spill]] %s9878_s0  ;;  %s404_s30 = sadd.s32 1, %s9756_s26 }
   0xd   : > { %s401_s18 = ssub.s32 %s9760_s27, %s9878_s0  ;;  %p414_p0 = scmp.ne.s32.totalorder %s9756_s26, %s9752_s25 }
   0xe   : > { %p402_p1 = scmp.eq.s32.totalorder %s401_s18, 0  ;;  %p415_p2 = scmp.eq.s32.totalorder %s9874_s28, 1 }
   0xf   : > { %p420_p3 = scmp.ne.s32.totalorder %s9752_s25, %s9748_s24  ;;  %p421_p4 = scmp.eq.s32.totalorder %s8759_s29, 1 }
  0x10   : > { %s9889_s19 = scalar_select %p402_p1, %s9756_s26, %s404_s30  }
  0x11   : > { %p9891_p5 = por %p415_p2, %p414_p0  ;;  %p9895_p6 = por %p421_p4, %p420_p3 }
  0x12   : > { %13686 = sst [smem:[#allocation13_spill]] %s9889_s19  ;;  %p8762_p7 = scmp.ge.s32.totalorder %s9760_s27, 1 }
  0x13   : > { %p499_p8 = scmp.lt.s32.totalorder %s9760_s27, 3 }
  0x15   : > { %p500_p9 = pnand %p8762_p7, %p499_p8 }
  0x17   : > { %503 = sbr.rel (%p500_p9) target bundleno = 2156 (0x86c), region = 88 }
  0x1c   : > { %s13689_s2 = sld [smem:[#allocation19_spill]]  ;;  %vm634_vm0 = vcmask 1040384   ;;  %p554_p10 = scmp.lt.s32.totalorder %s9874_s28, 1  ;;  %vm585_vm1 = vcmask 72704   ;;  %vm719_vm2 = vcmask 261120   ;;  %vm3717_vm3 = vcmask 523264  }
  0x1d   : > { %s13690_s23 = sld [smem:[#allocation18_spill]]  ;;  %s552_s26 = sand.u32 1, %s9752_s25   ;;  %vm8677_vm5 = vcmask 8192  }
  0x1e   : > { %s9935_s19 = scalar_select %p554_p10, %s9874_s28, 1 }
  0x1f   : > { %s13691_s4 = sld [smem:[#allocation21_spill]] }
  0x20   : > { %s9643_s21 = sshll.u32 %s9935_s19, 10  ;;  %s13692_s3 = sld [smem:[#allocation20_spill]] }
  0x21   : > { %s13696_s5 = sld [smem:[#allocation22_spill]]  ;;  %s8763_s0 = sshll.u32 %s9935_s19, 1 }
  0x22   : > { %v580_v0 = vld [vmem:[%s13689_s2 + $0x8] sm:$0x1]  ;;  %v9910_v2 = vld [vmem:[%s13689_s2] sm:$0xff] }
  0x23   : > { %v753_v1 = vld [vmem:[%s13689_s2 + $0x8] sm:$0x1]  ;;  %8766 = vmatpush.msk.msra.mxu0 %vm634_vm0, %v580_v0  ;;  %s9945_s29 = scalar_lea.vmem %s13690_s23, %s9643_s21  ;;  %s13702_s23 = sld [smem:[#allocation17_spill]] }
  0x24   : > { %8783 = vmatpush.msk.msra.mxu1 %vm634_vm0, %v753_v1  ;;  %v923_v3 = vld [vmem:[%s13689_s2 + $0x8] sm:$0x1]  ;;  %v563_v8 = vld [vmem:[%s9945_s29] sm:$0xff]  ;;  %v565_v16 = vld [vmem:[%s9945_s29 + $0x10] sm:$0xff]  ;;  %s8688_s21 = scalar_lea.hbm %s13673_s17, %s9874_s28 }
  0x25   : > { %v1093_v4 = vld [vmem:[%s13689_s2 + $0x8] sm:$0x1]  ;;  %8800 = vmatpush.msk.msra.mxu2 %vm634_vm0, %v923_v3  ;;  %653 = vmatpush.msra.mxu0 %v9910_v2  ;;  %v736_v9 = vld [vmem:[%s9945_s29 + $0x80] sm:$0xff]  ;;  %v738_v17 = vld [vmem:[%s9945_s29 + $0x90] sm:$0xff] }
  0x26   : > { %8817 = vmatpush.msk.msra.mxu3 %vm634_vm0, %v1093_v4  ;;  %v1603_v5 = vld [vmem:[%s13689_s2 + $0x8] sm:$0x1]  ;;  %824 = vmatpush.msra.mxu1 %v9910_v2  ;;  %v906_v10 = vld [vmem:[%s9945_s29 + $0x100] sm:$0xff]  ;;  %v908_v18 = vld [vmem:[%s9945_s29 + $0x110] sm:$0xff] }
  0x27   : > { %v1263_v6 = vld [vmem:[%s13689_s2 + $0x8] sm:$0x1]  ;;  %994 = vmatpush.msra.mxu2 %v9910_v2  ;;  %8767 = vmatmul.msk.f32.vlgmr.msra.gmra.mxu0 %vm585_vm1, %v563_v8  ;;  %v1076_v11 = vld [vmem:[%s9945_s29 + $0x180] sm:$0xff]  ;;  %v1078_v19 = vld [vmem:[%s9945_s29 + $0x190] sm:$0xff] }
  0x28   : > { %v1433_v7 = vld [vmem:[%s13689_s2 + $0x8] sm:$0x1]  ;;  %1164 = vmatpush.msra.mxu3 %v9910_v2  ;;  %8834 = vmatpush.msk.msrb.mxu0 %vm634_vm0, %v1263_v6  ;;  %v566_v20 = vld [vmem:[%s9945_s29 + $0x18] sm:$0xff]  ;;  %v567_v24 = vld [vmem:[%s9945_s29 + $0x20] sm:$0xff] }
  0x29   : > { %8868 = vmatpush.msk.msrb.mxu2 %vm634_vm0, %v1603_v5  ;;  %8851 = vmatpush.msk.msrb.mxu1 %vm634_vm0, %v1433_v7  ;;  %v564_v12 = vld [vmem:[%s9945_s29 + $0x8] sm:$0xff]  ;;  %v739_v21 = vld [vmem:[%s9945_s29 + $0x98] sm:$0xff]  ;;  %v740_v25 = vld [vmem:[%s9945_s29 + $0xa0] sm:$0xff] }
  0x2a   : > { %1334 = vmatpush.msrb.mxu0 %v9910_v2  ;;  %8784 = vmatmul.msk.f32.vlgmr.msra.gmra.mxu1 %vm585_vm1, %v736_v9  ;;  %v737_v13 = vld [vmem:[%s9945_s29 + $0x88] sm:$0xff]  ;;  %v909_v22 = vld [vmem:[%s9945_s29 + $0x118] sm:$0xff]  ;;  %v910_v26 = vld [vmem:[%s9945_s29 + $0x120] sm:$0xff] }
  0x2b   : > { %1674 = vmatpush.msrb.mxu2 %v9910_v2  ;;  %8818 = vmatmul.msk.f32.vlgmr.msra.gmra.mxu3 %vm585_vm1, %v1076_v11  ;;  %v907_v14 = vld [vmem:[%s9945_s29 + $0x108] sm:$0xff]  ;;  %v1079_v23 = vld [vmem:[%s9945_s29 + $0x198] sm:$0xff]  ;;  %v1080_v27 = vld [vmem:[%s9945_s29 + $0x1a0] sm:$0xff] }
  0x2c   : > { %8801 = vmatmul.msk.f32.vlgmr.msra.gmra.mxu2 %vm585_vm1, %v906_v10  ;;  %1504 = vmatpush.msrb.mxu1 %v9910_v2  ;;  %v1077_v15 = vld [vmem:[%s9945_s29 + $0x188] sm:$0xff]  ;;  %v569_v32 = vld [vmem:[%s9945_s29 + $0x30] sm:$0xff]  ;;  %v570_v36 = vld [vmem:[%s9945_s29 + $0x38] sm:$0xff] }
  0x2d   : > { %v568_v28 = vld [vmem:[%s9945_s29 + $0x28] sm:$0xff]  ;;  %v742_v33 = vld [vmem:[%s9945_s29 + $0xb0] sm:$0xff]  ;;  %v743_v37 = vld [vmem:[%s9945_s29 + $0xb8] sm:$0xff] }
  0x2e   : > { %v741_v29 = vld [vmem:[%s9945_s29 + $0xa8] sm:$0xff]  ;;  %v912_v34 = vld [vmem:[%s9945_s29 + $0x130] sm:$0xff]  ;;  %v913_v38 = vld [vmem:[%s9945_s29 + $0x138] sm:$0xff] }
  0x2f   : > { %8768 = vmatmul.msk.f32.gmra.mxu0 %vm585_vm1, %v564_v12  ;;  %v911_v30 = vld [vmem:[%s9945_s29 + $0x128] sm:$0xff]  ;;  %v1082_v35 = vld [vmem:[%s9945_s29 + $0x1b0] sm:$0xff]  ;;  %v1083_v39 = vld [vmem:[%s9945_s29 + $0x1b8] sm:$0xff] }
  0x30   : > { %v1081_v31 = vld [vmem:[%s9945_s29 + $0x1a8] sm:$0xff]  ;;  %v571_v40 = vld [vmem:[%s9945_s29 + $0x40] sm:$0xff]  ;;  %v573_v49 = vld [vmem:[%s9945_s29 + $0x50] sm:$0xff] }
  0x31   : > { %v744_v41 = vld [vmem:[%s9945_s29 + $0xc0] sm:$0xff]  ;;  %v572_v44 = vld [vmem:[%s9945_s29 + $0x48] sm:$0xff]  ;;  %v746_v50 = vld [vmem:[%s9945_s29 + $0xd0] sm:$0xff] }
  0x32   : > { %8785 = vmatmul.msk.f32.gmra.mxu1 %vm585_vm1, %v737_v13  ;;  %v914_v42 = vld [vmem:[%s9945_s29 + $0x140] sm:$0xff]  ;;  %v745_v45 = vld [vmem:[%s9945_s29 + $0xc8] sm:$0xff]  ;;  %v916_v51 = vld [vmem:[%s9945_s29 + $0x150] sm:$0xff] }
  0x33   : > { %8819 = vmatmul.msk.f32.gmra.mxu3 %vm585_vm1, %v1077_v15  ;;  %v1084_v43 = vld [vmem:[%s9945_s29 + $0x1c0] sm:$0xff]  ;;  %v915_v46 = vld [vmem:[%s9945_s29 + $0x148] sm:$0xff]  ;;  %v1086_v52 = vld [vmem:[%s9945_s29 + $0x1d0] sm:$0xff] }
  0x34   : > { %8802 = vmatmul.msk.f32.gmra.mxu2 %vm585_vm1, %v907_v14  ;;  %v1085_v47 = vld [vmem:[%s9945_s29 + $0x1c8] sm:$0xff]  ;;  %v574_v53 = vld [vmem:[%s9945_s29 + $0x58] sm:$0xff]  ;;  %v575_v57 = vld [vmem:[%s9945_s29 + $0x60] sm:$0xff] }
  0x35   : > { %v1773_v48 = vld [vmem:[%s13689_s2 + $0x8] sm:$0x1]  ;;  %v747_v54 = vld [vmem:[%s9945_s29 + $0xd8] sm:$0xff]  ;;  %v748_v58 = vld [vmem:[%s9945_s29 + $0xe0] sm:$0xff] }
  0x36   : > { %8885 = vmatpush.msk.msrb.mxu3 %vm634_vm0, %v1773_v48  ;;  %v917_v55 = vld [vmem:[%s9945_s29 + $0x158] sm:$0xff]  ;;  %v918_v59 = vld [vmem:[%s9945_s29 + $0x160] sm:$0xff]  ;;  %v576_v63 = vld [vmem:[%s9945_s29 + $0x68] sm:$0xff] }
  0x37   : > { %8769 = vmatmul.msk.f32.gmra.mxu0 %vm585_vm1, %v565_v16  ;;  %v1087_v56 = vld [vmem:[%s9945_s29 + $0x1d8] sm:$0xff]  ;;  %v1088_v60 = vld [vmem:[%s9945_s29 + $0x1e0] sm:$0xff]  ;;  %v749_v0 = vld [vmem:[%s9945_s29 + $0xe8] sm:$0xff] }
  0x38   : > { %1844 = vmatpush.msrb.mxu3 %v9910_v2  ;;  %v8941_v61 = vld [vmem:[%s13691_s4 + $0x58] sm:$0xff]  ;;  %v919_v1 = vld [vmem:[%s9945_s29 + $0x168] sm:$0xff]  ;;  %v577_v4 = vld [vmem:[%s9945_s29 + $0x70] sm:$0xff] }
  0x39   : > { %v8905_v62 = vld [vmem:[%s13691_s4 + $0x38] sm:$0xff]  ;;  %2712 = vmatpush.msra.mxu2 %v8941_v61  ;;  %v1089_v2 = vld [vmem:[%s9945_s29 + $0x1e8] sm:$0xff]  ;;  %v750_v5 = vld [vmem:[%s9945_s29 + $0xf0] sm:$0xff] }
  0x3a   : > { %8786 = vmatmul.msk.f32.gmra.mxu1 %vm585_vm1, %v738_v17  ;;  %2465 = vmatpush.msra.mxu0 %v8905_v62  ;;  %v2383_v3 = vld [vmem:[%s13691_s4 + $0x18] sm:$0xff]  ;;  %v920_v6 = vld [vmem:[%s9945_s29 + $0x170] sm:$0xff]  ;;  %v10096_v12 = vld [vmem:[%s13692_s3] ss:$0 sm:$0xff] }
  0x3b   : > { %8820 = vmatmul.msk.f32.gmra.mxu3 %vm585_vm1, %v1078_v19  ;;  %2578 = vmatpush.msra.mxu1 %v2383_v3  ;;  %v1090_v7 = vld [vmem:[%s9945_s29 + $0x1f0] sm:$0xff]  ;;  %v578_v8 = vld [vmem:[%s9945_s29 + $0x78] sm:$0xff]  ;;  %v10101_v13 = vld [vmem:[%s13692_s3] ss:$0 sm:$0xff] }
  0x3c   : > { %8803 = vmatmul.msk.f32.gmra.mxu2 %vm585_vm1, %v908_v18  ;;  %v751_v9 = vld [vmem:[%s9945_s29 + $0xf8] sm:$0xff]  ;;  %v1246_v16 = vld [vmem:[%s9945_s29 + $0x200] sm:$0xff] }
  0x3d   : > { %v921_v10 = vld [vmem:[%s9945_s29 + $0x178] sm:$0xff]  ;;  %v1416_v17 = vld [vmem:[%s9945_s29 + $0x280] sm:$0xff] }
  0x3e   : > { %v1091_v11 = vld [vmem:[%s9945_s29 + $0x1f8] sm:$0xff] }
  0x3f   : > { %8770 = vmatmul.msk.f32.gmra.mxu0 %vm585_vm1, %v566_v20  ;;  %v1586_v20 = vld [vmem:[%s9945_s29 + $0x300] sm:$0xff]  ;;  %v1249_v3 = vld [vmem:[%s9945_s29 + $0x218] sm:$0xff] }
  0x42   : > { %8787 = vmatmul.msk.f32.gmra.mxu1 %vm585_vm1, %v739_v21  ;;  %v1756_v21 = vld [vmem:[%s9945_s29 + $0x380] sm:$0xff] }
  0x43   : > { %8821 = vmatmul.msk.f32.gmra.mxu3 %vm585_vm1, %v1079_v23 }
  0x44   : > { %8804 = vmatmul.msk.f32.gmra.mxu2 %vm585_vm1, %v909_v22 }
  0x47   : > { %8771 = vmatmul.msk.f32.gmra.mxu0 %vm585_vm1, %v567_v24  ;;  %v10116_v24 = vld [vmem:[%s13692_s3] ss:$0 sm:$0xff] }
  0x4a   : > { %8788 = vmatmul.msk.f32.gmra.mxu1 %vm585_vm1, %v740_v25  ;;  %v10121_v25 = vld [vmem:[%s13692_s3] ss:$0 sm:$0xff] }
  0x4b   : > { %8822 = vmatmul.msk.f32.gmra.mxu3 %vm585_vm1, %v1080_v27 }
  0x4c   : > { %8805 = vmatmul.msk.f32.gmra.mxu2 %vm585_vm1, %v910_v26 }
  0x4f   : > { %8772 = vmatmul.msk.f32.gmra.mxu0 %vm585_vm1, %v568_v28 }
  0x52   : > { %8789 = vmatmul.msk.f32.gmra.mxu1 %vm585_vm1, %v741_v29 }
  0x53   : > { %8823 = vmatmul.msk.f32.gmra.mxu3 %vm585_vm1, %v1081_v31 }
  0x54   : > { %8806 = vmatmul.msk.f32.gmra.mxu2 %vm585_vm1, %v911_v30 }
  0x57   : > { %8773 = vmatmul.msk.f32.gmra.mxu0 %vm585_vm1, %v569_v32  ;;  %v1247_v32 = vld [vmem:[%s9945_s29 + $0x208] sm:$0xff] }
  0x5a   : > { %8790 = vmatmul.msk.f32.gmra.mxu1 %vm585_vm1, %v742_v33  ;;  %v1417_v33 = vld [vmem:[%s9945_s29 + $0x288] sm:$0xff] }
  0x5b   : > { %8824 = vmatmul.msk.f32.gmra.mxu3 %vm585_vm1, %v1082_v35 }
  0x5c   : > { %8807 = vmatmul.msk.f32.gmra.mxu2 %vm585_vm1, %v912_v34 }
  0x5f   : > { %8774 = vmatmul.msk.f32.gmra.mxu0 %vm585_vm1, %v570_v36  ;;  %v1587_v36 = vld [vmem:[%s9945_s29 + $0x308] sm:$0xff] }
  0x62   : > { %8791 = vmatmul.msk.f32.gmra.mxu1 %vm585_vm1, %v743_v37  ;;  %v1757_v37 = vld [vmem:[%s9945_s29 + $0x388] sm:$0xff] }
  0x63   : > { %8825 = vmatmul.msk.f32.gmra.mxu3 %vm585_vm1, %v1083_v39 }
  0x64   : > { %8808 = vmatmul.msk.f32.gmra.mxu2 %vm585_vm1, %v913_v38 }
  0x67   : > { %8775 = vmatmul.msk.f32.gmra.mxu0 %vm585_vm1, %v571_v40 }
  0x6a   : > { %8792 = vmatmul.msk.f32.gmra.mxu1 %vm585_vm1, %v744_v41 }
  0x6b   : > { %8826 = vmatmul.msk.f32.gmra.mxu3 %vm585_vm1, %v1084_v43  ;;  %v8904_v43 = vld [vmem:[%s13691_s4 + $0x30] sm:$0xff] }
  0x6c   : > { %8809 = vmatmul.msk.f32.gmra.mxu2 %vm585_vm1, %v914_v42  ;;  %v8940_v42 = vld [vmem:[%s13691_s4 + $0x50] sm:$0xff]  ;;  %2466 = vmatpush.msra.mxu0 %v8904_v43 }
  0x6d   : > { %2713 = vmatpush.msra.mxu2 %v8940_v42 }
  0x6f   : > { %8776 = vmatmul.msk.f32.gmra.mxu0 %vm585_vm1, %v572_v44  ;;  %v2382_v44 = vld [vmem:[%s13691_s4 + $0x10] sm:$0xff] }
  0x70   : > { %2579 = vmatpush.msra.mxu1 %v2382_v44  ;;  %v1591_v44 = vld [vmem:[%s9945_s29 + $0x328] sm:$0xff] }
  0x72   : > { %8793 = vmatmul.msk.f32.gmra.mxu1 %vm585_vm1, %v745_v45 }
  0x73   : > { %8827 = vmatmul.msk.f32.gmra.mxu3 %vm585_vm1, %v1085_v47 }
  0x74   : > { %8810 = vmatmul.msk.f32.gmra.mxu2 %vm585_vm1, %v915_v46 }
  0x77   : > { %8777 = vmatmul.msk.f32.gmra.mxu0 %vm585_vm1, %v573_v49 }
  0x7a   : > { %8794 = vmatmul.msk.f32.gmra.mxu1 %vm585_vm1, %v746_v50 }
  0x7b   : > { %8828 = vmatmul.msk.f32.gmra.mxu3 %vm585_vm1, %v1086_v52  ;;  %v1418_v52 = vld [vmem:[%s9945_s29 + $0x290] sm:$0xff] }
  0x7c   : > { %8811 = vmatmul.msk.f32.gmra.mxu2 %vm585_vm1, %v916_v51  ;;  %v1248_v51 = vld [vmem:[%s9945_s29 + $0x210] sm:$0xff] }
  0x7f   : > { %8778 = vmatmul.msk.f32.gmra.mxu0 %vm585_vm1, %v574_v53 }
  0x82   : > { %8795 = vmatmul.msk.f32.gmra.mxu1 %vm585_vm1, %v747_v54 }
  0x83   : > { %8829 = vmatmul.msk.f32.gmra.mxu3 %vm585_vm1, %v1087_v56  ;;  %v1758_v56 = vld [vmem:[%s9945_s29 + $0x390] sm:$0xff] }
  0x84   : > { %8812 = vmatmul.msk.f32.gmra.mxu2 %vm585_vm1, %v917_v55  ;;  %v1588_v55 = vld [vmem:[%s9945_s29 + $0x310] sm:$0xff] }
  0x87   : > { %8779 = vmatmul.msk.f32.gmra.mxu0 %vm585_vm1, %v575_v57 }
  0x8a   : > { %8796 = vmatmul.msk.f32.gmra.mxu1 %vm585_vm1, %v748_v58 }
  0x8b   : > { %8830 = vmatmul.msk.f32.gmra.mxu3 %vm585_vm1, %v1088_v60 }
  0x8c   : > { %8813 = vmatmul.msk.f32.gmra.mxu2 %vm585_vm1, %v918_v59 }
  0x8f   : > { %8780 = vmatmul.msk.f32.gmra.mxu0 %vm585_vm1, %v576_v63 }
  0x92   : > { %8797 = vmatmul.msk.f32.gmra.mxu1 %vm585_vm1, %v749_v0 }
  0x93   : > { %8831 = vmatmul.msk.f32.gmra.mxu3 %vm585_vm1, %v1089_v2 }
  0x94   : > { %8814 = vmatmul.msk.f32.gmra.mxu2 %vm585_vm1, %v919_v1 }
  0x97   : > { %8781 = vmatmul.msk.f32.gmra.mxu0 %vm585_vm1, %v577_v4  ;;  %v1419_v4 = vld [vmem:[%s9945_s29 + $0x298] sm:$0xff] }
  0x9a   : > { %8798 = vmatmul.msk.f32.gmra.mxu1 %vm585_vm1, %v750_v5 }
  0x9b   : > { %8832 = vmatmul.msk.f32.gmra.mxu3 %vm585_vm1, %v1090_v7  ;;  %v1589_v7 = vld [vmem:[%s9945_s29 + $0x318] sm:$0xff] }
  0x9c   : > { %8815 = vmatmul.msk.f32.gmra.mxu2 %vm585_vm1, %v920_v6 }
  0x9f   : > { %8782 = vmatmul.msk.f32.gmra.mxu0 %vm585_vm1, %v578_v8  ;;  %v1759_v8 = vld [vmem:[%s9945_s29 + $0x398] sm:$0xff] }
  0xa2   : > { %8799 = vmatmul.msk.f32.gmra.mxu1 %vm585_vm1, %v751_v9 }
  0xa3   : > { %8833 = vmatmul.msk.f32.gmra.mxu3 %vm585_vm1, %v1091_v11  ;;  %v9762_v11 = vmov 0.0  }
  0xa4   : > { %8816 = vmatmul.msk.f32.gmra.mxu2 %vm585_vm1, %v921_v10  ;;  %v655_v14 = vpop.f32.mrf.mxu0  ;;  %1926 = vst.msk [vmem:[#allocation5] sm:$0xff] %vm719_vm2, %v9762_v11 }
  0xa5   : > { %v656_v18 = vadd.f32 %v10096_v12, %v655_v14  ;;  %1927 = vst.msk [vmem:[#allocation5 + $0x8] sm:$0xff] %vm719_vm2, %v9762_v11 }
  0xa6   : > { %1928 = vst.msk [vmem:[#allocation5 + $0x10] sm:$0xff] %vm719_vm2, %v9762_v11 }
  0xa7   : > { %v826_v15 = vpop.f32.mrf.mxu1  ;;  %v703_v22 = vmax.f32 %v656_v18, 0.0  ;;  %8835 = vmatmul.msk.f32.vlgmr.msrb.gmra.mxu0 %vm585_vm1, %v1246_v16  ;;  %1929 = vst.msk [vmem:[#allocation5 + $0x18] sm:$0xff] %vm719_vm2, %v9762_v11 }
  0xa8   : > { %v827_v19 = vadd.f32 %v10101_v13, %v826_v15  ;;  %1930 = vst.msk [vmem:[#allocation5 + $0x20] sm:$0xff] %vm719_vm2, %v9762_v11 }
  0xa9   : > { %720 = vst.msk [vmem:[#allocation2] sm:$0xff] %vm719_vm2, %v703_v22  ;;  %v1250_v22 = vld [vmem:[%s9945_s29 + $0x220] sm:$0xff] }
  0xaa   : > { %v874_v23 = vmax.f32 %v827_v19, 0.0  ;;  %8852 = vmatmul.msk.f32.vlgmr.msrb.gmra.mxu1 %vm585_vm1, %v1416_v17  ;;  %1931 = vst.msk [vmem:[#allocation5 + $0x28] sm:$0xff] %vm719_vm2, %v9762_v11 }
  0xab   : > { %8886 = vmatmul.msk.f32.vlgmr.msrb.gmra.mxu3 %vm585_vm1, %v1756_v21  ;;  %1932 = vst.msk [vmem:[#allocation5 + $0x30] sm:$0xff] %vm719_vm2, %v9762_v11 }
  0xac   : > { %8869 = vmatmul.msk.f32.vlgmr.msrb.gmra.mxu2 %vm585_vm1, %v1586_v20  ;;  %890 = vst.msk [vmem:[#allocation2 + $0x80] sm:$0xff] %vm719_vm2, %v874_v23  ;;  %v658_v30 = vpop.f32.mrf.mxu0  ;;  %v1420_v23 = vld [vmem:[%s9945_s29 + $0x2a0] sm:$0xff] }
  0xad   : > { %v659_v34 = vadd.f32 %v10096_v12, %v658_v30  ;;  %1933 = vst.msk [vmem:[#allocation5 + $0x38] sm:$0xff] %vm719_vm2, %v9762_v11 }
  0xae   : > { %v1166_v27 = vpop.f32.mrf.mxu3  ;;  %1934 = vst.msk [vmem:[#allocation5 + $0x40] sm:$0xff] %vm719_vm2, %v9762_v11 }
  0xaf   : > { %v996_v26 = vpop.f32.mrf.mxu2  ;;  %v1167_v29 = vadd.f32 %v10121_v25, %v1166_v27  ;;  %v829_v31 = vpop.f32.mrf.mxu1  ;;  %v704_v40 = vmax.f32 %v659_v34, 0.0  ;;  %8836 = vmatmul.msk.f32.gmra.mxu0 %vm585_vm1, %v1247_v32  ;;  %1935 = vst.msk [vmem:[#allocation5 + $0x48] sm:$0xff] %vm719_vm2, %v9762_v11 }
  0xb0   : > { %v997_v28 = vadd.f32 %v10116_v24, %v996_v26  ;;  %v830_v35 = vadd.f32 %v10101_v13, %v829_v31  ;;  %1936 = vst.msk [vmem:[#allocation5 + $0x50] sm:$0xff] %vm719_vm2, %v9762_v11 }
  0xb1   : > { %v1214_v39 = vmax.f32 %v1167_v29, 0.0  ;;  %721 = vst.msk [vmem:[#allocation2 + $0x8] sm:$0xff] %vm719_vm2, %v704_v40  ;;  %v1760_v29 = vld [vmem:[%s9945_s29 + $0x3a0] sm:$0xff]  ;;  %v1251_v40 = vld [vmem:[%s9945_s29 + $0x228] sm:$0xff] }
  0xb2   : > { %v1044_v38 = vmax.f32 %v997_v28, 0.0  ;;  %v875_v41 = vmax.f32 %v830_v35, 0.0  ;;  %8853 = vmatmul.msk.f32.gmra.mxu1 %vm585_vm1, %v1417_v33  ;;  %v1590_v28 = vld [vmem:[%s9945_s29 + $0x320] sm:$0xff]  ;;  %1937 = vst.msk [vmem:[#allocation5 + $0x58] sm:$0xff] %vm719_vm2, %v9762_v11 }
  0xb3   : > { %8887 = vmatmul.msk.f32.gmra.mxu3 %vm585_vm1, %v1757_v37  ;;  %1230 = vst.msk [vmem:[#allocation2 + $0x180] sm:$0xff] %vm719_vm2, %v1214_v39 }
  0xb4   : > { %1060 = vst.msk [vmem:[#allocation2 + $0x100] sm:$0xff] %vm719_vm2, %v1044_v38  ;;  %8870 = vmatmul.msk.f32.gmra.mxu2 %vm585_vm1, %v1587_v36  ;;  %v661_v49 = vpop.f32.mrf.mxu0 }
  0xb5   : > { %891 = vst.msk [vmem:[#allocation2 + $0x88] sm:$0xff] %vm719_vm2, %v875_v41  ;;  %v662_v53 = vadd.f32 %v10096_v12, %v661_v49  ;;  %v1421_v41 = vld [vmem:[%s9945_s29 + $0x2a8] sm:$0xff] }
  0xb6   : > { %v1169_v46 = vpop.f32.mrf.mxu3  ;;  %1938 = vst.msk [vmem:[#allocation5 + $0x60] sm:$0xff] %vm719_vm2, %v9762_v11 }
  0xb7   : > { %v999_v45 = vpop.f32.mrf.mxu2  ;;  %v1170_v48 = vadd.f32 %v10121_v25, %v1169_v46  ;;  %v832_v50 = vpop.f32.mrf.mxu1  ;;  %v705_v59 = vmax.f32 %v662_v53, 0.0  ;;  %8837 = vmatmul.msk.f32.gmra.mxu0 %vm585_vm1, %v1248_v51  ;;  %v8903_v53 = vld [vmem:[%s13691_s4 + $0x28] sm:$0xff]  ;;  %1939 = vst.msk [vmem:[#allocation5 + $0x68] sm:$0xff] %vm719_vm2, %v9762_v11 }
  0xb8   : > { %v1000_v47 = vadd.f32 %v10116_v24, %v999_v45  ;;  %v833_v54 = vadd.f32 %v10101_v13, %v832_v50  ;;  %v1761_v45 = vld [vmem:[%s9945_s29 + $0x3a8] sm:$0xff]  ;;  %2467 = vmatpush.msra.mxu0 %v8903_v53  ;;  %1940 = vst.msk [vmem:[#allocation5 + $0x70] sm:$0xff] %vm719_vm2, %v9762_v11 }
  0xb9   : > { %v1215_v58 = vmax.f32 %v1170_v48, 0.0  ;;  %722 = vst.msk [vmem:[#allocation2 + $0x10] sm:$0xff] %vm719_vm2, %v705_v59  ;;  %v1252_v59 = vld [vmem:[%s9945_s29 + $0x230] sm:$0xff]  ;;  %v1765_v53 = vld [vmem:[%s9945_s29 + $0x3c8] sm:$0xff] }
  0xba   : > { %v1045_v57 = vmax.f32 %v1000_v47, 0.0  ;;  %v876_v60 = vmax.f32 %v833_v54, 0.0  ;;  %8854 = vmatmul.msk.f32.gmra.mxu1 %vm585_vm1, %v1418_v52  ;;  %v8939_v52 = vld [vmem:[%s13691_s4 + $0x48] sm:$0xff]  ;;  %1941 = vst.msk [vmem:[#allocation5 + $0x78] sm:$0xff] %vm719_vm2, %v9762_v11 }
  0xbb   : > { %8888 = vmatmul.msk.f32.gmra.mxu3 %vm585_vm1, %v1758_v56  ;;  %1231 = vst.msk [vmem:[#allocation2 + $0x188] sm:$0xff] %vm719_vm2, %v1215_v58  ;;  %v2381_v54 = vld [vmem:[%s13691_s4 + $0x8] sm:$0xff]  ;;  %2714 = vmatpush.msra.mxu2 %v8939_v52 }
  0xbc   : > { %1061 = vst.msk [vmem:[#allocation2 + $0x108] sm:$0xff] %vm719_vm2, %v1045_v57  ;;  %8871 = vmatmul.msk.f32.gmra.mxu2 %vm585_vm1, %v1588_v55  ;;  %v664_v1 = vpop.f32.mrf.mxu0  ;;  %2580 = vmatpush.msra.mxu1 %v2381_v54  ;;  %v1595_v52 = vld [vmem:[%s9945_s29 + $0x348] sm:$0xff] }
  0xbd   : > { %892 = vst.msk [vmem:[#allocation2 + $0x90] sm:$0xff] %vm719_vm2, %v876_v60  ;;  %v665_v5 = vadd.f32 %v10096_v12, %v664_v1  ;;  %v1422_v60 = vld [vmem:[%s9945_s29 + $0x2b0] sm:$0xff] }
  0xbe   : > { %v1172_v62 = vpop.f32.mrf.mxu3  ;;  %1942 = vst.msk [vmem:[#allocation5 + $0x80] sm:$0xff] %vm719_vm2, %v9762_v11 }
  0xbf   : > { %v1002_v61 = vpop.f32.mrf.mxu2  ;;  %v1173_v0 = vadd.f32 %v10121_v25, %v1172_v62  ;;  %v835_v2 = vpop.f32.mrf.mxu1  ;;  %v706_v14 = vmax.f32 %v665_v5, 0.0  ;;  %8838 = vmatmul.msk.f32.gmra.mxu0 %vm585_vm1, %v1249_v3  ;;  %1943 = vst.msk [vmem:[#allocation5 + $0x88] sm:$0xff] %vm719_vm2, %v9762_v11 }
  0xc0   : > { %v1003_v63 = vadd.f32 %v10116_v24, %v1002_v61  ;;  %v836_v6 = vadd.f32 %v10101_v13, %v835_v2  ;;  %1944 = vst.msk [vmem:[#allocation5 + $0x90] sm:$0xff] %vm719_vm2, %v9762_v11 }
  0xc1   : > { %v1216_v10 = vmax.f32 %v1173_v0, 0.0  ;;  %723 = vst.msk [vmem:[#allocation2 + $0x18] sm:$0xff] %vm719_vm2, %v706_v14  ;;  %v1762_v0 = vld [vmem:[%s9945_s29 + $0x3b0] sm:$0xff]  ;;  %v1253_v14 = vld [vmem:[%s9945_s29 + $0x238] sm:$0xff] }
  0xc2   : > { %v1046_v9 = vmax.f32 %v1003_v63, 0.0  ;;  %v877_v15 = vmax.f32 %v836_v6, 0.0  ;;  %8855 = vmatmul.msk.f32.gmra.mxu1 %vm585_vm1, %v1419_v4  ;;  %v1592_v63 = vld [vmem:[%s9945_s29 + $0x330] sm:$0xff]  ;;  %1945 = vst.msk [vmem:[#allocation5 + $0x98] sm:$0xff] %vm719_vm2, %v9762_v11 }
  0xc3   : > { %8889 = vmatmul.msk.f32.gmra.mxu3 %vm585_vm1, %v1759_v8  ;;  %1232 = vst.msk [vmem:[#allocation2 + $0x190] sm:$0xff] %vm719_vm2, %v1216_v10 }
  0xc4   : > { %1062 = vst.msk [vmem:[#allocation2 + $0x110] sm:$0xff] %vm719_vm2, %v1046_v9  ;;  %8872 = vmatmul.msk.f32.gmra.mxu2 %vm585_vm1, %v1589_v7  ;;  %v667_v20 = vpop.f32.mrf.mxu0 }
  0xc5   : > { %893 = vst.msk [vmem:[#allocation2 + $0x98] sm:$0xff] %vm719_vm2, %v877_v15  ;;  %v668_v26 = vadd.f32 %v10096_v12, %v667_v20  ;;  %v1423_v15 = vld [vmem:[%s9945_s29 + $0x2b8] sm:$0xff] }
  0xc6   : > { %v1175_v17 = vpop.f32.mrf.mxu3  ;;  %1946 = vst.msk [vmem:[#allocation5 + $0xa0] sm:$0xff] %vm719_vm2, %v9762_v11 }
  0xc7   : > { %v1005_v16 = vpop.f32.mrf.mxu2  ;;  %v1176_v19 = vadd.f32 %v10121_v25, %v1175_v17  ;;  %v838_v21 = vpop.f32.mrf.mxu1  ;;  %v707_v32 = vmax.f32 %v668_v26, 0.0  ;;  %8839 = vmatmul.msk.f32.gmra.mxu0 %vm585_vm1, %v1250_v22  ;;  %1947 = vst.msk [vmem:[#allocation5 + $0xa8] sm:$0xff] %vm719_vm2, %v9762_v11 }
  0xc8   : > { %v1006_v18 = vadd.f32 %v10116_v24, %v1005_v16  ;;  %v839_v27 = vadd.f32 %v10101_v13, %v838_v21  ;;  %1948 = vst.msk [vmem:[#allocation5 + $0xb0] sm:$0xff] %vm719_vm2, %v9762_v11 }
  0xc9   : > { %v1217_v31 = vmax.f32 %v1176_v19, 0.0  ;;  %724 = vst.msk [vmem:[#allocation2 + $0x20] sm:$0xff] %vm719_vm2, %v707_v32  ;;  %v1763_v19 = vld [vmem:[%s9945_s29 + $0x3b8] sm:$0xff]  ;;  %v1254_v32 = vld [vmem:[%s9945_s29 + $0x240] sm:$0xff] }
  0xca   : > { %v1047_v30 = vmax.f32 %v1006_v18, 0.0  ;;  %v878_v33 = vmax.f32 %v839_v27, 0.0  ;;  %8856 = vmatmul.msk.f32.gmra.mxu1 %vm585_vm1, %v1420_v23  ;;  %v1593_v18 = vld [vmem:[%s9945_s29 + $0x338] sm:$0xff]  ;;  %1949 = vst.msk [vmem:[#allocation5 + $0xb8] sm:$0xff] %vm719_vm2, %v9762_v11 }
  0xcb   : > { %8890 = vmatmul.msk.f32.gmra.mxu3 %vm585_vm1, %v1760_v29  ;;  %1233 = vst.msk [vmem:[#allocation2 + $0x198] sm:$0xff] %vm719_vm2, %v1217_v31 }
  0xcc   : > { %1063 = vst.msk [vmem:[#allocation2 + $0x118] sm:$0xff] %vm719_vm2, %v1047_v30  ;;  %8873 = vmatmul.msk.f32.gmra.mxu2 %vm585_vm1, %v1590_v28  ;;  %v670_v38 = vpop.f32.mrf.mxu0 }
  0xcd   : > { %894 = vst.msk [vmem:[#allocation2 + $0xa0] sm:$0xff] %vm719_vm2, %v878_v33  ;;  %v671_v42 = vadd.f32 %v10096_v12, %v670_v38  ;;  %v1424_v33 = vld [vmem:[%s9945_s29 + $0x2c0] sm:$0xff] }
  0xce   : > { %v1178_v35 = vpop.f32.mrf.mxu3  ;;  %1950 = vst.msk [vmem:[#allocation5 + $0xc0] sm:$0xff] %vm719_vm2, %v9762_v11 }
  0xcf   : > { %v1008_v34 = vpop.f32.mrf.mxu2  ;;  %v1179_v37 = vadd.f32 %v10121_v25, %v1178_v35  ;;  %v841_v39 = vpop.f32.mrf.mxu1  ;;  %v708_v48 = vmax.f32 %v671_v42, 0.0  ;;  %8840 = vmatmul.msk.f32.gmra.mxu0 %vm585_vm1, %v1251_v40  ;;  %1951 = vst.msk [vmem:[#allocation5 + $0xc8] sm:$0xff] %vm719_vm2, %v9762_v11 }
  0xd0   : > { %v1009_v36 = vadd.f32 %v10116_v24, %v1008_v34  ;;  %v842_v43 = vadd.f32 %v10101_v13, %v841_v39  ;;  %1952 = vst.msk [vmem:[#allocation5 + $0xd0] sm:$0xff] %vm719_vm2, %v9762_v11 }
  0xd1   : > { %v1218_v47 = vmax.f32 %v1179_v37, 0.0  ;;  %725 = vst.msk [vmem:[#allocation2 + $0x28] sm:$0xff] %vm719_vm2, %v708_v48  ;;  %v1764_v37 = vld [vmem:[%s9945_s29 + $0x3c0] sm:$0xff]  ;;  %v1255_v48 = vld [vmem:[%s9945_s29 + $0x248] sm:$0xff] }
  0xd2   : > { %v1048_v46 = vmax.f32 %v1009_v36, 0.0  ;;  %v879_v49 = vmax.f32 %v842_v43, 0.0  ;;  %8857 = vmatmul.msk.f32.gmra.mxu1 %vm585_vm1, %v1421_v41  ;;  %v1594_v36 = vld [vmem:[%s9945_s29 + $0x340] sm:$0xff]  ;;  %1953 = vst.msk [vmem:[#allocation5 + $0xd8] sm:$0xff] %vm719_vm2, %v9762_v11 }
  0xd3   : > { %8891 = vmatmul.msk.f32.gmra.mxu3 %vm585_vm1, %v1761_v45  ;;  %1234 = vst.msk [vmem:[#allocation2 + $0x1a0] sm:$0xff] %vm719_vm2, %v1218_v47 }
  0xd4   : > { %1064 = vst.msk [vmem:[#allocation2 + $0x120] sm:$0xff] %vm719_vm2, %v1048_v46  ;;  %8874 = vmatmul.msk.f32.gmra.mxu2 %vm585_vm1, %v1591_v44  ;;  %v673_v57 = vpop.f32.mrf.mxu0 }
  0xd5   : > { %895 = vst.msk [vmem:[#allocation2 + $0xa8] sm:$0xff] %vm719_vm2, %v879_v49  ;;  %v674_v61 = vadd.f32 %v10096_v12, %v673_v57  ;;  %v1425_v49 = vld [vmem:[%s9945_s29 + $0x2c8] sm:$0xff] }
  0xd6   : > { %v1181_v51 = vpop.f32.mrf.mxu3  ;;  %1954 = vst.msk [vmem:[#allocation5 + $0xe0] sm:$0xff] %vm719_vm2, %v9762_v11 }
  0xd7   : > { %v1011_v50 = vpop.f32.mrf.mxu2  ;;  %v1182_v56 = vadd.f32 %v10121_v25, %v1181_v51  ;;  %v844_v58 = vpop.f32.mrf.mxu1  ;;  %v709_v3 = vmax.f32 %v674_v61, 0.0  ;;  %8841 = vmatmul.msk.f32.gmra.mxu0 %vm585_vm1, %v1252_v59  ;;  %v8902_v59 = vld [vmem:[%s13691_s4 + $0x20] sm:$0xff]  ;;  %1955 = vst.msk [vmem:[#allocation5 + $0xe8] sm:$0xff] %vm719_vm2, %v9762_v11 }
  0xd8   : > { %v1012_v55 = vadd.f32 %v10116_v24, %v1011_v50  ;;  %v845_v62 = vadd.f32 %v10101_v13, %v844_v58  ;;  %v8938_v58 = vld [vmem:[%s13691_s4 + $0x40] sm:$0xff]  ;;  %2468 = vmatpush.msra.mxu0 %v8902_v59  ;;  %1956 = vst.msk [vmem:[#allocation5 + $0xf0] sm:$0xff] %vm719_vm2, %v9762_v11 }
  0xd9   : > { %v1219_v2 = vmax.f32 %v1182_v56, 0.0  ;;  %726 = vst.msk [vmem:[#allocation2 + $0x30] sm:$0xff] %vm719_vm2, %v709_v3  ;;  %2715 = vmatpush.msra.mxu2 %v8938_v58  ;;  %v1256_v3 = vld [vmem:[%s9945_s29 + $0x250] sm:$0xff] }
  0xda   : > { %v1049_v1 = vmax.f32 %v1012_v55, 0.0  ;;  %v880_v4 = vmax.f32 %v845_v62, 0.0  ;;  %8858 = vmatmul.msk.f32.gmra.mxu1 %vm585_vm1, %v1422_v60  ;;  %v2380_v60 = vld [vmem:[%s13691_s4] sm:$0xff]  ;;  %1957 = vst.msk [vmem:[#allocation5 + $0xf8] sm:$0xff] %vm719_vm2, %v9762_v11 }
  0xdb   : > { %8892 = vmatmul.msk.f32.gmra.mxu3 %vm585_vm1, %v1762_v0  ;;  %1235 = vst.msk [vmem:[#allocation2 + $0x1a8] sm:$0xff] %vm719_vm2, %v1219_v2  ;;  %2581 = vmatpush.msra.mxu1 %v2380_v60  ;;  %v1259_v60 = vld [vmem:[%s9945_s29 + $0x268] sm:$0xff] }
  0xdc   : > { %1065 = vst.msk [vmem:[#allocation2 + $0x128] sm:$0xff] %vm719_vm2, %v1049_v1  ;;  %8875 = vmatmul.msk.f32.gmra.mxu2 %vm585_vm1, %v1592_v63  ;;  %v676_v9 = vpop.f32.mrf.mxu0 }
  0xdd   : > { %896 = vst.msk [vmem:[#allocation2 + $0xb0] sm:$0xff] %vm719_vm2, %v880_v4  ;;  %v677_v16 = vadd.f32 %v10096_v12, %v676_v9  ;;  %v1426_v4 = vld [vmem:[%s9945_s29 + $0x2d0] sm:$0xff] }
  0xde   : > { %v1184_v6 = vpop.f32.mrf.mxu3  ;;  %1958 = vst.msk [vmem:[#allocation5 + $0x100] sm:$0xff] %vm719_vm2, %v9762_v11 }
  0xdf   : > { %v1014_v5 = vpop.f32.mrf.mxu2  ;;  %v1185_v8 = vadd.f32 %v10121_v25, %v1184_v6  ;;  %v847_v10 = vpop.f32.mrf.mxu1  ;;  %v710_v22 = vmax.f32 %v677_v16, 0.0  ;;  %8842 = vmatmul.msk.f32.gmra.mxu0 %vm585_vm1, %v1253_v14  ;;  %1959 = vst.msk [vmem:[#allocation5 + $0x108] sm:$0xff] %vm719_vm2, %v9762_v11 }
  0xe0   : > { %v1015_v7 = vadd.f32 %v10116_v24, %v1014_v5  ;;  %v848_v17 = vadd.f32 %v10101_v13, %v847_v10  ;;  %1960 = vst.msk [vmem:[#allocation5 + $0x110] sm:$0xff] %vm719_vm2, %v9762_v11 }
  0xe1   : > { %v1220_v21 = vmax.f32 %v1185_v8, 0.0  ;;  %727 = vst.msk [vmem:[#allocation2 + $0x38] sm:$0xff] %vm719_vm2, %v710_v22  ;;  %v1766_v8 = vld [vmem:[%s9945_s29 + $0x3d0] sm:$0xff]  ;;  %v1257_v22 = vld [vmem:[%s9945_s29 + $0x258] sm:$0xff] }
  0xe2   : > { %v1050_v20 = vmax.f32 %v1015_v7, 0.0  ;;  %v881_v23 = vmax.f32 %v848_v17, 0.0  ;;  %8859 = vmatmul.msk.f32.gmra.mxu1 %vm585_vm1, %v1423_v15  ;;  %v1596_v7 = vld [vmem:[%s9945_s29 + $0x350] sm:$0xff]  ;;  %1961 = vst.msk [vmem:[#allocation5 + $0x118] sm:$0xff] %vm719_vm2, %v9762_v11 }
  0xe3   : > { %8893 = vmatmul.msk.f32.gmra.mxu3 %vm585_vm1, %v1763_v19  ;;  %1236 = vst.msk [vmem:[#allocation2 + $0x1b0] sm:$0xff] %vm719_vm2, %v1220_v21 }
  0xe4   : > { %1066 = vst.msk [vmem:[#allocation2 + $0x130] sm:$0xff] %vm719_vm2, %v1050_v20  ;;  %8876 = vmatmul.msk.f32.gmra.mxu2 %vm585_vm1, %v1593_v18  ;;  %v679_v30 = vpop.f32.mrf.mxu0 }
  0xe5   : > { %897 = vst.msk [vmem:[#allocation2 + $0xb8] sm:$0xff] %vm719_vm2, %v881_v23  ;;  %v680_v34 = vadd.f32 %v10096_v12, %v679_v30  ;;  %v1427_v23 = vld [vmem:[%s9945_s29 + $0x2d8] sm:$0xff] }
  0xe6   : > { %v1187_v27 = vpop.f32.mrf.mxu3  ;;  %1962 = vst.msk [vmem:[#allocation5 + $0x120] sm:$0xff] %vm719_vm2, %v9762_v11 }
  0xe7   : > { %v1017_v26 = vpop.f32.mrf.mxu2  ;;  %v1188_v29 = vadd.f32 %v10121_v25, %v1187_v27  ;;  %v850_v31 = vpop.f32.mrf.mxu1  ;;  %v711_v40 = vmax.f32 %v680_v34, 0.0  ;;  %8843 = vmatmul.msk.f32.gmra.mxu0 %vm585_vm1, %v1254_v32  ;;  %v8961_v34 = vld [vmem:[%s13691_s4 + $0x78] sm:$0xff]  ;;  %1963 = vst.msk [vmem:[#allocation5 + $0x128] sm:$0xff] %vm719_vm2, %v9762_v11 }
  0xe8   : > { %v1018_v28 = vadd.f32 %v10116_v24, %v1017_v26  ;;  %v851_v35 = vadd.f32 %v10101_v13, %v850_v31  ;;  %2862 = vmatpush.msra.mxu3 %v8961_v34  ;;  %1964 = vst.msk [vmem:[#allocation5 + $0x130] sm:$0xff] %vm719_vm2, %v9762_v11  ;;  %v1431_v34 = vld [vmem:[%s9945_s29 + $0x2f8] sm:$0xff] }
  0xe9   : > { %v1221_v39 = vmax.f32 %v1188_v29, 0.0  ;;  %728 = vst.msk [vmem:[#allocation2 + $0x40] sm:$0xff] %vm719_vm2, %v711_v40  ;;  %v1767_v29 = vld [vmem:[%s9945_s29 + $0x3d8] sm:$0xff] }
  0xea   : > { %v1051_v38 = vmax.f32 %v1018_v28, 0.0  ;;  %v882_v41 = vmax.f32 %v851_v35, 0.0  ;;  %8860 = vmatmul.msk.f32.gmra.mxu1 %vm585_vm1, %v1424_v33  ;;  %v1597_v28 = vld [vmem:[%s9945_s29 + $0x358] sm:$0xff]  ;;  %1965 = vst.msk [vmem:[#allocation5 + $0x138] sm:$0xff] %vm719_vm2, %v9762_v11 }
  0xeb   : > { %8894 = vmatmul.msk.f32.gmra.mxu3 %vm585_vm1, %v1764_v37  ;;  %1237 = vst.msk [vmem:[#allocation2 + $0x1b8] sm:$0xff] %vm719_vm2, %v1221_v39  ;;  %v8960_v37 = vld [vmem:[%s13691_s4 + $0x70] sm:$0xff] }
  0xec   : > { %1067 = vst.msk [vmem:[#allocation2 + $0x138] sm:$0xff] %vm719_vm2, %v1051_v38  ;;  %8877 = vmatmul.msk.f32.gmra.mxu2 %vm585_vm1, %v1594_v36  ;;  %v682_v46 = vpop.f32.mrf.mxu0  ;;  %2863 = vmatpush.msra.mxu3 %v8960_v37  ;;  %v1601_v37 = vld [vmem:[%s9945_s29 + $0x378] sm:$0xff] }
  0xed   : > { %898 = vst.msk [vmem:[#allocation2 + $0xc0] sm:$0xff] %vm719_vm2, %v882_v41  ;;  %v683_v50 = vadd.f32 %v10096_v12, %v682_v46  ;;  %v1598_v46 = vld [vmem:[%s9945_s29 + $0x360] sm:$0xff] }
  0xee   : > { %v1190_v43 = vpop.f32.mrf.mxu3  ;;  %1966 = vst.msk [vmem:[#allocation5 + $0x140] sm:$0xff] %vm719_vm2, %v9762_v11 }
  0xef   : > { %v1020_v42 = vpop.f32.mrf.mxu2  ;;  %v1191_v45 = vadd.f32 %v10121_v25, %v1190_v43  ;;  %v853_v47 = vpop.f32.mrf.mxu1  ;;  %v712_v56 = vmax.f32 %v683_v50, 0.0  ;;  %8844 = vmatmul.msk.f32.gmra.mxu0 %vm585_vm1, %v1255_v48  ;;  %v1428_v43 = vld [vmem:[%s9945_s29 + $0x2e0] sm:$0xff]  ;;  %v8959_v48 = vld [vmem:[%s13691_s4 + $0x68] sm:$0xff]  ;;  %1967 = vst.msk [vmem:[#allocation5 + $0x148] sm:$0xff] %vm719_vm2, %v9762_v11 }
  0xf0   : > { %v1021_v44 = vadd.f32 %v10116_v24, %v1020_v42  ;;  %v854_v51 = vadd.f32 %v10101_v13, %v853_v47  ;;  %v1258_v42 = vld [vmem:[%s9945_s29 + $0x260] sm:$0xff]  ;;  %2864 = vmatpush.msra.mxu3 %v8959_v48  ;;  %1968 = vst.msk [vmem:[#allocation5 + $0x150] sm:$0xff] %vm719_vm2, %v9762_v11 }
  0xf1   : > { %v1222_v55 = vmax.f32 %v1191_v45, 0.0  ;;  %729 = vst.msk [vmem:[#allocation2 + $0x48] sm:$0xff] %vm719_vm2, %v712_v56  ;;  %v1768_v47 = vld [vmem:[%s9945_s29 + $0x3e0] sm:$0xff] }
  0xf2   : > { %v1052_v54 = vmax.f32 %v1021_v44, 0.0  ;;  %v883_v57 = vmax.f32 %v854_v51, 0.0  ;;  %8861 = vmatmul.msk.f32.gmra.mxu1 %vm585_vm1, %v1425_v49  ;;  %1969 = vst.msk [vmem:[#allocation5 + $0x158] sm:$0xff] %vm719_vm2, %v9762_v11 }
  0xf3   : > { %8895 = vmatmul.msk.f32.gmra.mxu3 %vm585_vm1, %v1765_v53  ;;  %1238 = vst.msk [vmem:[#allocation2 + $0x1c0] sm:$0xff] %vm719_vm2, %v1222_v55  ;;  %v8958_v53 = vld [vmem:[%s13691_s4 + $0x60] sm:$0xff] }
  0xf4   : > { %1068 = vst.msk [vmem:[#allocation2 + $0x140] sm:$0xff] %vm719_vm2, %v1052_v54  ;;  %8878 = vmatmul.msk.f32.gmra.mxu2 %vm585_vm1, %v1595_v52  ;;  %v685_v1 = vpop.f32.mrf.mxu0  ;;  %2865 = vmatpush.msra.mxu3 %v8958_v53 }
  0xf5   : > { %899 = vst.msk [vmem:[#allocation2 + $0xc8] sm:$0xff] %vm719_vm2, %v883_v57  ;;  %v686_v5 = vadd.f32 %v10096_v12, %v685_v1  ;;  %v1769_v1 = vld [vmem:[%s9945_s29 + $0x3e8] sm:$0xff] }
  0xf6   : > { %v1193_v62 = vpop.f32.mrf.mxu3  ;;  %1970 = vst.msk [vmem:[#allocation5 + $0x160] sm:$0xff] %vm719_vm2, %v9762_v11 }
  0xf7   : > { %v1023_v61 = vpop.f32.mrf.mxu2  ;;  %v1194_v0 = vadd.f32 %v10121_v25, %v1193_v62  ;;  %v856_v2 = vpop.f32.mrf.mxu1  ;;  %v713_v14 = vmax.f32 %v686_v5, 0.0  ;;  %8845 = vmatmul.msk.f32.gmra.mxu0 %vm585_vm1, %v1256_v3  ;;  %1971 = vst.msk [vmem:[#allocation5 + $0x168] sm:$0xff] %vm719_vm2, %v9762_v11 }
  0xf8   : > { %v1024_v63 = vadd.f32 %v10116_v24, %v1023_v61  ;;  %v857_v6 = vadd.f32 %v10101_v13, %v856_v2  ;;  %v1429_v61 = vld [vmem:[%s9945_s29 + $0x2e8] sm:$0xff]  ;;  %1972 = vst.msk [vmem:[#allocation5 + $0x170] sm:$0xff] %vm719_vm2, %v9762_v11 }
  0xf9   : > { %v1223_v10 = vmax.f32 %v1194_v0, 0.0  ;;  %730 = vst.msk [vmem:[#allocation2 + $0x50] sm:$0xff] %vm719_vm2, %v713_v14  ;;  %v1599_v0 = vld [vmem:[%s9945_s29 + $0x368] sm:$0xff] }
  0xfa   : > { %v1053_v9 = vmax.f32 %v1024_v63, 0.0  ;;  %v884_v15 = vmax.f32 %v857_v6, 0.0  ;;  %8862 = vmatmul.msk.f32.gmra.mxu1 %vm585_vm1, %v1426_v4  ;;  %1973 = vst.msk [vmem:[#allocation5 + $0x178] sm:$0xff] %vm719_vm2, %v9762_v11 }
  0xfb   : > { %8896 = vmatmul.msk.f32.gmra.mxu3 %vm585_vm1, %v1766_v8  ;;  %1239 = vst.msk [vmem:[#allocation2 + $0x1c8] sm:$0xff] %vm719_vm2, %v1223_v10 }
  0xfc   : > { %1069 = vst.msk [vmem:[#allocation2 + $0x148] sm:$0xff] %vm719_vm2, %v1053_v9  ;;  %8879 = vmatmul.msk.f32.gmra.mxu2 %vm585_vm1, %v1596_v7  ;;  %v688_v20 = vpop.f32.mrf.mxu0 }
  0xfd   : > { %900 = vst.msk [vmem:[#allocation2 + $0xd0] sm:$0xff] %vm719_vm2, %v884_v15  ;;  %v689_v26 = vadd.f32 %v10096_v12, %v688_v20  ;;  %v1260_v15 = vld [vmem:[%s9945_s29 + $0x270] sm:$0xff] }
  0xfe   : > { %v1196_v17 = vpop.f32.mrf.mxu3  ;;  %v1770_v20 = vld [vmem:[%s9945_s29 + $0x3f0] sm:$0xff]  ;;  %1974 = vst.msk [vmem:[#allocation5 + $0x180] sm:$0xff] %vm719_vm2, %v9762_v11 }
  0xff   : > { %v1026_v16 = vpop.f32.mrf.mxu2  ;;  %v1197_v19 = vadd.f32 %v10121_v25, %v1196_v17  ;;  %v859_v21 = vpop.f32.mrf.mxu1  ;;  %v714_v32 = vmax.f32 %v689_v26, 0.0  ;;  %8846 = vmatmul.msk.f32.gmra.mxu0 %vm585_vm1, %v1257_v22  ;;  %1975 = vst.msk [vmem:[#allocation5 + $0x188] sm:$0xff] %vm719_vm2, %v9762_v11 }
 0x100   : > { %v1027_v18 = vadd.f32 %v10116_v24, %v1026_v16  ;;  %v860_v27 = vadd.f32 %v10101_v13, %v859_v21  ;;  %v1430_v16 = vld [vmem:[%s9945_s29 + $0x2f0] sm:$0xff]  ;;  %1976 = vst.msk [vmem:[#allocation5 + $0x190] sm:$0xff] %vm719_vm2, %v9762_v11 }
 0x101   : > { %v1224_v31 = vmax.f32 %v1197_v19, 0.0  ;;  %731 = vst.msk [vmem:[#allocation2 + $0x58] sm:$0xff] %vm719_vm2, %v714_v32  ;;  %v1600_v19 = vld [vmem:[%s9945_s29 + $0x370] sm:$0xff] }
 0x102   : > { %v1054_v30 = vmax.f32 %v1027_v18, 0.0  ;;  %v885_v33 = vmax.f32 %v860_v27, 0.0  ;;  %8863 = vmatmul.msk.f32.gmra.mxu1 %vm585_vm1, %v1427_v23  ;;  %1977 = vst.msk [vmem:[#allocation5 + $0x198] sm:$0xff] %vm719_vm2, %v9762_v11 }
 0x103   : > { %8897 = vmatmul.msk.f32.gmra.mxu3 %vm585_vm1, %v1767_v29  ;;  %1240 = vst.msk [vmem:[#allocation2 + $0x1d0] sm:$0xff] %vm719_vm2, %v1224_v31 }
 0x104   : > { %1070 = vst.msk [vmem:[#allocation2 + $0x150] sm:$0xff] %vm719_vm2, %v1054_v30  ;;  %8880 = vmatmul.msk.f32.gmra.mxu2 %vm585_vm1, %v1597_v28  ;;  %v691_v40 = vpop.f32.mrf.mxu0 }
 0x105   : > { %901 = vst.msk [vmem:[#allocation2 + $0xd8] sm:$0xff] %vm719_vm2, %v885_v33  ;;  %v692_v44 = vadd.f32 %v10096_v12, %v691_v40  ;;  %v1261_v33 = vld [vmem:[%s9945_s29 + $0x278] sm:$0xff] }
 0x106   : > { %v1199_v36 = vpop.f32.mrf.mxu3  ;;  %1978 = vst.msk [vmem:[#allocation5 + $0x1a0] sm:$0xff] %vm719_vm2, %v9762_v11 }
 0x107   : > { %v1029_v35 = vpop.f32.mrf.mxu2  ;;  %v1200_v39 = vadd.f32 %v10121_v25, %v1199_v36  ;;  %v862_v41 = vpop.f32.mrf.mxu1  ;;  %v715_v51 = vmax.f32 %v692_v44, 0.0  ;;  %8847 = vmatmul.msk.f32.gmra.mxu0 %vm585_vm1, %v1258_v42  ;;  %1979 = vst.msk [vmem:[#allocation5 + $0x1a8] sm:$0xff] %vm719_vm2, %v9762_v11 }
 0x108   : > { %v1030_v38 = vadd.f32 %v10116_v24, %v1029_v35  ;;  %v863_v45 = vadd.f32 %v10101_v13, %v862_v41  ;;  %1980 = vst.msk [vmem:[#allocation5 + $0x1b0] sm:$0xff] %vm719_vm2, %v9762_v11 }
 0x109   : > { %v1225_v50 = vmax.f32 %v1200_v39, 0.0  ;;  %732 = vst.msk [vmem:[#allocation2 + $0x60] sm:$0xff] %vm719_vm2, %v715_v51  ;;  %v2384_v51 = vld [vmem:[#allocation5 + $0x1] sm:$0xff] }
 0x10a   : > { %v1055_v49 = vmax.f32 %v1030_v38, 0.0  ;;  %v886_v52 = vmax.f32 %v863_v45, 0.0  ;;  %8864 = vmatmul.msk.f32.gmra.mxu1 %vm585_vm1, %v1428_v43  ;;  %v1771_v38 = vld [vmem:[%s9945_s29 + $0x3f8] sm:$0xff]  ;;  %6456 = vst.msk [vmem:[#allocation6] sm:$0xff] %vm3717_vm3, %v9762_v11  ;;  %s557_s29 = scalar_lea.vmem %s13702_s23, %s8763_s0  ;;  %s8680_s23 = scalar_lea.sflag [#allocation9], %s552_s26 }
 0x10b   : > { %8898 = vmatmul.msk.f32.gmra.mxu3 %vm585_vm1, %v1768_v47  ;;  %1241 = vst.msk [vmem:[#allocation2 + $0x1d8] sm:$0xff] %vm719_vm2, %v1225_v50  ;;  %v9021_v45 = vld [vmem:[%s13691_s4 + $0xd8] sm:$0xff] }
 0x10c   : > { %1071 = vst.msk [vmem:[#allocation2 + $0x158] sm:$0xff] %vm719_vm2, %v1055_v49  ;;  %8881 = vmatmul.msk.f32.gmra.mxu2 %vm585_vm1, %v1598_v46  ;;  %v694_v58 = vpop.f32.mrf.mxu0  ;;  %v8981_v46 = vld [vmem:[%s13691_s4 + $0x98] sm:$0xff] }
 0x10d   : > { %902 = vst.msk [vmem:[#allocation2 + $0xe0] sm:$0xff] %vm719_vm2, %v886_v52  ;;  %v695_v62 = vadd.f32 %v10096_v12, %v694_v58  ;;  %v2364_v52 = vld [vmem:[#allocation5] sm:$0xff]  ;;  %3312 = vmatpush.msrb.mxu2 %v9021_v45  ;;  %3012 = vmatpush.msrb.mxu0 %v8981_v46  ;;  %v2385_v46 = vld [vmem:[#allocation5 + $0x9] sm:$0xff] }
 0x10e   : > { %v1202_v55 = vpop.f32.mrf.mxu3  ;;  %6457 = vst.msk [vmem:[#allocation6 + $0x8] sm:$0xff] %vm3717_vm3, %v9762_v11 }
 0x10f   : > { %v1032_v54 = vpop.f32.mrf.mxu2  ;;  %v1203_v57 = vadd.f32 %v10121_v25, %v1202_v55  ;;  %v865_v59 = vpop.f32.mrf.mxu1  ;;  %v716_v4 = vmax.f32 %v695_v62, 0.0  ;;  %8848 = vmatmul.msk.f32.gmra.mxu0 %vm585_vm1, %v1259_v60  ;;  %v2631_v55 = vld [vmem:[#allocation5 + $0x2] sm:$0xff]  ;;  %6458 = vst.msk [vmem:[#allocation6 + $0x10] sm:$0xff] %vm3717_vm3, %v9762_v11 }
 0x110   : > { %v1033_v56 = vadd.f32 %v10116_v24, %v1032_v54  ;;  %v866_v63 = vadd.f32 %v10101_v13, %v865_v59  ;;  %v1981_v59 = vld [vmem:[#allocation2] ss:$2 sm:$0xff]  ;;  %v1985_v60 = vld [vmem:[#allocation2 + $0x1] ss:$2 sm:$0xff]  ;;  %6459 = vst.msk [vmem:[#allocation6 + $0x18] sm:$0xff] %vm3717_vm3, %v9762_v11 }
 0x111   : > { %v1226_v3 = vmax.f32 %v1203_v57, 0.0  ;;  %733 = vst.msk [vmem:[#allocation2 + $0x68] sm:$0xff] %vm719_vm2, %v716_v4  ;;  %v1995_v62 = vld [vmem:[#allocation2 + $0x21] ss:$2 sm:$0xff] }
 0x112   : > { %v1056_v2 = vmax.f32 %v1033_v56, 0.0  ;;  %v887_v5 = vmax.f32 %v866_v63, 0.0  ;;  %8865 = vmatmul.msk.f32.gmra.mxu1 %vm585_vm1, %v1429_v61  ;;  %v1991_v61 = vld [vmem:[#allocation2 + $0x20] ss:$2 sm:$0xff]  ;;  %v1983_v63 = vld [vmem:[#allocation2 + $0x10] ss:$2 sm:$0xff] }
 0x113   : > { %8899 = vmatmul.msk.f32.gmra.mxu3 %vm585_vm1, %v1769_v1  ;;  %1242 = vst.msk [vmem:[#allocation2 + $0x1e0] sm:$0xff] %vm719_vm2, %v1226_v3  ;;  %v1993_v1 = vld [vmem:[#allocation2 + $0x30] ss:$2 sm:$0xff]  ;;  %v10527_v3 = vld [vmem:[#allocation2 + $0xa0] ss:$2 sm:$0xff] }
 0x114   : > { %1072 = vst.msk [vmem:[#allocation2 + $0x160] sm:$0xff] %vm719_vm2, %v1056_v2  ;;  %8882 = vmatmul.msk.f32.gmra.mxu2 %vm585_vm1, %v1599_v0  ;;  %v697_v10 = vpop.f32.mrf.mxu0  ;;  %v1987_v0 = vld [vmem:[#allocation2 + $0x11] ss:$2 sm:$0xff]  ;;  %v10529_v4 = vld [vmem:[#allocation2 + $0xa1] ss:$2 sm:$0xff] }
 0x115   : > { %903 = vst.msk [vmem:[#allocation2 + $0xe8] sm:$0xff] %vm719_vm2, %v887_v5  ;;  %v698_v17 = vadd.f32 %v10096_v12, %v697_v10  ;;  %v1997_v2 = vld [vmem:[#allocation2 + $0x31] ss:$2 sm:$0xff]  ;;  %v10536_v10 = vld [vmem:[#allocation2 + $0xb0] ss:$2 sm:$0xff] }
 0x116   : > { %v1205_v7 = vpop.f32.mrf.mxu3  ;;  %6460 = vst.msk [vmem:[#allocation6 + $0x20] sm:$0xff] %vm3717_vm3, %v9762_v11 }
 0x117   : > { %v1035_v6 = vpop.f32.mrf.mxu2  ;;  %v1206_v9 = vadd.f32 %v10121_v25, %v1205_v7  ;;  %v868_v14 = vpop.f32.mrf.mxu1  ;;  %v717_v23 = vmax.f32 %v698_v17, 0.0  ;;  %8849 = vmatmul.msk.f32.gmra.mxu0 %vm585_vm1, %v1260_v15  ;;  %6461 = vst.msk [vmem:[#allocation6 + $0x28] sm:$0xff] %vm3717_vm3, %v9762_v11 }
 0x118   : > { %v1036_v8 = vadd.f32 %v10116_v24, %v1035_v6  ;;  %v869_v18 = vadd.f32 %v10101_v13, %v868_v14  ;;  %v2015_v5 = vld [vmem:[#allocation2 + $0x60] ss:$2 sm:$0xff]  ;;  %v2019_v6 = vld [vmem:[#allocation2 + $0x61] ss:$2 sm:$0xff]  ;;  %v10538_v14 = vld [vmem:[#allocation2 + $0xb1] ss:$2 sm:$0xff] }
 0x119   : > { %v1227_v22 = vmax.f32 %v1206_v9, 0.0  ;;  %734 = vst.msk [vmem:[#allocation2 + $0x70] sm:$0xff] %vm719_vm2, %v717_v23  ;;  %v1998_v9 = vmax.f32 %v1991_v61, %v1995_v62  ;;  %v1988_v23 = vmax.f32 %v1981_v59, %v1985_v60  ;;  %v2059_v59 = vld [vmem:[#allocation2 + $0xd1] ss:$2 sm:$0xff] }
 0x11a   : > { %v1057_v21 = vmax.f32 %v1036_v8, 0.0  ;;  %v888_v26 = vmax.f32 %v869_v18, 0.0  ;;  %8866 = vmatmul.msk.f32.gmra.mxu1 %vm585_vm1, %v1430_v16  ;;  %v10548_v18 = vld [vmem:[#allocation2 + $0x80] ss:$2 sm:$0xff]  ;;  %6462 = vst.msk [vmem:[#allocation6 + $0x30] sm:$0xff] %vm3717_vm3, %v9762_v11 }
 0x11b   : > { %8900 = vmatmul.msk.f32.gmra.mxu3 %vm585_vm1, %v1770_v20  ;;  %1243 = vst.msk [vmem:[#allocation2 + $0x1e8] sm:$0xff] %vm719_vm2, %v1227_v22  ;;  %v1999_v20 = vmax.f32 %v1993_v1, %v1997_v2  ;;  %v2009_v22 = vld [vmem:[#allocation2 + $0x41] ss:$2 sm:$0xff]  ;;  %v10619_v1 = vld [vmem:[#allocation2 + $0x1a0] ss:$2 sm:$0xff] }
 0x11c   : > { %1073 = vst.msk [vmem:[#allocation2 + $0x168] sm:$0xff] %vm719_vm2, %v1057_v21  ;;  %8883 = vmatmul.msk.f32.gmra.mxu2 %vm585_vm1, %v1600_v19  ;;  %v700_v31 = vpop.f32.mrf.mxu0  ;;  %v10550_v19 = vld [vmem:[#allocation2 + $0x81] ss:$2 sm:$0xff]  ;;  %v2005_v21 = vld [vmem:[#allocation2 + $0x40] ss:$2 sm:$0xff] }
 0x11d   : > { %904 = vst.msk [vmem:[#allocation2 + $0xf0] sm:$0xff] %vm719_vm2, %v888_v26  ;;  %v701_v35 = vadd.f32 %v10096_v12, %v700_v31  ;;  %v10491_v12 = vld [vmem:[%s13692_s3] ss:$0 sm:$0xff]  ;;  %v10621_v2 = vld [vmem:[#allocation2 + $0x1a1] ss:$2 sm:$0xff] }
 0x11e   : > { %v1208_v28 = vpop.f32.mrf.mxu3  ;;  %v10554_v26 = vld [vmem:[#allocation2 + $0x90] ss:$2 sm:$0xff]  ;;  %6463 = vst.msk [vmem:[#allocation6 + $0x38] sm:$0xff] %vm3717_vm3, %v9762_v11 }
 0x11f   : > { %v1038_v27 = vpop.f32.mrf.mxu2  ;;  %v1209_v30 = vadd.f32 %v10121_v25, %v1208_v28  ;;  %v871_v32 = vpop.f32.mrf.mxu1  ;;  %v718_v41 = vmax.f32 %v701_v35, 0.0  ;;  %8850 = vmatmul.msk.f32.gmra.mxu0 %vm585_vm1, %v1261_v33  ;;  %v2007_v28 = vld [vmem:[#allocation2 + $0x50] ss:$2 sm:$0xff]  ;;  %v10562_v33 = vld [vmem:[#allocation2 + $0x120] ss:$2 sm:$0xff]  ;;  %6464 = vst.msk [vmem:[#allocation6 + $0x40] sm:$0xff] %vm3717_vm3, %v9762_v11 }
 0x120   : > { %v1039_v29 = vadd.f32 %v10116_v24, %v1038_v27  ;;  %v872_v36 = vadd.f32 %v10101_v13, %v871_v32  ;;  %v10496_v13 = vld [vmem:[%s13692_s3] ss:$0 sm:$0xff]  ;;  %v10556_v27 = vld [vmem:[#allocation2 + $0x91] ss:$2 sm:$0xff]  ;;  %v1989_v32 = vmax.f32 %v1983_v63, %v1987_v0  ;;  %v10566_v35 = vld [vmem:[#allocation2 + $0xc0] ss:$2 sm:$0xff] }
 0x121   : > { %v1228_v40 = vmax.f32 %v1209_v30, 0.0  ;;  %735 = vst.msk [vmem:[#allocation2 + $0x78] sm:$0xff] %vm719_vm2, %v718_v41  ;;  %v2022_v30 = vmax.f32 %v2015_v5, %v2019_v6  ;;  %v10578_v41 = vld [vmem:[#allocation2 + $0x130] ss:$2 sm:$0xff]  ;;  %v2037_v62 = vmax.f32 %v10554_v26, %v10556_v27  ;;  %v10617_v0 = vld [vmem:[#allocation2 + $0x191] ss:$2 sm:$0xff] }
 0x122   : > { %v1058_v39 = vmax.f32 %v1039_v29, 0.0  ;;  %v889_v42 = vmax.f32 %v872_v36, 0.0  ;;  %8867 = vmatmul.msk.f32.gmra.mxu1 %vm585_vm1, %v1431_v34  ;;  %v2011_v29 = vld [vmem:[#allocation2 + $0x51] ss:$2 sm:$0xff]  ;;  %v10564_v34 = vld [vmem:[#allocation2 + $0x121] ss:$2 sm:$0xff] }
 0x123   : > { %8901 = vmatmul.msk.f32.gmra.mxu3 %vm585_vm1, %v1771_v38  ;;  %1244 = vst.msk [vmem:[#allocation2 + $0x1f0] sm:$0xff] %vm719_vm2, %v1228_v40  ;;  %v10568_v36 = vld [vmem:[#allocation2 + $0xe0] ss:$2 sm:$0xff]  ;;  %v2046_v40 = vmax.f32 %v10527_v3, %v10529_v4  ;;  %v10615_v63 = vld [vmem:[#allocation2 + $0x190] ss:$2 sm:$0xff] }
 0x124   : > { %1074 = vst.msk [vmem:[#allocation2 + $0x170] sm:$0xff] %vm719_vm2, %v1058_v39  ;;  %8884 = vmatmul.msk.f32.gmra.mxu2 %vm585_vm1, %v1601_v37  ;;  %v1336_v49 = vpop.f32.mrf.mxu0  ;;  %v10570_v37 = vld [vmem:[#allocation2 + $0xe1] ss:$2 sm:$0xff]  ;;  %v2000_v39 = vmax.f32 %v1988_v23, %v1998_v9  ;;  %v2101_v3 = vld [vmem:[#allocation2 + $0x140] ss:$2 sm:$0xff] }
 0x125   : > { %905 = vst.msk [vmem:[#allocation2 + $0xf8] sm:$0xff] %vm719_vm2, %v889_v42  ;;  %v1337_v53 = vadd.f32 %v10491_v12, %v1336_v49  ;;  %v10580_v42 = vld [vmem:[#allocation2 + $0x131] ss:$2 sm:$0xff]  ;;  %v2001_v49 = vmax.f32 %v1989_v32, %v1999_v20  ;;  %v2070_v61 = vmax.f32 %v10568_v36, %v10570_v37  ;;  %v2105_v4 = vld [vmem:[#allocation2 + $0x141] ss:$2 sm:$0xff] }
 0x126   : > { %v1211_v44 = vpop.f32.mrf.mxu3  ;;  %v2111_v5 = vld [vmem:[#allocation2 + $0x160] ss:$2 sm:$0xff]  ;;  %v2115_v6 = vld [vmem:[#allocation2 + $0x161] ss:$2 sm:$0xff]  ;;  %v10635_v20 = vld [vmem:[#allocation2 + $0x1b1] ss:$2 sm:$0xff] }
 0x127   : > { %v1041_v43 = vpop.f32.mrf.mxu2  ;;  %v1212_v48 = vadd.f32 %v10121_v25, %v1211_v44  ;;  %v1506_v50 = vpop.f32.mrf.mxu1  ;;  %v1384_v57 = vmax.f32 %v1337_v53, 0.0  ;;  %8906 = vmatmul.msk.f32.vlgmr.msra.gmra.mxu0 %vm719_vm2, %v2384_v51  ;;  %v2057_v51 = vld [vmem:[#allocation2 + $0xc1] ss:$2 sm:$0xff]  ;;  %2002 = vst.msk [vmem:[#allocation5 + $0x19] sm:$0xff] %vm719_vm2, %v2000_v39  ;;  %v2151_v36 = vld [vmem:[#allocation2 + $0x1d0] ss:$2 sm:$0xff]  ;;  %v2118_v39 = vmax.f32 %v2111_v5, %v2115_v6 }
 0x128   : > { %v1042_v47 = vadd.f32 %v10116_v24, %v1041_v43  ;;  %v1507_v54 = vadd.f32 %v10496_v13, %v1506_v50  ;;  %v9001_v24 = vld [vmem:[%s13691_s4 + $0xb8] sm:$0xff]  ;;  %v2012_v43 = vmax.f32 %v2005_v21, %v2009_v22  ;;  %v2047_v50 = vmax.f32 %v10536_v10, %v10538_v14  ;;  %v2365_v53 = vld [vmem:[#allocation5 + $0x8] sm:$0xff]  ;;  %2003 = vst.msk [vmem:[#allocation5 + $0x21] sm:$0xff] %vm719_vm2, %v2001_v49 }
 0x129   : > { %v1229_v56 = vmax.f32 %v1212_v48, 0.0  ;;  %3162 = vmatpush.msrb.mxu1 %v9001_v24  ;;  %1400 = vst.msk [vmem:[#allocation2 + $0x200] sm:$0xff] %vm719_vm2, %v1384_v57  ;;  %v10540_v15 = vld [vmem:[#allocation2 + $0x70] ss:$2 sm:$0xff]  ;;  %v10542_v16 = vld [vmem:[#allocation2 + $0x71] ss:$2 sm:$0xff]  ;;  %v2060_v21 = vmax.f32 %v10566_v35, %v2057_v51 }
 0x12a   : > { %v1059_v25 = vmax.f32 %v1042_v47, 0.0  ;;  %v1554_v58 = vmax.f32 %v1507_v54, 0.0  ;;  %8922 = vmatmul.msk.f32.vlgmr.msra.gmra.mxu1 %vm719_vm2, %v2364_v52  ;;  %v2023_v38 = vmax.f32 %v10540_v15, %v10542_v16  ;;  %v10588_v47 = vld [vmem:[#allocation2 + $0x100] ss:$2 sm:$0xff]  ;;  %v10590_v48 = vld [vmem:[#allocation2 + $0x101] ss:$2 sm:$0xff]  ;;  %v2013_v52 = vmax.f32 %v2007_v28, %v2011_v29 }
 0x12b   : > { %1245 = vst.msk [vmem:[#allocation2 + $0x1f8] sm:$0xff] %vm719_vm2, %v1229_v56  ;;  %v2632_v54 = vld [vmem:[#allocation5 + $0xa] sm:$0xff]  ;;  %v2024_v60 = vmax.f32 %v2012_v43, %v2022_v30  ;;  %v2049_v27 = vmax.f32 %v2037_v62, %v2047_v50  ;;  %v2095_v28 = vmax.f32 %v10578_v41, %v10580_v42  ;;  %v2084_v35 = vmax.f32 %v10588_v47, %v10590_v48  ;;  %v10657_v47 = vld [vmem:[%s13692_s3] ss:$0 sm:$0xff] }
 0x12c   : > { %1075 = vst.msk [vmem:[#allocation2 + $0x178] sm:$0xff] %vm719_vm2, %v1059_v25  ;;  %8942 = vmatmul.msk.f32.vlgmr.msra.gmra.mxu2 %vm719_vm2, %v2631_v55  ;;  %v10546_v17 = vpop.f32.mrf.mxu0  ;;  %v10582_v44 = vld [vmem:[#allocation2 + $0xf0] ss:$2 sm:$0xff]  ;;  %v10584_v45 = vld [vmem:[#allocation2 + $0xf1] ss:$2 sm:$0xff]  ;;  %v2036_v55 = vmax.f32 %v10548_v18, %v10550_v19  ;;  %v2025_v9 = vmax.f32 %v2013_v52, %v2023_v38  ;;  %v2094_v18 = vmax.f32 %v10562_v33, %v10564_v34 }
 0x12d   : > { %1570 = vst.msk [vmem:[#allocation2 + $0x280] sm:$0xff] %vm719_vm2, %v1554_v58  ;;  %v10599_v24 = vld [vmem:[#allocation2 + $0x180] ss:$2 sm:$0xff]  ;;  %v10601_v25 = vld [vmem:[#allocation2 + $0x181] ss:$2 sm:$0xff]  ;;  %v2071_v10 = vmax.f32 %v10582_v44, %v10584_v45  ;;  %v2072_v38 = vmax.f32 %v2060_v21, %v2070_v61  ;;  %v2386_v41 = vld [vmem:[#allocation5 + $0x11] sm:$0xff]  ;;  %v2133_v50 = vmax.f32 %v10615_v63, %v10617_v0  ;;  %v2142_v52 = vmax.f32 %v10619_v1, %v10621_v2 }
 0x12e   : > { %v10534_v8 = vpop.f32.mrf.mxu3  ;;  %v10603_v56 = vld [vmem:[#allocation2 + $0x110] ss:$2 sm:$0xff]  ;;  %v10605_v57 = vld [vmem:[#allocation2 + $0x111] ss:$2 sm:$0xff]  ;;  %v2048_v16 = vmax.f32 %v2036_v55, %v2046_v40  ;;  %v2149_v29 = vld [vmem:[#allocation2 + $0x1c0] ss:$2 sm:$0xff]  ;;  %v2132_v42 = vmax.f32 %v10599_v24, %v10601_v25  ;;  %v2096_v51 = vmax.f32 %v2084_v35, %v2094_v18  ;;  %v1340_v18 = vadd.f32 %v10491_v12, %v10546_v17 }
 0x12f   : > { %v10532_v7 = vpop.f32.mrf.mxu2  ;;  %v10560_v31 = vpop.f32.mrf.mxu1  ;;  %8907 = vmatmul.msk.f32.gmra.mxu0 %vm719_vm2, %v2385_v46  ;;  %v2055_v58 = vld [vmem:[#allocation2 + $0xd0] ss:$2 sm:$0xff]  ;;  %v2153_v30 = vld [vmem:[#allocation2 + $0x1c1] ss:$2 sm:$0xff]  ;;  %v2107_v34 = vld [vmem:[#allocation2 + $0x151] ss:$2 sm:$0xff]  ;;  %v2085_v44 = vmax.f32 %v10603_v56, %v10605_v57 }
 0x130   : > { %v10633_v19 = vld [vmem:[#allocation2 + $0x1b0] ss:$2 sm:$0xff]  ;;  %v2061_v32 = vmax.f32 %v2055_v58, %v2059_v59  ;;  %v2155_v37 = vld [vmem:[#allocation2 + $0x1d1] ss:$2 sm:$0xff]  ;;  %v2159_v40 = vld [vmem:[#allocation2 + $0x1e0] ss:$2 sm:$0xff]  ;;  %v2156_v58 = vmax.f32 %v2149_v29, %v2153_v30  ;;  %v1677_v5 = vadd.f32 %v10657_v47, %v10532_v7 }
 0x131   : > { %v2103_v33 = vld [vmem:[#allocation2 + $0x150] ss:$2 sm:$0xff]  ;;  %2026 = vst.msk [vmem:[#allocation5 + $0x31] sm:$0xff] %vm719_vm2, %v2024_v60  ;;  %v2163_v45 = vld [vmem:[#allocation2 + $0x1e1] ss:$2 sm:$0xff]  ;;  %v2097_v24 = vmax.f32 %v2085_v44, %v2095_v28  ;;  %v2143_v25 = vmax.f32 %v10633_v19, %v10635_v20  ;;  %v2157_v61 = vmax.f32 %v2151_v36, %v2155_v37  ;;  %v1385_v29 = vmax.f32 %v1340_v18, 0.0 }
 0x132   : > { %8923 = vmatmul.msk.f32.gmra.mxu1 %vm719_vm2, %v2365_v53  ;;  %v2073_v46 = vmax.f32 %v2061_v32, %v2071_v10  ;;  %2027 = vst.msk [vmem:[#allocation5 + $0x39] sm:$0xff] %vm719_vm2, %v2025_v9  ;;  %v2366_v48 = vld [vmem:[#allocation5 + $0x10] sm:$0xff]  ;;  %v2108_v53 = vmax.f32 %v2101_v3, %v2105_v4  ;;  %v2109_v56 = vmax.f32 %v2103_v33, %v2107_v34  ;;  %v10670_v57 = vld [vmem:[%s13692_s3] ss:$0 sm:$0xff]  ;;  %v9020_v7 = vld [vmem:[%s13691_s4 + $0xd0] sm:$0xff] }
 0x133   : > { %v2113_v22 = vld [vmem:[#allocation2 + $0x170] ss:$2 sm:$0xff]  ;;  %v2117_v23 = vld [vmem:[#allocation2 + $0x171] ss:$2 sm:$0xff]  ;;  %2050 = vst.msk [vmem:[#allocation5 + $0x49] sm:$0xff] %vm719_vm2, %v2048_v16  ;;  %v2166_v60 = vmax.f32 %v2159_v40, %v2163_v45  ;;  %v2144_v4 = vmax.f32 %v2132_v42, %v2142_v52  ;;  %v2145_v9 = vmax.f32 %v2133_v50, %v2143_v25  ;;  %v1847_v10 = vadd.f32 %v10670_v57, %v10534_v8  ;;  %v8980_v20 = vld [vmem:[%s13691_s4 + $0x90] sm:$0xff] }
 0x134   : > { %8943 = vmatmul.msk.f32.gmra.mxu2 %vm719_vm2, %v2632_v54  ;;  %v10639_v26 = vpop.f32.mrf.mxu0  ;;  %v2119_v49 = vmax.f32 %v2113_v22, %v2117_v23  ;;  %v2161_v54 = vld [vmem:[#allocation2 + $0x1f0] ss:$2 sm:$0xff]  ;;  %v2165_v55 = vld [vmem:[#allocation2 + $0x1f1] ss:$2 sm:$0xff]  ;;  %2051 = vst.msk [vmem:[#allocation5 + $0x51] sm:$0xff] %vm719_vm2, %v2049_v27  ;;  %v2120_v59 = vmax.f32 %v2108_v53, %v2118_v39  ;;  %v1510_v8 = vadd.f32 %v10496_v13, %v10560_v31  ;;  %v9000_v17 = vld [vmem:[%s13691_s4 + $0xb0] sm:$0xff] }
 0x135   : > { %2074 = vst.msk [vmem:[#allocation5 + $0x61] sm:$0xff] %vm719_vm2, %v2072_v38  ;;  %v2167_v63 = vmax.f32 %v2161_v54, %v2165_v55  ;;  %v2781_v0 = vld [vmem:[#allocation5 + $0x18] sm:$0xff]  ;;  %v2168_v16 = vmax.f32 %v2156_v58, %v2166_v60  ;;  %3313 = vmatpush.msrb.mxu2 %v9020_v7  ;;  %3013 = vmatpush.msrb.mxu0 %v8980_v20  ;;  %v1724_v22 = vmax.f32 %v1677_v5, 0.0  ;;  %v1894_v28 = vmax.f32 %v1847_v10, 0.0  ;;  %v2782_v32 = vld [vmem:[#allocation5 + $0x20] sm:$0xff]  ;;  %v2783_v53 = vld [vmem:[#allocation5 + $0x28] sm:$0xff] }
 0x136   : > { %v10629_v15 = vpop.f32.mrf.mxu3  ;;  %v2121_v62 = vmax.f32 %v2109_v56, %v2119_v49  ;;  %2075 = vst.msk [vmem:[#allocation5 + $0x69] sm:$0xff] %vm719_vm2, %v2073_v46  ;;  %v2633_v1 = vld [vmem:[#allocation5 + $0x12] sm:$0xff]  ;;  %8962 = vmatmul.msk.f32.vlgmr.msra.gmra.mxu3 %vm719_vm2, %v2781_v0  ;;  %3163 = vmatpush.msrb.mxu1 %v9000_v17  ;;  %v1343_v30 = vadd.f32 %v10491_v12, %v10639_v26  ;;  %v10716_v34 = vld [vmem:[#allocation5 + $0x1a] sm:$0xff] }
 0x137   : > { %v10627_v14 = vpop.f32.mrf.mxu2  ;;  %v10647_v43 = vpop.f32.mrf.mxu1  ;;  %8908 = vmatmul.msk.f32.gmra.mxu0 %vm719_vm2, %v2386_v41  ;;  %2098 = vst.msk [vmem:[#allocation5 + $0x79] sm:$0xff] %vm719_vm2, %v2096_v51  ;;  %v2169_v21 = vmax.f32 %v2157_v61, %v2167_v63  ;;  %v10702_v27 = vld [vmem:[#allocation5 + $0x19] sm:$0xff]  ;;  %v1850_v31 = vadd.f32 %v10670_v57, %v10629_v15  ;;  %v10731_v49 = vld [vmem:[#allocation5 + $0x21] sm:$0xff] }
 0x138   : > { %2099 = vst.msk [vmem:[#allocation5 + $0x81] sm:$0xff] %vm719_vm2, %v2097_v24  ;;  %v1680_v23 = vadd.f32 %v10657_v47, %v10627_v14  ;;  %v1555_v14 = vmax.f32 %v1510_v8, 0.0  ;;  %v1513_v33 = vadd.f32 %v10496_v13, %v10647_v43  ;;  %v1386_v40 = vmax.f32 %v1343_v30, 0.0  ;;  %v10742_v24 = vld [vmem:[#allocation5 + $0x22] sm:$0xff]  ;;  %v10763_v10 = vld [vmem:[#allocation5 + $0x30] sm:$0xff] }
 0x139   : > { %2122 = vst.msk [vmem:[#allocation5 + $0x91] sm:$0xff] %vm719_vm2, %v2120_v59  ;;  %v1895_v38 = vmax.f32 %v1850_v31, 0.0  ;;  %v10766_v18 = vld [vmem:[#allocation5 + $0x2a] sm:$0xff] }
 0x13a   : > { %8924 = vmatmul.msk.f32.gmra.mxu1 %vm719_vm2, %v2366_v48  ;;  %2123 = vst.msk [vmem:[#allocation5 + $0x99] sm:$0xff] %vm719_vm2, %v2121_v62  ;;  %v1725_v36 = vmax.f32 %v1680_v23, 0.0  ;;  %v1556_v42 = vmax.f32 %v1513_v33, 0.0  ;;  %v10781_v30 = vld [vmem:[#allocation5 + $0x31] sm:$0xff] }
 0x13b   : > { %2146 = vst.msk [vmem:[#allocation5 + $0xa9] sm:$0xff] %vm719_vm2, %v2144_v4 }
 0x13c   : > { %8944 = vmatmul.msk.f32.gmra.mxu2 %vm719_vm2, %v2633_v1  ;;  %v1345_v6 = vpop.f32.mrf.mxu0  ;;  %2147 = vst.msk [vmem:[#allocation5 + $0xb1] sm:$0xff] %vm719_vm2, %v2145_v9 }
 0x13d   : > { %2170 = vst.msk [vmem:[#allocation5 + $0xc1] sm:$0xff] %vm719_vm2, %v2168_v16  ;;  %v1346_v43 = vadd.f32 %v10491_v12, %v1345_v6 }
 0x13e   : > { %v1852_v3 = vpop.f32.mrf.mxu3  ;;  %2171 = vst.msk [vmem:[#allocation5 + $0xc9] sm:$0xff] %vm719_vm2, %v2169_v21  ;;  %8963 = vmatmul.msk.f32.gmra.mxu3 %vm719_vm2, %v2782_v32 }
 0x13f   : > { %v1682_v2 = vpop.f32.mrf.mxu2  ;;  %v1515_v19 = vpop.f32.mrf.mxu1  ;;  %8909 = vmatmul.msk.f32.gmra.mxu0 %vm719_vm2, %v10702_v27  ;;  %1740 = vst.msk [vmem:[#allocation2 + $0x300] sm:$0xff] %vm719_vm2, %v1724_v22  ;;  %v1853_v39 = vadd.f32 %v10670_v57, %v1852_v3  ;;  %v1387_v51 = vmax.f32 %v1346_v43, 0.0 }
 0x140   : > { %v1683_v26 = vadd.f32 %v10657_v47, %v1682_v2  ;;  %1910 = vst.msk [vmem:[#allocation2 + $0x380] sm:$0xff] %vm719_vm2, %v1894_v28  ;;  %v1516_v44 = vadd.f32 %v10496_v13, %v1515_v19  ;;  %v10753_v2 = vld [vmem:[#allocation5 + $0x29] sm:$0xff] }
 0x141   : > { %1401 = vst.msk [vmem:[#allocation2 + $0x208] sm:$0xff] %vm719_vm2, %v1385_v29  ;;  %v1896_v48 = vmax.f32 %v1853_v39, 0.0  ;;  %v10792_v39 = vld [vmem:[#allocation5 + $0x32] sm:$0xff] }
 0x142   : > { %8925 = vmatmul.msk.f32.gmra.mxu1 %vm719_vm2, %v2781_v0  ;;  %1571 = vst.msk [vmem:[#allocation2 + $0x288] sm:$0xff] %vm719_vm2, %v1555_v14  ;;  %v1726_v45 = vmax.f32 %v1683_v26, 0.0  ;;  %v1557_v54 = vmax.f32 %v1516_v44, 0.0 }
 0x143   : > { %1741 = vst.msk [vmem:[#allocation2 + $0x308] sm:$0xff] %vm719_vm2, %v1725_v36  ;;  %v10786_v36 = vld [vmem:[#allocation5 + $0x38] sm:$0xff] }
 0x144   : > { %8945 = vmatmul.msk.f32.gmra.mxu2 %vm719_vm2, %v10716_v34  ;;  %v1348_v37 = vpop.f32.mrf.mxu0  ;;  %1911 = vst.msk [vmem:[#allocation2 + $0x388] sm:$0xff] %vm719_vm2, %v1895_v38 }
 0x145   : > { %1402 = vst.msk [vmem:[#allocation2 + $0x210] sm:$0xff] %vm719_vm2, %v1386_v40  ;;  %v1349_v52 = vadd.f32 %v10491_v12, %v1348_v37 }
 0x146   : > { %v1855_v35 = vpop.f32.mrf.mxu3  ;;  %1572 = vst.msk [vmem:[#allocation2 + $0x290] sm:$0xff] %vm719_vm2, %v1556_v42  ;;  %8964 = vmatmul.msk.f32.gmra.mxu3 %vm719_vm2, %v2783_v53 }
 0x147   : > { %v1685_v15 = vpop.f32.mrf.mxu2  ;;  %v1518_v41 = vpop.f32.mrf.mxu1  ;;  %v1856_v50 = vadd.f32 %v10670_v57, %v1855_v35  ;;  %8910 = vmatmul.msk.f32.gmra.mxu0 %vm719_vm2, %v10731_v49  ;;  %1742 = vst.msk [vmem:[#allocation2 + $0x310] sm:$0xff] %vm719_vm2, %v1726_v45  ;;  %v1388_v63 = vmax.f32 %v1349_v52, 0.0  ;;  %v9019_v45 = vld [vmem:[%s13691_s4 + $0xc8] sm:$0xff] }
 0x148   : > { %v1686_v46 = vadd.f32 %v10657_v47, %v1685_v15  ;;  %v1519_v55 = vadd.f32 %v10496_v13, %v1518_v41  ;;  %1912 = vst.msk [vmem:[#allocation2 + $0x390] sm:$0xff] %vm719_vm2, %v1896_v48  ;;  %v2173_v14 = vld [vmem:[#allocation2 + $0x200] ss:$2 sm:$0xff]  ;;  %3314 = vmatpush.msrb.mxu2 %v9019_v45 }
 0x149   : > { %v1897_v61 = vmax.f32 %v1856_v50, 0.0  ;;  %1403 = vst.msk [vmem:[#allocation2 + $0x218] sm:$0xff] %vm719_vm2, %v1387_v51  ;;  %v2221_v15 = vld [vmem:[#allocation2 + $0x280] ss:$2 sm:$0xff]  ;;  %v2225_v35 = vld [vmem:[#allocation2 + $0x281] ss:$2 sm:$0xff] }
 0x14a   : > { %8926 = vmatmul.msk.f32.gmra.mxu1 %vm719_vm2, %v2782_v32  ;;  %v1727_v58 = vmax.f32 %v1686_v46, 0.0  ;;  %1573 = vst.msk [vmem:[#allocation2 + $0x298] sm:$0xff] %vm719_vm2, %v1557_v54  ;;  %v1558_v3 = vmax.f32 %v1519_v55, 0.0  ;;  %v2177_v32 = vld [vmem:[#allocation2 + $0x201] ss:$2 sm:$0xff] }
 0x14b   : > { %1913 = vst.msk [vmem:[#allocation2 + $0x398] sm:$0xff] %vm719_vm2, %v1897_v61  ;;  %v2269_v26 = vld [vmem:[#allocation2 + $0x300] ss:$2 sm:$0xff]  ;;  %v2321_v38 = vld [vmem:[#allocation2 + $0x381] ss:$2 sm:$0xff]  ;;  %v2180_v50 = vmax.f32 %v2173_v14, %v2177_v32  ;;  %v2228_v61 = vmax.f32 %v2221_v15, %v2225_v35 }
 0x14c   : > { %8946 = vmatmul.msk.f32.gmra.mxu2 %vm719_vm2, %v10742_v24  ;;  %v1351_v60 = vpop.f32.mrf.mxu0  ;;  %1743 = vst.msk [vmem:[#allocation2 + $0x318] sm:$0xff] %vm719_vm2, %v1727_v58  ;;  %v2317_v37 = vld [vmem:[#allocation2 + $0x380] ss:$2 sm:$0xff]  ;;  %v2273_v51 = vld [vmem:[#allocation2 + $0x301] ss:$2 sm:$0xff] }
 0x14d   : > { %v1352_v0 = vadd.f32 %v10491_v12, %v1351_v60  ;;  %1404 = vst.msk [vmem:[#allocation2 + $0x220] sm:$0xff] %vm719_vm2, %v1388_v63  ;;  %v8979_v46 = vld [vmem:[%s13691_s4 + $0x88] sm:$0xff]  ;;  %v10843_v45 = vld [vmem:[#allocation5 + $0x48] sm:$0xff] }
 0x14e   : > { %v1858_v56 = vpop.f32.mrf.mxu3  ;;  %1574 = vst.msk [vmem:[#allocation2 + $0x2a0] sm:$0xff] %vm719_vm2, %v1558_v3  ;;  %8965 = vmatmul.msk.f32.gmra.mxu3 %vm719_vm2, %v10763_v10  ;;  %v8999_v48 = vld [vmem:[%s13691_s4 + $0xa8] sm:$0xff]  ;;  %3014 = vmatpush.msrb.mxu0 %v8979_v46 }
 0x14f   : > { %v1688_v25 = vpop.f32.mrf.mxu2  ;;  %v1859_v62 = vadd.f32 %v10670_v57, %v1858_v56  ;;  %v1521_v1 = vpop.f32.mrf.mxu1  ;;  %8911 = vmatmul.msk.f32.gmra.mxu0 %vm719_vm2, %v10753_v2  ;;  %v1389_v9 = vmax.f32 %v1352_v0, 0.0  ;;  %3164 = vmatpush.msrb.mxu1 %v8999_v48  ;;  %6465 = vst.msk [vmem:[#allocation6 + $0x48] sm:$0xff] %vm3717_vm3, %v9762_v11 }
 0x150   : > { %v1689_v59 = vadd.f32 %v10657_v47, %v1688_v25  ;;  %v1522_v4 = vadd.f32 %v10496_v13, %v1521_v1  ;;  %6466 = vst.msk [vmem:[#allocation6 + $0x50] sm:$0xff] %vm3717_vm3, %v9762_v11 }
 0x151   : > { %v1898_v6 = vmax.f32 %v1859_v62, 0.0  ;;  %1405 = vst.msk [vmem:[#allocation2 + $0x228] sm:$0xff] %vm719_vm2, %v1389_v9  ;;  %v2324_v62 = vmax.f32 %v2317_v37, %v2321_v38  ;;  %v10835_v38 = vld [vmem:[#allocation5 + $0x41] sm:$0xff]  ;;  %v2223_v46 = vld [vmem:[#allocation2 + $0x290] ss:$2 sm:$0xff] }
 0x152   : > { %v1728_v5 = vmax.f32 %v1689_v59, 0.0  ;;  %8927 = vmatmul.msk.f32.gmra.mxu1 %vm719_vm2, %v2783_v53  ;;  %v1559_v16 = vmax.f32 %v1522_v4, 0.0  ;;  %v2276_v4 = vmax.f32 %v2269_v26, %v2273_v51  ;;  %v2227_v48 = vld [vmem:[#allocation2 + $0x291] ss:$2 sm:$0xff]  ;;  %6467 = vst.msk [vmem:[#allocation6 + $0x58] sm:$0xff] %vm3717_vm3, %v9762_v11 }
 0x153   : > { %1914 = vst.msk [vmem:[#allocation2 + $0x3a0] sm:$0xff] %vm719_vm2, %v1898_v6 }
 0x154   : > { %1744 = vst.msk [vmem:[#allocation2 + $0x320] sm:$0xff] %vm719_vm2, %v1728_v5  ;;  %8947 = vmatmul.msk.f32.gmra.mxu2 %vm719_vm2, %v10766_v18  ;;  %v1354_v8 = vpop.f32.mrf.mxu0 }
 0x155   : > { %v1355_v17 = vadd.f32 %v10491_v12, %v1354_v8  ;;  %1575 = vst.msk [vmem:[#allocation2 + $0x2a8] sm:$0xff] %vm719_vm2, %v1559_v16 }
 0x156   : > { %v1861_v7 = vpop.f32.mrf.mxu3  ;;  %8966 = vmatmul.msk.f32.gmra.mxu3 %vm719_vm2, %v10786_v36  ;;  %6468 = vst.msk [vmem:[#allocation6 + $0x60] sm:$0xff] %vm3717_vm3, %v9762_v11 }
 0x157   : > { %v1691_v19 = vpop.f32.mrf.mxu2  ;;  %v1862_v21 = vadd.f32 %v10670_v57, %v1861_v7  ;;  %v1524_v23 = vpop.f32.mrf.mxu1  ;;  %v1390_v29 = vmax.f32 %v1355_v17, 0.0  ;;  %8912 = vmatmul.msk.f32.gmra.mxu0 %vm719_vm2, %v10781_v30  ;;  %v10821_v17 = vld [vmem:[#allocation5 + $0x40] sm:$0xff]  ;;  %6469 = vst.msk [vmem:[#allocation6 + $0x68] sm:$0xff] %vm3717_vm3, %v9762_v11 }
 0x158   : > { %v1692_v20 = vadd.f32 %v10657_v47, %v1691_v19  ;;  %v1525_v31 = vadd.f32 %v10496_v13, %v1524_v23  ;;  %v2183_v52 = vld [vmem:[#allocation2 + $0x220] ss:$2 sm:$0xff]  ;;  %v2187_v53 = vld [vmem:[#allocation2 + $0x221] ss:$2 sm:$0xff]  ;;  %6470 = vst.msk [vmem:[#allocation6 + $0x70] sm:$0xff] %vm3717_vm3, %v9762_v11 }
 0x159   : > { %v1899_v28 = vmax.f32 %v1862_v21, 0.0  ;;  %1406 = vst.msk [vmem:[#allocation2 + $0x230] sm:$0xff] %vm719_vm2, %v1390_v29  ;;  %v2190_v54 = vmax.f32 %v2183_v52, %v2187_v53  ;;  %v10812_v19 = vld [vmem:[#allocation5 + $0x39] sm:$0xff] }
 0x15a   : > { %v1729_v22 = vmax.f32 %v1692_v20, 0.0  ;;  %v1560_v33 = vmax.f32 %v1525_v31, 0.0  ;;  %8928 = vmatmul.msk.f32.gmra.mxu1 %vm719_vm2, %v10763_v10  ;;  %v2271_v53 = vld [vmem:[#allocation2 + $0x310] ss:$2 sm:$0xff]  ;;  %6471 = vst.msk [vmem:[#allocation6 + $0x78] sm:$0xff] %vm3717_vm3, %v9762_v11 }
 0x15b   : > { %1915 = vst.msk [vmem:[#allocation2 + $0x3a8] sm:$0xff] %vm719_vm2, %v1899_v28  ;;  %v2192_v5 = vmax.f32 %v2180_v50, %v2190_v54  ;;  %v10823_v28 = vld [vmem:[#allocation5 + $0x3a] sm:$0xff]  ;;  %v10849_v50 = vld [vmem:[#allocation5 + $0x42] sm:$0xff] }
 0x15c   : > { %1745 = vst.msk [vmem:[#allocation2 + $0x328] sm:$0xff] %vm719_vm2, %v1729_v22  ;;  %8948 = vmatmul.msk.f32.gmra.mxu2 %vm719_vm2, %v10792_v39  ;;  %v1357_v44 = vpop.f32.mrf.mxu0  ;;  %v2231_v55 = vld [vmem:[#allocation2 + $0x2a0] ss:$2 sm:$0xff]  ;;  %v2235_v25 = vld [vmem:[#allocation2 + $0x2a1] ss:$2 sm:$0xff] }
 0x15d   : > { %1576 = vst.msk [vmem:[#allocation2 + $0x2b0] sm:$0xff] %vm719_vm2, %v1560_v33  ;;  %v1358_v59 = vadd.f32 %v10491_v12, %v1357_v44  ;;  %v2238_v63 = vmax.f32 %v2231_v55, %v2235_v25  ;;  %v2179_v44 = vld [vmem:[#allocation2 + $0x211] ss:$2 sm:$0xff]  ;;  %v2319_v54 = vld [vmem:[#allocation2 + $0x390] ss:$2 sm:$0xff] }
 0x15e   : > { %v1864_v43 = vpop.f32.mrf.mxu3  ;;  %2194 = vst.msk [vmem:[#allocation5 + $0xd9] sm:$0xff] %vm719_vm2, %v2192_v5  ;;  %8967 = vmatmul.msk.f32.gmra.mxu3 %vm719_vm2, %v10821_v17  ;;  %v2323_v55 = vld [vmem:[#allocation2 + $0x391] ss:$2 sm:$0xff] }
 0x15f   : > { %v1694_v40 = vpop.f32.mrf.mxu2  ;;  %v1865_v42 = vadd.f32 %v10670_v57, %v1864_v43  ;;  %v1527_v60 = vpop.f32.mrf.mxu1  ;;  %v2240_v7 = vmax.f32 %v2228_v61, %v2238_v63  ;;  %8913 = vmatmul.msk.f32.gmra.mxu0 %vm719_vm2, %v10812_v19  ;;  %v1391_v8 = vmax.f32 %v1358_v59, 0.0  ;;  %6472 = vst.msk [vmem:[#allocation6 + $0x80] sm:$0xff] %vm3717_vm3, %v9762_v11 }
 0x160   : > { %v1695_v41 = vadd.f32 %v10657_v47, %v1694_v40  ;;  %v1528_v3 = vadd.f32 %v10496_v13, %v1527_v60  ;;  %v2275_v60 = vld [vmem:[#allocation2 + $0x311] ss:$2 sm:$0xff]  ;;  %6473 = vst.msk [vmem:[#allocation6 + $0x88] sm:$0xff] %vm3717_vm3, %v9762_v11 }
 0x161   : > { %v1900_v58 = vmax.f32 %v1865_v42, 0.0  ;;  %2242 = vst.msk [vmem:[#allocation5 + $0x109] sm:$0xff] %vm719_vm2, %v2240_v7  ;;  %v2175_v42 = vld [vmem:[#allocation2 + $0x210] ss:$2 sm:$0xff] }
 0x162   : > { %v1730_v56 = vmax.f32 %v1695_v41, 0.0  ;;  %v2327_v9 = vld [vmem:[#allocation2 + $0x3a0] ss:$2 sm:$0xff]  ;;  %v2331_v16 = vld [vmem:[#allocation2 + $0x3a1] ss:$2 sm:$0xff]  ;;  %8929 = vmatmul.msk.f32.gmra.mxu1 %vm719_vm2, %v10786_v36  ;;  %v1561_v23 = vmax.f32 %v1528_v3, 0.0  ;;  %v2181_v59 = vmax.f32 %v2175_v42, %v2179_v44 }
 0x163   : > { %v2279_v0 = vld [vmem:[#allocation2 + $0x320] ss:$2 sm:$0xff]  ;;  %v2283_v1 = vld [vmem:[#allocation2 + $0x321] ss:$2 sm:$0xff]  ;;  %v2334_v20 = vmax.f32 %v2327_v9, %v2331_v16  ;;  %1916 = vst.msk [vmem:[#allocation2 + $0x3b0] sm:$0xff] %vm719_vm2, %v1900_v58  ;;  %v2229_v9 = vmax.f32 %v2223_v46, %v2227_v48  ;;  %v2325_v16 = vmax.f32 %v2319_v54, %v2323_v55 }
 0x164   : > { %v2286_v6 = vmax.f32 %v2279_v0, %v2283_v1  ;;  %1746 = vst.msk [vmem:[#allocation2 + $0x330] sm:$0xff] %vm719_vm2, %v1730_v56  ;;  %8949 = vmatmul.msk.f32.gmra.mxu2 %vm719_vm2, %v10823_v28  ;;  %v1360_v33 = vpop.f32.mrf.mxu0 }
 0x165   : > { %v2336_v22 = vmax.f32 %v2324_v62, %v2334_v20  ;;  %v1361_v15 = vadd.f32 %v10491_v12, %v1360_v33  ;;  %1407 = vst.msk [vmem:[#allocation2 + $0x238] sm:$0xff] %vm719_vm2, %v1391_v8 }
 0x166   : > { %v2288_v21 = vmax.f32 %v2276_v4, %v2286_v6  ;;  %v1867_v29 = vpop.f32.mrf.mxu3  ;;  %1577 = vst.msk [vmem:[#allocation2 + $0x2b8] sm:$0xff] %vm719_vm2, %v1561_v23  ;;  %8968 = vmatmul.msk.f32.gmra.mxu3 %vm719_vm2, %v10843_v45 }
 0x167   : > { %v1697_v31 = vpop.f32.mrf.mxu2  ;;  %v1868_v32 = vadd.f32 %v10670_v57, %v1867_v29  ;;  %2338 = vst.msk [vmem:[#allocation5 + $0x169] sm:$0xff] %vm719_vm2, %v2336_v22  ;;  %v1530_v37 = vpop.f32.mrf.mxu1  ;;  %v1392_v40 = vmax.f32 %v1361_v15, 0.0  ;;  %8914 = vmatmul.msk.f32.gmra.mxu0 %vm719_vm2, %v10835_v38  ;;  %v2277_v22 = vmax.f32 %v2271_v53, %v2275_v60  ;;  %v10894_v60 = vld [vmem:[#allocation5 + $0x58] sm:$0xff] }
 0x168   : > { %2290 = vst.msk [vmem:[#allocation5 + $0x139] sm:$0xff] %vm719_vm2, %v2288_v21  ;;  %v1698_v14 = vadd.f32 %v10657_v47, %v1697_v31  ;;  %v1531_v43 = vadd.f32 %v10496_v13, %v1530_v37  ;;  %v10869_v37 = vld [vmem:[#allocation5 + $0x50] sm:$0xff] }
 0x169   : > { %v1901_v26 = vmax.f32 %v1868_v32, 0.0  ;;  %1408 = vst.msk [vmem:[#allocation2 + $0x240] sm:$0xff] %vm719_vm2, %v1392_v40  ;;  %v10860_v32 = vld [vmem:[#allocation5 + $0x49] sm:$0xff] }
 0x16a   : > { %v1731_v35 = vmax.f32 %v1698_v14, 0.0  ;;  %v1562_v41 = vmax.f32 %v1531_v43, 0.0  ;;  %8930 = vmatmul.msk.f32.gmra.mxu1 %vm719_vm2, %v10821_v17  ;;  %6474 = vst.msk [vmem:[#allocation6 + $0x90] sm:$0xff] %vm3717_vm3, %v9762_v11 }
 0x16b   : > { %1917 = vst.msk [vmem:[#allocation2 + $0x3b8] sm:$0xff] %vm719_vm2, %v1901_v26 }
 0x16c   : > { %1747 = vst.msk [vmem:[#allocation2 + $0x338] sm:$0xff] %vm719_vm2, %v1731_v35  ;;  %8950 = vmatmul.msk.f32.gmra.mxu2 %vm719_vm2, %v10849_v50  ;;  %v1363_v58 = vpop.f32.mrf.mxu0  ;;  %v2185_v61 = vld [vmem:[#allocation2 + $0x230] ss:$2 sm:$0xff]  ;;  %v2189_v62 = vld [vmem:[#allocation2 + $0x231] ss:$2 sm:$0xff] }
 0x16d   : > { %1578 = vst.msk [vmem:[#allocation2 + $0x2c0] sm:$0xff] %vm719_vm2, %v1562_v41  ;;  %v2191_v63 = vmax.f32 %v2185_v61, %v2189_v62  ;;  %v2233_v0 = vld [vmem:[#allocation2 + $0x2b0] ss:$2 sm:$0xff]  ;;  %v2237_v1 = vld [vmem:[#allocation2 + $0x2b1] ss:$2 sm:$0xff]  ;;  %v1364_v5 = vadd.f32 %v10491_v12, %v1363_v58 }
 0x16e   : > { %v1870_v52 = vpop.f32.mrf.mxu3  ;;  %v2239_v7 = vmax.f32 %v2233_v0, %v2237_v1  ;;  %v10871_v41 = vld [vmem:[#allocation5 + $0x4a] sm:$0xff]  ;;  %8969 = vmatmul.msk.f32.gmra.mxu3 %vm719_vm2, %v10869_v37  ;;  %v10897_v61 = vld [vmem:[#allocation5 + $0x52] sm:$0xff]  ;;  %6475 = vst.msk [vmem:[#allocation6 + $0x98] sm:$0xff] %vm3717_vm3, %v9762_v11 }
 0x16f   : > { %v1700_v51 = vpop.f32.mrf.mxu2  ;;  %v1871_v56 = vadd.f32 %v10670_v57, %v1870_v52  ;;  %v1533_v6 = vpop.f32.mrf.mxu1  ;;  %v2193_v23 = vmax.f32 %v2181_v59, %v2191_v63  ;;  %8915 = vmatmul.msk.f32.gmra.mxu0 %vm719_vm2, %v10860_v32  ;;  %v1393_v26 = vmax.f32 %v1364_v5, 0.0  ;;  %v10886_v58 = vld [vmem:[#allocation5 + $0x51] sm:$0xff]  ;;  %6476 = vst.msk [vmem:[#allocation6 + $0xa0] sm:$0xff] %vm3717_vm3, %v9762_v11 }
 0x170   : > { %v1701_v25 = vadd.f32 %v10657_v47, %v1700_v51  ;;  %v1534_v8 = vadd.f32 %v10496_v13, %v1533_v6  ;;  %v2241_v33 = vmax.f32 %v2229_v9, %v2239_v7  ;;  %v8978_v5 = vld [vmem:[%s13691_s4 + $0x80] sm:$0xff] }
 0x171   : > { %v1902_v4 = vmax.f32 %v1871_v56, 0.0  ;;  %2195 = vst.msk [vmem:[#allocation5 + $0xe1] sm:$0xff] %vm719_vm2, %v2193_v23  ;;  %v8998_v6 = vld [vmem:[%s13691_s4 + $0xa0] sm:$0xff]  ;;  %3015 = vmatpush.msrb.mxu0 %v8978_v5 }
 0x172   : > { %v1732_v3 = vmax.f32 %v1701_v25, 0.0  ;;  %v2329_v29 = vld [vmem:[#allocation2 + $0x3b0] ss:$2 sm:$0xff]  ;;  %v2333_v14 = vld [vmem:[#allocation2 + $0x3b1] ss:$2 sm:$0xff]  ;;  %8931 = vmatmul.msk.f32.gmra.mxu1 %vm719_vm2, %v10843_v45  ;;  %2243 = vst.msk [vmem:[#allocation5 + $0x111] sm:$0xff] %vm719_vm2, %v2241_v33 }
 0x173   : > { %v2281_v20 = vld [vmem:[#allocation2 + $0x330] ss:$2 sm:$0xff]  ;;  %v2285_v21 = vld [vmem:[#allocation2 + $0x331] ss:$2 sm:$0xff]  ;;  %v2335_v15 = vmax.f32 %v2329_v29, %v2333_v14  ;;  %1918 = vst.msk [vmem:[#allocation2 + $0x3c0] sm:$0xff] %vm719_vm2, %v1902_v4  ;;  %v1563_v43 = vmax.f32 %v1534_v8, 0.0  ;;  %3165 = vmatpush.msrb.mxu1 %v8998_v6 }
 0x174   : > { %v2287_v31 = vmax.f32 %v2281_v20, %v2285_v21  ;;  %1748 = vst.msk [vmem:[#allocation2 + $0x340] sm:$0xff] %vm719_vm2, %v1732_v3  ;;  %8951 = vmatmul.msk.f32.gmra.mxu2 %vm719_vm2, %v10871_v41  ;;  %v1366_v51 = vpop.f32.mrf.mxu0  ;;  %v9018_v4 = vld [vmem:[%s13691_s4 + $0xc0] sm:$0xff] }
 0x175   : > { %v2337_v40 = vmax.f32 %v2325_v16, %v2335_v15  ;;  %v1367_v52 = vadd.f32 %v10491_v12, %v1366_v51  ;;  %1409 = vst.msk [vmem:[#allocation2 + $0x248] sm:$0xff] %vm719_vm2, %v1393_v26  ;;  %3315 = vmatpush.msrb.mxu2 %v9018_v4  ;;  %v10915_v21 = vld [vmem:[#allocation5 + $0x59] sm:$0xff] }
 0x176   : > { %v2289_v35 = vmax.f32 %v2277_v22, %v2287_v31  ;;  %v1873_v44 = vpop.f32.mrf.mxu3  ;;  %1579 = vst.msk [vmem:[#allocation2 + $0x2c8] sm:$0xff] %vm719_vm2, %v1563_v43  ;;  %8970 = vmatmul.msk.f32.gmra.mxu3 %vm719_vm2, %v10894_v60  ;;  %v10928_v31 = vld [vmem:[#allocation5 + $0x5a] sm:$0xff] }
 0x177   : > { %v1703_v42 = vpop.f32.mrf.mxu2  ;;  %v1874_v48 = vadd.f32 %v10670_v57, %v1873_v44  ;;  %2339 = vst.msk [vmem:[#allocation5 + $0x171] sm:$0xff] %vm719_vm2, %v2337_v40  ;;  %v1536_v55 = vpop.f32.mrf.mxu1  ;;  %v1394_v25 = vmax.f32 %v1367_v52, 0.0  ;;  %8916 = vmatmul.msk.f32.gmra.mxu0 %vm719_vm2, %v10886_v58  ;;  %v9041_v40 = vld [vmem:[%s13691_s4 + $0xf8] sm:$0xff]  ;;  %v10952_v52 = vld [vmem:[#allocation5 + $0x61] sm:$0xff] }
 0x178   : > { %2291 = vst.msk [vmem:[#allocation5 + $0x141] sm:$0xff] %vm719_vm2, %v2289_v35  ;;  %v1704_v46 = vadd.f32 %v10657_v47, %v1703_v42  ;;  %v1537_v56 = vadd.f32 %v10496_v13, %v1536_v55  ;;  %v10939_v35 = vld [vmem:[%s13692_s3] ss:$0 sm:$0xff]  ;;  %3462 = vmatpush.msrb.mxu3 %v9041_v40  ;;  %v10963_v55 = vld [vmem:[#allocation5 + $0x62] sm:$0xff] }
 0x179   : > { %v1903_v54 = vmax.f32 %v1874_v48, 0.0  ;;  %1410 = vst.msk [vmem:[#allocation2 + $0x250] sm:$0xff] %vm719_vm2, %v1394_v25  ;;  %v10948_v48 = vld [vmem:[%s13692_s3] ss:$0 sm:$0xff]  ;;  %s8692_s3 = sshll.u32 %s8688_s21, 4  ;;  %s8693_s3 = int_to_ptr.hbm [resolvable:$true] %s8692_s3 }
 0x17a   : > { %v1733_v53 = vmax.f32 %v1704_v46, 0.0  ;;  %v1564_v59 = vmax.f32 %v1537_v56, 0.0  ;;  %8932 = vmatmul.msk.f32.gmra.mxu1 %vm719_vm2, %v10869_v37  ;;  %s9712_s30 = sshra.s32 %s8693_s3, 4  ;;  %s9713_s30 = int_to_ptr.hbm [resolvable:$true] %s9712_s30 }
 0x17b   : > { %1919 = vst.msk [vmem:[#allocation2 + $0x3c8] sm:$0xff] %vm719_vm2, %v1903_v54  ;;  %v10960_v54 = vld [vmem:[#allocation5 + $0x68] sm:$0xff]  ;;  %s9714_s18 = scalar_lea.hbm %s9713_s30, 1  ;;  %p9719_p0 = scmp.lt.s32.totalorder %s9713_s30, %s13673_s17 }
 0x17c   : > { %1749 = vst.msk [vmem:[#allocation2 + $0x348] sm:$0xff] %vm719_vm2, %v1733_v53  ;;  %8952 = vmatmul.msk.f32.gmra.mxu2 %vm719_vm2, %v10897_v61  ;;  %v1369_v3 = vpop.f32.mrf.mxu0  ;;  %p9715_p11 = scmp.ne.s32.totalorder %s9713_s30, %s9714_s18 }
 0x17d   : > { %1580 = vst.msk [vmem:[#allocation2 + $0x2d0] sm:$0xff] %vm719_vm2, %v1564_v59  ;;  %v1370_v9 = vadd.f32 %v10491_v12, %v1369_v3  ;;  %v10925_v12 = vld [vmem:[#allocation5 + $0x60] sm:$0xff] }
 0x17e   : > { %v1876_v63 = vpop.f32.mrf.mxu3  ;;  %8971 = vmatmul.msk.f32.gmra.mxu3 %vm719_vm2, %v10925_v12  ;;  %p9716_p12 = pnand %p9715_p11, %p9891_p5 }
 0x17f   : > { %v1706_v62 = vpop.f32.mrf.mxu2  ;;  %v1877_v1 = vadd.f32 %v10670_v57, %v1876_v63  ;;  %v1539_v20 = vpop.f32.mrf.mxu1  ;;  %v1395_v8 = vmax.f32 %v1370_v9, 0.0  ;;  %8917 = vmatmul.msk.f32.gmra.mxu0 %vm719_vm2, %v10915_v21  ;;  %v10974_v9 = vld [vmem:[#allocation5 + $0x69] sm:$0xff] }
 0x180   : > { %v1707_v0 = vadd.f32 %v10657_v47, %v1706_v62  ;;  %v1540_v22 = vadd.f32 %v10496_v13, %v1539_v20  ;;  %v10985_v20 = vld [vmem:[#allocation5 + $0x6a] sm:$0xff]  ;;  %p9717_p13 = pneg %p9716_p12 }
 0x181   : > { %v1904_v7 = vmax.f32 %v1877_v1, 0.0  ;;  %1411 = vst.msk [vmem:[#allocation2 + $0x258] sm:$0xff] %vm719_vm2, %v1395_v8 }
 0x182   : > { %v1734_v16 = vmax.f32 %v1707_v0, 0.0  ;;  %v1565_v23 = vmax.f32 %v1540_v22, 0.0  ;;  %8933 = vmatmul.msk.f32.gmra.mxu1 %vm719_vm2, %v10894_v60 }
 0x183   : > { %1920 = vst.msk [vmem:[#allocation2 + $0x3d0] sm:$0xff] %vm719_vm2, %v1904_v7  ;;  %v10982_v7 = vld [vmem:[#allocation5 + $0x70] sm:$0xff] }
 0x184   : > { %1750 = vst.msk [vmem:[#allocation2 + $0x350] sm:$0xff] %vm719_vm2, %v1734_v16  ;;  %8953 = vmatmul.msk.f32.gmra.mxu2 %vm719_vm2, %v10928_v31  ;;  %v1372_v15 = vpop.f32.mrf.mxu0 }
 0x185   : > { %1581 = vst.msk [vmem:[#allocation2 + $0x2d8] sm:$0xff] %vm719_vm2, %v1565_v23  ;;  %v1373_v26 = vadd.f32 %v10939_v35, %v1372_v15  ;;  %v9039_v15 = vld [vmem:[%s13691_s4 + $0xe8] sm:$0xff] }
 0x186   : > { %v1879_v29 = vpop.f32.mrf.mxu3  ;;  %8972 = vmatmul.msk.f32.gmra.mxu3 %vm719_vm2, %v10960_v54 }
 0x187   : > { %v1709_v13 = vpop.f32.mrf.mxu2  ;;  %v1880_v33 = vadd.f32 %v10670_v57, %v1879_v29  ;;  %v1542_v44 = vpop.f32.mrf.mxu1  ;;  %v1396_v46 = vmax.f32 %v1373_v26, 0.0  ;;  %8918 = vmatmul.msk.f32.gmra.mxu0 %vm719_vm2, %v10952_v52 }
 0x188   : > { %v1710_v14 = vadd.f32 %v10657_v47, %v1709_v13  ;;  %v1543_v51 = vadd.f32 %v10948_v48, %v1542_v44  ;;  %v2197_v44 = vld [vmem:[#allocation2 + $0x240] ss:$2 sm:$0xff] }
 0x189   : > { %v1905_v42 = vmax.f32 %v1880_v33, 0.0  ;;  %1412 = vst.msk [vmem:[#allocation2 + $0x260] sm:$0xff] %vm719_vm2, %v1396_v46  ;;  %v9040_v33 = vld [vmem:[%s13691_s4 + $0xf0] sm:$0xff] }
 0x18a   : > { %v1735_v43 = vmax.f32 %v1710_v14, 0.0  ;;  %v1566_v53 = vmax.f32 %v1543_v51, 0.0  ;;  %8934 = vmatmul.msk.f32.gmra.mxu1 %vm719_vm2, %v10925_v12  ;;  %3463 = vmatpush.msrb.mxu3 %v9040_v33  ;;  %v2201_v46 = vld [vmem:[#allocation2 + $0x241] ss:$2 sm:$0xff] }
 0x18b   : > { %1921 = vst.msk [vmem:[#allocation2 + $0x3d8] sm:$0xff] %vm719_vm2, %v1905_v42  ;;  %v11000_v42 = vld [vmem:[#allocation5 + $0x71] sm:$0xff] }
 0x18c   : > { %1751 = vst.msk [vmem:[#allocation2 + $0x358] sm:$0xff] %vm719_vm2, %v1735_v43  ;;  %8954 = vmatmul.msk.f32.gmra.mxu2 %vm719_vm2, %v10963_v55  ;;  %v1375_v63 = vpop.f32.mrf.mxu0  ;;  %3464 = vmatpush.msrb.mxu3 %v9039_v15 }
 0x18d   : > { %1582 = vst.msk [vmem:[#allocation2 + $0x2e0] sm:$0xff] %vm719_vm2, %v1566_v53  ;;  %v1376_v0 = vadd.f32 %v10939_v35, %v1375_v63 }
 0x18e   : > { %v1882_v56 = vpop.f32.mrf.mxu3  ;;  %8973 = vmatmul.msk.f32.gmra.mxu3 %vm719_vm2, %v10982_v7 }
 0x18f   : > { %v1712_v25 = vpop.f32.mrf.mxu2  ;;  %v1883_v62 = vadd.f32 %v10670_v57, %v1882_v56  ;;  %v1545_v4 = vpop.f32.mrf.mxu1  ;;  %v1397_v5 = vmax.f32 %v1376_v0, 0.0  ;;  %8919 = vmatmul.msk.f32.gmra.mxu0 %vm719_vm2, %v10974_v9  ;;  %v2245_v56 = vld [vmem:[#allocation2 + $0x2c0] ss:$2 sm:$0xff] }
 0x190   : > { %v1713_v59 = vadd.f32 %v10657_v47, %v1712_v25  ;;  %v1546_v6 = vadd.f32 %v10948_v48, %v1545_v4  ;;  %v9038_v25 = vld [vmem:[%s13691_s4 + $0xe0] sm:$0xff] }
 0x191   : > { %v1906_v3 = vmax.f32 %v1883_v62, 0.0  ;;  %1413 = vst.msk [vmem:[#allocation2 + $0x268] sm:$0xff] %vm719_vm2, %v1397_v5  ;;  %3465 = vmatpush.msrb.mxu3 %v9038_v25 }
 0x192   : > { %v1736_v1 = vmax.f32 %v1713_v59, 0.0  ;;  %v1567_v16 = vmax.f32 %v1546_v6, 0.0  ;;  %8935 = vmatmul.msk.f32.gmra.mxu1 %vm719_vm2, %v10960_v54  ;;  %v2249_v59 = vld [vmem:[#allocation2 + $0x2c1] ss:$2 sm:$0xff] }
 0x193   : > { %1922 = vst.msk [vmem:[#allocation2 + $0x3e0] sm:$0xff] %vm719_vm2, %v1906_v3  ;;  %v2252_v6 = vmax.f32 %v2245_v56, %v2249_v59 }
 0x194   : > { %1752 = vst.msk [vmem:[#allocation2 + $0x360] sm:$0xff] %vm719_vm2, %v1736_v1  ;;  %8955 = vmatmul.msk.f32.gmra.mxu2 %vm719_vm2, %v10985_v20  ;;  %v1378_v29 = vpop.f32.mrf.mxu0  ;;  %v2204_v1 = vmax.f32 %v2197_v44, %v2201_v46  ;;  %v9061_v44 = vld [vmem:[%s13691_s4 + $0x118] sm:$0xff]  ;;  %v2293_v46 = vld [vmem:[#allocation2 + $0x340] ss:$2 sm:$0xff] }
 0x195   : > { %1583 = vst.msk [vmem:[#allocation2 + $0x2e8] sm:$0xff] %vm719_vm2, %v1567_v16  ;;  %v1379_v14 = vadd.f32 %v10939_v35, %v1378_v29  ;;  %v2341_v16 = vld [vmem:[#allocation2 + $0x3c0] ss:$2 sm:$0xff]  ;;  %3612 = vmatpush.msra.mxu0 %v9061_v44 }
 0x196   : > { %v1885_v22 = vpop.f32.mrf.mxu3 }
 0x197   : > { %v1715_v8 = vpop.f32.mrf.mxu2  ;;  %v1886_v13 = vadd.f32 %v10670_v57, %v1885_v22  ;;  %v1548_v43 = vpop.f32.mrf.mxu1  ;;  %v1398_v51 = vmax.f32 %v1379_v14, 0.0  ;;  %8920 = vmatmul.msk.f32.gmra.mxu0 %vm719_vm2, %v11000_v42  ;;  %v2345_v14 = vld [vmem:[#allocation2 + $0x3c1] ss:$2 sm:$0xff] }
 0x198   : > { %v1716_v23 = vadd.f32 %v10657_v47, %v1715_v8  ;;  %v1549_v53 = vadd.f32 %v10948_v48, %v1548_v43  ;;  %v2207_v62 = vld [vmem:[#allocation2 + $0x260] ss:$2 sm:$0xff]  ;;  %v2211_v63 = vld [vmem:[#allocation2 + $0x261] ss:$2 sm:$0xff]  ;;  %v11013_v8 = vld [vmem:[#allocation5 + $0x78] sm:$0xff] }
 0x199   : > { %v1907_v40 = vmax.f32 %v1886_v13, 0.0  ;;  %v2214_v3 = vmax.f32 %v2207_v62, %v2211_v63  ;;  %1414 = vst.msk [vmem:[#allocation2 + $0x270] sm:$0xff] %vm719_vm2, %v1398_v51  ;;  %8974 = vmatmul.msk.f32.gmra.mxu3 %vm719_vm2, %v11013_v8  ;;  %v3753_v43 = vld [vmem:[%s13691_s4 + $0x18] sm:$0xff]  ;;  %v2297_v51 = vld [vmem:[#allocation2 + $0x341] ss:$2 sm:$0xff]  ;;  %v11032_v63 = vld [vmem:[#allocation5 + $0x79] sm:$0xff] }
 0x19a   : > { %v1737_v26 = vmax.f32 %v1716_v23, 0.0  ;;  %v1568_v0 = vmax.f32 %v1549_v53, 0.0  ;;  %8936 = vmatmul.msk.f32.gmra.mxu1 %vm719_vm2, %v10982_v7  ;;  %v11016_v23 = vld [vmem:[#allocation5 + $0x72] sm:$0xff]  ;;  %3947 = vmatpush.msra.mxu2 %v3753_v43 }
 0x19b   : > { %1923 = vst.msk [vmem:[#allocation2 + $0x3e8] sm:$0xff] %vm719_vm2, %v1907_v40  ;;  %v2216_v33 = vmax.f32 %v2204_v1, %v2214_v3 }
 0x19c   : > { %1753 = vst.msk [vmem:[#allocation2 + $0x368] sm:$0xff] %vm719_vm2, %v1737_v26  ;;  %v2255_v4 = vld [vmem:[#allocation2 + $0x2e0] ss:$2 sm:$0xff]  ;;  %v2259_v5 = vld [vmem:[#allocation2 + $0x2e1] ss:$2 sm:$0xff]  ;;  %8956 = vmatmul.msk.f32.gmra.mxu2 %vm719_vm2, %v11016_v23  ;;  %v1381_v40 = vpop.f32.mrf.mxu0 }
 0x19d   : > { %v2262_v22 = vmax.f32 %v2255_v4, %v2259_v5  ;;  %1584 = vst.msk [vmem:[#allocation2 + $0x2f0] sm:$0xff] %vm719_vm2, %v1568_v0  ;;  %v1382_v25 = vadd.f32 %v10939_v35, %v1381_v40  ;;  %v2348_v0 = vmax.f32 %v2341_v16, %v2345_v14 }
 0x19e   : > { %v1888_v29 = vpop.f32.mrf.mxu3  ;;  %2218 = vst.msk [vmem:[#allocation5 + $0xf1] sm:$0xff] %vm719_vm2, %v2216_v33 }
 0x19f   : > { %v1718_v13 = vpop.f32.mrf.mxu2  ;;  %v1889_v26 = vadd.f32 %v10670_v57, %v1888_v29  ;;  %v2264_v53 = vmax.f32 %v2252_v6, %v2262_v22  ;;  %v1551_v62 = vpop.f32.mrf.mxu1  ;;  %v1399_v4 = vmax.f32 %v1382_v25, 0.0  ;;  %v2300_v6 = vmax.f32 %v2293_v46, %v2297_v51  ;;  %v9081_v29 = vld [vmem:[%s13691_s4 + $0x38] sm:$0xff]  ;;  %8921 = vmatmul.msk.f32.gmra.mxu0 %vm719_vm2, %v11032_v63 }
 0x1a0   : > { %v1719_v15 = vadd.f32 %v10657_v47, %v1718_v13  ;;  %v1552_v5 = vadd.f32 %v10948_v48, %v1551_v62  ;;  %3834 = vmatpush.msra.mxu1 %v9081_v29  ;;  %v11046_v48 = vld [vmem:[#allocation5 + $0x80] sm:$0xff]  ;;  %v2203_v62 = vld [vmem:[#allocation2 + $0x251] ss:$2 sm:$0xff] }
 0x1a1   : > { %v1908_v59 = vmax.f32 %v1889_v26, 0.0  ;;  %2266 = vst.msk [vmem:[#allocation5 + $0x121] sm:$0xff] %vm719_vm2, %v2264_v53  ;;  %v11049_v26 = vld [vmem:[#allocation5 + $0x7a] sm:$0xff]  ;;  %8975 = vmatmul.msk.f32.gmra.mxu3 %vm719_vm2, %v11046_v48 }
 0x1a2   : > { %v1738_v56 = vmax.f32 %v1719_v15, 0.0  ;;  %v2351_v35 = vld [vmem:[#allocation2 + $0x3e0] ss:$2 sm:$0xff]  ;;  %v2355_v13 = vld [vmem:[#allocation2 + $0x3e1] ss:$2 sm:$0xff]  ;;  %v1569_v16 = vmax.f32 %v1552_v5, 0.0  ;;  %8937 = vmatmul.msk.f32.gmra.mxu1 %vm719_vm2, %v11013_v8 }
 0x1a3   : > { %v2303_v1 = vld [vmem:[#allocation2 + $0x360] ss:$2 sm:$0xff]  ;;  %v2307_v3 = vld [vmem:[#allocation2 + $0x361] ss:$2 sm:$0xff]  ;;  %v2358_v33 = vmax.f32 %v2351_v35, %v2355_v13  ;;  %1924 = vst.msk [vmem:[#allocation2 + $0x3f0] sm:$0xff] %vm719_vm2, %v1908_v59 }
 0x1a4   : > { %v2310_v22 = vmax.f32 %v2303_v1, %v2307_v3  ;;  %1754 = vst.msk [vmem:[#allocation2 + $0x370] sm:$0xff] %vm719_vm2, %v1738_v56  ;;  %8957 = vmatmul.msk.f32.gmra.mxu2 %vm719_vm2, %v11049_v26  ;;  %v2470_v51 = vpop.f32.mrf.mxu0  ;;  %v2199_v59 = vld [vmem:[#allocation2 + $0x250] ss:$2 sm:$0xff]  ;;  %v2251_v1 = vld [vmem:[#allocation2 + $0x2d1] ss:$2 sm:$0xff]  ;;  %v11065_v35 = vld [vmem:[#allocation5 + $0x88] sm:$0xff] }
 0x1a5   : > { %1415 = vst.msk [vmem:[#allocation2 + $0x278] sm:$0xff] %vm719_vm2, %v1399_v4  ;;  %v2360_v15 = vmax.f32 %v2348_v0, %v2358_v33  ;;  %v2247_v0 = vld [vmem:[#allocation2 + $0x2d0] ss:$2 sm:$0xff] }
 0x1a6   : > { %v2312_v14 = vmax.f32 %v2300_v6, %v2310_v22  ;;  %1585 = vst.msk [vmem:[#allocation2 + $0x2f8] sm:$0xff] %vm719_vm2, %v1569_v16  ;;  %v1891_v43 = vpop.f32.mrf.mxu3  ;;  %v2253_v22 = vmax.f32 %v2247_v0, %v2251_v1  ;;  %v2343_v33 = vld [vmem:[#allocation2 + $0x3d0] ss:$2 sm:$0xff]  ;;  %v2347_v16 = vld [vmem:[#allocation2 + $0x3d1] ss:$2 sm:$0xff] }
 0x1a7   : > { %v1721_v40 = vpop.f32.mrf.mxu2  ;;  %v1892_v46 = vadd.f32 %v10670_v57, %v1891_v43  ;;  %2362 = vst.msk [vmem:[#allocation5 + $0x181] sm:$0xff] %vm719_vm2, %v2360_v15  ;;  %v2583_v56 = vpop.f32.mrf.mxu1  ;;  %8982 = vmatmul.msk.f32.vlgmr.msrb.gmra.mxu0 %vm719_vm2, %v10702_v27  ;;  %v2295_v27 = vld [vmem:[#allocation2 + $0x350] ss:$2 sm:$0xff]  ;;  %v2299_v15 = vld [vmem:[#allocation2 + $0x351] ss:$2 sm:$0xff]  ;;  %v2349_v43 = vmax.f32 %v2343_v33, %v2347_v16 }
 0x1a8   : > { %2314 = vst.msk [vmem:[#allocation5 + $0x151] sm:$0xff] %vm719_vm2, %v2312_v14  ;;  %v1722_v44 = vadd.f32 %v10657_v47, %v1721_v40  ;;  %v2205_v47 = vmax.f32 %v2199_v59, %v2203_v62 }
 0x1a9   : > { %v1909_v25 = vmax.f32 %v1892_v46, 0.0  ;;  %8976 = vmatmul.msk.f32.gmra.mxu3 %vm719_vm2, %v11065_v35 }
 0x1aa   : > { %v1739_v53 = vmax.f32 %v1722_v44, 0.0  ;;  %9002 = vmatmul.msk.f32.vlgmr.msrb.gmra.mxu1 %vm719_vm2, %v10716_v34 }
 0x1ab   : > { %1925 = vst.msk [vmem:[#allocation2 + $0x3f8] sm:$0xff] %vm719_vm2, %v1909_v25  ;;  %v2301_v25 = vmax.f32 %v2295_v27, %v2299_v15 }
 0x1ac   : > { %1755 = vst.msk [vmem:[#allocation2 + $0x378] sm:$0xff] %vm719_vm2, %v1739_v53  ;;  %v2209_v3 = vld [vmem:[#allocation2 + $0x270] ss:$2 sm:$0xff]  ;;  %v2213_v4 = vld [vmem:[#allocation2 + $0x271] ss:$2 sm:$0xff]  ;;  %9022 = vmatmul.msk.f32.vlgmr.msrb.gmra.mxu2 %vm719_vm2, %v10763_v10  ;;  %v2473_v34 = vpop.f32.mrf.mxu0 }
 0x1ad   : > { %v2215_v57 = vmax.f32 %v2209_v3, %v2213_v4  ;;  %v2257_v5 = vld [vmem:[#allocation2 + $0x2f0] ss:$2 sm:$0xff]  ;;  %v2261_v6 = vld [vmem:[#allocation2 + $0x2f1] ss:$2 sm:$0xff] }
 0x1ae   : > { %v2263_v13 = vmax.f32 %v2257_v5, %v2261_v6  ;;  %v11077_v3 = vld [vmem:[#allocation5 + $0x90] sm:$0xff]  ;;  %v9060_v6 = vld [vmem:[%s13691_s4 + $0x110] sm:$0xff] }
 0x1af   : > { %v2717_v29 = vpop.f32.mrf.mxu2  ;;  %v2217_v14 = vmax.f32 %v2205_v47, %v2215_v57  ;;  %v2586_v53 = vpop.f32.mrf.mxu1  ;;  %8983 = vmatmul.msk.f32.gmra.mxu0 %vm719_vm2, %v10731_v49 }
 0x1b0   : > { %v2265_v40 = vmax.f32 %v2253_v22, %v2263_v13  ;;  %3613 = vmatpush.msra.mxu0 %v9060_v6  ;;  %v2587_v13 = vadd.f32 %v2586_v53, %v2473_v34 }
 0x1b1   : > { %2219 = vst.msk [vmem:[#allocation5 + $0xf9] sm:$0xff] %vm719_vm2, %v2217_v14  ;;  %8977 = vmatmul.msk.f32.gmra.mxu3 %vm719_vm2, %v11077_v3 }
 0x1b2   : > { %2267 = vst.msk [vmem:[#allocation5 + $0x129] sm:$0xff] %vm719_vm2, %v2265_v40  ;;  %v2353_v62 = vld [vmem:[#allocation2 + $0x3f0] ss:$2 sm:$0xff]  ;;  %v2357_v0 = vld [vmem:[#allocation2 + $0x3f1] ss:$2 sm:$0xff]  ;;  %9003 = vmatmul.msk.f32.gmra.mxu1 %vm719_vm2, %v10742_v24  ;;  %v2584_v24 = vadd.f32 %v2583_v56, %v2470_v51 }
 0x1b3   : > { %v2305_v44 = vld [vmem:[#allocation2 + $0x370] ss:$2 sm:$0xff]  ;;  %v2309_v46 = vld [vmem:[#allocation2 + $0x371] ss:$2 sm:$0xff]  ;;  %v2359_v1 = vmax.f32 %v2353_v62, %v2357_v0 }
 0x1b4   : > { %v2311_v59 = vmax.f32 %v2305_v44, %v2309_v46  ;;  %9023 = vmatmul.msk.f32.gmra.mxu2 %vm719_vm2, %v10786_v36  ;;  %v2476_v57 = vpop.f32.mrf.mxu0  ;;  %v2765_v5 = vadd.f32 %v2717_v29, %v2584_v24  ;;  %v3752_v36 = vld [vmem:[%s13691_s4 + $0x10] sm:$0xff] }
 0x1b5   : > { %v2361_v4 = vmax.f32 %v2349_v43, %v2359_v1  ;;  %3948 = vmatpush.msra.mxu2 %v3752_v36 }
 0x1b6   : > { %v2313_v10 = vmax.f32 %v2301_v25, %v2311_v59 }
 0x1b7   : > { %2363 = vst.msk [vmem:[#allocation5 + $0x189] sm:$0xff] %vm719_vm2, %v2361_v4  ;;  %v2720_v47 = vpop.f32.mrf.mxu2  ;;  %v2589_v49 = vpop.f32.mrf.mxu1  ;;  %8984 = vmatmul.msk.f32.gmra.mxu0 %vm719_vm2, %v10753_v2 }
 0x1b8   : > { %2315 = vst.msk [vmem:[#allocation5 + $0x159] sm:$0xff] %vm719_vm2, %v2313_v10  ;;  %v2766_v29 = vadd.f32 %v2720_v47, %v2587_v13 }
 0x1b9   : > { %9042 = vmatmul.msk.f32.vlgmr.msrb.gmra.mxu3 %vm719_vm2, %v10781_v30  ;;  %v2867_v51 = vpop.f32.mrf.mxu3 }
 0x1ba   : > { %9004 = vmatmul.msk.f32.gmra.mxu1 %vm719_vm2, %v10766_v18  ;;  %v11099_v56 = vadd.f32 %v2867_v51, %v2765_v5 }
 0x1bc   : > { %9024 = vmatmul.msk.f32.gmra.mxu2 %vm719_vm2, %v10821_v17  ;;  %v2479_v2 = vpop.f32.mrf.mxu0  ;;  %v9080_v17 = vld [vmem:[%s13691_s4 + $0x30] sm:$0xff] }
 0x1bd   : > { %3835 = vmatpush.msra.mxu1 %v9080_v17 }
 0x1bf   : > { %v2723_v18 = vpop.f32.mrf.mxu2  ;;  %v2592_v22 = vpop.f32.mrf.mxu1  ;;  %8985 = vmatmul.msk.f32.gmra.mxu0 %vm719_vm2, %v10781_v30 }
 0x1c0   : > { %v2593_v33 = vadd.f32 %v2592_v22, %v2479_v2 }
 0x1c1   : > { %9043 = vmatmul.msk.f32.gmra.mxu3 %vm719_vm2, %v10812_v19  ;;  %v2870_v14 = vpop.f32.mrf.mxu3 }
 0x1c2   : > { %9005 = vmatmul.msk.f32.gmra.mxu1 %vm719_vm2, %v10792_v39  ;;  %v11112_v15 = vadd.f32 %v2870_v14, %v2766_v29 }
 0x1c4   : > { %9025 = vmatmul.msk.f32.gmra.mxu2 %vm719_vm2, %v10843_v45  ;;  %v2482_v16 = vpop.f32.mrf.mxu0 }
 0x1c7   : > { %v2726_v27 = vpop.f32.mrf.mxu2  ;;  %v2595_v30 = vpop.f32.mrf.mxu1  ;;  %8986 = vmatmul.msk.f32.gmra.mxu0 %vm719_vm2, %v10812_v19 }
 0x1c8   : > { %v2768_v40 = vadd.f32 %v2726_v27, %v2593_v33  ;;  %v2596_v39 = vadd.f32 %v2595_v30, %v2482_v16  ;;  %v9078_v33 = vld [vmem:[%s13691_s4 + $0x20] sm:$0xff] }
 0x1c9   : > { %9044 = vmatmul.msk.f32.gmra.mxu3 %vm719_vm2, %v10835_v38  ;;  %v2873_v34 = vpop.f32.mrf.mxu3 }
 0x1ca   : > { %9006 = vmatmul.msk.f32.gmra.mxu1 %vm719_vm2, %v10823_v28 }
 0x1cc   : > { %9026 = vmatmul.msk.f32.gmra.mxu2 %vm719_vm2, %v10869_v37  ;;  %v2485_v45 = vpop.f32.mrf.mxu0 }
 0x1cf   : > { %v2729_v43 = vpop.f32.mrf.mxu2  ;;  %v2598_v46 = vpop.f32.mrf.mxu1  ;;  %8987 = vmatmul.msk.f32.gmra.mxu0 %vm719_vm2, %v10835_v38  ;;  %v3751_v38 = vld [vmem:[%s13691_s4 + $0x8] sm:$0xff] }
 0x1d0   : > { %v2769_v44 = vadd.f32 %v2729_v43, %v2596_v39  ;;  %3949 = vmatpush.msra.mxu2 %v3751_v38  ;;  %v11213_v39 = vld [vmem:[#allocation5 + $0x81] sm:$0xff] }
 0x1d1   : > { %9045 = vmatmul.msk.f32.gmra.mxu3 %vm719_vm2, %v10860_v32  ;;  %v2876_v28 = vpop.f32.mrf.mxu3 }
 0x1d2   : > { %9007 = vmatmul.msk.f32.gmra.mxu1 %vm719_vm2, %v10849_v50  ;;  %v11130_v53 = vadd.f32 %v2876_v28, %v2768_v40  ;;  %v9059_v50 = vld [vmem:[%s13691_s4 + $0x108] sm:$0xff]  ;;  %v11221_v28 = vld [vmem:[#allocation5 + $0x89] sm:$0xff] }
 0x1d3   : > { %3614 = vmatpush.msra.mxu0 %v9059_v50 }
 0x1d4   : > { %9027 = vmatmul.msk.f32.gmra.mxu2 %vm719_vm2, %v10894_v60  ;;  %v2488_v19 = vpop.f32.mrf.mxu0 }
 0x1d7   : > { %v2732_v37 = vpop.f32.mrf.mxu2  ;;  %v2601_v25 = vpop.f32.mrf.mxu1  ;;  %8988 = vmatmul.msk.f32.gmra.mxu0 %vm719_vm2, %v10860_v32 }
 0x1d8   : > { %v2602_v32 = vadd.f32 %v2601_v25, %v2488_v19  ;;  %v11225_v37 = vld [vmem:[#allocation5 + $0x82] sm:$0xff]  ;;  %v11229_v25 = vld [vmem:[#allocation5 + $0x98] sm:$0xff] }
 0x1d9   : > { %9046 = vmatmul.msk.f32.gmra.mxu3 %vm719_vm2, %v10886_v58  ;;  %v2879_v59 = vpop.f32.mrf.mxu3 }
 0x1da   : > { %9008 = vmatmul.msk.f32.gmra.mxu1 %vm719_vm2, %v10871_v41  ;;  %v11146_v62 = vadd.f32 %v2879_v59, %v2769_v44 }
 0x1dc   : > { %9028 = vmatmul.msk.f32.gmra.mxu2 %vm719_vm2, %v10925_v12  ;;  %v2491_v60 = vpop.f32.mrf.mxu0  ;;  %v9079_v12 = vld [vmem:[%s13691_s4 + $0x28] sm:$0xff] }
 0x1dd   : > { %3836 = vmatpush.msra.mxu1 %v9079_v12  ;;  %v11243_v12 = vld [vmem:[#allocation5 + $0x8a] sm:$0xff] }
 0x1df   : > { %v2735_v41 = vpop.f32.mrf.mxu2  ;;  %v2604_v1 = vpop.f32.mrf.mxu1  ;;  %8989 = vmatmul.msk.f32.gmra.mxu0 %vm719_vm2, %v10886_v58  ;;  %3837 = vmatpush.msra.mxu1 %v9078_v33 }
 0x1e0   : > { %v2771_v0 = vadd.f32 %v2735_v41, %v2602_v32  ;;  %v2605_v10 = vadd.f32 %v2604_v1, %v2491_v60  ;;  %v9115_v1 = vld [vmem:[%s13691_s4 + $0x48] sm:$0xff] }
 0x1e1   : > { %9047 = vmatmul.msk.f32.gmra.mxu3 %vm719_vm2, %v10915_v21  ;;  %v2882_v47 = vpop.f32.mrf.mxu3 }
 0x1e2   : > { %9009 = vmatmul.msk.f32.gmra.mxu1 %vm719_vm2, %v10897_v61  ;;  %v11250_v47 = vld [vmem:[#allocation5 + $0xa0] sm:$0xff] }
 0x1e4   : > { %9029 = vmatmul.msk.f32.gmra.mxu2 %vm719_vm2, %v10960_v54  ;;  %v2494_v4 = vpop.f32.mrf.mxu0 }
 0x1e5   : > { %v3393_v4 = vld [vmem:[#allocation5 + $0x91] sm:$0xff] }
 0x1e7   : > { %v2738_v57 = vpop.f32.mrf.mxu2  ;;  %v2607_v24 = vpop.f32.mrf.mxu1  ;;  %8990 = vmatmul.msk.f32.gmra.mxu0 %vm719_vm2, %v10915_v21 }
 0x1e8   : > { %v2772_v49 = vadd.f32 %v2738_v57, %v2605_v10  ;;  %v9114_v10 = vld [vmem:[%s13691_s4 + $0x40] sm:$0xff]  ;;  %v9177_v57 = vld [vmem:[%s13691_s4 + $0xb8] sm:$0xff] }
 0x1e9   : > { %9048 = vmatmul.msk.f32.gmra.mxu3 %vm719_vm2, %v10952_v52  ;;  %v2885_v61 = vpop.f32.mrf.mxu3 }
 0x1ea   : > { %9010 = vmatmul.msk.f32.gmra.mxu1 %vm719_vm2, %v10928_v31  ;;  %v11167_v5 = vadd.f32 %v2885_v61, %v2771_v0  ;;  %v9116_v0 = vld [vmem:[%s13691_s4 + $0x50] sm:$0xff] }
 0x1ec   : > { %9030 = vmatmul.msk.f32.gmra.mxu2 %vm719_vm2, %v10982_v7  ;;  %v2497_v58 = vpop.f32.mrf.mxu0 }
 0x1ef   : > { %v2741_v54 = vpop.f32.mrf.mxu2  ;;  %v2610_v36 = vpop.f32.mrf.mxu1  ;;  %8991 = vmatmul.msk.f32.gmra.mxu0 %vm719_vm2, %v10952_v52  ;;  %v3750_v52 = vld [vmem:[%s13691_s4] sm:$0xff] }
 0x1f0   : > { %v2611_v21 = vadd.f32 %v2610_v36, %v2497_v58  ;;  %3950 = vmatpush.msra.mxu2 %v3750_v52 }
 0x1f1   : > { %9049 = vmatmul.msk.f32.gmra.mxu3 %vm719_vm2, %v10974_v9  ;;  %v2888_v7 = vpop.f32.mrf.mxu3 }
 0x1f2   : > { %9011 = vmatmul.msk.f32.gmra.mxu1 %vm719_vm2, %v10963_v55  ;;  %v11177_v2 = vadd.f32 %v2888_v7, %v2772_v49  ;;  %v9058_v55 = vld [vmem:[%s13691_s4 + $0x100] sm:$0xff]  ;;  %v9137_v49 = vld [vmem:[%s13691_s4 + $0x78] sm:$0xff]  ;;  %4527 = vmatpush.msrb.mxu2 %v9177_v57 }
 0x1f3   : > { %3615 = vmatpush.msra.mxu0 %v9058_v55  ;;  %v11271_v7 = vld [vmem:[#allocation5 + $0x99] sm:$0xff] }
 0x1f4   : > { %9031 = vmatmul.msk.f32.gmra.mxu2 %vm719_vm2, %v11013_v8  ;;  %v2500_v31 = vpop.f32.mrf.mxu0 }
 0x1f5   : > { %4229 = vmatpush.msrb.mxu0 %v9137_v49 }
 0x1f7   : > { %v2744_v6 = vpop.f32.mrf.mxu2  ;;  %v2613_v18 = vpop.f32.mrf.mxu1  ;;  %8992 = vmatmul.msk.f32.gmra.mxu0 %vm719_vm2, %v10974_v9 }
 0x1f8   : > { %v2774_v51 = vadd.f32 %v2744_v6, %v2611_v21  ;;  %v2614_v9 = vadd.f32 %v2613_v18, %v2500_v31  ;;  %v9157_v21 = vld [vmem:[%s13691_s4 + $0x98] sm:$0xff]  ;;  %v11273_v6 = vld [vmem:[#allocation5 + $0xa8] sm:$0xff] }
 0x1f9   : > { %9050 = vmatmul.msk.f32.gmra.mxu3 %vm719_vm2, %v11000_v42  ;;  %v2891_v22 = vpop.f32.mrf.mxu3  ;;  %v11267_v31 = vld [vmem:[#allocation5 + $0x92] sm:$0xff]  ;;  %4378 = vmatpush.msrb.mxu1 %v9157_v21 }
 0x1fa   : > { %9012 = vmatmul.msk.f32.gmra.mxu1 %vm719_vm2, %v10985_v20 }
 0x1fc   : > { %9032 = vmatmul.msk.f32.gmra.mxu2 %vm719_vm2, %v11046_v48  ;;  %v2503_v8 = vpop.f32.mrf.mxu0 }
 0x1ff   : > { %v2747_v17 = vpop.f32.mrf.mxu2  ;;  %v2616_v29 = vpop.f32.mrf.mxu1  ;;  %8993 = vmatmul.msk.f32.gmra.mxu0 %vm719_vm2, %v11000_v42  ;;  %v9117_v42 = vld [vmem:[%s13691_s4 + $0x58] sm:$0xff] }
 0x200   : > { %v2775_v13 = vadd.f32 %v2747_v17, %v2614_v9  ;;  %4080 = vmatpush.msra.mxu3 %v9117_v42  ;;  %v3531_v17 = vld [vmem:[#allocation5 + $0x32] sm:$0xff] }
 0x201   : > { %9051 = vmatmul.msk.f32.gmra.mxu3 %vm719_vm2, %v11032_v63  ;;  %v2894_v14 = vpop.f32.mrf.mxu3 }
 0x202   : > { %9013 = vmatmul.msk.f32.gmra.mxu1 %vm719_vm2, %v11016_v23  ;;  %v11204_v40 = vadd.f32 %v2894_v14, %v2774_v51  ;;  %4081 = vmatpush.msra.mxu3 %v9116_v0 }
 0x204   : > { %9033 = vmatmul.msk.f32.gmra.mxu2 %vm719_vm2, %v11065_v35  ;;  %v2506_v16 = vpop.f32.mrf.mxu0  ;;  %4082 = vmatpush.msra.mxu3 %v9115_v1 }
 0x206   : > { %4083 = vmatpush.msra.mxu3 %v9114_v10 }
 0x207   : > { %v2750_v27 = vpop.f32.mrf.mxu2  ;;  %v2619_v30 = vpop.f32.mrf.mxu1  ;;  %8994 = vmatmul.msk.f32.gmra.mxu0 %vm719_vm2, %v11032_v63 }
 0x208   : > { %v2620_v45 = vadd.f32 %v2619_v30, %v2506_v16 }
 0x209   : > { %9052 = vmatmul.msk.f32.gmra.mxu3 %vm719_vm2, %v11213_v39  ;;  %v2897_v43 = vpop.f32.mrf.mxu3 }
 0x20a   : > { %9014 = vmatmul.msk.f32.gmra.mxu1 %vm719_vm2, %v11049_v26  ;;  %v11219_v46 = vadd.f32 %v2897_v43, %v2775_v13  ;;  %v11281_v13 = vld [vmem:[#allocation5 + $0xa1] sm:$0xff] }
 0x20c   : > { %9034 = vmatmul.msk.f32.gmra.mxu2 %vm719_vm2, %v11077_v3  ;;  %v2509_v34 = vpop.f32.mrf.mxu0 }
 0x20f   : > { %v2753_v44 = vpop.f32.mrf.mxu2  ;;  %v2622_v63 = vpop.f32.mrf.mxu1  ;;  %8995 = vmatmul.msk.f32.gmra.mxu0 %vm719_vm2, %v11213_v39 }
 0x210   : > { %v2777_v19 = vadd.f32 %v2753_v44, %v2620_v45  ;;  %v2623_v38 = vadd.f32 %v2622_v63, %v2509_v34  ;;  %v3532_v45 = vld [vmem:[#allocation5 + $0x3a] sm:$0xff] }
 0x211   : > { %9053 = vmatmul.msk.f32.gmra.mxu3 %vm719_vm2, %v11221_v28  ;;  %v2900_v32 = vpop.f32.mrf.mxu3 }
 0x212   : > { %9015 = vmatmul.msk.f32.gmra.mxu1 %vm719_vm2, %v11225_v37 }
 0x214   : > { %9035 = vmatmul.msk.f32.gmra.mxu2 %vm719_vm2, %v11229_v25  ;;  %v2512_v50 = vpop.f32.mrf.mxu0 }
 0x217   : > { %v2756_v60 = vpop.f32.mrf.mxu2  ;;  %v2625_v41 = vpop.f32.mrf.mxu1  ;;  %8996 = vmatmul.msk.f32.gmra.mxu0 %vm719_vm2, %v11221_v28 }
 0x218   : > { %v2778_v59 = vadd.f32 %v2756_v60, %v2623_v38  ;;  %v3533_v38 = vld [vmem:[#allocation5 + $0x42] sm:$0xff]  ;;  %v3534_v41 = vld [vmem:[#allocation5 + $0x4a] sm:$0xff] }
 0x219   : > { %9054 = vmatmul.msk.f32.gmra.mxu3 %vm719_vm2, %v3393_v4 }
 0x21a   : > { %9016 = vmatmul.msk.f32.gmra.mxu1 %vm719_vm2, %v11243_v12 }
 0x21c   : > { %9036 = vmatmul.msk.f32.gmra.mxu2 %vm719_vm2, %v11250_v47  ;;  %v2515_v24 = vpop.f32.mrf.mxu0  ;;  %v2903_v58 = vpop.f32.mrf.mxu3 }
 0x21d   : > { %v11261_v54 = vadd.f32 %v2903_v58, %v2777_v19  ;;  %v3535_v58 = vld [vmem:[#allocation5 + $0x52] sm:$0xff] }
 0x21f   : > { %v2759_v61 = vpop.f32.mrf.mxu2  ;;  %v2628_v36 = vpop.f32.mrf.mxu1  ;;  %8997 = vmatmul.msk.f32.gmra.mxu0 %vm719_vm2, %v3393_v4 }
 0x220   : > { %v2629_v51 = vadd.f32 %v2628_v36, %v2515_v24 }
 0x221   : > { %9055 = vmatmul.msk.f32.gmra.mxu3 %vm719_vm2, %v11271_v7 }
 0x222   : > { %9017 = vmatmul.msk.f32.gmra.mxu1 %vm719_vm2, %v11267_v31 }
 0x224   : > { %9037 = vmatmul.msk.f32.gmra.mxu2 %vm719_vm2, %v11273_v6  ;;  %v3017_v18 = vpop.f32.mrf.mxu0  ;;  %v2906_v52 = vpop.f32.mrf.mxu3 }
 0x225   : > { %v11279_v9 = vadd.f32 %v2906_v52, %v2778_v59  ;;  %v3065_v29 = vadd.f32 %v3017_v18, %v11099_v56 }
 0x227   : > { %v2762_v55 = vpop.f32.mrf.mxu2  ;;  %v3167_v22 = vpop.f32.mrf.mxu1  ;;  %9062 = vmatmul.msk.f32.vlgmr.msra.gmra.mxu0 %vm719_vm2, %v3531_v17 }
 0x228   : > { %v2780_v8 = vadd.f32 %v2762_v55, %v2629_v51  ;;  %v3215_v33 = vadd.f32 %v3167_v22, %v3065_v29  ;;  %v3536_v55 = vld [vmem:[#allocation5 + $0x5a] sm:$0xff] }
 0x229   : > { %9056 = vmatmul.msk.f32.gmra.mxu3 %vm719_vm2, %v11281_v13 }
 0x22a   : > { %9082 = vmatmul.msk.f32.vlgmr.msra.gmra.mxu1 %vm719_vm2, %v11213_v39  ;;  %v11297_v39 = vld [vmem:[#allocation5 + $0xa9] sm:$0xff] }
 0x22c   : > { %9098 = vmatmul.msk.f32.vlgmr.msra.gmra.mxu2 %vm719_vm2, %v11046_v48  ;;  %v3020_v16 = vpop.f32.mrf.mxu0  ;;  %v2909_v14 = vpop.f32.mrf.mxu3 }
 0x22d   : > { %v3066_v56 = vadd.f32 %v3020_v16, %v11112_v15  ;;  %v11358_v16 = vld [vmem:[#allocation5 + $0xb1] sm:$0xff] }
 0x22f   : > { %v3317_v27 = vpop.f32.mrf.mxu2  ;;  %v3170_v42 = vpop.f32.mrf.mxu1  ;;  %9063 = vmatmul.msk.f32.gmra.mxu0 %vm719_vm2, %v3532_v45  ;;  %v9175_v45 = vld [vmem:[%s13691_s4 + $0xa8] sm:$0xff] }
 0x230   : > { %v11291_v30 = vadd.f32 %v3317_v27, %v3215_v33  ;;  %v3216_v48 = vadd.f32 %v3170_v42, %v3066_v56  ;;  %v3537_v33 = vld [vmem:[#allocation5 + $0x62] sm:$0xff]  ;;  %v11365_v42 = vld [vmem:[#allocation5 + $0xb0] sm:$0xff] }
 0x231   : > { %9057 = vmatmul.msk.f32.gmra.mxu3 %vm719_vm2, %v11297_v39  ;;  %v11363_v27 = vld [vmem:[#allocation5 + $0xa2] sm:$0xff] }
 0x232   : > { %9083 = vmatmul.msk.f32.gmra.mxu1 %vm719_vm2, %v11221_v28  ;;  %v9136_v28 = vld [vmem:[%s13691_s4 + $0x70] sm:$0xff] }
 0x233   : > { %4230 = vmatpush.msrb.mxu0 %v9136_v28 }
 0x234   : > { %9099 = vmatmul.msk.f32.gmra.mxu2 %vm719_vm2, %v11065_v35  ;;  %v3023_v34 = vpop.f32.mrf.mxu0  ;;  %v2912_v43 = vpop.f32.mrf.mxu3  ;;  %v9176_v35 = vld [vmem:[%s13691_s4 + $0xb0] sm:$0xff] }
 0x235   : > { %v11303_v19 = vadd.f32 %v2912_v43, %v2780_v8  ;;  %4528 = vmatpush.msrb.mxu2 %v9176_v35  ;;  %v9155_v35 = vld [vmem:[%s13691_s4 + $0x88] sm:$0xff] }
 0x237   : > { %v3320_v44 = vpop.f32.mrf.mxu2  ;;  %v3173_v15 = vpop.f32.mrf.mxu1  ;;  %9064 = vmatmul.msk.f32.gmra.mxu0 %vm719_vm2, %v3533_v38  ;;  %4529 = vmatpush.msrb.mxu2 %v9175_v45  ;;  %v11445_v45 = vld [vmem:[#allocation5 + $0xd0] sm:$0xff] }
 0x238   : > { %v11305_v63 = vadd.f32 %v3320_v44, %v3216_v48  ;;  %v11379_v44 = vld [vmem:[#allocation5 + $0xb9] sm:$0xff] }
 0x239   : > { %9118 = vmatmul.msk.f32.vlgmr.msra.gmra.mxu3 %vm719_vm2, %v11225_v37 }
 0x23a   : > { %9084 = vmatmul.msk.f32.gmra.mxu1 %vm719_vm2, %v3393_v4 }
 0x23c   : > { %9100 = vmatmul.msk.f32.gmra.mxu2 %vm719_vm2, %v11077_v3  ;;  %v3026_v50 = vpop.f32.mrf.mxu0  ;;  %v11319_v32 = vpop.f32.mrf.mxu3  ;;  %v9156_v3 = vld [vmem:[%s13691_s4 + $0x90] sm:$0xff] }
 0x23d   : > { %4379 = vmatpush.msrb.mxu1 %v9156_v3  ;;  %v3068_v0 = vadd.f32 %v3026_v50, %v11130_v53  ;;  %v11391_v50 = vld [vmem:[#allocation5 + $0xaa] sm:$0xff] }
 0x23f   : > { %v3323_v60 = vpop.f32.mrf.mxu2  ;;  %v3176_v59 = vpop.f32.mrf.mxu1  ;;  %9065 = vmatmul.msk.f32.gmra.mxu0 %vm719_vm2, %v3534_v41  ;;  %4380 = vmatpush.msrb.mxu1 %v9155_v35 }
 0x240   : > { %v3218_v1 = vadd.f32 %v3176_v59, %v3068_v0  ;;  %v11393_v60 = vld [vmem:[#allocation5 + $0xb8] sm:$0xff] }
 0x241   : > { %9119 = vmatmul.msk.f32.gmra.mxu3 %vm719_vm2, %v11243_v12 }
 0x242   : > { %9085 = vmatmul.msk.f32.gmra.mxu1 %vm719_vm2, %v11271_v7 }
 0x244   : > { %9101 = vmatmul.msk.f32.gmra.mxu2 %vm719_vm2, %v11229_v25  ;;  %v3029_v10 = vpop.f32.mrf.mxu0  ;;  %v11332_v4 = vpop.f32.mrf.mxu3 }
 0x245   : > { %v3069_v53 = vadd.f32 %v3029_v10, %v11146_v62  ;;  %v11349_v62 = vld [vmem:[#allocation5 + $0x9a] sm:$0xff]  ;;  %v11407_v10 = vld [vmem:[#allocation5 + $0xb2] sm:$0xff] }
 0x247   : > { %v3326_v57 = vpop.f32.mrf.mxu2  ;;  %v3179_v24 = vpop.f32.mrf.mxu1  ;;  %9066 = vmatmul.msk.f32.gmra.mxu0 %vm719_vm2, %v3535_v58 }
 0x248   : > { %v11334_v49 = vadd.f32 %v3326_v57, %v3218_v1  ;;  %v3219_v61 = vadd.f32 %v3179_v24, %v3069_v53  ;;  %v11403_v1 = vld [vmem:[#allocation5 + $0xc1] sm:$0xff] }
 0x249   : > { %9120 = vmatmul.msk.f32.gmra.mxu3 %vm719_vm2, %v11267_v31  ;;  %v11409_v57 = vld [vmem:[#allocation5 + $0xc0] sm:$0xff] }
 0x24a   : > { %9086 = vmatmul.msk.f32.gmra.mxu1 %vm719_vm2, %v11281_v13 }
 0x24c   : > { %9102 = vmatmul.msk.f32.gmra.mxu2 %vm719_vm2, %v11250_v47  ;;  %v3032_v36 = vpop.f32.mrf.mxu0  ;;  %v3473_v21 = vpop.f32.mrf.mxu3 }
 0x24d   : > { %v11424_v21 = vld [vmem:[#allocation5 + $0xba] sm:$0xff] }
 0x24f   : > { %v3329_v51 = vpop.f32.mrf.mxu2  ;;  %v3182_v52 = vpop.f32.mrf.mxu1  ;;  %9067 = vmatmul.msk.f32.gmra.mxu0 %vm719_vm2, %v3536_v55 }
 0x250   : > { %v11344_v18 = vadd.f32 %v3329_v51, %v3219_v61  ;;  %v11419_v61 = vld [vmem:[#allocation5 + $0xc9] sm:$0xff] }
 0x251   : > { %9121 = vmatmul.msk.f32.gmra.mxu3 %vm719_vm2, %v11349_v62  ;;  %v11426_v51 = vld [vmem:[#allocation5 + $0xc8] sm:$0xff] }
 0x252   : > { %9087 = vmatmul.msk.f32.gmra.mxu1 %vm719_vm2, %v11297_v39 }
 0x254   : > { %9103 = vmatmul.msk.f32.gmra.mxu2 %vm719_vm2, %v11273_v6  ;;  %v3035_v8 = vpop.f32.mrf.mxu0  ;;  %v11355_v22 = vpop.f32.mrf.mxu3 }
 0x255   : > { %v3071_v14 = vadd.f32 %v3035_v8, %v11167_v5  ;;  %v9135_v5 = vld [vmem:[%s13691_s4 + $0x68] sm:$0xff] }
 0x256   : > { %4231 = vmatpush.msrb.mxu0 %v9135_v5  ;;  %v9174_v5 = vld [vmem:[%s13691_s4 + $0xa0] sm:$0xff] }
 0x257   : > { %v3332_v17 = vpop.f32.mrf.mxu2  ;;  %v3185_v29 = vpop.f32.mrf.mxu1  ;;  %9068 = vmatmul.msk.f32.gmra.mxu0 %vm719_vm2, %v3537_v33  ;;  %4530 = vmatpush.msrb.mxu2 %v9174_v5  ;;  %v11498_v5 = vld [vmem:[#allocation5 + $0xe9] sm:$0xff] }
 0x258   : > { %v3221_v56 = vadd.f32 %v3185_v29, %v3071_v14  ;;  %v11434_v17 = vld [vmem:[#allocation5 + $0xd1] sm:$0xff]  ;;  %v11443_v14 = vld [vmem:[#allocation5 + $0xc2] sm:$0xff] }
 0x259   : > { %9122 = vmatmul.msk.f32.gmra.mxu3 %vm719_vm2, %v11363_v27 }
 0x25a   : > { %9088 = vmatmul.msk.f32.gmra.mxu1 %vm719_vm2, %v11358_v16 }
 0x25c   : > { %9104 = vmatmul.msk.f32.gmra.mxu2 %vm719_vm2, %v11365_v42  ;;  %v3038_v48 = vpop.f32.mrf.mxu0  ;;  %v11377_v34 = vpop.f32.mrf.mxu3 }
 0x25d   : > { %v3072_v28 = vadd.f32 %v3038_v48, %v11177_v2 }
 0x25f   : > { %v3335_v43 = vpop.f32.mrf.mxu2  ;;  %v3188_v38 = vpop.f32.mrf.mxu1  ;;  %9069 = vmatmul.msk.f32.gmra.mxu0 %vm719_vm2, %v10985_v20 }
 0x260   : > { %v11381_v15 = vadd.f32 %v3335_v43, %v3221_v56  ;;  %v3222_v59 = vadd.f32 %v3188_v38, %v3072_v28  ;;  %v9154_v28 = vld [vmem:[%s13691_s4 + $0x80] sm:$0xff] }
 0x261   : > { %9123 = vmatmul.msk.f32.gmra.mxu3 %vm719_vm2, %v11391_v50  ;;  %4381 = vmatpush.msrb.mxu1 %v9154_v28 }
 0x262   : > { %9089 = vmatmul.msk.f32.gmra.mxu1 %vm719_vm2, %v11379_v44 }
 0x264   : > { %9105 = vmatmul.msk.f32.gmra.mxu2 %vm719_vm2, %v11393_v60  ;;  %v3041_v41 = vpop.f32.mrf.mxu0  ;;  %v3482_v3 = vpop.f32.mrf.mxu3 }
 0x265   : > { %v11468_v41 = vld [vmem:[#allocation5 + $0xca] sm:$0xff]  ;;  %v11470_v3 = vld [vmem:[#allocation5 + $0xd8] sm:$0xff] }
 0x267   : > { %v3338_v20 = vpop.f32.mrf.mxu2  ;;  %v3191_v2 = vpop.f32.mrf.mxu1  ;;  %9070 = vmatmul.msk.f32.gmra.mxu0 %vm719_vm2, %v11016_v23 }
 0x268   : > { %v11399_v0 = vadd.f32 %v3338_v20, %v3222_v59  ;;  %v11464_v59 = vld [vmem:[#allocation5 + $0xd9] sm:$0xff] }
 0x269   : > { %9124 = vmatmul.msk.f32.gmra.mxu3 %vm719_vm2, %v11407_v10 }
 0x26a   : > { %9090 = vmatmul.msk.f32.gmra.mxu1 %vm719_vm2, %v11403_v1 }
 0x26c   : > { %9106 = vmatmul.msk.f32.gmra.mxu2 %vm719_vm2, %v11409_v57  ;;  %v3044_v24 = vpop.f32.mrf.mxu0  ;;  %v11415_v58 = vpop.f32.mrf.mxu3 }
 0x26d   : > { %v3074_v36 = vadd.f32 %v3044_v24, %v11204_v40 }
 0x26f   : > { %v3341_v53 = vpop.f32.mrf.mxu2  ;;  %v3194_v23 = vpop.f32.mrf.mxu1  ;;  %9071 = vmatmul.msk.f32.gmra.mxu0 %vm719_vm2, %v11049_v26 }
 0x270   : > { %v3224_v52 = vadd.f32 %v3194_v23, %v3074_v36  ;;  %v9197_v53 = vld [vmem:[%s13691_s4 + $0xd8] sm:$0xff]  ;;  %v11483_v23 = vld [vmem:[#allocation5 + $0xe1] sm:$0xff] }
 0x271   : > { %9125 = vmatmul.msk.f32.gmra.mxu3 %vm719_vm2, %v11424_v21 }
 0x272   : > { %9091 = vmatmul.msk.f32.gmra.mxu1 %vm719_vm2, %v11419_v61  ;;  %4676 = vmatpush.msrb.mxu3 %v9197_v53  ;;  %v9195_v53 = vld [vmem:[%s13691_s4 + $0xc8] sm:$0xff] }
 0x274   : > { %9107 = vmatmul.msk.f32.gmra.mxu2 %vm719_vm2, %v11426_v51  ;;  %v3047_v55 = vpop.f32.mrf.mxu0  ;;  %v11432_v26 = vpop.f32.mrf.mxu3 }
 0x275   : > { %v3075_v33 = vadd.f32 %v3047_v55, %v11219_v46  ;;  %v9134_v46 = vld [vmem:[%s13691_s4 + $0x60] sm:$0xff]  ;;  %v11490_v55 = vld [vmem:[#allocation5 + $0xe0] sm:$0xff] }
 0x276   : > { %4232 = vmatpush.msrb.mxu0 %v9134_v46 }
 0x277   : > { %v3344_v8 = vpop.f32.mrf.mxu2  ;;  %v3197_v29 = vpop.f32.mrf.mxu1  ;;  %9072 = vmatmul.msk.f32.gmra.mxu0 %vm719_vm2, %v11225_v37 }
 0x278   : > { %v11436_v40 = vadd.f32 %v3344_v8, %v3224_v52  ;;  %v3225_v37 = vadd.f32 %v3197_v29, %v3075_v33  ;;  %v11488_v52 = vld [vmem:[#allocation5 + $0xd2] sm:$0xff] }
 0x279   : > { %9126 = vmatmul.msk.f32.gmra.mxu3 %vm719_vm2, %v11443_v14 }
 0x27a   : > { %9092 = vmatmul.msk.f32.gmra.mxu1 %vm719_vm2, %v11434_v17 }
 0x27c   : > { %9108 = vmatmul.msk.f32.gmra.mxu2 %vm719_vm2, %v11445_v45  ;;  %v3050_v56 = vpop.f32.mrf.mxu0  ;;  %v3491_v48 = vpop.f32.mrf.mxu3 }
 0x27d   : > { %v11507_v56 = vld [vmem:[#allocation5 + $0xda] sm:$0xff]  ;;  %v11509_v48 = vld [vmem:[#allocation5 + $0xe8] sm:$0xff] }
 0x27f   : > { %v3347_v43 = vpop.f32.mrf.mxu2  ;;  %v3200_v35 = vpop.f32.mrf.mxu1  ;;  %9073 = vmatmul.msk.f32.gmra.mxu0 %vm719_vm2, %v11243_v12 }
 0x280   : > { %v11457_v38 = vadd.f32 %v3347_v43, %v3225_v37 }
 0x281   : > { %9127 = vmatmul.msk.f32.gmra.mxu3 %vm719_vm2, %v11468_v41 }
 0x282   : > { %9093 = vmatmul.msk.f32.gmra.mxu1 %vm719_vm2, %v11464_v59 }
 0x284   : > { %9109 = vmatmul.msk.f32.gmra.mxu2 %vm719_vm2, %v11470_v3  ;;  %v3053_v20 = vpop.f32.mrf.mxu0  ;;  %v11476_v2 = vpop.f32.mrf.mxu3 }
 0x285   : > { %v3077_v36 = vadd.f32 %v3053_v20, %v11261_v54 }
 0x287   : > { %v3350_v12 = vpop.f32.mrf.mxu2  ;;  %v3203_v24 = vpop.f32.mrf.mxu1  ;;  %9074 = vmatmul.msk.f32.gmra.mxu0 %vm719_vm2, %v11267_v31 }
 0x288   : > { %v3227_v8 = vadd.f32 %v3203_v24, %v3077_v36  ;;  %v9196_v24 = vld [vmem:[%s13691_s4 + $0xd0] sm:$0xff]  ;;  %v11525_v36 = vld [vmem:[#allocation5 + $0xf1] sm:$0xff] }
 0x289   : > { %9128 = vmatmul.msk.f32.gmra.mxu3 %vm719_vm2, %v11488_v52 }
 0x28a   : > { %9094 = vmatmul.msk.f32.gmra.mxu1 %vm719_vm2, %v11483_v23  ;;  %4677 = vmatpush.msrb.mxu3 %v9196_v24  ;;  %v11569_v24 = vld [vmem:[#allocation5 + $0xf9] sm:$0xff] }
 0x28b   : > { %13695 = vst [vmem:[#allocation16_spill] sm:$0xff] %v11569_v24 }
 0x28c   : > { %9110 = vmatmul.msk.f32.gmra.mxu2 %vm719_vm2, %v11490_v55  ;;  %v3056_v31 = vpop.f32.mrf.mxu0  ;;  %v11496_v29 = vpop.f32.mrf.mxu3  ;;  %4678 = vmatpush.msrb.mxu3 %v9195_v53 }
 0x28d   : > { %v3078_v37 = vadd.f32 %v3056_v31, %v11279_v9  ;;  %v11536_v31 = vld [vmem:[#allocation5 + $0xe2] sm:$0xff] }
 0x28f   : > { %v3353_v33 = vpop.f32.mrf.mxu2  ;;  %v3206_v46 = vpop.f32.mrf.mxu1  ;;  %9075 = vmatmul.msk.f32.gmra.mxu0 %vm719_vm2, %v11349_v62 }
 0x290   : > { %v11500_v54 = vadd.f32 %v3353_v33, %v3227_v8  ;;  %v3228_v43 = vadd.f32 %v3206_v46, %v3078_v37  ;;  %v9194_v8 = vld [vmem:[%s13691_s4 + $0xc0] sm:$0xff]  ;;  %v11538_v33 = vld [vmem:[#allocation5 + $0xf0] sm:$0xff] }
 0x291   : > { %9129 = vmatmul.msk.f32.gmra.mxu3 %vm719_vm2, %v11507_v56  ;;  %v9257_v46 = vld [vmem:[%s13691_s4 + $0x38] sm:$0xff] }
 0x292   : > { %9095 = vmatmul.msk.f32.gmra.mxu1 %vm719_vm2, %v11498_v5  ;;  %v9217_v37 = vld [vmem:[%s13691_s4 + $0xf8] sm:$0xff]  ;;  %4679 = vmatpush.msrb.mxu3 %v9194_v8 }
 0x293   : > { %5195 = vmatpush.msra.mxu2 %v9257_v46  ;;  %4825 = vmatpush.msra.mxu0 %v9217_v37  ;;  %v11578_v8 = vld [vmem:[#allocation5 + $0xea] sm:$0xff]  ;;  %v11580_v46 = vld [vmem:[#allocation5 + $0xf8] sm:$0xff] }
 0x294   : > { %9111 = vmatmul.msk.f32.gmra.mxu2 %vm719_vm2, %v11509_v48  ;;  %v3059_v35 = vpop.f32.mrf.mxu0  ;;  %v3500_v28 = vpop.f32.mrf.mxu3  ;;  %v11595_v37 = vld [vmem:[%s13696_s5] ss:$0 sm:$0xff] }
 0x297   : > { %v3356_v20 = vpop.f32.mrf.mxu2  ;;  %v3209_v9 = vpop.f32.mrf.mxu1  ;;  %9076 = vmatmul.msk.f32.gmra.mxu0 %vm719_vm2, %v11363_v27 }
 0x298   : > { %v11515_v12 = vadd.f32 %v3356_v20, %v3228_v43  ;;  %v9237_v9 = vld [vmem:[%s13691_s4 + $0x118] sm:$0xff] }
 0x299   : > { %9130 = vmatmul.msk.f32.gmra.mxu3 %vm719_vm2, %v11536_v31  ;;  %4974 = vmatpush.msra.mxu1 %v9237_v9 }
 0x29a   : > { %13693 = vst [vmem:[#allocation14_spill] sm:$0xff] %v11515_v12  ;;  %9096 = vmatmul.msk.f32.gmra.mxu1 %vm719_vm2, %v11525_v36 }
 0x29c   : > { %9112 = vmatmul.msk.f32.gmra.mxu2 %vm719_vm2, %v11538_v33  ;;  %v3062_v43 = vpop.f32.mrf.mxu0  ;;  %v11558_v35 = vpop.f32.mrf.mxu3 }
 0x29d   : > { %13694 = vst [vmem:[#allocation15_spill] sm:$0xff] %v11558_v35  ;;  %v3080_v53 = vadd.f32 %v3062_v43, %v11303_v19  ;;  %v3515_v19 = vadd.f32 %v11319_v32, %v11291_v30 }
 0x29f   : > { %v3359_v28 = vpop.f32.mrf.mxu2  ;;  %v3212_v20 = vpop.f32.mrf.mxu1  ;;  %9077 = vmatmul.msk.f32.gmra.mxu0 %vm719_vm2, %v11391_v50 }
 0x2a0   : > { %v3230_v43 = vadd.f32 %v3212_v20, %v3080_v53 }
 0x2a1   : > { %9131 = vmatmul.msk.f32.gmra.mxu3 %vm719_vm2, %v11578_v8 }
 0x2a2   : > { %9097 = vmatmul.msk.f32.gmra.mxu1 %vm719_vm2, %v11569_v24 }
 0x2a4   : > { %9113 = vmatmul.msk.f32.gmra.mxu2 %vm719_vm2, %v11580_v46  ;;  %v3617_v28 = vpop.f32.mrf.mxu0  ;;  %v11601_v9 = vpop.f32.mrf.mxu3 }
 0x2a5   : > { %v3665_v24 = vadd.f32 %v3617_v28, %v3515_v19 }
 0x2a7   : > { %v3362_v12 = vpop.f32.mrf.mxu2  ;;  %v3839_v32 = vpop.f32.mrf.mxu1  ;;  %v3685_v35 = vadd.f32 %v11595_v37, %v3665_v24  ;;  %9138 = vmatmul.msk.f32.vlgmr.msrb.gmra.mxu0 %vm719_vm2, %v11229_v25  ;;  %v3516_v25 = vadd.f32 %v11332_v4, %v11305_v63  ;;  %v11638_v63 = vld [vmem:[#allocation5 + $0xfa] sm:$0xff] }
 0x2a8   : > { %v11605_v30 = vadd.f32 %v3362_v12, %v3230_v43  ;;  %v11618_v12 = vld [vmem:[#allocation5 + $0xf2] sm:$0xff] }
 0x2a9   : > { %v3701_v20 = vmax.f32 %v3685_v35, 0.0  ;;  %9132 = vmatmul.msk.f32.gmra.mxu3 %vm719_vm2, %v11618_v12 }
 0x2aa   : > { %9158 = vmatmul.msk.f32.vlgmr.msrb.gmra.mxu1 %vm719_vm2, %v11271_v7 }
 0x2ab   : > { %3718 = vst.msk [vmem:[#allocation3] sm:$0xff] %vm3717_vm3, %v3701_v20 }
 0x2ac   : > { %9178 = vmatmul.msk.f32.vlgmr.msrb.gmra.mxu2 %vm719_vm2, %v11349_v62  ;;  %v3620_v7 = vpop.f32.mrf.mxu0  ;;  %v3509_v35 = vpop.f32.mrf.mxu3 }
 0x2ad   : > { %v3666_v53 = vadd.f32 %v3620_v7, %v3516_v25 }
 0x2af   : > { %v3952_v24 = vpop.f32.mrf.mxu2  ;;  %v3842_v43 = vpop.f32.mrf.mxu1  ;;  %v3686_v28 = vadd.f32 %v11595_v37, %v3666_v53  ;;  %9139 = vmatmul.msk.f32.gmra.mxu0 %vm719_vm2, %v11250_v47  ;;  %v9256_v47 = vld [vmem:[%s13691_s4 + $0x30] sm:$0xff] }
 0x2b0   : > { %v3953_v19 = vadd.f32 %v3952_v24, %v3839_v32  ;;  %5196 = vmatpush.msra.mxu2 %v9256_v47  ;;  %v9236_v53 = vld [vmem:[%s13691_s4 + $0x110] sm:$0xff] }
 0x2b1   : > { %v3702_v4 = vmax.f32 %v3686_v28, 0.0  ;;  %9133 = vmatmul.msk.f32.gmra.mxu3 %vm719_vm2, %v11638_v63  ;;  %4975 = vmatpush.msra.mxu1 %v9236_v53 }
 0x2b2   : > { %9159 = vmatmul.msk.f32.gmra.mxu1 %vm719_vm2, %v11281_v13  ;;  %v3518_v13 = vadd.f32 %v11355_v22, %v11334_v49 }
 0x2b3   : > { %3719 = vst.msk [vmem:[#allocation3 + $0x8] sm:$0xff] %vm3717_vm3, %v3702_v4 }
 0x2b4   : > { %9179 = vmatmul.msk.f32.gmra.mxu2 %vm719_vm2, %v11363_v27  ;;  %v3623_v11 = vpop.f32.mrf.mxu0  ;;  %v11645_v62 = vpop.f32.mrf.mxu3 }
 0x2b7   : > { %v3955_v32 = vpop.f32.mrf.mxu2  ;;  %v3845_v20 = vpop.f32.mrf.mxu1  ;;  %9140 = vmatmul.msk.f32.gmra.mxu0 %vm719_vm2, %v11273_v6  ;;  %v9216_v6 = vld [vmem:[%s13691_s4 + $0xf0] sm:$0xff] }
 0x2b8   : > { %4826 = vmatpush.msra.mxu0 %v9216_v6 }
 0x2b9   : > { %9198 = vmatmul.msk.f32.vlgmr.msrb.gmra.mxu3 %vm719_vm2, %v11365_v42 }
 0x2ba   : > { %9160 = vmatmul.msk.f32.gmra.mxu1 %vm719_vm2, %v11297_v39 }
 0x2bc   : > { %9180 = vmatmul.msk.f32.gmra.mxu2 %vm719_vm2, %v11391_v50  ;;  %v3626_v27 = vpop.f32.mrf.mxu0  ;;  %v4085_v39 = vpop.f32.mrf.mxu3 }
 0x2bd   : > { %v3668_v7 = vadd.f32 %v3626_v27, %v3518_v13  ;;  %v11663_v35 = vadd.f32 %v4085_v39, %v3953_v19  ;;  %v3519_v19 = vadd.f32 %v11377_v34, %v11344_v18  ;;  %v3521_v27 = vadd.f32 %v11415_v58, %v11381_v15  ;;  %v9255_v58 = vld [vmem:[%s13691_s4 + $0x28] sm:$0xff] }
 0x2be   : > { %5197 = vmatpush.msra.mxu2 %v9255_v58 }
 0x2bf   : > { %v3958_v25 = vpop.f32.mrf.mxu2  ;;  %v3848_v24 = vpop.f32.mrf.mxu1  ;;  %v3688_v49 = vadd.f32 %v11595_v37, %v3668_v7  ;;  %9141 = vmatmul.msk.f32.gmra.mxu0 %vm719_vm2, %v11365_v42 }
 0x2c0   : > { %v3959_v50 = vadd.f32 %v3958_v25, %v3845_v20 }
 0x2c1   : > { %v3704_v22 = vmax.f32 %v3688_v49, 0.0  ;;  %9199 = vmatmul.msk.f32.gmra.mxu3 %vm719_vm2, %v11393_v60 }
 0x2c2   : > { %9161 = vmatmul.msk.f32.gmra.mxu1 %vm719_vm2, %v11358_v16 }
 0x2c3   : > { %3721 = vst.msk [vmem:[#allocation3 + $0x18] sm:$0xff] %vm3717_vm3, %v3704_v22 }
 0x2c4   : > { %9181 = vmatmul.msk.f32.gmra.mxu2 %vm719_vm2, %v11407_v10  ;;  %v3629_v43 = vpop.f32.mrf.mxu0  ;;  %v4088_v28 = vpop.f32.mrf.mxu3 }
 0x2c5   : > { %v3669_v42 = vadd.f32 %v3629_v43, %v3519_v19 }
 0x2c7   : > { %v3961_v4 = vpop.f32.mrf.mxu2  ;;  %v3851_v32 = vpop.f32.mrf.mxu1  ;;  %v3689_v16 = vadd.f32 %v11595_v37, %v3669_v42  ;;  %9142 = vmatmul.msk.f32.gmra.mxu0 %vm719_vm2, %v11393_v60  ;;  %v6477_v60 = vld [vmem:[#allocation3] ss:$2 sm:$0xff] }
 0x2c8   : > { %v3962_v11 = vadd.f32 %v3961_v4, %v3848_v24 }
 0x2c9   : > { %v3705_v10 = vmax.f32 %v3689_v16, 0.0  ;;  %9200 = vmatmul.msk.f32.gmra.mxu3 %vm719_vm2, %v11409_v57 }
 0x2ca   : > { %9162 = vmatmul.msk.f32.gmra.mxu1 %vm719_vm2, %v11379_v44  ;;  %v6479_v44 = vld [vmem:[#allocation3 + $0x1] ss:$2 sm:$0xff] }
 0x2cb   : > { %3722 = vst.msk [vmem:[#allocation3 + $0x20] sm:$0xff] %vm3717_vm3, %v3705_v10  ;;  %v6480_v39 = vmax.f32 %v6477_v60, %v6479_v44 }
 0x2cc   : > { %9182 = vmatmul.msk.f32.gmra.mxu2 %vm719_vm2, %v11424_v21  ;;  %v3632_v18 = vpop.f32.mrf.mxu0  ;;  %v4091_v34 = vpop.f32.mrf.mxu3 }
 0x2cd   : > { %v11690_v47 = vadd.f32 %v4091_v34, %v3959_v50 }
 0x2cf   : > { %v3964_v20 = vpop.f32.mrf.mxu2  ;;  %v3854_v13 = vpop.f32.mrf.mxu1  ;;  %9143 = vmatmul.msk.f32.gmra.mxu0 %vm719_vm2, %v11409_v57 }
 0x2d1   : > { %9201 = vmatmul.msk.f32.gmra.mxu3 %vm719_vm2, %v11426_v51 }
 0x2d2   : > { %9163 = vmatmul.msk.f32.gmra.mxu1 %vm719_vm2, %v11403_v1  ;;  %v6482_v21 = vld [vmem:[#allocation3 + $0x18] ss:$2 sm:$0xff]  ;;  %v6484_v6 = vld [vmem:[#allocation3 + $0x19] ss:$2 sm:$0xff] }
 0x2d3   : > { %v6485_v25 = vmax.f32 %v6482_v21, %v6484_v6 }
 0x2d4   : > { %9183 = vmatmul.msk.f32.gmra.mxu2 %vm719_vm2, %v11443_v14  ;;  %v3635_v7 = vpop.f32.mrf.mxu0  ;;  %v4094_v57 = vpop.f32.mrf.mxu3  ;;  %v9215_v14 = vld [vmem:[%s13691_s4 + $0xe8] sm:$0xff] }
 0x2d5   : > { %v6486_v50 = vmax.f32 %v6480_v39, %v6485_v25  ;;  %v3671_v53 = vadd.f32 %v3635_v7, %v3521_v27  ;;  %v11702_v49 = vadd.f32 %v4094_v57, %v3962_v11  ;;  %4827 = vmatpush.msra.mxu0 %v9215_v14  ;;  %v9235_v11 = vld [vmem:[%s13691_s4 + $0x108] sm:$0xff] }
 0x2d6   : > { %4976 = vmatpush.msra.mxu1 %v9235_v11 }
 0x2d7   : > { %v3967_v24 = vpop.f32.mrf.mxu2  ;;  %v3857_v22 = vpop.f32.mrf.mxu1  ;;  %6487 = vst.msk [vmem:[#allocation6 + $0x11] sm:$0xff] %vm3717_vm3, %v6486_v50  ;;  %v3691_v19 = vadd.f32 %v11595_v37, %v3671_v53  ;;  %9144 = vmatmul.msk.f32.gmra.mxu0 %vm719_vm2, %v11426_v51  ;;  %v3522_v51 = vadd.f32 %v11432_v26, %v11399_v0 }
 0x2d8   : > { %v3968_v1 = vadd.f32 %v3967_v24, %v3854_v13 }
 0x2d9   : > { %v3707_v15 = vmax.f32 %v3691_v19, 0.0  ;;  %9202 = vmatmul.msk.f32.gmra.mxu3 %vm719_vm2, %v11445_v45 }
 0x2da   : > { %9164 = vmatmul.msk.f32.gmra.mxu1 %vm719_vm2, %v11419_v61 }
 0x2db   : > { %3724 = vst.msk [vmem:[#allocation3 + $0x30] sm:$0xff] %vm3717_vm3, %v3707_v15 }
 0x2dc   : > { %9184 = vmatmul.msk.f32.gmra.mxu2 %vm719_vm2, %v11468_v41  ;;  %v3638_v61 = vpop.f32.mrf.mxu0  ;;  %v4097_v43 = vpop.f32.mrf.mxu3 }
 0x2dd   : > { %v3672_v4 = vadd.f32 %v3638_v61, %v3522_v51 }
 0x2df   : > { %v3970_v28 = vpop.f32.mrf.mxu2  ;;  %v3860_v42 = vpop.f32.mrf.mxu1  ;;  %v3692_v32 = vadd.f32 %v11595_v37, %v3672_v4  ;;  %9145 = vmatmul.msk.f32.gmra.mxu0 %vm719_vm2, %v11445_v45 }
 0x2e0   : > { %v3971_v41 = vadd.f32 %v3970_v28, %v3857_v22  ;;  %v13697_v22 = vld [vmem:[#allocation15_spill] sm:$0xff] }
 0x2e1   : > { %v3708_v0 = vmax.f32 %v3692_v32, 0.0  ;;  %9203 = vmatmul.msk.f32.gmra.mxu3 %vm719_vm2, %v11470_v3  ;;  %v3527_v19 = vadd.f32 %v13697_v22, %v11500_v54  ;;  %v13698_v54 = vld [vmem:[#allocation16_spill] sm:$0xff]  ;;  %v13699_v32 = vld [vmem:[#allocation14_spill] sm:$0xff] }
 0x2e2   : > { %9165 = vmatmul.msk.f32.gmra.mxu1 %vm719_vm2, %v11434_v17  ;;  %v3524_v17 = vadd.f32 %v11476_v2, %v11436_v40  ;;  %v3525_v40 = vadd.f32 %v11496_v29, %v11457_v38  ;;  %v9254_v38 = vld [vmem:[%s13691_s4 + $0x20] sm:$0xff]  ;;  %v11804_v42 = vld [vmem:[#allocation5 + $0x100] sm:$0xff] }
 0x2e3   : > { %3725 = vst.msk [vmem:[#allocation3 + $0x38] sm:$0xff] %vm3717_vm3, %v3708_v0  ;;  %v9214_v29 = vld [vmem:[%s13691_s4 + $0xe0] sm:$0xff]  ;;  %5198 = vmatpush.msra.mxu2 %v9254_v38  ;;  %v3528_v0 = vadd.f32 %v11601_v9, %v13699_v32 }
 0x2e4   : > { %9185 = vmatmul.msk.f32.gmra.mxu2 %vm719_vm2, %v11488_v52  ;;  %v3641_v26 = vpop.f32.mrf.mxu0  ;;  %v4100_v16 = vpop.f32.mrf.mxu3  ;;  %4828 = vmatpush.msra.mxu0 %v9214_v29  ;;  %v4895_v32 = vld [vmem:[#allocation5 + $0xba] sm:$0xff] }
 0x2e5   : > { %v11736_v18 = vadd.f32 %v4100_v16, %v3968_v1 }
 0x2e7   : > { %v3973_v10 = vpop.f32.mrf.mxu2  ;;  %v3863_v34 = vpop.f32.mrf.mxu1  ;;  %9146 = vmatmul.msk.f32.gmra.mxu0 %vm719_vm2, %v11470_v3 }
 0x2e9   : > { %9204 = vmatmul.msk.f32.gmra.mxu3 %vm719_vm2, %v11490_v55 }
 0x2ea   : > { %9166 = vmatmul.msk.f32.gmra.mxu1 %vm719_vm2, %v11464_v59  ;;  %v6489_v50 = vld [vmem:[#allocation3 + $0x30] ss:$2 sm:$0xff]  ;;  %v6491_v24 = vld [vmem:[#allocation3 + $0x31] ss:$2 sm:$0xff] }
 0x2eb   : > { %v6492_v15 = vmax.f32 %v6489_v50, %v6491_v24  ;;  %v9313_v50 = vld [vmem:[%s13691_s4 + $0x78] sm:$0xff]  ;;  %v11874_v24 = vld [vmem:[#allocation5 + $0x118] sm:$0xff] }
 0x2ec   : > { %9186 = vmatmul.msk.f32.gmra.mxu2 %vm719_vm2, %v11507_v56  ;;  %v3644_v45 = vpop.f32.mrf.mxu0  ;;  %v4103_v52 = vpop.f32.mrf.mxu3 }
 0x2ed   : > { %v3674_v13 = vadd.f32 %v3644_v45, %v3524_v17  ;;  %v11748_v60 = vadd.f32 %v4103_v52, %v3971_v41  ;;  %v5114_v41 = vld [vmem:[%s13691_s4 + $0x18] sm:$0xff] }
 0x2ee   : > { %5308 = vmatpush.msra.mxu3 %v5114_v41 }
 0x2ef   : > { %v3976_v20 = vpop.f32.mrf.mxu2  ;;  %v3866_v3 = vpop.f32.mrf.mxu1  ;;  %v3694_v21 = vadd.f32 %v11595_v37, %v3674_v13  ;;  %9147 = vmatmul.msk.f32.gmra.mxu0 %vm719_vm2, %v11490_v55 }
 0x2f0   : > { %v3977_v44 = vadd.f32 %v3976_v20, %v3863_v34  ;;  %v11813_v34 = vld [vmem:[#allocation5 + $0x101] sm:$0xff] }
 0x2f1   : > { %v3710_v59 = vmax.f32 %v3694_v21, 0.0  ;;  %9205 = vmatmul.msk.f32.gmra.mxu3 %vm719_vm2, %v11509_v48  ;;  %v11822_v20 = vld [vmem:[#allocation5 + $0x102] sm:$0xff] }
 0x2f2   : > { %9167 = vmatmul.msk.f32.gmra.mxu1 %vm719_vm2, %v11483_v23 }
 0x2f3   : > { %3727 = vst.msk [vmem:[#allocation3 + $0x48] sm:$0xff] %vm3717_vm3, %v3710_v59 }
 0x2f4   : > { %9187 = vmatmul.msk.f32.gmra.mxu2 %vm719_vm2, %v11536_v31  ;;  %v3647_v2 = vpop.f32.mrf.mxu0  ;;  %v4106_v56 = vpop.f32.mrf.mxu3 }
 0x2f5   : > { %v3675_v27 = vadd.f32 %v3647_v2, %v3525_v40  ;;  %v5113_v40 = vld [vmem:[%s13691_s4 + $0x10] sm:$0xff]  ;;  %v5112_v2 = vld [vmem:[%s13691_s4 + $0x8] sm:$0xff] }
 0x2f6   : > { %v11839_v56 = vld [vmem:[#allocation5 + $0x109] sm:$0xff]  ;;  %5309 = vmatpush.msra.mxu3 %v5113_v40 }
 0x2f7   : > { %v3979_v6 = vpop.f32.mrf.mxu2  ;;  %v3869_v39 = vpop.f32.mrf.mxu1  ;;  %v3695_v23 = vadd.f32 %v11595_v37, %v3675_v27  ;;  %9148 = vmatmul.msk.f32.gmra.mxu0 %vm719_vm2, %v11509_v48  ;;  %v11846_v27 = vld [vmem:[#allocation5 + $0x110] sm:$0xff] }
 0x2f8   : > { %v3980_v55 = vadd.f32 %v3979_v6, %v3866_v3  ;;  %v5111_v6 = vld [vmem:[%s13691_s4] sm:$0xff]  ;;  %5310 = vmatpush.msra.mxu3 %v5112_v2  ;;  %v9333_v39 = vld [vmem:[%s13691_s4 + $0x98] sm:$0xff] }
 0x2f9   : > { %v3711_v31 = vmax.f32 %v3695_v23, 0.0  ;;  %9206 = vmatmul.msk.f32.gmra.mxu3 %vm719_vm2, %v11538_v33  ;;  %v3530_v23 = vadd.f32 %v11645_v62, %v11605_v30  ;;  %5739 = vmatpush.msrb.mxu2 %v9333_v39  ;;  %v11870_v62 = vld [vmem:[#allocation5 + $0x111] sm:$0xff]  ;;  %v9312_v39 = vld [vmem:[%s13691_s4 + $0x70] sm:$0xff] }
 0x2fa   : > { %9168 = vmatmul.msk.f32.gmra.mxu1 %vm719_vm2, %v11498_v5  ;;  %5311 = vmatpush.msra.mxu3 %v5111_v6  ;;  %v4748_v6 = vld [vmem:[#allocation5 + $0xc9] sm:$0xff] }
 0x2fb   : > { %3728 = vst.msk [vmem:[#allocation3 + $0x50] sm:$0xff] %vm3717_vm3, %v3711_v31  ;;  %v9293_v31 = vld [vmem:[%s13691_s4 + $0x58] sm:$0xff] }
 0x2fc   : > { %9188 = vmatmul.msk.f32.gmra.mxu2 %vm719_vm2, %v11578_v8  ;;  %v3650_v5 = vpop.f32.mrf.mxu0  ;;  %v4109_v48 = vpop.f32.mrf.mxu3  ;;  %v9234_v8 = vld [vmem:[%s13691_s4 + $0x100] sm:$0xff]  ;;  %5441 = vmatpush.msrb.mxu0 %v9293_v31 }
 0x2fd   : > { %v11778_v7 = vadd.f32 %v4109_v48, %v3977_v44  ;;  %4977 = vmatpush.msra.mxu1 %v9234_v8  ;;  %v11927_v31 = vld [vmem:[#allocation5 + $0x119] sm:$0xff] }
 0x2ff   : > { %v3982_v25 = vpop.f32.mrf.mxu2  ;;  %v3872_v57 = vpop.f32.mrf.mxu1  ;;  %9149 = vmatmul.msk.f32.gmra.mxu0 %vm719_vm2, %v11538_v33  ;;  %5590 = vmatpush.msrb.mxu1 %v9313_v50 }
 0x301   : > { %9207 = vmatmul.msk.f32.gmra.mxu3 %vm719_vm2, %v11580_v46  ;;  %5591 = vmatpush.msrb.mxu1 %v9312_v39 }
 0x302   : > { %9169 = vmatmul.msk.f32.gmra.mxu1 %vm719_vm2, %v11525_v36  ;;  %v6494_v53 = vld [vmem:[#allocation3 + $0x48] ss:$2 sm:$0xff]  ;;  %v6496_v1 = vld [vmem:[#allocation3 + $0x49] ss:$2 sm:$0xff] }
 0x303   : > { %v6497_v58 = vmax.f32 %v6494_v53, %v6496_v1  ;;  %v11876_v1 = vld [vmem:[#allocation5 + $0x112] sm:$0xff] }
 0x304   : > { %9189 = vmatmul.msk.f32.gmra.mxu2 %vm719_vm2, %v11618_v12  ;;  %v3653_v33 = vpop.f32.mrf.mxu0  ;;  %v4112_v14 = vpop.f32.mrf.mxu3 }
 0x305   : > { %v6498_v51 = vmax.f32 %v6492_v15, %v6497_v58  ;;  %v3677_v43 = vadd.f32 %v3653_v33, %v3527_v19  ;;  %v11793_v28 = vadd.f32 %v4112_v14, %v3980_v55  ;;  %v11848_v55 = vld [vmem:[#allocation5 + $0x10a] sm:$0xff]  ;;  %v4894_v14 = vld [vmem:[#allocation5 + $0xb2] sm:$0xff] }
 0x306   : > { %v4745_v33 = vld [vmem:[#allocation5 + $0xb1] sm:$0xff] }
 0x307   : > { %v3985_v61 = vpop.f32.mrf.mxu2  ;;  %v3875_v4 = vpop.f32.mrf.mxu1  ;;  %6499 = vst.msk [vmem:[#allocation6 + $0x21] sm:$0xff] %vm3717_vm3, %v6498_v51  ;;  %v3697_v12 = vadd.f32 %v11595_v37, %v3677_v43  ;;  %9150 = vmatmul.msk.f32.gmra.mxu0 %vm719_vm2, %v11580_v46 }
 0x308   : > { %v3986_v36 = vadd.f32 %v3985_v61, %v3872_v57  ;;  %v11886_v61 = vld [vmem:[#allocation5 + $0x120] sm:$0xff] }
 0x309   : > { %v3713_v11 = vmax.f32 %v3697_v12, 0.0  ;;  %9208 = vmatmul.msk.f32.gmra.mxu3 %vm719_vm2, %v11804_v42 }
 0x30a   : > { %9170 = vmatmul.msk.f32.gmra.mxu1 %vm719_vm2, %v13698_v54 }
 0x30b   : > { %3730 = vst.msk [vmem:[#allocation3 + $0x60] sm:$0xff] %vm3717_vm3, %v3713_v11 }
 0x30c   : > { %9190 = vmatmul.msk.f32.gmra.mxu2 %vm719_vm2, %v11638_v63  ;;  %v3656_v26 = vpop.f32.mrf.mxu0  ;;  %v4115_v46 = vpop.f32.mrf.mxu3  ;;  %v11820_v63 = vld [vmem:[#allocation5 + $0x108] sm:$0xff] }
 0x30d   : > { %v3678_v10 = vadd.f32 %v3656_v26, %v3528_v0  ;;  %v11898_v0 = vld [vmem:[#allocation5 + $0x128] sm:$0xff] }
 0x30f   : > { %v3988_v16 = vpop.f32.mrf.mxu2  ;;  %v3878_v45 = vpop.f32.mrf.mxu1  ;;  %v3698_v52 = vadd.f32 %v11595_v37, %v3678_v10  ;;  %9151 = vmatmul.msk.f32.gmra.mxu0 %vm719_vm2, %v11804_v42 }
 0x310   : > { %v3989_v17 = vadd.f32 %v3988_v16, %v3875_v4  ;;  %v4746_v4 = vld [vmem:[#allocation5 + $0xb9] sm:$0xff]  ;;  %v4747_v45 = vld [vmem:[#allocation5 + $0xc1] sm:$0xff] }
 0x311   : > { %v3714_v9 = vmax.f32 %v3698_v52, 0.0  ;;  %9209 = vmatmul.msk.f32.gmra.mxu3 %vm719_vm2, %v11820_v63  ;;  %v4896_v52 = vld [vmem:[#allocation5 + $0xc2] sm:$0xff] }
 0x312   : > { %9171 = vmatmul.msk.f32.gmra.mxu1 %vm719_vm2, %v11813_v34 }
 0x313   : > { %3731 = vst.msk [vmem:[#allocation3 + $0x68] sm:$0xff] %vm3717_vm3, %v3714_v9 }
 0x314   : > { %9191 = vmatmul.msk.f32.gmra.mxu2 %vm719_vm2, %v11822_v20  ;;  %v3659_v13 = vpop.f32.mrf.mxu0  ;;  %v4118_v44 = vpop.f32.mrf.mxu3 }
 0x315   : > { %v11829_v21 = vadd.f32 %v4118_v44, %v3986_v36  ;;  %v9332_v13 = vld [vmem:[%s13691_s4 + $0x90] sm:$0xff] }
 0x316   : > { %v9292_v44 = vld [vmem:[%s13691_s4 + $0x50] sm:$0xff]  ;;  %5740 = vmatpush.msrb.mxu2 %v9332_v13 }
 0x317   : > { %v3991_v3 = vpop.f32.mrf.mxu2  ;;  %v3881_v59 = vpop.f32.mrf.mxu1  ;;  %9152 = vmatmul.msk.f32.gmra.mxu0 %vm719_vm2, %v11820_v63 }
 0x318   : > { %5442 = vmatpush.msrb.mxu0 %v9292_v44  ;;  %v9311_v44 = vld [vmem:[%s13691_s4 + $0x68] sm:$0xff] }
 0x319   : > { %9210 = vmatmul.msk.f32.gmra.mxu3 %vm719_vm2, %v11846_v27  ;;  %5592 = vmatpush.msrb.mxu1 %v9311_v44  ;;  %v12048_v44 = vld [vmem:[#allocation5 + $0x159] sm:$0xff] }
 0x31a   : > { %9172 = vmatmul.msk.f32.gmra.mxu1 %vm719_vm2, %v11839_v56 }
 0x31c   : > { %9192 = vmatmul.msk.f32.gmra.mxu2 %vm719_vm2, %v11848_v55  ;;  %v3662_v38 = vpop.f32.mrf.mxu0  ;;  %v4121_v29 = vpop.f32.mrf.mxu3 }
 0x31d   : > { %v3680_v48 = vadd.f32 %v3662_v38, %v3530_v23  ;;  %v11862_v25 = vadd.f32 %v4121_v29, %v3989_v17  ;;  %v4897_v23 = vld [vmem:[#allocation5 + $0xca] sm:$0xff] }
 0x31f   : > { %v3994_v5 = vpop.f32.mrf.mxu2  ;;  %v3884_v8 = vpop.f32.mrf.mxu1  ;;  %v3700_v30 = vadd.f32 %v11595_v37, %v3680_v48  ;;  %9153 = vmatmul.msk.f32.gmra.mxu0 %vm719_vm2, %v11846_v27  ;;  %v4749_v48 = vld [vmem:[#allocation5 + $0xd1] sm:$0xff] }
 0x320   : > { %v3995_v57 = vadd.f32 %v3994_v5, %v3881_v59 }
 0x321   : > { %v3716_v53 = vmax.f32 %v3700_v30, 0.0  ;;  %9211 = vmatmul.msk.f32.gmra.mxu3 %vm719_vm2, %v11874_v24 }
 0x322   : > { %9173 = vmatmul.msk.f32.gmra.mxu1 %vm719_vm2, %v11870_v62 }
 0x323   : > { %3733 = vst.msk [vmem:[#allocation3 + $0x78] sm:$0xff] %vm3717_vm3, %v3716_v53  ;;  %v4898_v53 = vld [vmem:[#allocation5 + $0xd2] sm:$0xff] }
 0x324   : > { %9193 = vmatmul.msk.f32.gmra.mxu2 %vm719_vm2, %v11876_v1  ;;  %v4234_v37 = vpop.f32.mrf.mxu0  ;;  %v4124_v22 = vpop.f32.mrf.mxu3 }
 0x325   : > { %v4282_v51 = vadd.f32 %v4234_v37, %v11663_v35 }
 0x327   : > { %v3997_v19 = vpop.f32.mrf.mxu2  ;;  %v4383_v58 = vpop.f32.mrf.mxu1  ;;  %9218 = vmatmul.msk.f32.vlgmr.msra.gmra.mxu0 %vm719_vm2, %v4745_v33 }
 0x328   : > { %v3998_v15 = vadd.f32 %v3997_v19, %v3884_v8  ;;  %v4431_v43 = vadd.f32 %v4383_v58, %v4282_v51  ;;  %v4899_v58 = vld [vmem:[#allocation5 + $0xda] sm:$0xff] }
 0x329   : > { %9212 = vmatmul.msk.f32.gmra.mxu3 %vm719_vm2, %v11886_v61 }
 0x32a   : > { %9238 = vmatmul.msk.f32.vlgmr.msra.gmra.mxu1 %vm719_vm2, %v4894_v14  ;;  %v11950_v14 = vld [vmem:[#allocation5 + $0x129] sm:$0xff] }
 0x32c   : > { %9258 = vmatmul.msk.f32.vlgmr.msra.gmra.mxu2 %vm719_vm2, %v11813_v34  ;;  %v4237_v36 = vpop.f32.mrf.mxu0  ;;  %v4127_v41 = vpop.f32.mrf.mxu3 }
 0x32d   : > { %v11892_v54 = vadd.f32 %v4127_v41, %v3995_v57 }
 0x32f   : > { %v4532_v12 = vpop.f32.mrf.mxu2  ;;  %v4386_v35 = vpop.f32.mrf.mxu1  ;;  %9219 = vmatmul.msk.f32.gmra.mxu0 %vm719_vm2, %v4746_v4 }
 0x330   : > { %v11894_v11 = vadd.f32 %v4532_v12, %v4431_v43  ;;  %v4751_v12 = vld [vmem:[#allocation5 + $0xe1] sm:$0xff]  ;;  %v11961_v35 = vld [vmem:[#allocation5 + $0x131] sm:$0xff] }
 0x331   : > { %9213 = vmatmul.msk.f32.gmra.mxu3 %vm719_vm2, %v11898_v0 }
 0x332   : > { %9239 = vmatmul.msk.f32.gmra.mxu1 %vm719_vm2, %v4895_v32 }
 0x334   : > { %9259 = vmatmul.msk.f32.gmra.mxu2 %vm719_vm2, %v11839_v56  ;;  %v4240_v26 = vpop.f32.mrf.mxu0  ;;  %v4130_v46 = vpop.f32.mrf.mxu3 }
 0x335   : > { %v11904_v10 = vadd.f32 %v4130_v46, %v3998_v15  ;;  %v4284_v9 = vadd.f32 %v4240_v26, %v11690_v47  ;;  %v4750_v15 = vld [vmem:[#allocation5 + $0xd9] sm:$0xff] }
 0x336   : > { %v9331_v26 = vld [vmem:[%s13691_s4 + $0x88] sm:$0xff] }
 0x337   : > { %v4535_v16 = vpop.f32.mrf.mxu2  ;;  %v4389_v17 = vpop.f32.mrf.mxu1  ;;  %9220 = vmatmul.msk.f32.gmra.mxu0 %vm719_vm2, %v4747_v45  ;;  %v9291_v46 = vld [vmem:[%s13691_s4 + $0x48] sm:$0xff]  ;;  %5741 = vmatpush.msrb.mxu2 %v9331_v26  ;;  %v9330_v26 = vld [vmem:[%s13691_s4 + $0x80] sm:$0xff] }
 0x338   : > { %v4433_v3 = vadd.f32 %v4389_v17, %v4284_v9  ;;  %5443 = vmatpush.msrb.mxu0 %v9291_v46  ;;  %v4752_v17 = vld [vmem:[#allocation5 + $0xe9] sm:$0xff] }
 0x339   : > { %9274 = vmatmul.msk.f32.vlgmr.msra.gmra.mxu3 %vm719_vm2, %v11804_v42  ;;  %5742 = vmatpush.msrb.mxu2 %v9330_v26  ;;  %v9352_v26 = vld [vmem:[%s13691_s4 + $0xb0] sm:$0xff] }
 0x33a   : > { %9240 = vmatmul.msk.f32.gmra.mxu1 %vm719_vm2, %v4896_v52 }
 0x33c   : > { %9260 = vmatmul.msk.f32.gmra.mxu2 %vm719_vm2, %v11870_v62  ;;  %v4243_v47 = vpop.f32.mrf.mxu0  ;;  %v11919_v59 = vpop.f32.mrf.mxu3 }
 0x33d   : > { %v4285_v38 = vadd.f32 %v4243_v47, %v11702_v49  ;;  %v11939_v49 = vld [vmem:[#allocation5 + $0x121] sm:$0xff]  ;;  %v11982_v47 = vld [vmem:[#allocation5 + $0x139] sm:$0xff] }
 0x33f   : > { %v4538_v40 = vpop.f32.mrf.mxu2  ;;  %v4392_v42 = vpop.f32.mrf.mxu1  ;;  %9221 = vmatmul.msk.f32.gmra.mxu0 %vm719_vm2, %v4748_v6 }
 0x340   : > { %v11921_v2 = vadd.f32 %v4538_v40, %v4433_v3  ;;  %v4434_v29 = vadd.f32 %v4392_v42, %v4285_v38  ;;  %v4901_v3 = vld [vmem:[#allocation5 + $0xea] sm:$0xff]  ;;  %v4902_v38 = vld [vmem:[#allocation5 + $0xf2] sm:$0xff] }
 0x341   : > { %9275 = vmatmul.msk.f32.gmra.mxu3 %vm719_vm2, %v11820_v63 }
 0x342   : > { %9241 = vmatmul.msk.f32.gmra.mxu1 %vm719_vm2, %v4897_v23  ;;  %v4753_v23 = vld [vmem:[#allocation5 + $0xf1] sm:$0xff] }
 0x344   : > { %9261 = vmatmul.msk.f32.gmra.mxu2 %vm719_vm2, %v11927_v31  ;;  %v4246_v5 = vpop.f32.mrf.mxu0  ;;  %v4684_v57 = vpop.f32.mrf.mxu3 }
 0x345   : > { %v11993_v5 = vld [vmem:[#allocation5 + $0x130] sm:$0xff] }
 0x347   : > { %v4541_v8 = vpop.f32.mrf.mxu2  ;;  %v4395_v30 = vpop.f32.mrf.mxu1  ;;  %9222 = vmatmul.msk.f32.gmra.mxu0 %vm719_vm2, %v4749_v48  ;;  %v11995_v48 = vld [vmem:[#allocation5 + $0x141] sm:$0xff] }
 0x348   : > { %v11935_v50 = vadd.f32 %v4541_v8, %v4434_v29 }
 0x349   : > { %9276 = vmatmul.msk.f32.gmra.mxu3 %vm719_vm2, %v11846_v27 }
 0x34a   : > { %9242 = vmatmul.msk.f32.gmra.mxu1 %vm719_vm2, %v4898_v53 }
 0x34c   : > { %9262 = vmatmul.msk.f32.gmra.mxu2 %vm719_vm2, %v11939_v49  ;;  %v4249_v63 = vpop.f32.mrf.mxu0  ;;  %v11945_v37 = vpop.f32.mrf.mxu3 }
 0x34d   : > { %v4287_v33 = vadd.f32 %v4249_v63, %v11736_v18  ;;  %v4900_v18 = vld [vmem:[#allocation5 + $0xe2] sm:$0xff] }
 0x34f   : > { %v4544_v22 = vpop.f32.mrf.mxu2  ;;  %v4398_v19 = vpop.f32.mrf.mxu1  ;;  %9223 = vmatmul.msk.f32.gmra.mxu0 %vm719_vm2, %v4750_v15  ;;  %v12006_v15 = vld [vmem:[#allocation5 + $0x149] sm:$0xff] }
 0x350   : > { %v4436_v27 = vadd.f32 %v4398_v19, %v4287_v33  ;;  %v4754_v22 = vld [vmem:[#allocation5 + $0xf9] sm:$0xff] }
 0x351   : > { %9277 = vmatmul.msk.f32.gmra.mxu3 %vm719_vm2, %v11874_v24  ;;  %v4903_v19 = vld [vmem:[#allocation5 + $0xfa] sm:$0xff] }
 0x352   : > { %9243 = vmatmul.msk.f32.gmra.mxu1 %vm719_vm2, %v4899_v58  ;;  %v12010_v33 = vld [vmem:[#allocation5 + $0x138] sm:$0xff] }
 0x354   : > { %9263 = vmatmul.msk.f32.gmra.mxu2 %vm719_vm2, %v11950_v14  ;;  %v4252_v51 = vpop.f32.mrf.mxu0  ;;  %v11956_v43 = vpop.f32.mrf.mxu3 }
 0x355   : > { %v4288_v32 = vadd.f32 %v4252_v51, %v11748_v60 }
 0x357   : > { %v4547_v36 = vpop.f32.mrf.mxu2  ;;  %v4401_v41 = vpop.f32.mrf.mxu1  ;;  %9224 = vmatmul.msk.f32.gmra.mxu0 %vm719_vm2, %v4751_v12 }
 0x358   : > { %v11958_v4 = vadd.f32 %v4547_v36, %v4436_v27  ;;  %v4437_v16 = vadd.f32 %v4401_v41, %v4288_v32  ;;  %v12024_v32 = vld [vmem:[#allocation5 + $0x151] sm:$0xff] }
 0x359   : > { %9278 = vmatmul.msk.f32.gmra.mxu3 %vm719_vm2, %v11886_v61 }
 0x35a   : > { %9244 = vmatmul.msk.f32.gmra.mxu1 %vm719_vm2, %v4900_v18 }
 0x35c   : > { %9264 = vmatmul.msk.f32.gmra.mxu2 %vm719_vm2, %v11961_v35  ;;  %v4255_v60 = vpop.f32.mrf.mxu0  ;;  %v4693_v45 = vpop.f32.mrf.mxu3 }
 0x35d   : > { %v9310_v45 = vld [vmem:[%s13691_s4 + $0x60] sm:$0xff] }
 0x35e   : > { %5593 = vmatpush.msrb.mxu1 %v9310_v45  ;;  %v9351_v45 = vld [vmem:[%s13691_s4 + $0xa8] sm:$0xff] }
 0x35f   : > { %v4550_v52 = vpop.f32.mrf.mxu2  ;;  %v4404_v13 = vpop.f32.mrf.mxu1  ;;  %9225 = vmatmul.msk.f32.gmra.mxu0 %vm719_vm2, %v4752_v17 }
 0x360   : > { %v11975_v9 = vadd.f32 %v4550_v52, %v4437_v16  ;;  %v12046_v13 = vld [vmem:[#allocation5 + $0x148] sm:$0xff] }
 0x361   : > { %9279 = vmatmul.msk.f32.gmra.mxu3 %vm719_vm2, %v11898_v0 }
 0x362   : > { %9245 = vmatmul.msk.f32.gmra.mxu1 %vm719_vm2, %v4901_v3 }
 0x364   : > { %9265 = vmatmul.msk.f32.gmra.mxu2 %vm719_vm2, %v11982_v47  ;;  %v4258_v40 = vpop.f32.mrf.mxu0  ;;  %v11988_v42 = vpop.f32.mrf.mxu3 }
 0x365   : > { %v4290_v29 = vadd.f32 %v4258_v40, %v11778_v7 }
 0x367   : > { %v4553_v6 = vpop.f32.mrf.mxu2  ;;  %v4407_v39 = vpop.f32.mrf.mxu1  ;;  %9226 = vmatmul.msk.f32.gmra.mxu0 %vm719_vm2, %v4753_v23  ;;  %v9353_v23 = vld [vmem:[%s13691_s4 + $0xb8] sm:$0xff] }
 0x368   : > { %v4439_v57 = vadd.f32 %v4407_v39, %v4290_v29  ;;  %5888 = vmatpush.msrb.mxu3 %v9353_v23 }
 0x369   : > { %9280 = vmatmul.msk.f32.gmra.mxu3 %vm719_vm2, %v11993_v5 }
 0x36a   : > { %9246 = vmatmul.msk.f32.gmra.mxu1 %vm719_vm2, %v4902_v38  ;;  %v12063_v38 = vld [vmem:[#allocation5 + $0x161] sm:$0xff]  ;;  %5889 = vmatpush.msrb.mxu3 %v9352_v26 }
 0x36c   : > { %9266 = vmatmul.msk.f32.gmra.mxu2 %vm719_vm2, %v11995_v48  ;;  %v4261_v8 = vpop.f32.mrf.mxu0  ;;  %v12001_v30 = vpop.f32.mrf.mxu3  ;;  %5890 = vmatpush.msrb.mxu3 %v9351_v45 }
 0x36d   : > { %v4291_v58 = vadd.f32 %v4261_v8, %v11793_v28  ;;  %v12022_v28 = vld [vmem:[#allocation5 + $0x140] sm:$0xff] }
 0x36f   : > { %v4556_v53 = vpop.f32.mrf.mxu2  ;;  %v4410_v7 = vpop.f32.mrf.mxu1  ;;  %9227 = vmatmul.msk.f32.gmra.mxu0 %vm719_vm2, %v4754_v22 }
 0x370   : > { %v12003_v63 = vadd.f32 %v4556_v53, %v4439_v57  ;;  %v4440_v27 = vadd.f32 %v4410_v7, %v4291_v58  ;;  %v12068_v57 = vld [vmem:[#allocation5 + $0x150] sm:$0xff]  ;;  %v12082_v58 = vld [vmem:[#allocation5 + $0x158] sm:$0xff] }
 0x371   : > { %9281 = vmatmul.msk.f32.gmra.mxu3 %vm719_vm2, %v12010_v33 }
 0x372   : > { %9247 = vmatmul.msk.f32.gmra.mxu1 %vm719_vm2, %v4903_v19 }
 0x374   : > { %9267 = vmatmul.msk.f32.gmra.mxu2 %vm719_vm2, %v12006_v15  ;;  %v4264_v51 = vpop.f32.mrf.mxu0  ;;  %v4702_v36 = vpop.f32.mrf.mxu3 }
 0x377   : > { %v4559_v41 = vpop.f32.mrf.mxu2  ;;  %v4413_v18 = vpop.f32.mrf.mxu1  ;;  %9228 = vmatmul.msk.f32.gmra.mxu0 %vm719_vm2, %v11813_v34  ;;  %v9290_v34 = vld [vmem:[%s13691_s4 + $0x40] sm:$0xff] }
 0x378   : > { %v12016_v12 = vadd.f32 %v4559_v41, %v4440_v27  ;;  %5444 = vmatpush.msrb.mxu0 %v9290_v34  ;;  %v12084_v27 = vld [vmem:[#allocation5 + $0x169] sm:$0xff] }
 0x379   : > { %9282 = vmatmul.msk.f32.gmra.mxu3 %vm719_vm2, %v12022_v28  ;;  %v12097_v34 = vld [vmem:[#allocation5 + $0x122] sm:$0xff] }
 0x37a   : > { %9248 = vmatmul.msk.f32.gmra.mxu1 %vm719_vm2, %v11822_v20 }
 0x37c   : > { %9268 = vmatmul.msk.f32.gmra.mxu2 %vm719_vm2, %v12024_v32  ;;  %v4267_v46 = vpop.f32.mrf.mxu0  ;;  %v12036_v16 = vpop.f32.mrf.mxu3 }
 0x37d   : > { %v4293_v52 = vadd.f32 %v4267_v46, %v11829_v21 }
 0x37f   : > { %v4562_v60 = vpop.f32.mrf.mxu2  ;;  %v4416_v17 = vpop.f32.mrf.mxu1  ;;  %9229 = vmatmul.msk.f32.gmra.mxu0 %vm719_vm2, %v11839_v56 }
 0x380   : > { %v4442_v3 = vadd.f32 %v4416_v17, %v4293_v52  ;;  %v12102_v60 = vld [vmem:[#allocation5 + $0x160] sm:$0xff]  ;;  %v12104_v17 = vld [vmem:[#allocation5 + $0x171] sm:$0xff] }
 0x381   : > { %9283 = vmatmul.msk.f32.gmra.mxu3 %vm719_vm2, %v12046_v13  ;;  %v9413_v52 = vld [vmem:[%s13691_s4 + $0x118] sm:$0xff] }
 0x382   : > { %9249 = vmatmul.msk.f32.gmra.mxu1 %vm719_vm2, %v11848_v55  ;;  %6335 = vmatpush.msra.mxu2 %v9413_v52 }
 0x384   : > { %9269 = vmatmul.msk.f32.gmra.mxu2 %vm719_vm2, %v12048_v44  ;;  %v4270_v40 = vpop.f32.mrf.mxu0  ;;  %v12054_v6 = vpop.f32.mrf.mxu3 }
 0x385   : > { %v4294_v29 = vadd.f32 %v4270_v40, %v11862_v25  ;;  %v12078_v25 = vld [vmem:[#allocation5 + $0x11a] sm:$0xff] }
 0x387   : > { %v4565_v56 = vpop.f32.mrf.mxu2  ;;  %v4419_v21 = vpop.f32.mrf.mxu1  ;;  %9230 = vmatmul.msk.f32.gmra.mxu0 %vm719_vm2, %v11870_v62 }
 0x388   : > { %v12056_v39 = vadd.f32 %v4565_v56, %v4442_v3  ;;  %v4443_v8 = vadd.f32 %v4419_v21, %v4294_v29  ;;  %v9373_v3 = vld [vmem:[%s13691_s4 + $0xd8] sm:$0xff] }
 0x389   : > { %9284 = vmatmul.msk.f32.gmra.mxu3 %vm719_vm2, %v12068_v57  ;;  %6037 = vmatpush.msra.mxu0 %v9373_v3 }
 0x38a   : > { %9250 = vmatmul.msk.f32.gmra.mxu1 %vm719_vm2, %v11876_v1 }
 0x38c   : > { %9270 = vmatmul.msk.f32.gmra.mxu2 %vm719_vm2, %v12063_v38  ;;  %v4273_v53 = vpop.f32.mrf.mxu0  ;;  %v4711_v7 = vpop.f32.mrf.mxu3 }
 0x38d   : > { %v9393_v53 = vld [vmem:[%s13691_s4 + $0xf8] sm:$0xff] }
 0x38e   : > { %v12131_v7 = vld [vmem:[#allocation5 + $0x12a] sm:$0xff]  ;;  %6186 = vmatpush.msra.mxu1 %v9393_v53 }
 0x38f   : > { %v4568_v62 = vpop.f32.mrf.mxu2  ;;  %v4422_v19 = vpop.f32.mrf.mxu1  ;;  %9231 = vmatmul.msk.f32.gmra.mxu0 %vm719_vm2, %v11927_v31 }
 0x390   : > { %v12074_v22 = vadd.f32 %v4568_v62, %v4443_v8  ;;  %v12133_v62 = vld [vmem:[#allocation5 + $0x179] sm:$0xff] }
 0x391   : > { %9285 = vmatmul.msk.f32.gmra.mxu3 %vm719_vm2, %v12082_v58 }
 0x392   : > { %9251 = vmatmul.msk.f32.gmra.mxu1 %vm719_vm2, %v12078_v25 }
 0x394   : > { %9271 = vmatmul.msk.f32.gmra.mxu2 %vm719_vm2, %v12084_v27  ;;  %v4276_v51 = vpop.f32.mrf.mxu0  ;;  %v12090_v36 = vpop.f32.mrf.mxu3 }
 0x395   : > { %v4296_v46 = vadd.f32 %v4276_v51, %v11892_v54  ;;  %v9350_v54 = vld [vmem:[%s13691_s4 + $0xa0] sm:$0xff]  ;;  %v12138_v51 = vld [vmem:[#allocation5 + $0x168] sm:$0xff] }
 0x396   : > { %5891 = vmatpush.msrb.mxu3 %v9350_v54 }
 0x397   : > { %v4571_v41 = vpop.f32.mrf.mxu2  ;;  %v4425_v18 = vpop.f32.mrf.mxu1  ;;  %9232 = vmatmul.msk.f32.gmra.mxu0 %vm719_vm2, %v11939_v49 }
 0x398   : > { %v4445_v40 = vadd.f32 %v4425_v18, %v4296_v46  ;;  %v4729_v41 = vadd.f32 %v11919_v59, %v11894_v11  ;;  %v12157_v11 = vld [vmem:[#allocation5 + $0x170] sm:$0xff] }
 0x399   : > { %9286 = vmatmul.msk.f32.gmra.mxu3 %vm719_vm2, %v12102_v60 }
 0x39a   : > { %9252 = vmatmul.msk.f32.gmra.mxu1 %vm719_vm2, %v12097_v34 }
 0x39c   : > { %9272 = vmatmul.msk.f32.gmra.mxu2 %vm719_vm2, %v12104_v17  ;;  %v4279_v56 = vpop.f32.mrf.mxu0  ;;  %v12122_v21 = vpop.f32.mrf.mxu3 }
 0x39d   : > { %v4297_v19 = vadd.f32 %v4279_v56, %v11904_v10  ;;  %v12149_v10 = vld [vmem:[%s13696_s5] ss:$0 sm:$0xff] }
 0x39f   : > { %v4574_v23 = vpop.f32.mrf.mxu2  ;;  %v4428_v8 = vpop.f32.mrf.mxu1  ;;  %9233 = vmatmul.msk.f32.gmra.mxu0 %vm719_vm2, %v11950_v14 }
 0x3a0   : > { %v12124_v29 = vadd.f32 %v4574_v23, %v4445_v40  ;;  %v4446_v18 = vadd.f32 %v4428_v8, %v4297_v19  ;;  %v6501_v19 = vld [vmem:[#allocation3 + $0x60] ss:$2 sm:$0xff] }
 0x3a1   : > { %9287 = vmatmul.msk.f32.gmra.mxu3 %vm719_vm2, %v12138_v51 }
 0x3a2   : > { %9253 = vmatmul.msk.f32.gmra.mxu1 %vm719_vm2, %v12131_v7 }
 0x3a4   : > { %9273 = vmatmul.msk.f32.gmra.mxu2 %vm719_vm2, %v12133_v62  ;;  %v4830_v26 = vpop.f32.mrf.mxu0  ;;  %v4720_v46 = vpop.f32.mrf.mxu3 }
 0x3a5   : > { %v4878_v54 = vadd.f32 %v4830_v26, %v4729_v41  ;;  %v6503_v41 = vld [vmem:[#allocation3 + $0x61] ss:$2 sm:$0xff] }
 0x3a7   : > { %v4577_v45 = vpop.f32.mrf.mxu2  ;;  %v4979_v3 = vpop.f32.mrf.mxu1  ;;  %9294 = vmatmul.msk.f32.vlgmr.msrb.gmra.mxu0 %vm719_vm2, %v11822_v20 }
 0x3a8   : > { %v12151_v52 = vadd.f32 %v4577_v45, %v4446_v18  ;;  %v5027_v40 = vadd.f32 %v4979_v3, %v4878_v54 }
 0x3a9   : > { %9288 = vmatmul.msk.f32.gmra.mxu3 %vm719_vm2, %v12157_v11 }
 0x3aa   : > { %9314 = vmatmul.msk.f32.vlgmr.msrb.gmra.mxu1 %vm719_vm2, %v11874_v24  ;;  %v5047_v59 = vadd.f32 %v12149_v10, %v5027_v40  ;;  %v12171_v24 = vld [vmem:[#allocation5 + $0x178] sm:$0xff] }
 0x3ac   : > { %9334 = vmatmul.msk.f32.vlgmr.msrb.gmra.mxu2 %vm719_vm2, %v11927_v31  ;;  %v5063_v56 = vmax.f32 %v5047_v59, 0.0  ;;  %v4833_v23 = vpop.f32.mrf.mxu0  ;;  %v12164_v8 = vpop.f32.mrf.mxu3  ;;  %v4731_v31 = vadd.f32 %v11945_v37, %v11921_v2 }
 0x3ae   : > { %5079 = vst.msk [vmem:[#allocation3 + $0x80] sm:$0xff] %vm3717_vm3, %v5063_v56 }
 0x3af   : > { %v5200_v20 = vpop.f32.mrf.mxu2  ;;  %v4982_v53 = vpop.f32.mrf.mxu1  ;;  %9295 = vmatmul.msk.f32.gmra.mxu0 %vm719_vm2, %v11848_v55  ;;  %v6504_v55 = vmax.f32 %v6501_v19, %v6503_v41  ;;  %v9392_v41 = vld [vmem:[%s13691_s4 + $0xf0] sm:$0xff] }
 0x3b0   : > { %6187 = vmatpush.msra.mxu1 %v9392_v41 }
 0x3b1   : > { %9289 = vmatmul.msk.f32.gmra.mxu3 %vm719_vm2, %v12171_v24 }
 0x3b2   : > { %9315 = vmatmul.msk.f32.gmra.mxu1 %vm719_vm2, %v11886_v61 }
 0x3b4   : > { %9335 = vmatmul.msk.f32.gmra.mxu2 %vm719_vm2, %v11939_v49  ;;  %v4836_v46 = vpop.f32.mrf.mxu0  ;;  %v12179_v45 = vpop.f32.mrf.mxu3  ;;  %v9412_v49 = vld [vmem:[%s13691_s4 + $0x110] sm:$0xff] }
 0x3b5   : > { %v6506_v18 = vld [vmem:[#allocation3 + $0x78] ss:$2 sm:$0xff]  ;;  %v6508_v26 = vld [vmem:[#allocation3 + $0x79] ss:$2 sm:$0xff]  ;;  %v4880_v3 = vadd.f32 %v4836_v46, %v4731_v31  ;;  %6336 = vmatpush.msra.mxu2 %v9412_v49 }
 0x3b6   : > { %v6509_v61 = vmax.f32 %v6506_v18, %v6508_v26 }
 0x3b7   : > { %v5203_v54 = vpop.f32.mrf.mxu2  ;;  %v4985_v40 = vpop.f32.mrf.mxu1  ;;  %9296 = vmatmul.msk.f32.gmra.mxu0 %vm719_vm2, %v11876_v1  ;;  %v9372_v1 = vld [vmem:[%s13691_s4 + $0xd0] sm:$0xff] }
 0x3b8   : > { %v6510_v59 = vmax.f32 %v6504_v55, %v6509_v61  ;;  %v5029_v56 = vadd.f32 %v4985_v40, %v4880_v3  ;;  %6038 = vmatpush.msra.mxu0 %v9372_v1 }
 0x3b9   : > { %9354 = vmatmul.msk.f32.vlgmr.msrb.gmra.mxu3 %vm719_vm2, %v12078_v25 }
 0x3ba   : > { %9316 = vmatmul.msk.f32.gmra.mxu1 %vm719_vm2, %v11898_v0  ;;  %6511 = vst.msk [vmem:[#allocation6 + $0x31] sm:$0xff] %vm3717_vm3, %v6510_v59  ;;  %v5049_v2 = vadd.f32 %v12149_v10, %v5029_v56  ;;  %v4732_v0 = vadd.f32 %v11956_v43, %v11935_v50 }
 0x3bc   : > { %9336 = vmatmul.msk.f32.gmra.mxu2 %vm719_vm2, %v11950_v14  ;;  %v5065_v37 = vmax.f32 %v5049_v2, 0.0  ;;  %v4839_v23 = vpop.f32.mrf.mxu0  ;;  %v5313_v20 = vpop.f32.mrf.mxu3 }
 0x3bd   : > { %v4881_v14 = vadd.f32 %v4839_v23, %v4732_v0  ;;  %v12245_v0 = vld [vmem:[#allocation5 + $0x13a] sm:$0xff] }
 0x3be   : > { %5081 = vst.msk [vmem:[#allocation3 + $0x90] sm:$0xff] %vm3717_vm3, %v5065_v37 }
 0x3bf   : > { %v5206_v53 = vpop.f32.mrf.mxu2  ;;  %v4988_v19 = vpop.f32.mrf.mxu1  ;;  %9297 = vmatmul.msk.f32.gmra.mxu0 %vm719_vm2, %v12078_v25 }
 0x3c0   : > { %v5030_v31 = vadd.f32 %v4988_v19, %v4881_v14  ;;  %v12268_v19 = vld [vmem:[#allocation5 + $0x142] sm:$0xff] }
 0x3c1   : > { %9355 = vmatmul.msk.f32.gmra.mxu3 %vm719_vm2, %v12097_v34 }
 0x3c2   : > { %9317 = vmatmul.msk.f32.gmra.mxu1 %vm719_vm2, %v11993_v5  ;;  %v5050_v50 = vadd.f32 %v12149_v10, %v5030_v31 }
 0x3c4   : > { %9337 = vmatmul.msk.f32.gmra.mxu2 %vm719_vm2, %v11961_v35  ;;  %v5066_v43 = vmax.f32 %v5050_v50, 0.0  ;;  %v4842_v18 = vpop.f32.mrf.mxu0  ;;  %v5316_v26 = vpop.f32.mrf.mxu3  ;;  %v4734_v35 = vadd.f32 %v11988_v42, %v11958_v4  ;;  %v4735_v4 = vadd.f32 %v12001_v30, %v11975_v9  ;;  %v9411_v9 = vld [vmem:[%s13691_s4 + $0x108] sm:$0xff]  ;;  %v4737_v50 = vadd.f32 %v12036_v16, %v12003_v63  ;;  %v12283_v63 = vld [vmem:[#allocation5 + $0x14a] sm:$0xff] }
 0x3c5   : > { %v12213_v55 = vadd.f32 %v5316_v26, %v5203_v54  ;;  %v9371_v30 = vld [vmem:[%s13691_s4 + $0xc8] sm:$0xff]  ;;  %6337 = vmatpush.msra.mxu2 %v9411_v9  ;;  %v4738_v16 = vadd.f32 %v12054_v6, %v12016_v12  ;;  %v9370_v9 = vld [vmem:[%s13691_s4 + $0xc0] sm:$0xff] }
 0x3c6   : > { %5082 = vst.msk [vmem:[#allocation3 + $0x98] sm:$0xff] %vm3717_vm3, %v5066_v43  ;;  %6039 = vmatpush.msra.mxu0 %v9371_v30  ;;  %v4740_v30 = vadd.f32 %v12090_v36, %v12056_v39  ;;  %v12334_v39 = vld [vmem:[#allocation5 + $0x162] sm:$0xff] }
 0x3c7   : > { %v5209_v46 = vpop.f32.mrf.mxu2  ;;  %v4991_v25 = vpop.f32.mrf.mxu1  ;;  %9298 = vmatmul.msk.f32.gmra.mxu0 %vm719_vm2, %v12097_v34 }
 0x3c8   : > { %6040 = vmatpush.msra.mxu0 %v9370_v9 }
 0x3c9   : > { %9356 = vmatmul.msk.f32.gmra.mxu3 %vm719_vm2, %v12131_v7 }
 0x3ca   : > { %9318 = vmatmul.msk.f32.gmra.mxu1 %vm719_vm2, %v12010_v33  ;;  %v12231_v33 = vld [vmem:[#allocation5 + $0x132] sm:$0xff] }
 0x3cc   : > { %9338 = vmatmul.msk.f32.gmra.mxu2 %vm719_vm2, %v11982_v47  ;;  %v4845_v5 = vpop.f32.mrf.mxu0  ;;  %v5319_v61 = vpop.f32.mrf.mxu3 }
 0x3cd   : > { %v4883_v3 = vadd.f32 %v4845_v5, %v4734_v35  ;;  %v12225_v40 = vadd.f32 %v5319_v61, %v5206_v53  ;;  %v6513_v41 = vld [vmem:[#allocation3 + $0x90] ss:$2 sm:$0xff]  ;;  %v6515_v31 = vld [vmem:[#allocation3 + $0x91] ss:$2 sm:$0xff] }
 0x3ce   : > { %v6516_v46 = vmax.f32 %v6513_v41, %v6515_v31  ;;  %v4741_v41 = vadd.f32 %v12122_v21, %v12074_v22  ;;  %v12351_v22 = vld [vmem:[#allocation5 + $0x16a] sm:$0xff] }
 0x3cf   : > { %v5212_v54 = vpop.f32.mrf.mxu2  ;;  %v4994_v59 = vpop.f32.mrf.mxu1  ;;  %9299 = vmatmul.msk.f32.gmra.mxu0 %vm719_vm2, %v12131_v7 }
 0x3d0   : > { %v5032_v34 = vadd.f32 %v4994_v59, %v4883_v3 }
 0x3d1   : > { %9357 = vmatmul.msk.f32.gmra.mxu3 %vm719_vm2, %v12231_v33 }
 0x3d2   : > { %9319 = vmatmul.msk.f32.gmra.mxu1 %vm719_vm2, %v12022_v28  ;;  %v5052_v47 = vadd.f32 %v12149_v10, %v5032_v34 }
 0x3d4   : > { %9339 = vmatmul.msk.f32.gmra.mxu2 %vm719_vm2, %v11995_v48  ;;  %v5068_v42 = vmax.f32 %v5052_v47, 0.0  ;;  %v4848_v56 = vpop.f32.mrf.mxu0  ;;  %v5322_v2 = vpop.f32.mrf.mxu3 }
 0x3d5   : > { %v4884_v28 = vadd.f32 %v4848_v56, %v4735_v4 }
 0x3d6   : > { %5084 = vst.msk [vmem:[#allocation3 + $0xa8] sm:$0xff] %vm3717_vm3, %v5068_v42 }
 0x3d7   : > { %v5215_v7 = vpop.f32.mrf.mxu2  ;;  %v4997_v49 = vpop.f32.mrf.mxu1  ;;  %9300 = vmatmul.msk.f32.gmra.mxu0 %vm719_vm2, %v12231_v33 }
 0x3d8   : > { %v5033_v1 = vadd.f32 %v4997_v49, %v4884_v28 }
 0x3d9   : > { %9358 = vmatmul.msk.f32.gmra.mxu3 %vm719_vm2, %v12245_v0 }
 0x3da   : > { %9320 = vmatmul.msk.f32.gmra.mxu1 %vm719_vm2, %v12046_v13  ;;  %v5053_v48 = vadd.f32 %v12149_v10, %v5033_v1 }
 0x3dc   : > { %9340 = vmatmul.msk.f32.gmra.mxu2 %vm719_vm2, %v12006_v15  ;;  %v5069_v37 = vmax.f32 %v5053_v48, 0.0  ;;  %v4851_v13 = vpop.f32.mrf.mxu0  ;;  %v5325_v23 = vpop.f32.mrf.mxu3  ;;  %v9391_v15 = vld [vmem:[%s13691_s4 + $0xe8] sm:$0xff] }
 0x3dd   : > { %v12259_v53 = vadd.f32 %v5325_v23, %v5212_v54  ;;  %6188 = vmatpush.msra.mxu1 %v9391_v15 }
 0x3de   : > { %5085 = vst.msk [vmem:[#allocation3 + $0xb0] sm:$0xff] %vm3717_vm3, %v5069_v37 }
 0x3df   : > { %v5218_v20 = vpop.f32.mrf.mxu2  ;;  %v5000_v14 = vpop.f32.mrf.mxu1  ;;  %9301 = vmatmul.msk.f32.gmra.mxu0 %vm719_vm2, %v12245_v0 }
 0x3e0   : > { %v9390_v14 = vld [vmem:[%s13691_s4 + $0xe0] sm:$0xff] }
 0x3e1   : > { %9359 = vmatmul.msk.f32.gmra.mxu3 %vm719_vm2, %v12268_v19  ;;  %6189 = vmatpush.msra.mxu1 %v9390_v14  ;;  %v12410_v14 = vld [vmem:[#allocation5 + $0x189] sm:$0xff] }
 0x3e2   : > { %9321 = vmatmul.msk.f32.gmra.mxu1 %vm719_vm2, %v12068_v57 }
 0x3e4   : > { %9341 = vmatmul.msk.f32.gmra.mxu2 %vm719_vm2, %v12024_v32  ;;  %v4854_v26 = vpop.f32.mrf.mxu0  ;;  %v5328_v25 = vpop.f32.mrf.mxu3 }
 0x3e5   : > { %v6518_v43 = vld [vmem:[#allocation3 + $0xa8] ss:$2 sm:$0xff]  ;;  %v6520_v18 = vld [vmem:[#allocation3 + $0xa9] ss:$2 sm:$0xff]  ;;  %v4886_v5 = vadd.f32 %v4854_v26, %v4737_v50  ;;  %v12276_v61 = vadd.f32 %v5328_v25, %v5215_v7 }
 0x3e6   : > { %v6521_v35 = vmax.f32 %v6518_v43, %v6520_v18  ;;  %v12297_v7 = vld [vmem:[#allocation5 + $0x152] sm:$0xff] }
 0x3e7   : > { %v5221_v57 = vpop.f32.mrf.mxu2  ;;  %v5003_v54 = vpop.f32.mrf.mxu1  ;;  %9302 = vmatmul.msk.f32.gmra.mxu0 %vm719_vm2, %v12268_v19 }
 0x3e8   : > { %v6522_v3 = vmax.f32 %v6516_v46, %v6521_v35  ;;  %v5035_v59 = vadd.f32 %v5003_v54, %v4886_v5  ;;  %v9437_v46 = vld [vmem:[%s13662_s6 + $0x78] sm:$0xff] }
 0x3e9   : > { %9360 = vmatmul.msk.f32.gmra.mxu3 %vm719_vm2, %v12283_v63 }
 0x3ea   : > { %9322 = vmatmul.msk.f32.gmra.mxu1 %vm719_vm2, %v12082_v58  ;;  %6523 = vst.msk [vmem:[#allocation6 + $0x41] sm:$0xff] %vm3717_vm3, %v6522_v3  ;;  %v5055_v32 = vadd.f32 %v12149_v10, %v5035_v59  ;;  %6677 = vmatpush.msra.mxu3 %v9437_v46  ;;  %v9435_v59 = vld [vmem:[%s13662_s6 + $0x68] sm:$0xff]  ;;  %v12423_v46 = vld [vmem:[#allocation5 + $0x191] sm:$0xff] }
 0x3ec   : > { %9342 = vmatmul.msk.f32.gmra.mxu2 %vm719_vm2, %v12048_v44  ;;  %v5071_v34 = vmax.f32 %v5055_v32, 0.0  ;;  %v4857_v47 = vpop.f32.mrf.mxu0  ;;  %v5331_v4 = vpop.f32.mrf.mxu3  ;;  %v9434_v32 = vld [vmem:[%s13662_s6 + $0x60] sm:$0xff] }
 0x3ed   : > { %v4887_v42 = vadd.f32 %v4857_v47, %v4738_v16  ;;  %v12376_v16 = vld [vmem:[#allocation5 + $0x172] sm:$0xff] }
 0x3ee   : > { %5087 = vst.msk [vmem:[#allocation3 + $0xc0] sm:$0xff] %vm3717_vm3, %v5071_v34  ;;  %v12378_v34 = vld [vmem:[#allocation5 + $0x181] sm:$0xff] }
 0x3ef   : > { %v5224_v58 = vpop.f32.mrf.mxu2  ;;  %v5006_v56 = vpop.f32.mrf.mxu1  ;;  %9303 = vmatmul.msk.f32.gmra.mxu0 %vm719_vm2, %v12283_v63 }
 0x3f0   : > { %v5036_v2 = vadd.f32 %v5006_v56, %v4887_v42  ;;  %v4743_v42 = vadd.f32 %v12164_v8, %v12124_v29  ;;  %v9431_v29 = vld [vmem:[%s13662_s6 + $0x48] sm:$0xff] }
 0x3f1   : > { %9361 = vmatmul.msk.f32.gmra.mxu3 %vm719_vm2, %v12297_v7 }
 0x3f2   : > { %9323 = vmatmul.msk.f32.gmra.mxu1 %vm719_vm2, %v12102_v60  ;;  %v5056_v44 = vadd.f32 %v12149_v10, %v5036_v2  ;;  %v12311_v60 = vld [vmem:[#allocation5 + $0x15a] sm:$0xff] }
 0x3f4   : > { %9343 = vmatmul.msk.f32.gmra.mxu2 %vm719_vm2, %v12063_v38  ;;  %v5072_v12 = vmax.f32 %v5056_v44, 0.0  ;;  %v4860_v6 = vpop.f32.mrf.mxu0  ;;  %v5334_v28 = vpop.f32.mrf.mxu3  ;;  %v9410_v38 = vld [vmem:[%s13691_s4 + $0x100] sm:$0xff] }
 0x3f5   : > { %v12305_v1 = vadd.f32 %v5334_v28, %v5221_v57  ;;  %6338 = vmatpush.msra.mxu2 %v9410_v38 }
 0x3f6   : > { %5088 = vst.msk [vmem:[#allocation3 + $0xc8] sm:$0xff] %vm3717_vm3, %v5072_v12 }
 0x3f7   : > { %v5227_v49 = vpop.f32.mrf.mxu2  ;;  %v5009_v48 = vpop.f32.mrf.mxu1  ;;  %9304 = vmatmul.msk.f32.gmra.mxu0 %vm719_vm2, %v12297_v7 }
 0x3f9   : > { %9362 = vmatmul.msk.f32.gmra.mxu3 %vm719_vm2, %v12311_v60 }
 0x3fa   : > { %9324 = vmatmul.msk.f32.gmra.mxu1 %vm719_vm2, %v12138_v51 }
 0x3fc   : > { %9344 = vmatmul.msk.f32.gmra.mxu2 %vm719_vm2, %v12084_v27  ;;  %v4863_v51 = vpop.f32.mrf.mxu0  ;;  %v5337_v37 = vpop.f32.mrf.mxu3 }
 0x3fd   : > { %v4889_v23 = vadd.f32 %v4863_v51, %v4740_v30  ;;  %v12325_v20 = vadd.f32 %v5337_v37, %v5224_v58  ;;  %v6525_v47 = vld [vmem:[#allocation3 + $0xc0] ss:$2 sm:$0xff]  ;;  %v6527_v4 = vld [vmem:[#allocation3 + $0xc1] ss:$2 sm:$0xff]  ;;  %v9433_v58 = vld [vmem:[%s13662_s6 + $0x58] sm:$0xff] }
 0x3fe   : > { %v6528_v12 = vmax.f32 %v6525_v47, %v6527_v4  ;;  %v9432_v30 = vld [vmem:[%s13662_s6 + $0x50] sm:$0xff] }
 0x3ff   : > { %v5230_v13 = vpop.f32.mrf.mxu2  ;;  %v5012_v27 = vpop.f32.mrf.mxu1  ;;  %9305 = vmatmul.msk.f32.gmra.mxu0 %vm719_vm2, %v12311_v60  ;;  %v12399_v37 = vld [vmem:[#allocation5 + $0x188] sm:$0xff] }
 0x400   : > { %v5038_v15 = vadd.f32 %v5012_v27, %v4889_v23  ;;  %v12407_v23 = vld [vmem:[#allocation5 + $0x17a] sm:$0xff] }
 0x401   : > { %9363 = vmatmul.msk.f32.gmra.mxu3 %vm719_vm2, %v12334_v39 }
 0x402   : > { %9325 = vmatmul.msk.f32.gmra.mxu1 %vm719_vm2, %v12157_v11  ;;  %v5058_v36 = vadd.f32 %v12149_v10, %v5038_v15  ;;  %v4744_v15 = vadd.f32 %v12179_v45, %v12151_v52  ;;  %v12427_v52 = vld [vmem:[#allocation5 + $0x182] sm:$0xff] }
 0x404   : > { %9345 = vmatmul.msk.f32.gmra.mxu2 %vm719_vm2, %v12104_v17  ;;  %v5074_v31 = vmax.f32 %v5058_v36, 0.0  ;;  %v4866_v50 = vpop.f32.mrf.mxu0  ;;  %v5340_v43 = vpop.f32.mrf.mxu3 }
 0x405   : > { %v4890_v11 = vadd.f32 %v4866_v50, %v4741_v41 }
 0x406   : > { %5090 = vst.msk [vmem:[#allocation3 + $0xd8] sm:$0xff] %vm3717_vm3, %v5074_v31 }
 0x407   : > { %v5233_v18 = vpop.f32.mrf.mxu2  ;;  %v5015_v26 = vpop.f32.mrf.mxu1  ;;  %9306 = vmatmul.msk.f32.gmra.mxu0 %vm719_vm2, %v12334_v39 }
 0x408   : > { %v5039_v25 = vadd.f32 %v5015_v26, %v4890_v11  ;;  %v12421_v26 = vld [vmem:[#allocation5 + $0x190] sm:$0xff] }
 0x409   : > { %9364 = vmatmul.msk.f32.gmra.mxu3 %vm719_vm2, %v12351_v22 }
 0x40a   : > { %9326 = vmatmul.msk.f32.gmra.mxu1 %vm719_vm2, %v12171_v24  ;;  %v5059_v17 = vadd.f32 %v12149_v10, %v5039_v25  ;;  %v9436_v24 = vld [vmem:[%s13662_s6 + $0x70] sm:$0xff] }
 0x40b   : > { %6678 = vmatpush.msra.mxu3 %v9436_v24  ;;  %v5957_v24 = vld [vmem:[#allocation5 + $0x130] sm:$0xff] }
 0x40c   : > { %9346 = vmatmul.msk.f32.gmra.mxu2 %vm719_vm2, %v12133_v62  ;;  %v5075_v21 = vmax.f32 %v5059_v17, 0.0  ;;  %v4869_v35 = vpop.f32.mrf.mxu0  ;;  %v5343_v57 = vpop.f32.mrf.mxu3  ;;  %v12369_v62 = vld [vmem:[#allocation5 + $0x180] sm:$0xff] }
 0x40d   : > { %v12359_v54 = vadd.f32 %v5343_v57, %v5230_v13  ;;  %6679 = vmatpush.msra.mxu3 %v9435_v59  ;;  %v9430_v13 = vld [vmem:[%s13662_s6 + $0x40] sm:$0xff] }
 0x40e   : > { %5091 = vst.msk [vmem:[#allocation3 + $0xe0] sm:$0xff] %vm3717_vm3, %v5075_v21  ;;  %v6106_v57 = vld [vmem:[#allocation5 + $0x131] sm:$0xff] }
 0x40f   : > { %v5236_v5 = vpop.f32.mrf.mxu2  ;;  %v5018_v3 = vpop.f32.mrf.mxu1  ;;  %9307 = vmatmul.msk.f32.gmra.mxu0 %vm719_vm2, %v12351_v22  ;;  %6680 = vmatpush.msra.mxu3 %v9434_v32 }
 0x411   : > { %9365 = vmatmul.msk.f32.gmra.mxu3 %vm719_vm2, %v12376_v16 }
 0x412   : > { %9327 = vmatmul.msk.f32.gmra.mxu1 %vm719_vm2, %v12369_v62  ;;  %6681 = vmatpush.msra.mxu3 %v9433_v58 }
 0x414   : > { %9347 = vmatmul.msk.f32.gmra.mxu2 %vm719_vm2, %v12378_v34  ;;  %v4872_v44 = vpop.f32.mrf.mxu0  ;;  %v5346_v6 = vpop.f32.mrf.mxu3  ;;  %6682 = vmatpush.msra.mxu3 %v9432_v30  ;;  %v6596_v30 = vld [vmem:[#allocation6 + $0x1] sm:$0xff] }
 0x415   : > { %v6530_v56 = vld [vmem:[#allocation3 + $0xd8] ss:$2 sm:$0xff]  ;;  %v6532_v2 = vld [vmem:[#allocation3 + $0xd9] ss:$2 sm:$0xff]  ;;  %v4892_v48 = vadd.f32 %v4872_v44, %v4743_v42  ;;  %v12389_v38 = vadd.f32 %v5346_v6, %v5233_v18 }
 0x416   : > { %v6533_v28 = vmax.f32 %v6530_v56, %v6532_v2  ;;  %6683 = vmatpush.msra.mxu3 %v9431_v29  ;;  %v5958_v42 = vld [vmem:[#allocation5 + $0x138] sm:$0xff] }
 0x417   : > { %v5239_v49 = vpop.f32.mrf.mxu2  ;;  %v5021_v9 = vpop.f32.mrf.mxu1  ;;  %9308 = vmatmul.msk.f32.gmra.mxu0 %vm719_vm2, %v12376_v16  ;;  %v12447_v56 = vld [vmem:[#allocation5 + $0x192] sm:$0xff] }
 0x418   : > { %v6534_v8 = vmax.f32 %v6528_v12, %v6533_v28  ;;  %v5041_v51 = vadd.f32 %v5021_v9, %v4892_v48  ;;  %6684 = vmatpush.msra.mxu3 %v9430_v13  ;;  %v6107_v2 = vld [vmem:[#allocation5 + $0x139] sm:$0xff]  ;;  %v6109_v13 = vld [vmem:[#allocation5 + $0x149] sm:$0xff] }
 0x419   : > { %9366 = vmatmul.msk.f32.gmra.mxu3 %vm719_vm2, %v12407_v23  ;;  %v5959_v9 = vld [vmem:[#allocation5 + $0x140] sm:$0xff] }
 0x41a   : > { %9328 = vmatmul.msk.f32.gmra.mxu1 %vm719_vm2, %v12399_v37  ;;  %6535 = vst.msk [vmem:[#allocation6 + $0x51] sm:$0xff] %vm3717_vm3, %v6534_v8  ;;  %v5061_v27 = vadd.f32 %v12149_v10, %v5041_v51 }
 0x41c   : > { %9348 = vmatmul.msk.f32.gmra.mxu2 %vm719_vm2, %v12410_v14  ;;  %v5077_v36 = vmax.f32 %v5061_v27, 0.0  ;;  %v4875_v41 = vpop.f32.mrf.mxu0  ;;  %v5349_v31 = vpop.f32.mrf.mxu3 }
 0x41d   : > { %v4893_v43 = vadd.f32 %v4875_v41, %v4744_v15  ;;  %v6597_v41 = vld [vmem:[#allocation6 + $0x9] sm:$0xff] }
 0x41e   : > { %5093 = vst.msk [vmem:[#allocation3 + $0xf0] sm:$0xff] %vm3717_vm3, %v5077_v36  ;;  %v5960_v36 = vld [vmem:[#allocation5 + $0x148] sm:$0xff] }
 0x41f   : > { %v5242_v50 = vpop.f32.mrf.mxu2  ;;  %v5024_v18 = vpop.f32.mrf.mxu1  ;;  %9309 = vmatmul.msk.f32.gmra.mxu0 %vm719_vm2, %v12407_v23 }
 0x420   : > { %v5042_v11 = vadd.f32 %v5024_v18, %v4893_v43  ;;  %v6110_v43 = vld [vmem:[#allocation5 + $0x151] sm:$0xff] }
 0x421   : > { %9367 = vmatmul.msk.f32.gmra.mxu3 %vm719_vm2, %v12427_v52 }
 0x422   : > { %9329 = vmatmul.msk.f32.gmra.mxu1 %vm719_vm2, %v12421_v26  ;;  %v5062_v45 = vadd.f32 %v12149_v10, %v5042_v11  ;;  %v12439_v10 = vld [vmem:[#allocation5 + $0x18a] sm:$0xff] }
 0x423   : > { %v6598_v11 = vld [vmem:[#allocation6 + $0x11] sm:$0xff] }
 0x424   : > { %9349 = vmatmul.msk.f32.gmra.mxu2 %vm719_vm2, %v12423_v46  ;;  %v5078_v25 = vmax.f32 %v5062_v45, 0.0  ;;  %v5446_v17 = vpop.f32.mrf.mxu0  ;;  %v5352_v21 = vpop.f32.mrf.mxu3 }
 0x425   : > { %v12435_v5 = vadd.f32 %v5352_v21, %v5239_v49 }
 0x426   : > { %5094 = vst.msk [vmem:[#allocation3 + $0xf8] sm:$0xff] %vm3717_vm3, %v5078_v25 }
 0x427   : > { %v5245_v35 = vpop.f32.mrf.mxu2  ;;  %v5595_v3 = vpop.f32.mrf.mxu1  ;;  %9374 = vmatmul.msk.f32.vlgmr.msra.gmra.mxu0 %vm719_vm2, %v5957_v24 }
 0x428   : > { %v5962_v35 = vld [vmem:[#allocation5 + $0x158] sm:$0xff] }
 0x429   : > { %9368 = vmatmul.msk.f32.gmra.mxu3 %vm719_vm2, %v12439_v10  ;;  %v6111_v3 = vld [vmem:[#allocation5 + $0x159] sm:$0xff] }
 0x42a   : > { %9394 = vmatmul.msk.f32.vlgmr.msra.gmra.mxu1 %vm719_vm2, %v6106_v57  ;;  %v6599_v57 = vld [vmem:[#allocation6 + $0x19] sm:$0xff] }
 0x42c   : > { %9414 = vmatmul.msk.f32.vlgmr.msra.gmra.mxu2 %vm719_vm2, %v12231_v33  ;;  %v5449_v59 = vpop.f32.mrf.mxu0  ;;  %v5355_v32 = vpop.f32.mrf.mxu3 }
 0x42d   : > { %v12445_v4 = vadd.f32 %v5355_v32, %v5242_v50  ;;  %v5495_v44 = vadd.f32 %v5449_v59, %v12213_v55  ;;  %v6108_v55 = vld [vmem:[#allocation5 + $0x141] sm:$0xff]  ;;  %v5961_v50 = vld [vmem:[#allocation5 + $0x150] sm:$0xff] }
 0x42e   : > { %v6112_v32 = vld [vmem:[#allocation5 + $0x161] sm:$0xff] }
 0x42f   : > { %v5744_v47 = vpop.f32.mrf.mxu2  ;;  %v5598_v58 = vpop.f32.mrf.mxu1  ;;  %9375 = vmatmul.msk.f32.gmra.mxu0 %vm719_vm2, %v5958_v42  ;;  %v5963_v42 = vld [vmem:[#allocation5 + $0x160] sm:$0xff] }
 0x430   : > { %v5644_v33 = vadd.f32 %v5598_v58, %v5495_v44 }
 0x431   : > { %9369 = vmatmul.msk.f32.gmra.mxu3 %vm719_vm2, %v12447_v56 }
 0x432   : > { %9395 = vmatmul.msk.f32.gmra.mxu1 %vm719_vm2, %v6107_v2 }
 0x434   : > { %9415 = vmatmul.msk.f32.gmra.mxu2 %vm719_vm2, %v12245_v0  ;;  %v5452_v12 = vpop.f32.mrf.mxu0  ;;  %v5358_v6 = vpop.f32.mrf.mxu3 }
 0x435   : > { %v5496_v29 = vadd.f32 %v5452_v12, %v12225_v40  ;;  %v6601_v12 = vld [vmem:[#allocation6 + $0x29] sm:$0xff]  ;;  %v6113_v6 = vld [vmem:[#allocation5 + $0x169] sm:$0xff] }
 0x437   : > { %v5747_v28 = vpop.f32.mrf.mxu2  ;;  %v5601_v48 = vpop.f32.mrf.mxu1  ;;  %9376 = vmatmul.msk.f32.gmra.mxu0 %vm719_vm2, %v5959_v9 }
 0x438   : > { %v12456_v49 = vadd.f32 %v5747_v28, %v5644_v33  ;;  %v5645_v0 = vadd.f32 %v5601_v48, %v5496_v29  ;;  %v5964_v33 = vld [vmem:[#allocation5 + $0x168] sm:$0xff] }
 0x439   : > { %9438 = vmatmul.msk.f32.vlgmr.msra.gmra.mxu3 %vm3717_vm3, %v6596_v30 }
 0x43a   : > { %9396 = vmatmul.msk.f32.gmra.mxu1 %vm719_vm2, %v6108_v55 }
 0x43c   : > { %9416 = vmatmul.msk.f32.gmra.mxu2 %vm719_vm2, %v12268_v19  ;;  %v5455_v8 = vpop.f32.mrf.mxu0  ;;  %v5893_v48 = vpop.f32.mrf.mxu3 }
 0x43d   : > { %v6114_v8 = vld [vmem:[#allocation5 + $0x171] sm:$0xff] }
 0x43e   : > { %v6592_v48 = vld [vmem:[%s13662_s6 + $0x20] sm:$0xff] }
 0x43f   : > { %v5750_v51 = vpop.f32.mrf.mxu2  ;;  %v5604_v15 = vpop.f32.mrf.mxu1  ;;  %9377 = vmatmul.msk.f32.gmra.mxu0 %vm719_vm2, %v5960_v36 }
 0x440   : > { %v12464_v27 = vadd.f32 %v5750_v51, %v5645_v0  ;;  %v5965_v0 = vld [vmem:[#allocation5 + $0x170] sm:$0xff] }
 0x441   : > { %9439 = vmatmul.msk.f32.gmra.mxu3 %vm3717_vm3, %v6597_v41  ;;  %v6602_v51 = vld [vmem:[#allocation6 + $0x31] sm:$0xff]  ;;  %v6115_v41 = vld [vmem:[#allocation5 + $0x179] sm:$0xff] }
 0x442   : > { %9397 = vmatmul.msk.f32.gmra.mxu1 %vm719_vm2, %v6109_v13 }
 0x444   : > { %9417 = vmatmul.msk.f32.gmra.mxu2 %vm719_vm2, %v12283_v63  ;;  %v5458_v40 = vpop.f32.mrf.mxu0  ;;  %v12506_v15 = vpop.f32.mrf.mxu3 }
 0x445   : > { %v5498_v18 = vadd.f32 %v5458_v40, %v12259_v53 }
 0x447   : > { %v5753_v19 = vpop.f32.mrf.mxu2  ;;  %v5607_v31 = vpop.f32.mrf.mxu1  ;;  %9378 = vmatmul.msk.f32.gmra.mxu0 %vm719_vm2, %v5961_v50  ;;  %v6603_v50 = vld [vmem:[#allocation6 + $0x39] sm:$0xff] }
 0x448   : > { %v5647_v45 = vadd.f32 %v5607_v31, %v5498_v18  ;;  %v5966_v31 = vld [vmem:[#allocation5 + $0x178] sm:$0xff] }
 0x449   : > { %9440 = vmatmul.msk.f32.gmra.mxu3 %vm3717_vm3, %v6598_v11 }
 0x44a   : > { %9398 = vmatmul.msk.f32.gmra.mxu1 %vm719_vm2, %v6110_v43 }
 0x44c   : > { %9418 = vmatmul.msk.f32.gmra.mxu2 %vm719_vm2, %v12297_v7  ;;  %v5461_v25 = vpop.f32.mrf.mxu0  ;;  %v12515_v18 = vpop.f32.mrf.mxu3 }
 0x44d   : > { %v5499_v53 = vadd.f32 %v5461_v25, %v12276_v61  ;;  %v6600_v61 = vld [vmem:[#allocation6 + $0x21] sm:$0xff] }
 0x44f   : > { %v5756_v63 = vpop.f32.mrf.mxu2  ;;  %v5610_v21 = vpop.f32.mrf.mxu1  ;;  %9379 = vmatmul.msk.f32.gmra.mxu0 %vm719_vm2, %v5962_v35 }
 0x450   : > { %v12477_v17 = vadd.f32 %v5756_v63, %v5647_v45  ;;  %v5648_v7 = vadd.f32 %v5610_v21, %v5499_v53  ;;  %v6604_v45 = vld [vmem:[#allocation6 + $0x41] sm:$0xff] }
 0x451   : > { %9441 = vmatmul.msk.f32.gmra.mxu3 %vm3717_vm3, %v6599_v57  ;;  %v6605_v57 = vld [vmem:[#allocation6 + $0x49] sm:$0xff] }
 0x452   : > { %9399 = vmatmul.msk.f32.gmra.mxu1 %vm719_vm2, %v6111_v3 }
 0x454   : > { %9419 = vmatmul.msk.f32.gmra.mxu2 %vm719_vm2, %v12311_v60  ;;  %v5464_v24 = vpop.f32.mrf.mxu0 }
 0x455   : > { %v6606_v24 = vld [vmem:[#allocation6 + $0x51] sm:$0xff] }
 0x457   : > { %v5759_v59 = vpop.f32.mrf.mxu2  ;;  %v5613_v58 = vpop.f32.mrf.mxu1  ;;  %9380 = vmatmul.msk.f32.gmra.mxu0 %vm719_vm2, %v5963_v42  ;;  %v6119_v42 = vld [vmem:[#allocation5 + $0x199] sm:$0xff] }
 0x458   : > { %v12485_v47 = vadd.f32 %v5759_v59, %v5648_v7 }
 0x459   : > { %9442 = vmatmul.msk.f32.gmra.mxu3 %vm3717_vm3, %v6600_v61  ;;  %v6594_v61 = vld [vmem:[%s13662_s6 + $0x30] sm:$0xff] }
 0x45a   : > { %9400 = vmatmul.msk.f32.gmra.mxu1 %vm719_vm2, %v6112_v32  ;;  %v5970_v32 = vld [vmem:[#allocation5 + $0x198] sm:$0xff] }
 0x45c   : > { %9420 = vmatmul.msk.f32.gmra.mxu2 %vm719_vm2, %v12334_v39  ;;  %v5467_v2 = vpop.f32.mrf.mxu0 }
 0x45d   : > { %v5501_v28 = vadd.f32 %v5467_v2, %v12305_v1  ;;  %v9476_v2 = vld [vmem:[%s13662_s6 + $0xb0] sm:$0xff] }
 0x45f   : > { %v5762_v60 = vpop.f32.mrf.mxu2  ;;  %v5616_v44 = vpop.f32.mrf.mxu1  ;;  %9381 = vmatmul.msk.f32.gmra.mxu0 %vm719_vm2, %v5964_v33  ;;  %v9475_v33 = vld [vmem:[%s13662_s6 + $0xa8] sm:$0xff] }
 0x460   : > { %v5650_v9 = vadd.f32 %v5616_v44, %v5501_v28  ;;  %v9500_v60 = vld [vmem:[%s13662_s6 + $0xf0] sm:$0xff]  ;;  %v6593_v44 = vld [vmem:[%s13662_s6 + $0x28] sm:$0xff]  ;;  %v9474_v28 = vld [vmem:[%s13662_s6 + $0xa0] sm:$0xff] }
 0x461   : > { %9443 = vmatmul.msk.f32.gmra.mxu3 %vm3717_vm3, %v6601_v12 }
 0x462   : > { %9401 = vmatmul.msk.f32.gmra.mxu1 %vm719_vm2, %v6113_v6  ;;  %v9499_v6 = vld [vmem:[%s13662_s6 + $0xe8] sm:$0xff] }
 0x464   : > { %9421 = vmatmul.msk.f32.gmra.mxu2 %vm719_vm2, %v12351_v22  ;;  %v5470_v39 = vpop.f32.mrf.mxu0 }
 0x465   : > { %v5502_v1 = vadd.f32 %v5470_v39, %v12325_v20  ;;  %v6591_v39 = vld [vmem:[%s13662_s6 + $0x18] sm:$0xff] }
 0x467   : > { %v5765_v30 = vpop.f32.mrf.mxu2  ;;  %v5619_v29 = vpop.f32.mrf.mxu1  ;;  %9382 = vmatmul.msk.f32.gmra.mxu0 %vm719_vm2, %v5965_v0  ;;  %v5971_v0 = vld [vmem:[#allocation5 + $0x1a0] sm:$0xff] }
 0x468   : > { %v12498_v55 = vadd.f32 %v5765_v30, %v5650_v9  ;;  %v5651_v22 = vadd.f32 %v5619_v29, %v5502_v1  ;;  %v9473_v9 = vld [vmem:[%s13662_s6 + $0x98] sm:$0xff] }
 0x469   : > { %9444 = vmatmul.msk.f32.gmra.mxu3 %vm3717_vm3, %v6602_v51 }
 0x46a   : > { %9402 = vmatmul.msk.f32.gmra.mxu1 %vm719_vm2, %v6114_v8  ;;  %v9497_v8 = vld [vmem:[%s13662_s6 + $0xd8] sm:$0xff] }
 0x46c   : > { %9422 = vmatmul.msk.f32.gmra.mxu2 %vm719_vm2, %v12376_v16  ;;  %v5473_v13 = vpop.f32.mrf.mxu0 }
 0x46f   : > { %v5768_v36 = vpop.f32.mrf.mxu2  ;;  %v5622_v19 = vpop.f32.mrf.mxu1  ;;  %9383 = vmatmul.msk.f32.gmra.mxu0 %vm719_vm2, %v5966_v31  ;;  %v9496_v31 = vld [vmem:[%s13662_s6 + $0xd0] sm:$0xff] }
 0x470   : > { %v12508_v40 = vadd.f32 %v5768_v36, %v5651_v22  ;;  %v6120_v22 = vld [vmem:[#allocation5 + $0x1a1] sm:$0xff] }
 0x471   : > { %9445 = vmatmul.msk.f32.gmra.mxu3 %vm3717_vm3, %v6603_v50  ;;  %v9472_v19 = vld [vmem:[%s13662_s6 + $0x90] sm:$0xff] }
 0x472   : > { %9403 = vmatmul.msk.f32.gmra.mxu1 %vm719_vm2, %v6115_v41  ;;  %v6590_v41 = vld [vmem:[%s13662_s6 + $0x10] sm:$0xff] }
 0x473   : > { %v6269_v50 = vld [vmem:[#allocation5 + $0x1a2] sm:$0xff] }
 0x474   : > { %9423 = vmatmul.msk.f32.gmra.mxu2 %vm719_vm2, %v12407_v23  ;;  %v5476_v20 = vpop.f32.mrf.mxu0 }
 0x475   : > { %v5504_v11 = vadd.f32 %v5476_v20, %v12359_v54  ;;  %v6589_v20 = vld [vmem:[%s13662_s6 + $0x8] sm:$0xff] }
 0x477   : > { %v5771_v16 = vpop.f32.mrf.mxu2  ;;  %v5625_v43 = vpop.f32.mrf.mxu1  ;;  %9384 = vmatmul.msk.f32.gmra.mxu0 %vm719_vm2, %v12369_v62 }
 0x478   : > { %v5653_v23 = vadd.f32 %v5625_v43, %v5504_v11  ;;  %v5902_v62 = vpop.f32.mrf.mxu3  ;;  %v9471_v43 = vld [vmem:[%s13662_s6 + $0x88] sm:$0xff] }
 0x479   : > { %9446 = vmatmul.msk.f32.gmra.mxu3 %vm3717_vm3, %v6604_v45  ;;  %v9495_v11 = vld [vmem:[%s13662_s6 + $0xc8] sm:$0xff]  ;;  %v9524_v45 = vld [vmem:[%s13662_s6 + $0x130] sm:$0xff] }
 0x47a   : > { %9404 = vmatmul.msk.f32.gmra.mxu1 %vm719_vm2, %v12378_v34  ;;  %v6121_v62 = vld [vmem:[#allocation5 + $0x1a9] sm:$0xff] }
 0x47c   : > { %9424 = vmatmul.msk.f32.gmra.mxu2 %vm719_vm2, %v12427_v52  ;;  %v5479_v25 = vpop.f32.mrf.mxu0 }
 0x47d   : > { %v5505_v54 = vadd.f32 %v5479_v25, %v12389_v38  ;;  %v6595_v38 = vld [vmem:[%s13662_s6 + $0x38] sm:$0xff]  ;;  %v9494_v25 = vld [vmem:[%s13662_s6 + $0xc0] sm:$0xff] }
 0x47e   : > { %6790 = vmatpush.msrb.mxu0 %v6595_v38  ;;  %v6572_v38 = vld [vmem:[#allocation6] sm:$0xff] }
 0x47f   : > { %v5774_v63 = vpop.f32.mrf.mxu2  ;;  %v5628_v35 = vpop.f32.mrf.mxu1  ;;  %9385 = vmatmul.msk.f32.gmra.mxu0 %vm719_vm2, %v12399_v37  ;;  %v9501_v37 = vld [vmem:[%s13662_s6 + $0xf8] sm:$0xff] }
 0x480   : > { %v12525_v21 = vadd.f32 %v5774_v63, %v5653_v23  ;;  %v5654_v34 = vadd.f32 %v5628_v35, %v5505_v54  ;;  %7082 = vmatpush.msrb.mxu2 %v9501_v37  ;;  %v12556_v59 = vpop.f32.mrf.mxu3  ;;  %6791 = vmatpush.msrb.mxu0 %v6594_v61  ;;  %v9470_v23 = vld [vmem:[%s13662_s6 + $0x80] sm:$0xff]  ;;  %v6573_v61 = vld [vmem:[#allocation6 + $0x8] sm:$0xff] }
 0x481   : > { %9447 = vmatmul.msk.f32.gmra.mxu3 %vm3717_vm3, %v6605_v57  ;;  %v5972_v57 = vld [vmem:[#allocation5 + $0x1a8] sm:$0xff] }
 0x482   : > { %9405 = vmatmul.msk.f32.gmra.mxu1 %vm719_vm2, %v12410_v14  ;;  %v9525_v14 = vld [vmem:[%s13662_s6 + $0x138] sm:$0xff]  ;;  %7083 = vmatpush.msrb.mxu2 %v9500_v60  ;;  %v5942_v60 = vadd.f32 %v12506_v15, %v12456_v49  ;;  %v5943_v49 = vadd.f32 %v12515_v18, %v12464_v27 }
 0x483   : > { %7236 = vmatpush.msrb.mxu3 %v9525_v14  ;;  %6792 = vmatpush.msrb.mxu0 %v6593_v44  ;;  %v6848_v44 = vld [vmem:[#allocation6 + $0xa] sm:$0xff] }
 0x484   : > { %9425 = vmatmul.msk.f32.gmra.mxu2 %vm719_vm2, %v12439_v10  ;;  %v5482_v52 = vpop.f32.mrf.mxu0  ;;  %v9477_v10 = vld [vmem:[%s13662_s6 + $0xb8] sm:$0xff] }
 0x485   : > { %6928 = vmatpush.msrb.mxu1 %v9477_v10  ;;  %7084 = vmatpush.msrb.mxu2 %v9499_v6  ;;  %v6847_v10 = vld [vmem:[#allocation6 + $0x2] sm:$0xff] }
 0x486   : > { %6793 = vmatpush.msrb.mxu0 %v6592_v48  ;;  %7237 = vmatpush.msrb.mxu3 %v9524_v45 }
 0x487   : > { %v5777_v3 = vpop.f32.mrf.mxu2  ;;  %v5631_v7 = vpop.f32.mrf.mxu1  ;;  %9386 = vmatmul.msk.f32.gmra.mxu0 %vm719_vm2, %v12421_v26  ;;  %6929 = vmatpush.msrb.mxu1 %v9476_v2 }
 0x488   : > { %v12535_v53 = vadd.f32 %v5777_v3, %v5654_v34  ;;  %v12598_v1 = vpop.f32.mrf.mxu3  ;;  %6794 = vmatpush.msrb.mxu0 %v6591_v39  ;;  %v6270_v7 = vld [vmem:[#allocation5 + $0x1aa] sm:$0xff] }
 0x489   : > { %9448 = vmatmul.msk.f32.gmra.mxu3 %vm3717_vm3, %v6606_v24  ;;  %6930 = vmatpush.msrb.mxu1 %v9475_v33  ;;  %v9523_v24 = vld [vmem:[%s13662_s6 + $0x128] sm:$0xff] }
 0x48a   : > { %9406 = vmatmul.msk.f32.gmra.mxu1 %vm719_vm2, %v12423_v46  ;;  %6795 = vmatpush.msrb.mxu0 %v6590_v41  ;;  %v12677_v41 = vld [vmem:[#allocation6 + $0x59] sm:$0xff] }
 0x48b   : > { %6931 = vmatpush.msrb.mxu1 %v9474_v28  ;;  %7238 = vmatpush.msrb.mxu3 %v9523_v24 }
 0x48c   : > { %9426 = vmatmul.msk.f32.gmra.mxu2 %vm719_vm2, %v12447_v56  ;;  %v5485_v26 = vpop.f32.mrf.mxu0  ;;  %v6268_v56 = vld [vmem:[#allocation5 + $0x19a] sm:$0xff]  ;;  %6796 = vmatpush.msrb.mxu0 %v6589_v20 }
 0x48d   : > { %v5507_v12 = vadd.f32 %v5485_v26, %v12435_v5  ;;  %v9498_v5 = vld [vmem:[%s13662_s6 + $0xe0] sm:$0xff]  ;;  %6932 = vmatpush.msrb.mxu1 %v9473_v9 }
 0x48e   : > { %7085 = vmatpush.msrb.mxu2 %v9498_v5  ;;  %v9522_v9 = vld [vmem:[%s13662_s6 + $0x120] sm:$0xff] }
 0x48f   : > { %v5780_v58 = vpop.f32.mrf.mxu2  ;;  %v5634_v46 = vpop.f32.mrf.mxu1  ;;  %9387 = vmatmul.msk.f32.gmra.mxu0 %vm719_vm2, %v5970_v32  ;;  %6933 = vmatpush.msrb.mxu1 %v9472_v19 }
 0x490   : > { %v5656_v30 = vadd.f32 %v5634_v46, %v5507_v12  ;;  %7086 = vmatpush.msrb.mxu2 %v9497_v8  ;;  %v5911_v3 = vpop.f32.mrf.mxu3  ;;  %v7001_v58 = vld [vmem:[#allocation6 + $0x10] sm:$0xff]  ;;  %v7002_v12 = vld [vmem:[#allocation6 + $0x18] sm:$0xff]  ;;  %7239 = vmatpush.msrb.mxu3 %v9522_v9  ;;  %v12672_v8 = vld [vmem:[#allocation6 + $0x20] sm:$0xff] }
 0x491   : > { %6934 = vmatpush.msrb.mxu1 %v9471_v43  ;;  %9449 = vmatmul.msk.f32.gmra.mxu3 %vm3717_vm3, %v12677_v41  ;;  %v12733_v9 = vld [vmem:[#allocation6 + $0x32] sm:$0xff] }
 0x492   : > { %9407 = vmatmul.msk.f32.gmra.mxu1 %vm719_vm2, %v6119_v42  ;;  %7087 = vmatpush.msrb.mxu2 %v9496_v31  ;;  %v12652_v42 = vld [vmem:[%s13696_s5] ss:$0 sm:$0xff]  ;;  %s553_s5 = scalar_lea.vmem [#allocation8], %s552_s26 }
 0x493   : > { %6935 = vmatpush.msrb.mxu1 %v9470_v23  ;;  %v5945_v23 = vadd.f32 %v12556_v59, %v12477_v17  ;;  %s8690_s2 = sshll.u32 %s553_s5, 4  ;;  %s8691_s2 = int_to_ptr.vmem [resolvable:$true] %s8690_s2 }
 0x494   : > { %9427 = vmatmul.msk.f32.gmra.mxu2 %vm719_vm2, %v6268_v56  ;;  %v5488_v29 = vpop.f32.mrf.mxu0 }
 0x495   : > { %v5508_v16 = vadd.f32 %v5488_v29, %v12445_v4  ;;  %v6588_v4 = vld [vmem:[%s13662_s6] sm:$0xff]  ;;  %7088 = vmatpush.msrb.mxu2 %v9495_v11 }
 0x496   : > { %6797 = vmatpush.msrb.mxu0 %v6588_v4  ;;  %v9521_v4 = vld [vmem:[%s13662_s6 + $0x118] sm:$0xff] }
 0x497   : > { %v5783_v51 = vpop.f32.mrf.mxu2  ;;  %v5637_v36 = vpop.f32.mrf.mxu1  ;;  %9388 = vmatmul.msk.f32.gmra.mxu0 %vm719_vm2, %v5971_v0  ;;  %7089 = vmatpush.msrb.mxu2 %v9494_v25 }
 0x498   : > { %v12600_v13 = vadd.f32 %v5783_v51, %v5656_v30  ;;  %v5657_v63 = vadd.f32 %v5637_v36, %v5508_v16  ;;  %v12646_v32 = vpop.f32.mrf.mxu3  ;;  %v12667_v30 = vld [vmem:[#allocation6 + $0x12] sm:$0xff]  ;;  %v12687_v16 = vld [vmem:[#allocation6 + $0x28] sm:$0xff]  ;;  %7240 = vmatpush.msrb.mxu3 %v9521_v4 }
 0x49a   : > { %9408 = vmatmul.msk.f32.gmra.mxu1 %vm719_vm2, %v6120_v22 }
 0x49c   : > { %9428 = vmatmul.msk.f32.gmra.mxu2 %vm719_vm2, %v6269_v50  ;;  %v5491_v35 = vpop.f32.mrf.mxu0  ;;  %v12682_v50 = vld [vmem:[#allocation6 + $0x1a] sm:$0xff] }
 0x49d   : > { %v12701_v35 = vld [vmem:[#allocation6 + $0x22] sm:$0xff] }
 0x49f   : > { %v5786_v54 = vpop.f32.mrf.mxu2  ;;  %v5640_v52 = vpop.f32.mrf.mxu1  ;;  %9389 = vmatmul.msk.f32.gmra.mxu0 %vm719_vm2, %v5972_v57 }
 0x4a0   : > { %v12636_v34 = vadd.f32 %v5786_v54, %v5657_v63  ;;  %v12659_v6 = vpop.f32.mrf.mxu3  ;;  %v6537_v54 = vld [vmem:[#allocation3 + $0xf0] ss:$2 sm:$0xff]  ;;  %v12705_v52 = vld [vmem:[#allocation6 + $0x30] sm:$0xff] }
 0x4a2   : > { %9409 = vmatmul.msk.f32.gmra.mxu1 %vm719_vm2, %v6121_v62  ;;  %v6539_v62 = vld [vmem:[#allocation3 + $0xf1] ss:$2 sm:$0xff] }
 0x4a3   : > { %v6540_v3 = vmax.f32 %v6537_v54, %v6539_v62  ;;  %v12771_v54 = vld [vmem:[#allocation6 + $0x50] sm:$0xff] }
 0x4a4   : > { %9429 = vmatmul.msk.f32.gmra.mxu2 %vm719_vm2, %v6270_v7  ;;  %v6042_v37 = vpop.f32.mrf.mxu0 }
 0x4a7   : > { %v5789_v14 = vpop.f32.mrf.mxu2  ;;  %v6191_v26 = vpop.f32.mrf.mxu1  ;;  %9454 = vmatmul.msk.f32.vlgmr.msrb.gmra.mxu0 %vm3717_vm3, %v6572_v38 }
 0x4a8   : > { %v5920_v22 = vpop.f32.mrf.mxu3 }
 0x4a9   : > { %v12749_v22 = vld [vmem:[#allocation6 + $0x3a] sm:$0xff] }
 0x4aa   : > { %9478 = vmatmul.msk.f32.vlgmr.msrb.gmra.mxu1 %vm3717_vm3, %v6847_v10  ;;  %v5946_v10 = vadd.f32 %v12598_v1, %v12485_v47 }
 0x4ac   : > { %9502 = vmatmul.msk.f32.vlgmr.msrb.gmra.mxu2 %vm3717_vm3, %v7001_v58  ;;  %v6045_v46 = vpop.f32.mrf.mxu0 }
 0x4ad   : > { %v6091_v33 = vadd.f32 %v6045_v46, %v5942_v60  ;;  %v12713_v46 = vld [vmem:[#allocation6 + $0x2a] sm:$0xff] }
 0x4af   : > { %v6340_v2 = vpop.f32.mrf.mxu2  ;;  %v6194_v56 = vpop.f32.mrf.mxu1  ;;  %9455 = vmatmul.msk.f32.gmra.mxu0 %vm3717_vm3, %v6573_v61 }
 0x4b0   : > { %v6240_v28 = vadd.f32 %v6194_v56, %v6091_v33  ;;  %v12697_v63 = vpop.f32.mrf.mxu3  ;;  %v12721_v56 = vld [vmem:[#allocation6 + $0x38] sm:$0xff] }
 0x4b2   : > { %9479 = vmatmul.msk.f32.gmra.mxu1 %vm3717_vm3, %v6848_v44 }
 0x4b4   : > { %9503 = vmatmul.msk.f32.gmra.mxu2 %vm3717_vm3, %v7002_v12  ;;  %v6048_v48 = vpop.f32.mrf.mxu0 }
 0x4b5   : > { %v6092_v0 = vadd.f32 %v6048_v48, %v5943_v49 }
 0x4b7   : > { %v6343_v5 = vpop.f32.mrf.mxu2  ;;  %v6197_v39 = vpop.f32.mrf.mxu1  ;;  %9456 = vmatmul.msk.f32.gmra.mxu0 %vm3717_vm3, %v7001_v58 }
 0x4b8   : > { %v6389_v15 = vadd.f32 %v6343_v5, %v6240_v28  ;;  %v6241_v27 = vadd.f32 %v6197_v39, %v6092_v0  ;;  %v12719_v60 = vpop.f32.mrf.mxu3 }
 0x4ba   : > { %v6409_v29 = vadd.f32 %v12652_v42, %v6389_v15  ;;  %9480 = vmatmul.msk.f32.gmra.mxu1 %vm3717_vm3, %v12667_v30  ;;  %v12740_v15 = vld [vmem:[#allocation6 + $0x40] sm:$0xff] }
 0x4bc   : > { %v6425_v51 = vmax.f32 %v6409_v29, 0.0  ;;  %9504 = vmatmul.msk.f32.gmra.mxu2 %vm3717_vm3, %v12672_v8  ;;  %v6051_v18 = vpop.f32.mrf.mxu0 }
 0x4be   : > { %6441 = vst.msk [vmem:[#allocation3 + $0x108] sm:$0xff] %vm3717_vm3, %v6425_v51 }
 0x4bf   : > { %v6346_v36 = vpop.f32.mrf.mxu2  ;;  %v6200_v31 = vpop.f32.mrf.mxu1  ;;  %9457 = vmatmul.msk.f32.gmra.mxu0 %vm3717_vm3, %v7002_v12  ;;  %v9520_v12 = vld [vmem:[%s13662_s6 + $0x110] sm:$0xff] }
 0x4c0   : > { %v6390_v19 = vadd.f32 %v6346_v36, %v6241_v27  ;;  %7241 = vmatpush.msrb.mxu3 %v9520_v12  ;;  %v5929_v29 = vpop.f32.mrf.mxu3  ;;  %v5948_v27 = vadd.f32 %v12646_v32, %v12498_v55  ;;  %v9519_v32 = vld [vmem:[%s13662_s6 + $0x108] sm:$0xff] }
 0x4c2   : > { %v6410_v20 = vadd.f32 %v12652_v42, %v6390_v19  ;;  %9481 = vmatmul.msk.f32.gmra.mxu1 %vm3717_vm3, %v12682_v50  ;;  %v12753_v19 = vld [vmem:[#allocation6 + $0x48] sm:$0xff]  ;;  %7242 = vmatpush.msrb.mxu3 %v9519_v32 }
 0x4c4   : > { %v6426_v43 = vmax.f32 %v6410_v20, 0.0  ;;  %9505 = vmatmul.msk.f32.gmra.mxu2 %vm3717_vm3, %v12687_v16  ;;  %v6054_v11 = vpop.f32.mrf.mxu0 }
 0x4c5   : > { %v6094_v57 = vadd.f32 %v6054_v11, %v5945_v23  ;;  %v5949_v11 = vadd.f32 %v12659_v6, %v12508_v40  ;;  %v12766_v23 = vld [vmem:[#allocation6 + $0x42] sm:$0xff] }
 0x4c6   : > { %6442 = vst.msk [vmem:[#allocation3 + $0x110] sm:$0xff] %vm3717_vm3, %v6426_v43 }
 0x4c7   : > { %v6349_v45 = vpop.f32.mrf.mxu2  ;;  %v6203_v25 = vpop.f32.mrf.mxu1  ;;  %9458 = vmatmul.msk.f32.gmra.mxu0 %vm3717_vm3, %v12672_v8 }
 0x4c8   : > { %v6243_v37 = vadd.f32 %v6203_v25, %v6094_v57  ;;  %v12757_v43 = vpop.f32.mrf.mxu3 }
 0x4ca   : > { %9482 = vmatmul.msk.f32.gmra.mxu1 %vm3717_vm3, %v12701_v35 }
 0x4cc   : > { %9506 = vmatmul.msk.f32.gmra.mxu2 %vm3717_vm3, %v12705_v52  ;;  %v6057_v38 = vpop.f32.mrf.mxu0 }
 0x4cd   : > { %v6542_v17 = vld [vmem:[#allocation3 + $0x108] ss:$2 sm:$0xff]  ;;  %v6544_v59 = vld [vmem:[#allocation3 + $0x109] ss:$2 sm:$0xff]  ;;  %v6095_v2 = vadd.f32 %v6057_v38, %v5946_v10 }
 0x4ce   : > { %v6545_v7 = vmax.f32 %v6542_v17, %v6544_v59  ;;  %v12776_v59 = vld [vmem:[#allocation6 + $0x69] sm:$0xff]  ;;  %v12789_v10 = vld [vmem:[#allocation6 + $0x58] sm:$0xff] }
 0x4cf   : > { %v6352_v14 = vpop.f32.mrf.mxu2  ;;  %v6206_v58 = vpop.f32.mrf.mxu1  ;;  %9459 = vmatmul.msk.f32.gmra.mxu0 %vm3717_vm3, %v12687_v16  ;;  %v12784_v38 = vld [vmem:[#allocation6 + $0x4a] sm:$0xff] }
 0x4d0   : > { %v6546_v24 = vmax.f32 %v6540_v3, %v6545_v7  ;;  %v6392_v26 = vadd.f32 %v6352_v14, %v6243_v37  ;;  %v6244_v1 = vadd.f32 %v6206_v58, %v6095_v2  ;;  %v12780_v37 = vpop.f32.mrf.mxu3  ;;  %v9518_v58 = vld [vmem:[%s13662_s6 + $0x100] sm:$0xff]  ;;  %v5951_v2 = vadd.f32 %v12697_v63, %v12525_v21 }
 0x4d1   : > { %7243 = vmatpush.msrb.mxu3 %v9518_v58 }
 0x4d2   : > { %6547 = vst.msk [vmem:[#allocation6 + $0x61] sm:$0xff] %vm3717_vm3, %v6546_v24  ;;  %v6412_v61 = vadd.f32 %v12652_v42, %v6392_v26  ;;  %9483 = vmatmul.msk.f32.gmra.mxu1 %vm3717_vm3, %v12713_v46 }
 0x4d4   : > { %v6428_v47 = vmax.f32 %v6412_v61, 0.0  ;;  %9507 = vmatmul.msk.f32.gmra.mxu2 %vm3717_vm3, %v12721_v56  ;;  %v6060_v44 = vpop.f32.mrf.mxu0 }
 0x4d6   : > { %6444 = vst.msk [vmem:[#allocation3 + $0x120] sm:$0xff] %vm3717_vm3, %v6428_v47 }
 0x4d7   : > { %v6355_v33 = vpop.f32.mrf.mxu2  ;;  %v6209_v48 = vpop.f32.mrf.mxu1  ;;  %9460 = vmatmul.msk.f32.gmra.mxu0 %vm3717_vm3, %v12705_v52 }
 0x4d8   : > { %v6393_v28 = vadd.f32 %v6355_v33, %v6244_v1  ;;  %v12801_v1 = vld [vmem:[#allocation6 + $0x52] sm:$0xff]  ;;  %v5938_v33 = vpop.f32.mrf.mxu3 }
 0x4d9   : > { %v12729_v5 = vld [vmem:[#allocation6 + $0x61] sm:$0xff]  ;;  %v5954_v33 = vadd.f32 %v12757_v43, %v12600_v13 }
 0x4da   : > { %v6413_v49 = vadd.f32 %v12652_v42, %v6393_v28  ;;  %9450 = vmatmul.msk.f32.gmra.mxu3 %vm3717_vm3, %v12729_v5  ;;  %9484 = vmatmul.msk.f32.gmra.mxu1 %vm3717_vm3, %v12733_v9  ;;  %v12805_v48 = vld [vmem:[#allocation6 + $0x60] sm:$0xff]  ;;  %v9547_v13 = vld [vmem:[%s13662_s6 + $0x168] sm:$0xff] }
 0x4dc   : > { %v6429_v39 = vmax.f32 %v6413_v49, 0.0  ;;  %9508 = vmatmul.msk.f32.gmra.mxu2 %vm3717_vm3, %v12740_v15  ;;  %v6063_v0 = vpop.f32.mrf.mxu0 }
 0x4dd   : > { %v6097_v36 = vadd.f32 %v6063_v0, %v5948_v27  ;;  %v9549_v27 = vld [vmem:[%s13662_s6 + $0x178] sm:$0xff] }
 0x4de   : > { %6445 = vst.msk [vmem:[#allocation3 + $0x128] sm:$0xff] %vm3717_vm3, %v6429_v39  ;;  %7390 = vmatpush.msra.mxu0 %v9549_v27  ;;  %v9572_v27 = vld [vmem:[%s13662_s6 + $0x1b0] sm:$0xff] }
 0x4df   : > { %v6358_v51 = vpop.f32.mrf.mxu2  ;;  %v6212_v18 = vpop.f32.mrf.mxu1  ;;  %9461 = vmatmul.msk.f32.gmra.mxu0 %vm3717_vm3, %v12721_v56 }
 0x4e0   : > { %v6246_v31 = vadd.f32 %v6212_v18, %v6097_v36  ;;  %v9597_v51 = vld [vmem:[%s13662_s6 + $0x1f8] sm:$0xff] }
 0x4e1   : > { %v9621_v18 = vld [vmem:[%s13662_s6 + $0x238] sm:$0xff]  ;;  %7698 = vmatpush.msra.mxu2 %v9597_v51 }
 0x4e2   : > { %9485 = vmatmul.msk.f32.gmra.mxu1 %vm3717_vm3, %v12749_v22  ;;  %9451 = vmatmul.msk.f32.gmra.mxu3 %vm3717_vm3, %v12776_v59 }
 0x4e3   : > { %7852 = vmatpush.msra.mxu3 %v9621_v18 }
 0x4e4   : > { %9509 = vmatmul.msk.f32.gmra.mxu2 %vm3717_vm3, %v12753_v19  ;;  %v6066_v20 = vpop.f32.mrf.mxu0 }
 0x4e5   : > { %v6098_v57 = vadd.f32 %v6066_v20, %v5949_v11  ;;  %v6549_v12 = vld [vmem:[#allocation3 + $0x120] ss:$2 sm:$0xff]  ;;  %v6551_v28 = vld [vmem:[#allocation3 + $0x121] ss:$2 sm:$0xff]  ;;  %v5952_v20 = vadd.f32 %v12719_v60, %v12535_v53  ;;  %v12835_v60 = vpop.f32.mrf.mxu3 }
 0x4e6   : > { %v6552_v63 = vmax.f32 %v6549_v12, %v6551_v28 }
 0x4e7   : > { %v6361_v55 = vpop.f32.mrf.mxu2  ;;  %v6215_v4 = vpop.f32.mrf.mxu1  ;;  %9462 = vmatmul.msk.f32.gmra.mxu0 %vm3717_vm3, %v12740_v15 }
 0x4e8   : > { %v6395_v45 = vadd.f32 %v6361_v55, %v6246_v31  ;;  %v6247_v40 = vadd.f32 %v6215_v4, %v6098_v57  ;;  %v9573_v31 = vld [vmem:[%s13662_s6 + $0x1b8] sm:$0xff]  ;;  %v12831_v57 = vld [vmem:[#allocation6 + $0x68] sm:$0xff] }
 0x4e9   : > { %7544 = vmatpush.msra.mxu1 %v9573_v31 }
 0x4ea   : > { %v6415_v25 = vadd.f32 %v12652_v42, %v6395_v45  ;;  %9486 = vmatmul.msk.f32.gmra.mxu1 %vm3717_vm3, %v12766_v23  ;;  %v12825_v45 = vld [vmem:[#allocation6 + $0x5a] sm:$0xff] }
 0x4eb   : > { %7545 = vmatpush.msra.mxu1 %v9572_v27 }
 0x4ec   : > { %v6431_v62 = vmax.f32 %v6415_v25, 0.0  ;;  %9510 = vmatmul.msk.f32.gmra.mxu2 %vm3717_vm3, %v12771_v54  ;;  %v6069_v6 = vpop.f32.mrf.mxu0 }
 0x4ee   : > { %6447 = vst.msk [vmem:[#allocation3 + $0x138] sm:$0xff] %vm3717_vm3, %v6431_v62 }
 0x4ef   : > { %v6364_v17 = vpop.f32.mrf.mxu2  ;;  %v6218_v7 = vpop.f32.mrf.mxu1  ;;  %9463 = vmatmul.msk.f32.gmra.mxu0 %vm3717_vm3, %v12753_v19 }
 0x4f0   : > { %v6396_v3 = vadd.f32 %v6364_v17, %v6247_v40 }
 0x4f2   : > { %v6416_v14 = vadd.f32 %v12652_v42, %v6396_v3  ;;  %9487 = vmatmul.msk.f32.gmra.mxu1 %vm3717_vm3, %v12784_v38 }
 0x4f4   : > { %v6432_v24 = vmax.f32 %v6416_v14, 0.0  ;;  %9511 = vmatmul.msk.f32.gmra.mxu2 %vm3717_vm3, %v12789_v10  ;;  %v6072_v26 = vpop.f32.mrf.mxu0  ;;  %v12842_v14 = vld [vmem:[#allocation6 + $0x62] sm:$0xff] }
 0x4f5   : > { %v6100_v44 = vadd.f32 %v6072_v26, %v5951_v2  ;;  %v6689_v2 = vpop.f32.mrf.mxu3 }
 0x4f6   : > { %6448 = vst.msk [vmem:[#allocation3 + $0x140] sm:$0xff] %vm3717_vm3, %v6432_v24 }
 0x4f7   : > { %v6367_v61 = vpop.f32.mrf.mxu2  ;;  %v6221_v47 = vpop.f32.mrf.mxu1  ;;  %9464 = vmatmul.msk.f32.gmra.mxu0 %vm3717_vm3, %v12771_v54 }
 0x4f8   : > { %v6249_v29 = vadd.f32 %v6221_v47, %v6100_v44  ;;  %v12854_v44 = vld [vmem:[#allocation6 + $0x79] sm:$0xff] }
 0x4fa   : > { %9488 = vmatmul.msk.f32.gmra.mxu1 %vm3717_vm3, %v12801_v1 }
 0x4fc   : > { %9512 = vmatmul.msk.f32.gmra.mxu2 %vm3717_vm3, %v12805_v48  ;;  %v6075_v0 = vpop.f32.mrf.mxu0 }
 0x4fd   : > { %v6554_v49 = vld [vmem:[#allocation3 + $0x138] ss:$2 sm:$0xff]  ;;  %v6556_v21 = vld [vmem:[#allocation3 + $0x139] ss:$2 sm:$0xff]  ;;  %v6101_v25 = vadd.f32 %v6075_v0, %v5952_v20 }
 0x4fe   : > { %v6557_v39 = vmax.f32 %v6554_v49, %v6556_v21  ;;  %v9548_v21 = vld [vmem:[%s13662_s6 + $0x170] sm:$0xff] }
 0x4ff   : > { %v6370_v36 = vpop.f32.mrf.mxu2  ;;  %v6224_v11 = vpop.f32.mrf.mxu1  ;;  %9465 = vmatmul.msk.f32.gmra.mxu0 %vm3717_vm3, %v12789_v10 }
 0x500   : > { %v6558_v55 = vmax.f32 %v6552_v63, %v6557_v39  ;;  %v6398_v32 = vadd.f32 %v6370_v36, %v6249_v29  ;;  %v6250_v62 = vadd.f32 %v6224_v11, %v6101_v25  ;;  %7391 = vmatpush.msra.mxu0 %v9548_v21  ;;  %v9546_v63 = vld [vmem:[%s13662_s6 + $0x160] sm:$0xff]  ;;  %v9596_v39 = vld [vmem:[%s13662_s6 + $0x1f0] sm:$0xff]  ;;  %v5955_v36 = vadd.f32 %v12780_v37, %v12636_v34  ;;  %v9595_v11 = vld [vmem:[%s13662_s6 + $0x1e8] sm:$0xff] }
 0x501   : > { %v9620_v29 = vld [vmem:[%s13662_s6 + $0x230] sm:$0xff]  ;;  %7699 = vmatpush.msra.mxu2 %v9596_v39  ;;  %v9570_v37 = vld [vmem:[%s13662_s6 + $0x1a0] sm:$0xff] }
 0x502   : > { %6559 = vst.msk [vmem:[#allocation6 + $0x71] sm:$0xff] %vm3717_vm3, %v6558_v55  ;;  %v6418_v4 = vadd.f32 %v12652_v42, %v6398_v32  ;;  %9489 = vmatmul.msk.f32.gmra.mxu1 %vm3717_vm3, %v12825_v45  ;;  %7392 = vmatpush.msra.mxu0 %v9547_v13  ;;  %v9545_v55 = vld [vmem:[%s13662_s6 + $0x158] sm:$0xff]  ;;  %v9571_v32 = vld [vmem:[%s13662_s6 + $0x1a8] sm:$0xff] }
 0x503   : > { %7853 = vmatpush.msra.mxu3 %v9620_v29  ;;  %v7155_v25 = vld [vmem:[#allocation6 + $0x11] sm:$0xff]  ;;  %7546 = vmatpush.msra.mxu1 %v9571_v32  ;;  %v9567_v13 = vld [vmem:[%s13662_s6 + $0x188] sm:$0xff]  ;;  %v9566_v29 = vld [vmem:[%s13662_s6 + $0x180] sm:$0xff] }
 0x504   : > { %v6434_v53 = vmax.f32 %v6418_v4, 0.0  ;;  %9513 = vmatmul.msk.f32.gmra.mxu2 %vm3717_vm3, %v12831_v57  ;;  %v6078_v40 = vpop.f32.mrf.mxu0  ;;  %7393 = vmatpush.msra.mxu0 %v9546_v63  ;;  %v12899_v4 = vpop.f32.mrf.mxu3  ;;  %v9594_v63 = vld [vmem:[%s13662_s6 + $0x1e0] sm:$0xff] }
 0x505   : > { %v9544_v40 = vld [vmem:[%s13662_s6 + $0x150] sm:$0xff]  ;;  %7700 = vmatpush.msra.mxu2 %v9595_v11  ;;  %7547 = vmatpush.msra.mxu1 %v9570_v37  ;;  %v9590_v32 = vld [vmem:[%s13662_s6 + $0x1c0] sm:$0xff] }
 0x506   : > { %6450 = vst.msk [vmem:[#allocation3 + $0x150] sm:$0xff] %vm3717_vm3, %v6434_v53  ;;  %7394 = vmatpush.msra.mxu0 %v9545_v55  ;;  %v7157_v55 = vld [vmem:[#allocation6 + $0x21] sm:$0xff] }
 0x507   : > { %v6373_v6 = vpop.f32.mrf.mxu2  ;;  %v6227_v3 = vpop.f32.mrf.mxu1  ;;  %9466 = vmatmul.msk.f32.gmra.mxu0 %vm3717_vm3, %v12805_v48  ;;  %7701 = vmatpush.msra.mxu2 %v9594_v63  ;;  %v9618_v37 = vld [vmem:[%s13662_s6 + $0x220] sm:$0xff] }
 0x508   : > { %v6399_v17 = vadd.f32 %v6373_v6, %v6250_v62  ;;  %v9619_v6 = vld [vmem:[%s13662_s6 + $0x228] sm:$0xff]  ;;  %7395 = vmatpush.msra.mxu0 %v9544_v40 }
 0x509   : > { %v12838_v7 = vld [vmem:[#allocation6 + $0x71] sm:$0xff]  ;;  %7854 = vmatpush.msra.mxu3 %v9619_v6 }
 0x50a   : > { %v6419_v24 = vadd.f32 %v12652_v42, %v6399_v17  ;;  %9452 = vmatmul.msk.f32.gmra.mxu3 %vm3717_vm3, %v12838_v7  ;;  %9490 = vmatmul.msk.f32.gmra.mxu1 %vm3717_vm3, %v12842_v14  ;;  %v12849_v26 = vld [vmem:[#allocation6 + $0x70] sm:$0xff]  ;;  %v12872_v43 = vld [vmem:[#allocation6 + $0x78] sm:$0xff] }
 0x50b   : > { %v12860_v28 = vld [vmem:[#allocation6 + $0x6a] sm:$0xff]  ;;  %v12903_v34 = vld [vmem:[#allocation6 + $0x72] sm:$0xff]  ;;  %7855 = vmatpush.msra.mxu3 %v9618_v37 }
 0x50c   : > { %v6435_v58 = vmax.f32 %v6419_v24, 0.0  ;;  %9514 = vmatmul.msk.f32.gmra.mxu2 %vm3717_vm3, %v12849_v26  ;;  %v6081_v61 = vpop.f32.mrf.mxu0  ;;  %v9569_v17 = vld [vmem:[%s13662_s6 + $0x198] sm:$0xff]  ;;  %v9543_v24 = vld [vmem:[%s13662_s6 + $0x148] sm:$0xff] }
 0x50d   : > { %v6103_v49 = vadd.f32 %v6081_v61, %v5954_v33  ;;  %7548 = vmatpush.msra.mxu1 %v9569_v17  ;;  %v7156_v33 = vld [vmem:[#allocation6 + $0x19] sm:$0xff]  ;;  %7396 = vmatpush.msra.mxu0 %v9543_v24  ;;  %v7162_v37 = vld [vmem:[#allocation6 + $0x49] sm:$0xff] }
 0x50e   : > { %6451 = vst.msk [vmem:[#allocation3 + $0x158] sm:$0xff] %vm3717_vm3, %v6435_v58  ;;  %v9568_v58 = vld [vmem:[%s13662_s6 + $0x190] sm:$0xff] }
 0x50f   : > { %v6376_v47 = vpop.f32.mrf.mxu2  ;;  %v6230_v12 = vpop.f32.mrf.mxu1  ;;  %9467 = vmatmul.msk.f32.gmra.mxu0 %vm3717_vm3, %v12831_v57  ;;  %7549 = vmatpush.msra.mxu1 %v9568_v58 }
 0x510   : > { %v6252_v0 = vadd.f32 %v6230_v12, %v6103_v49  ;;  %v9542_v12 = vld [vmem:[%s13662_s6 + $0x140] sm:$0xff] }
 0x511   : > { %7397 = vmatpush.msra.mxu0 %v9542_v12  ;;  %7550 = vmatpush.msra.mxu1 %v9567_v13 }
 0x512   : > { %9453 = vmatmul.msk.f32.gmra.mxu3 %vm3717_vm3, %v12854_v44  ;;  %9491 = vmatmul.msk.f32.gmra.mxu1 %vm3717_vm3, %v12860_v28 }
 0x513   : > { %7551 = vmatpush.msra.mxu1 %v9566_v29  ;;  %v7160_v29 = vld [vmem:[#allocation6 + $0x39] sm:$0xff] }
 0x514   : > { %9515 = vmatmul.msk.f32.gmra.mxu2 %vm3717_vm3, %v12872_v43  ;;  %v6084_v51 = vpop.f32.mrf.mxu0 }
 0x515   : > { %v6104_v62 = vadd.f32 %v6084_v51, %v5955_v36  ;;  %v9593_v51 = vld [vmem:[%s13662_s6 + $0x1d8] sm:$0xff] }
 0x516   : > { %7702 = vmatpush.msra.mxu2 %v9593_v51  ;;  %v6561_v11 = vld [vmem:[#allocation3 + $0x150] ss:$2 sm:$0xff] }
 0x517   : > { %v6379_v18 = vpop.f32.mrf.mxu2  ;;  %v6233_v20 = vpop.f32.mrf.mxu1  ;;  %9468 = vmatmul.msk.f32.gmra.mxu0 %vm3717_vm3, %v12849_v26 }
 0x518   : > { %v6401_v31 = vadd.f32 %v6379_v18, %v6252_v0  ;;  %v6253_v61 = vadd.f32 %v6233_v20, %v6104_v62  ;;  %v6695_v0 = vpop.f32.mrf.mxu3  ;;  %v9592_v18 = vld [vmem:[%s13662_s6 + $0x1d0] sm:$0xff]  ;;  %v9591_v20 = vld [vmem:[%s13662_s6 + $0x1c8] sm:$0xff] }
 0x519   : > { %7703 = vmatpush.msra.mxu2 %v9592_v18 }
 0x51a   : > { %v6421_v53 = vadd.f32 %v12652_v42, %v6401_v31  ;;  %9526 = vmatmul.msk.f32.vlgmr.msrb.gmra.mxu3 %vm3717_vm3, %v7155_v25  ;;  %9492 = vmatmul.msk.f32.gmra.mxu1 %vm3717_vm3, %v12903_v34  ;;  %v6563_v25 = vld [vmem:[#allocation3 + $0x151] ss:$2 sm:$0xff] }
 0x51b   : > { %7704 = vmatpush.msra.mxu2 %v9591_v20  ;;  %v7161_v20 = vld [vmem:[#allocation6 + $0x41] sm:$0xff] }
 0x51c   : > { %v6437_v3 = vmax.f32 %v6421_v53, 0.0  ;;  %v6087_v2 = vpop.f32.mrf.mxu0 }
 0x51d   : > { %7705 = vmatpush.msra.mxu2 %v9590_v32 }
 0x51e   : > { %6453 = vst.msk [vmem:[#allocation3 + $0x168] sm:$0xff] %vm3717_vm3, %v6437_v3  ;;  %v7158_v3 = vld [vmem:[#allocation6 + $0x29] sm:$0xff] }
 0x51f   : > { %v6382_v47 = vpop.f32.mrf.mxu2  ;;  %v6236_v21 = vpop.f32.mrf.mxu1  ;;  %9469 = vmatmul.msk.f32.gmra.mxu0 %vm3717_vm3, %v12872_v43 }
 0x520   : > { %v6402_v49 = vadd.f32 %v6382_v47, %v6253_v61  ;;  %v12967_v53 = vpop.f32.mrf.mxu3  ;;  %v9617_v21 = vld [vmem:[%s13662_s6 + $0x218] sm:$0xff] }
 0x521   : > { %7856 = vmatpush.msra.mxu3 %v9617_v21 }
 0x522   : > { %v6422_v39 = vadd.f32 %v12652_v42, %v6402_v49  ;;  %9527 = vmatmul.msk.f32.gmra.mxu3 %vm3717_vm3, %v7156_v33 }
 0x524   : > { %v6438_v27 = vmax.f32 %v6422_v39, 0.0  ;;  %v12951_v42 = vpop.f32.mrf.mxu0 }
 0x526   : > { %6454 = vst.msk [vmem:[#allocation3 + $0x170] sm:$0xff] %vm3717_vm3, %v6438_v27 }
 0x527   : > { %v6385_v36 = vpop.f32.mrf.mxu2  ;;  %v12953_v31 = vpop.f32.mrf.mxu1  ;;  %9550 = vmatmul.msk.f32.vlgmr.msra.gmra.mxu0 %vm3717_vm3, %v12667_v30  ;;  %v6564_v30 = vmax.f32 %v6561_v11, %v6563_v25 }
 0x528   : > { %v6701_v47 = vpop.f32.mrf.mxu3 }
 0x52a   : > { %9528 = vmatmul.msk.f32.gmra.mxu3 %vm3717_vm3, %v7157_v55 }
 0x52c   : > { %v6802_v17 = vpop.f32.mrf.mxu0 }
 0x52d   : > { %v6566_v62 = vld [vmem:[#allocation3 + $0x168] ss:$2 sm:$0xff]  ;;  %v6568_v40 = vld [vmem:[#allocation3 + $0x169] ss:$2 sm:$0xff] }
 0x52e   : > { %v6569_v6 = vmax.f32 %v6566_v62, %v6568_v40 }
 0x52f   : > { %v6940_v58 = vpop.f32.mrf.mxu1  ;;  %9551 = vmatmul.msk.f32.gmra.mxu0 %vm3717_vm3, %v12682_v50  ;;  %v12973_v61 = vpop.f32.mrf.mxu2  ;;  %v7159_v50 = vld [vmem:[#allocation6 + $0x31] sm:$0xff] }
 0x530   : > { %v6570_v24 = vmax.f32 %v6564_v30, %v6569_v6  ;;  %v12993_v0 = vpop.f32.mrf.mxu3  ;;  %v7163_v30 = vld [vmem:[#allocation6 + $0x51] sm:$0xff]  ;;  %v9615_v6 = vld [vmem:[%s13662_s6 + $0x208] sm:$0xff] }
 0x532   : > { %6571 = vst.msk [vmem:[#allocation6 + $0x81] sm:$0xff] %vm3717_vm3, %v6570_v24  ;;  %9529 = vmatmul.msk.f32.gmra.mxu3 %vm3717_vm3, %v7158_v3 }
 0x534   : > { %v12975_v2 = vpop.f32.mrf.mxu0 }
 0x537   : > { %v12977_v33 = vpop.f32.mrf.mxu1  ;;  %9552 = vmatmul.msk.f32.gmra.mxu0 %vm3717_vm3, %v12701_v35  ;;  %v7094_v13 = vpop.f32.mrf.mxu2 }
 0x538   : > { %v6707_v32 = vpop.f32.mrf.mxu3 }
 0x539   : > { %v12979_v12 = vld [vmem:[#allocation6 + $0x7a] sm:$0xff]  ;;  %v12995_v51 = vld [vmem:[#allocation6 + $0x88] sm:$0xff] }
 0x53a   : > { %v12981_v49 = vld [vmem:[#allocation6 + $0x80] sm:$0xff]  ;;  %9493 = vmatmul.msk.f32.gmra.mxu1 %vm3717_vm3, %v12979_v12  ;;  %9530 = vmatmul.msk.f32.gmra.mxu3 %vm3717_vm3, %v7159_v50 }
 0x53b   : > { %9516 = vmatmul.msk.f32.gmra.mxu2 %vm3717_vm3, %v12981_v49 }
 0x53c   : > { %v6808_v63 = vpop.f32.mrf.mxu0 }
 0x53f   : > { %v6946_v39 = vpop.f32.mrf.mxu1  ;;  %9553 = vmatmul.msk.f32.gmra.mxu0 %vm3717_vm3, %v12713_v46  ;;  %v13006_v18 = vpop.f32.mrf.mxu2 }
 0x542   : > { %9574 = vmatmul.msk.f32.vlgmr.msra.gmra.mxu1 %vm3717_vm3, %v12672_v8  ;;  %9531 = vmatmul.msk.f32.gmra.mxu3 %vm3717_vm3, %v7160_v29  ;;  %v9616_v8 = vld [vmem:[%s13662_s6 + $0x210] sm:$0xff] }
 0x543   : > { %9517 = vmatmul.msk.f32.gmra.mxu2 %vm3717_vm3, %v12995_v51  ;;  %7857 = vmatpush.msra.mxu3 %v9616_v8 }
 0x544   : > { %v13004_v27 = vpop.f32.mrf.mxu0 }
 0x545   : > { %7858 = vmatpush.msra.mxu3 %v9615_v6 }
 0x547   : > { %v13008_v36 = vpop.f32.mrf.mxu1  ;;  %9554 = vmatmul.msk.f32.gmra.mxu0 %vm3717_vm3, %v12733_v9  ;;  %v7100_v62 = vpop.f32.mrf.mxu2 }
 0x548   : > { %v7169_v62 = vld [vmem:[#allocation6 + $0x81] sm:$0xff] }
 0x54a   : > { %9575 = vmatmul.msk.f32.gmra.mxu1 %vm3717_vm3, %v12687_v16  ;;  %9532 = vmatmul.msk.f32.gmra.mxu3 %vm3717_vm3, %v7161_v20  ;;  %v13025_v16 = vpop.f32.mrf.mxu3 }
 0x54b   : > { %9598 = vmatmul.msk.f32.vlgmr.msra.gmra.mxu2 %vm3717_vm3, %v7157_v55 }
 0x54c   : > { %v6814_v11 = vpop.f32.mrf.mxu0 }
 0x54f   : > { %v6952_v25 = vpop.f32.mrf.mxu1  ;;  %9555 = vmatmul.msk.f32.gmra.mxu0 %vm3717_vm3, %v12749_v22 }
 0x552   : > { %9576 = vmatmul.msk.f32.gmra.mxu1 %vm3717_vm3, %v12705_v52  ;;  %9533 = vmatmul.msk.f32.gmra.mxu3 %vm3717_vm3, %v7162_v37  ;;  %v13036_v52 = vpop.f32.mrf.mxu2 }
 0x553   : > { %9599 = vmatmul.msk.f32.gmra.mxu2 %vm3717_vm3, %v7158_v3  ;;  %v6713_v3 = vpop.f32.mrf.mxu3 }
 0x554   : > { %v13027_v55 = vpop.f32.mrf.mxu0 }
 0x557   : > { %v13029_v40 = vpop.f32.mrf.mxu1  ;;  %9556 = vmatmul.msk.f32.gmra.mxu0 %vm3717_vm3, %v12766_v23 }
 0x55a   : > { %9577 = vmatmul.msk.f32.gmra.mxu1 %vm3717_vm3, %v12721_v56  ;;  %9534 = vmatmul.msk.f32.gmra.mxu3 %vm3717_vm3, %v7163_v30  ;;  %v7106_v56 = vpop.f32.mrf.mxu2 }
 0x55b   : > { %9600 = vmatmul.msk.f32.gmra.mxu2 %vm3717_vm3, %v7159_v50  ;;  %v13053_v50 = vpop.f32.mrf.mxu3 }
 0x55c   : > { %v6820_v17 = vpop.f32.mrf.mxu0 }
 0x55d   : > { %v7170_v17 = vld [vmem:[#allocation6 + $0x89] sm:$0xff] }
 0x55f   : > { %v6958_v24 = vpop.f32.mrf.mxu1  ;;  %9557 = vmatmul.msk.f32.gmra.mxu0 %vm3717_vm3, %v12784_v38 }
 0x562   : > { %9578 = vmatmul.msk.f32.gmra.mxu1 %vm3717_vm3, %v12740_v15  ;;  %9535 = vmatmul.msk.f32.gmra.mxu3 %vm3717_vm3, %v12677_v41  ;;  %v9614_v15 = vld [vmem:[%s13662_s6 + $0x200] sm:$0xff]  ;;  %v13065_v13 = vpop.f32.mrf.mxu2 }
 0x563   : > { %9601 = vmatmul.msk.f32.gmra.mxu2 %vm3717_vm3, %v7160_v29  ;;  %7859 = vmatpush.msra.mxu3 %v9614_v15  ;;  %v6719_v39 = vpop.f32.mrf.mxu3  ;;  %v7323_v15 = vld [vmem:[#allocation6 + $0x82] sm:$0xff] }
 0x564   : > { %v13049_v58 = vpop.f32.mrf.mxu0 }
 0x567   : > { %v13051_v47 = vpop.f32.mrf.mxu1  ;;  %9558 = vmatmul.msk.f32.gmra.mxu0 %vm3717_vm3, %v12801_v1 }
 0x56a   : > { %9579 = vmatmul.msk.f32.gmra.mxu1 %vm3717_vm3, %v12753_v19  ;;  %9536 = vmatmul.msk.f32.gmra.mxu3 %vm3717_vm3, %v12729_v5 }
 0x56b   : > { %9602 = vmatmul.msk.f32.gmra.mxu2 %vm3717_vm3, %v7161_v20  ;;  %v7112_v20 = vpop.f32.mrf.mxu2  ;;  %v13083_v32 = vpop.f32.mrf.mxu3 }
 0x56c   : > { %v6826_v21 = vpop.f32.mrf.mxu0  ;;  %v7478_v20 = vld [vmem:[#allocation6 + $0x98] sm:$0xff] }
 0x56f   : > { %v6964_v63 = vpop.f32.mrf.mxu1  ;;  %9559 = vmatmul.msk.f32.gmra.mxu0 %vm3717_vm3, %v12825_v45 }
 0x570   : > { %v7324_v63 = vld [vmem:[#allocation6 + $0x8a] sm:$0xff] }
 0x572   : > { %9580 = vmatmul.msk.f32.gmra.mxu1 %vm3717_vm3, %v12771_v54  ;;  %9537 = vmatmul.msk.f32.gmra.mxu3 %vm3717_vm3, %v12776_v59 }
 0x573   : > { %9603 = vmatmul.msk.f32.gmra.mxu2 %vm3717_vm3, %v7162_v37  ;;  %v13093_v11 = vpop.f32.mrf.mxu2 }
 0x574   : > { %v13074_v19 = vpop.f32.mrf.mxu0 }
 0x577   : > { %v13076_v29 = vpop.f32.mrf.mxu1  ;;  %9560 = vmatmul.msk.f32.gmra.mxu0 %vm3717_vm3, %v12842_v14 }
 0x57a   : > { %9581 = vmatmul.msk.f32.gmra.mxu1 %vm3717_vm3, %v12789_v10  ;;  %9538 = vmatmul.msk.f32.gmra.mxu3 %vm3717_vm3, %v12838_v7  ;;  %v6725_v10 = vpop.f32.mrf.mxu3 }
 0x57b   : > { %9604 = vmatmul.msk.f32.gmra.mxu2 %vm3717_vm3, %v7163_v30 }
 0x57c   : > { %v6832_v54 = vpop.f32.mrf.mxu0 }
 0x57d   : > { %v7631_v54 = vld [vmem:[#allocation6 + $0x91] sm:$0xff] }
 0x57f   : > { %v6970_v8 = vpop.f32.mrf.mxu1  ;;  %9561 = vmatmul.msk.f32.gmra.mxu0 %vm3717_vm3, %v12860_v28 }
 0x582   : > { %9582 = vmatmul.msk.f32.gmra.mxu1 %vm3717_vm3, %v12805_v48  ;;  %9539 = vmatmul.msk.f32.gmra.mxu3 %vm3717_vm3, %v12854_v44 }
 0x583   : > { %9605 = vmatmul.msk.f32.gmra.mxu2 %vm3717_vm3, %v12677_v41  ;;  %v7118_v41 = vpop.f32.mrf.mxu2 }
 0x584   : > { %v13097_v25 = vpop.f32.mrf.mxu0 }
 0x587   : > { %v13099_v37 = vpop.f32.mrf.mxu1  ;;  %9562 = vmatmul.msk.f32.gmra.mxu0 %vm3717_vm3, %v12903_v34 }
 0x58a   : > { %9583 = vmatmul.msk.f32.gmra.mxu1 %vm3717_vm3, %v12831_v57  ;;  %9540 = vmatmul.msk.f32.gmra.mxu3 %vm3717_vm3, %v7169_v62 }
 0x58b   : > { %9606 = vmatmul.msk.f32.gmra.mxu2 %vm3717_vm3, %v12729_v5  ;;  %v13115_v3 = vpop.f32.mrf.mxu2 }
 0x58c   : > { %v6838_v30 = vpop.f32.mrf.mxu0 }
 0x58d   : > { %v6728_v48 = vpop.f32.mrf.mxu3 }
 0x58f   : > { %v6976_v6 = vpop.f32.mrf.mxu1  ;;  %9563 = vmatmul.msk.f32.gmra.mxu0 %vm3717_vm3, %v12979_v12 }
 0x592   : > { %9584 = vmatmul.msk.f32.gmra.mxu1 %vm3717_vm3, %v12849_v26  ;;  %9541 = vmatmul.msk.f32.gmra.mxu3 %vm3717_vm3, %v7170_v17 }
 0x593   : > { %9607 = vmatmul.msk.f32.gmra.mxu2 %vm3717_vm3, %v12776_v59  ;;  %v7124_v39 = vpop.f32.mrf.mxu2 }
 0x594   : > { %v6841_v5 = vpop.f32.mrf.mxu0  ;;  %v6800_v39 = vadd.f32 %v12951_v42, %v12835_v60  ;;  %v13189_v60 = vld [vmem:[%s13663_s7] ss:$0 sm:$0xff] }
 0x595   : > { %v6731_v57 = vpop.f32.mrf.mxu3  ;;  %v6842_v24 = vadd.f32 %v6841_v5, %v6728_v48 }
 0x597   : > { %v6979_v56 = vpop.f32.mrf.mxu1  ;;  %9564 = vmatmul.msk.f32.gmra.mxu0 %vm3717_vm3, %v7323_v15 }
 0x598   : > { %v6999_v21 = vadd.f32 %v6979_v56, %v6842_v24 }
 0x59a   : > { %9585 = vmatmul.msk.f32.gmra.mxu1 %vm3717_vm3, %v12872_v43  ;;  %9622 = vmatmul.msk.f32.vlgmr.msra.gmra.mxu3 %vm3717_vm3, %v12701_v35 }
 0x59b   : > { %9608 = vmatmul.msk.f32.gmra.mxu2 %vm3717_vm3, %v12838_v7  ;;  %v13136_v35 = vpop.f32.mrf.mxu2 }
 0x59c   : > { %v6844_v26 = vpop.f32.mrf.mxu0 }
 0x59d   : > { %v13124_v59 = vpop.f32.mrf.mxu3 }
 0x59f   : > { %9565 = vmatmul.msk.f32.gmra.mxu0 %vm3717_vm3, %v7324_v63 }
 0x5a2   : > { %9586 = vmatmul.msk.f32.gmra.mxu1 %vm3717_vm3, %v12981_v49  ;;  %9623 = vmatmul.msk.f32.gmra.mxu3 %vm3717_vm3, %v12713_v46  ;;  %v7477_v49 = vld [vmem:[#allocation6 + $0x90] sm:$0xff] }
 0x5a3   : > { %9609 = vmatmul.msk.f32.gmra.mxu2 %vm3717_vm3, %v12854_v44  ;;  %v7130_v46 = vpop.f32.mrf.mxu2 }
 0x5a4   : > { %v6985_v46 = vadd.f32 %v12953_v31, %v6800_v39  ;;  %v6806_v31 = vadd.f32 %v12975_v2, %v12899_v4  ;;  %v6812_v39 = vadd.f32 %v13004_v27, %v12967_v53  ;;  %v8124_v53 = vld [vmem:[%s13666_s10 + $0xf8] sm:$0xff]  ;;  %v8107_v27 = vld [vmem:[%s13666_s10 + $0x70] sm:$0xff] }
 0x5a5   : > { %v7248_v7 = vpop.f32.mrf.mxu3  ;;  %8151 = vmatpush.msrb.mxu1 %v8124_v53 }
 0x5aa   : > { %9587 = vmatmul.msk.f32.gmra.mxu1 %vm3717_vm3, %v12995_v51  ;;  %9624 = vmatmul.msk.f32.gmra.mxu3 %vm3717_vm3, %v12733_v9 }
 0x5ab   : > { %9610 = vmatmul.msk.f32.gmra.mxu2 %vm3717_vm3, %v7169_v62  ;;  %v7632_v62 = vld [vmem:[#allocation6 + $0x99] sm:$0xff] }
 0x5ad   : > { %v13140_v43 = vpop.f32.mrf.mxu3 }
 0x5b2   : > { %9588 = vmatmul.msk.f32.gmra.mxu1 %vm3717_vm3, %v7477_v49  ;;  %9625 = vmatmul.msk.f32.gmra.mxu3 %vm3717_vm3, %v12749_v22  ;;  %v7786_v49 = vld [vmem:[#allocation6 + $0x9a] sm:$0xff] }
 0x5b3   : > { %9611 = vmatmul.msk.f32.gmra.mxu2 %vm3717_vm3, %v7170_v17 }
 0x5b5   : > { %v7254_v44 = vpop.f32.mrf.mxu3 }
 0x5b7   : > { %v6982_v51 = vpop.f32.mrf.mxu1 }
 0x5ba   : > { %9589 = vmatmul.msk.f32.gmra.mxu1 %vm3717_vm3, %v7478_v20  ;;  %9626 = vmatmul.msk.f32.gmra.mxu3 %vm3717_vm3, %v12766_v23 }
 0x5bb   : > { %9612 = vmatmul.msk.f32.gmra.mxu2 %vm3717_vm3, %v7631_v54 }
 0x5bd   : > { %v13150_v10 = vpop.f32.mrf.mxu3 }
 0x5be   : > { %v7133_v9 = vpop.f32.mrf.mxu2 }
 0x5bf   : > { %v7153_v8 = vadd.f32 %v7133_v9, %v6999_v21  ;;  %v7553_v17 = vpop.f32.mrf.mxu1 }
 0x5c2   : > { %9627 = vmatmul.msk.f32.gmra.mxu3 %vm3717_vm3, %v12784_v38 }
 0x5c3   : > { %9613 = vmatmul.msk.f32.gmra.mxu2 %vm3717_vm3, %v7632_v62 }
 0x5c5   : > { %v7260_v41 = vpop.f32.mrf.mxu3 }
 0x5c6   : > { %v7136_v22 = vpop.f32.mrf.mxu2 }
 0x5ca   : > { %9628 = vmatmul.msk.f32.gmra.mxu3 %vm3717_vm3, %v12801_v1 }
 0x5cd   : > { %v13157_v48 = vpop.f32.mrf.mxu3 }
 0x5d2   : > { %9629 = vmatmul.msk.f32.gmra.mxu3 %vm3717_vm3, %v12825_v45  ;;  %v7399_v45 = vpop.f32.mrf.mxu0 }
 0x5d5   : > { %v7266_v23 = vpop.f32.mrf.mxu3 }
 0x5da   : > { %9630 = vmatmul.msk.f32.gmra.mxu3 %vm3717_vm3, %v12842_v14  ;;  %v7707_v14 = vpop.f32.mrf.mxu2  ;;  %v7402_v5 = vpop.f32.mrf.mxu0 }
 0x5dd   : > { %v13163_v30 = vpop.f32.mrf.mxu3 }
 0x5e2   : > { %9631 = vmatmul.msk.f32.gmra.mxu3 %vm3717_vm3, %v12860_v28  ;;  %v7556_v28 = vpop.f32.mrf.mxu1  ;;  %v7710_v24 = vpop.f32.mrf.mxu2 }
 0x5e3   : > { %v7405_v21 = vpop.f32.mrf.mxu0 }
 0x5e5   : > { %v7272_v38 = vpop.f32.mrf.mxu3 }
 0x5ea   : > { %9632 = vmatmul.msk.f32.gmra.mxu3 %vm3717_vm3, %v12903_v34  ;;  %v7785_v34 = vld [vmem:[#allocation6 + $0x92] sm:$0xff]  ;;  %v7559_v26 = vpop.f32.mrf.mxu1 }
 0x5eb   : > { %v7408_v44 = vpop.f32.mrf.mxu0 }
 0x5ec   : > { %v8106_v44 = vld [vmem:[%s13666_s10 + $0x68] sm:$0xff] }
 0x5ed   : > { %v13169_v6 = vpop.f32.mrf.mxu3 }
 0x5f2   : > { %9633 = vmatmul.msk.f32.gmra.mxu3 %vm3717_vm3, %v12979_v12  ;;  %v7562_v54 = vpop.f32.mrf.mxu1 }
 0x5f3   : > { %v8122_v54 = vld [vmem:[%s13666_s10 + $0xe8] sm:$0xff] }
 0x5f5   : > { %v7278_v1 = vpop.f32.mrf.mxu3 }
 0x5fa   : > { %9634 = vmatmul.msk.f32.gmra.mxu3 %vm3717_vm3, %v7323_v15  ;;  %v7713_v15 = vpop.f32.mrf.mxu2  ;;  %v7565_v38 = vpop.f32.mrf.mxu1 }
 0x5fd   : > { %v13174_v57 = vpop.f32.mrf.mxu3 }
 0x602   : > { %9635 = vmatmul.msk.f32.gmra.mxu3 %vm3717_vm3, %v7324_v63  ;;  %v7139_v63 = vadd.f32 %v12973_v61, %v6985_v46  ;;  %v7716_v62 = vpop.f32.mrf.mxu2  ;;  %v7411_v61 = vpop.f32.mrf.mxu0  ;;  %v6989_v46 = vadd.f32 %v13008_v36, %v6812_v39  ;;  %v8123_v36 = vld [vmem:[%s13666_s10 + $0xf0] sm:$0xff] }
 0x603   : > { %8152 = vmatpush.msrb.mxu1 %v8123_v36 }
 0x604   : > { %v7293_v20 = vadd.f32 %v13124_v59, %v7139_v63  ;;  %v6987_v59 = vadd.f32 %v12977_v33, %v6806_v31  ;;  %v7143_v63 = vadd.f32 %v13036_v52, %v6989_v46  ;;  %v8105_v52 = vld [vmem:[%s13666_s10 + $0x60] sm:$0xff]  ;;  %v7987_v31 = vlaneseq }
 0x605   : > { %v7284_v56 = vpop.f32.mrf.mxu3  ;;  %8153 = vmatpush.msrb.mxu1 %v8122_v54 }
 0x606   : > { %v7447_v9 = vadd.f32 %v7399_v45, %v7293_v20  ;;  %vm13230_vm4 = vcmp.lt.s32.totalorder %v7987_v31, 128 }
 0x608   : > { %v7601_v22 = vadd.f32 %v7553_v17, %v7447_v9  ;;  %v7141_v17 = vadd.f32 %v13006_v18, %v6987_v59  ;;  %v7297_v9 = vadd.f32 %v13150_v10, %v7143_v63  ;;  %v8121_v63 = vld [vmem:[%s13666_s10 + $0xe0] sm:$0xff] }
 0x609   : > { %8154 = vmatpush.msrb.mxu1 %v8121_v63  ;;  %v8094_v63 = vld [vmem:[%s13666_s10 + $0x8] sm:$0xff] }
 0x60a   : > { %9636 = vmatmul.msk.f32.gmra.mxu3 %vm3717_vm3, %v7785_v34  ;;  %v7755_v41 = vadd.f32 %v7707_v14, %v7601_v22  ;;  %v7719_v45 = vpop.f32.mrf.mxu2  ;;  %v7295_v5 = vadd.f32 %v13140_v43, %v7141_v17  ;;  %v7414_v24 = vpop.f32.mrf.mxu0  ;;  %v8221_v43 = vld [vmem:[%s13664_s8 + $0x180] sm:$0xff]  ;;  %v7451_v22 = vadd.f32 %v7411_v61, %v7297_v9  ;;  %v6818_v61 = vadd.f32 %v13027_v55, %v12993_v0  ;;  %v8119_v9 = vld [vmem:[%s13666_s10 + $0xd0] sm:$0xff] }
 0x60b   : > { %v7568_v34 = vpop.f32.mrf.mxu1  ;;  %8284 = vmatpush.xpose.msrb.mxu2 %v8221_v43 }
 0x60c   : > { %v7449_v28 = vadd.f32 %v7405_v21, %v7295_v5  ;;  %v8108_v21 = vld [vmem:[%s13666_s10 + $0x78] sm:$0xff]  ;;  %v8125_v5 = vld [vmem:[%s13667_s11] sm:$0x1] }
 0x60d   : > { %v7287_v12 = vpop.f32.mrf.mxu3  ;;  %8131 = vmatpush.msrb.mxu0 %v8108_v21 }
 0x60e   : > { %v13180_v7 = vadd.f32 %v7287_v12, %v7153_v8  ;;  %v7603_v56 = vadd.f32 %v7559_v26, %v7449_v28  ;;  %v8222_v26 = vld [vmem:[%s13664_s8 + $0x188] sm:$0xff] }
 0x60f   : > { %8304 = vmatpush.xpose.msrb.mxu3 %v8222_v26  ;;  %8132 = vmatpush.msrb.mxu0 %v8107_v27 }
 0x610   : > { %v7757_v4 = vadd.f32 %v7713_v15, %v7603_v56 }
 0x611   : > { %8133 = vmatpush.msrb.mxu0 %v8106_v44 }
 0x612   : > { %9637 = vmatmul.msk.f32.gmra.mxu3 %vm3717_vm3, %v7786_v49  ;;  %v7722_v2 = vpop.f32.mrf.mxu2  ;;  %v7417_v15 = vpop.f32.mrf.mxu0 }
 0x613   : > { %8134 = vmatpush.msrb.mxu0 %v8105_v52 }
 0x615   : > { %v7290_v51 = vpop.f32.mrf.mxu3 }
 0x616   : > { %v7571_v51 = vpop.f32.mrf.mxu1 }
 0x61a   : > { %v7725_v62 = vpop.f32.mrf.mxu2  ;;  %v7420_v10 = vpop.f32.mrf.mxu0 }
 0x61b   : > { %v8099_v10 = vld [vmem:[%s13666_s10 + $0x30] sm:$0xff] }
 0x61d   : > { %v7861_v42 = vpop.f32.mrf.mxu3 }
 0x61e   : > { %v7909_v8 = vadd.f32 %v7861_v42, %v7755_v41  ;;  %v7574_v34 = vpop.f32.mrf.mxu1 }
 0x620   : > { %v7929_v23 = vadd.f32 %v13189_v60, %v7909_v8  ;;  %v7605_v8 = vadd.f32 %v7565_v38, %v7451_v22  ;;  %v8102_v22 = vld [vmem:[%s13666_s10 + $0x48] sm:$0xff] }
 0x622   : > { %v7945_v1 = vmax.f32 %v7929_v23, 0.0  ;;  %v7423_v0 = vpop.f32.mrf.mxu0 }
 0x624   : > { %7961 = vst [vmem:[#allocation4] sm:$0xff] %v7945_v1  ;;  %v7759_v1 = vadd.f32 %v7719_v45, %v7605_v8  ;;  %v7728_v45 = vpop.f32.mrf.mxu2 }
 0x625   : > { %v7864_v14 = vpop.f32.mrf.mxu3  ;;  %v8115_v45 = vld [vmem:[%s13666_s10 + $0xb0] sm:$0xff] }
 0x626   : > { %v7577_v46 = vpop.f32.mrf.mxu1 }
 0x62b   : > { %v7977_v41 = vld [vmem:[#allocation4] ss:$2 sm:$0xf]  ;;  %v7979_v42 = vld [vmem:[#allocation4 + $0x1] ss:$2 sm:$0xf] }
 0x62c   : > { %v7980_v17 = vmax.f32 %v7977_v41, %v7979_v42  ;;  %v7731_v43 = vpop.f32.mrf.mxu2  ;;  %v8101_v42 = vld [vmem:[%s13666_s10 + $0x40] sm:$0xff] }
 0x62d   : > { %v7867_v12 = vpop.f32.mrf.mxu3 }
 0x62e   : > { %v7911_v49 = vadd.f32 %v7867_v12, %v7757_v4  ;;  %v6991_v4 = vadd.f32 %v13029_v40, %v6818_v61  ;;  %v6824_v40 = vadd.f32 %v13049_v58, %v13025_v16  ;;  %v8205_v16 = vld [vmem:[%s13664_s8 + $0x100] sm:$0xff]  ;;  %v8104_v58 = vld [vmem:[%s13666_s10 + $0x58] sm:$0xff]  ;;  %v7580_v44 = vpop.f32.mrf.mxu1 }
 0x62f   : > { %8285 = vmatpush.xpose.msrb.mxu2 %v8205_v16  ;;  %8135 = vmatpush.msrb.mxu0 %v8104_v58  ;;  %v8092_v16 = vld [vmem:[%s557_s29] sm:$0x3]  ;;  %v8110_v44 = vld [vmem:[%s13666_s10 + $0x88] sm:$0xff]  ;;  %s9718_s29 = scalar_lea.hbm %s13673_s17, 2 }
 0x630   : > { %v7931_v33 = vadd.f32 %v13189_v60, %v7911_v49  ;;  %v7145_v12 = vadd.f32 %v13065_v13, %v6991_v4  ;;  %p9720_p1 = scmp.lt.s32.totalorder %s9718_s29, %s9714_s18 }
 0x632   : > { %v7947_v18 = vmax.f32 %v7931_v33, 0.0  ;;  %v7299_v49 = vadd.f32 %v13157_v48, %v7145_v12  ;;  %v7426_v48 = vpop.f32.mrf.mxu0  ;;  %v8098_v12 = vld [vmem:[%s13666_s10 + $0x28] sm:$0xff]  ;;  %p9721_p2 = por %p9720_p1, %p9719_p0 }
 0x633   : > { %v8173_v48 = vld [vmem:[%s13664_s8] sm:$0xff] }
 0x634   : > { %7963 = vst [vmem:[#allocation4 + $0x10] sm:$0xff] %v7947_v18  ;;  %v7453_v55 = vadd.f32 %v7417_v15, %v7299_v49  ;;  %v6993_v15 = vadd.f32 %v13051_v47, %v6824_v40  ;;  %v8206_v47 = vld [vmem:[%s13664_s8 + $0x108] sm:$0xff]  ;;  %v7734_v52 = vpop.f32.mrf.mxu2  ;;  %v8189_v40 = vld [vmem:[%s13664_s8 + $0x80] sm:$0xff]  ;;  %p9722_p3 = pnand %p9721_p2, %p9717_p13 }
 0x635   : > { %v7870_v20 = vpop.f32.mrf.mxu3  ;;  %8305 = vmatpush.xpose.msrb.mxu3 %v8206_v47  ;;  %8286 = vmatpush.xpose.msrb.mxu2 %v8189_v40  ;;  %v8225_v47 = vld [vmem:[%s13664_s8 + $0x1a0] sm:$0xff]  ;;  %v8212_v40 = vld [vmem:[%s13664_s8 + $0x138] sm:$0xff] }
 0x636   : > { %v7607_v18 = vadd.f32 %v7571_v51, %v7453_v55  ;;  %v8120_v51 = vld [vmem:[%s13666_s10 + $0xd8] sm:$0xff]  ;;  %v8103_v20 = vld [vmem:[%s13666_s10 + $0x50] sm:$0xff]  ;;  %v7147_v54 = vadd.f32 %v13093_v11, %v6993_v15  ;;  %v8118_v11 = vld [vmem:[%s13666_s10 + $0xc8] sm:$0xff]  ;;  %v13299_v4 = vpop.f32.mrf.mxu1 }
 0x637   : > { %8155 = vmatpush.msrb.mxu1 %v8120_v51  ;;  %8136 = vmatpush.msrb.mxu0 %v8103_v20  ;;  %v8114_v55 = vld [vmem:[%s13666_s10 + $0xa8] sm:$0xff]  ;;  %v8093_v20 = vld [vmem:[%s13666_s10] sm:$0xff] }
 0x638   : > { %v7761_v21 = vadd.f32 %v7725_v62, %v7607_v18  ;;  %v7301_v41 = vadd.f32 %v13163_v30, %v7147_v54  ;;  %v8100_v30 = vld [vmem:[%s13666_s10 + $0x38] sm:$0xff]  ;;  %v8109_v52 = vld [vmem:[%s13666_s10 + $0x80] sm:$0xff] }
 0x639   : > { %8156 = vmatpush.msrb.mxu1 %v8119_v9  ;;  %8137 = vmatpush.msrb.mxu0 %v8102_v22  ;;  %v8096_v18 = vld [vmem:[%s13666_s10 + $0x18] sm:$0xff]  ;;  %v8127_v22 = vperm.slane %v8092_v16, 0 }
 0x63a   : > { %v7455_v31 = vadd.f32 %v7423_v0, %v7301_v41  ;;  %8287 = vmatpush.xpose.msrb.mxu2 %v8173_v48 }
 0x63b   : > { %v7982_v23 = vld [vmem:[#allocation4 + $0x10] ss:$2 sm:$0xf]  ;;  %v7984_v59 = vld [vmem:[#allocation4 + $0x11] ss:$2 sm:$0xf]  ;;  %8157 = vmatpush.msrb.mxu1 %v8118_v11  ;;  %8138 = vmatpush.msrb.mxu0 %v8101_v42 }
 0x63c   : > { %v7985_v14 = vmax.f32 %v7982_v23, %v7984_v59  ;;  %v8117_v59 = vld [vmem:[%s13666_s10 + $0xc0] sm:$0xff]  ;;  %v8224_v11 = vld [vmem:[%s13664_s8 + $0x198] sm:$0xff]  ;;  %v8128_v42 = vperm.slane %v8092_v16, 1  ;;  %v8195_v16 = vld [vmem:[%s13664_s8 + $0xb0] sm:$0xff] }
 0x63d   : > { %v7873_v28 = vpop.f32.mrf.mxu3  ;;  %8158 = vmatpush.msrb.mxu1 %v8117_v59  ;;  %8139 = vmatpush.msrb.mxu0 %v8100_v30  ;;  %v8209_v59 = vld [vmem:[%s13664_s8 + $0x120] sm:$0xff] }
 0x63e   : > { %v7986_v24 = vmax.f32 %v7980_v17, %v7985_v14  ;;  %v7913_v56 = vadd.f32 %v7873_v28, %v7759_v1  ;;  %v7609_v17 = vadd.f32 %v7577_v46, %v7455_v31  ;;  %v8116_v14 = vld [vmem:[%s13666_s10 + $0xb8] sm:$0xff]  ;;  %v7429_v28 = vpop.f32.mrf.mxu0  ;;  %v8097_v46 = vld [vmem:[%s13666_s10 + $0x20] sm:$0xff]  ;;  %v7586_v51 = vpop.f32.mrf.mxu1  ;;  %8364 = vmatpush.xpose.msra.mxu2 %v8225_v47 }
 0x63f   : > { %8159 = vmatpush.msrb.mxu1 %v8116_v14  ;;  %8140 = vmatpush.msrb.mxu0 %v8099_v10  ;;  %v6836_v14 = vadd.f32 %v13097_v25, %v13083_v32  ;;  %v8191_v32 = vld [vmem:[%s13664_s8 + $0x90] sm:$0xff] }
 0x640   : > { %7991 = vst.msk [vmem:[#allocation7] sm:$0x1] %vm13230_vm4, %v7986_v24  ;;  %v7933_v38 = vadd.f32 %v13189_v60, %v7913_v56  ;;  %v7763_v56 = vadd.f32 %v7731_v43, %v7609_v17  ;;  %v8208_v17 = vld [vmem:[%s13664_s8 + $0x118] sm:$0xff] }
 0x641   : > { %7993 = vst [vmem:[#allocation1] sm:$0xff] %v7986_v24  ;;  %8160 = vmatpush.msrb.mxu1 %v8115_v45  ;;  %8141 = vmatpush.msrb.mxu0 %v8098_v12  ;;  %v6997_v45 = vadd.f32 %v13099_v37, %v6836_v14  ;;  %v8175_v37 = vld [vmem:[%s13664_s8 + $0x10] sm:$0xff] }
 0x642   : > { %v7949_v2 = vmax.f32 %v7933_v38, 0.0  ;;  %8365 = vmatpush.xpose.msra.mxu2 %v8209_v59 }
 0x643   : > { %8161 = vmatpush.msrb.mxu1 %v8114_v55  ;;  %8142 = vmatpush.msrb.mxu0 %v8097_v46  ;;  %v8176_v55 = vld [vmem:[%s13664_s8 + $0x18] sm:$0xff] }
 0x644   : > { %7965 = vst [vmem:[#allocation4 + $0x20] sm:$0xff] %v7949_v2 }
 0x645   : > { %v7876_v39 = vpop.f32.mrf.mxu3  ;;  %8143 = vmatpush.msrb.mxu0 %v8096_v18 }
 0x646   : > { %v6830_v39 = vadd.f32 %v13074_v19, %v13053_v50  ;;  %v8113_v19 = vld [vmem:[%s13666_s10 + $0xa0] sm:$0xff]  ;;  %v7432_v15 = vpop.f32.mrf.mxu0  ;;  %v7589_v25 = vpop.f32.mrf.mxu1 }
 0x647   : > { %8162 = vmatpush.msrb.mxu1 %v8113_v19 }
 0x648   : > { %v7995_v33 = vld [vmem:[#allocation1 + $0x1] ss:$9 sm:$0xff]  ;;  %v6995_v43 = vadd.f32 %v13076_v29, %v6830_v39 }
 0x649   : > { %7998 = vst [vmem:[#allocation1] sm:$0xff] %v7986_v24  ;;  %v8190_v29 = vld [vmem:[%s13664_s8 + $0x88] sm:$0xff] }
 0x64a   : > { %7997 = vst.msk [vmem:[#allocation7 + $0x1] sm:$0x1] %vm13230_vm4, %v7995_v33  ;;  %v7737_v33 = vpop.f32.mrf.mxu2  ;;  %8306 = vmatpush.xpose.msrb.mxu3 %v8190_v29  ;;  %v8178_v39 = vld [vmem:[%s13664_s8 + $0x28] sm:$0xff] }
 0x64b   : > { %v8009_v8 = vld [vmem:[#allocation4 + $0x20] ss:$2 sm:$0xf]  ;;  %v8011_v1 = vld [vmem:[#allocation4 + $0x21] ss:$2 sm:$0xf] }
 0x64c   : > { %v8012_v34 = vmax.f32 %v8009_v8, %v8011_v1  ;;  %v8210_v1 = vld [vmem:[%s13664_s8 + $0x128] sm:$0xff] }
 0x64d   : > { %v7879_v26 = vpop.f32.mrf.mxu3 }
 0x64e   : > { %v7915_v13 = vadd.f32 %v7879_v26, %v7761_v21  ;;  %v8112_v26 = vld [vmem:[%s13666_s10 + $0x98] sm:$0xff] }
 0x64f   : > { %8163 = vmatpush.msrb.mxu1 %v8112_v26 }
 0x650   : > { %v8000_v53 = vld [vmem:[#allocation1 + $0x2] ss:$9 sm:$0xff]  ;;  %v7935_v27 = vadd.f32 %v13189_v60, %v7915_v13 }
 0x651   : > { %8003 = vst [vmem:[#allocation1] sm:$0xff] %v7986_v24  ;;  %v8095_v13 = vld [vmem:[%s13666_s10 + $0x10] sm:$0xff] }
 0x652   : > { %8002 = vst.msk [vmem:[#allocation7 + $0x2] sm:$0x1] %vm13230_vm4, %v8000_v53  ;;  %v7951_v36 = vmax.f32 %v7935_v27, 0.0  ;;  %v7149_v53 = vadd.f32 %v13115_v3, %v6995_v43  ;;  %v8111_v27 = vld [vmem:[%s13666_s10 + $0x90] sm:$0xff]  ;;  %v8174_v3 = vld [vmem:[%s13664_s8 + $0x8] sm:$0xff]  ;;  %8144 = vmatpush.msrb.mxu0 %v8095_v13  ;;  %v7740_v41 = vpop.f32.mrf.mxu2  ;;  %v7592_v13 = vpop.f32.mrf.mxu1 }
 0x653   : > { %8164 = vmatpush.msrb.mxu1 %v8111_v27  ;;  %8307 = vmatpush.xpose.msrb.mxu3 %v8174_v3 }
 0x654   : > { %7967 = vst [vmem:[#allocation4 + $0x30] sm:$0xff] %v7951_v36  ;;  %v7303_v58 = vadd.f32 %v13169_v6, %v7149_v53  ;;  %v8226_v6 = vld [vmem:[%s13664_s8 + $0x1a8] sm:$0xff]  ;;  %8145 = vmatpush.msrb.mxu0 %v8094_v63 }
 0x655   : > { %v7882_v62 = vpop.f32.mrf.mxu3  ;;  %8165 = vmatpush.msrb.mxu1 %v8110_v44  ;;  %v8196_v44 = vld [vmem:[%s13664_s8 + $0xb8] sm:$0xff] }
 0x656   : > { %v7457_v54 = vadd.f32 %v7429_v28, %v7303_v58  ;;  %v8223_v62 = vld [vmem:[%s13664_s8 + $0x190] sm:$0xff]  ;;  %8146 = vmatpush.msrb.mxu0 %v8093_v20  ;;  %v8193_v28 = vld [vmem:[%s13664_s8 + $0xa0] sm:$0xff] }
 0x657   : > { %8384 = vmatpush.xpose.msra.mxu3 %v8226_v6  ;;  %8166 = vmatpush.msrb.mxu1 %v8109_v52 }
 0x658   : > { %v8005_v23 = vld [vmem:[#allocation1 + $0x3] ss:$9 sm:$0xff]  ;;  %v7611_v31 = vadd.f32 %v13299_v4, %v7457_v54  ;;  %8324 = vmatpush.xpose.msra.mxu0 %v8223_v62  ;;  %8167 = vmatmul.f32.vlgmr.msrb.gmra.mxu1 %v8128_v42 }
 0x659   : > { %8007 = vst.msk [vmem:[#allocation7 + $0x3] sm:$0x1] %vm13230_vm4, %v8005_v23  ;;  %8344 = vmatpush.xpose.msra.mxu1 %v8224_v11  ;;  %v8207_v23 = vld [vmem:[%s13664_s8 + $0x110] sm:$0xff]  ;;  %8147 = vmatmul.f32.vlgmr.msrb.gmra.mxu0 %v8127_v22  ;;  %v8180_v22 = vld [vmem:[%s13664_s8 + $0x38] sm:$0xff]  ;;  %v8229_v11 = vld [vmem:[%s13664_s8 + $0x1c0] sm:$0xff] }
 0x65a   : > { %v7765_v8 = vadd.f32 %v7737_v33, %v7611_v31  ;;  %8366 = vmatpush.xpose.msra.mxu2 %v8193_v28  ;;  %v7743_v12 = vpop.f32.mrf.mxu2  ;;  %v8227_v33 = vld [vmem:[%s13664_s8 + $0x1b0] sm:$0xff]  ;;  %v8230_v42 = vld [vmem:[%s13664_s8 + $0x1c8] sm:$0xff] }
 0x65b   : > { %v8014_v61 = vld [vmem:[#allocation4 + $0x30] ss:$2 sm:$0xf]  ;;  %v8016_v24 = vld [vmem:[#allocation4 + $0x31] ss:$2 sm:$0xf]  ;;  %8385 = vmatpush.xpose.msra.mxu3 %v8210_v1 }
 0x65c   : > { %v8017_v38 = vmax.f32 %v8014_v61, %v8016_v24  ;;  %v7435_v61 = vpop.f32.mrf.mxu0  ;;  %8325 = vmatpush.xpose.msra.mxu0 %v8207_v23  ;;  %v8194_v24 = vld [vmem:[%s13664_s8 + $0xa8] sm:$0xff]  ;;  %v8179_v62 = vld [vmem:[%s13664_s8 + $0x30] sm:$0xff]  ;;  %v7595_v23 = vpop.f32.mrf.mxu1 }
 0x65d   : > { %v7885_v2 = vpop.f32.mrf.mxu3  ;;  %8345 = vmatpush.xpose.msra.mxu1 %v8208_v17  ;;  %v8231_v31 = vld [vmem:[%s13664_s8 + $0x1d0] sm:$0xff]  ;;  %v8214_v17 = vld [vmem:[%s13664_s8 + $0x148] sm:$0xff] }
 0x65e   : > { %v13306_v49 = vmax.f32 %v8012_v34, %v8017_v38  ;;  %v7917_v0 = vadd.f32 %v7885_v2, %v7763_v56  ;;  %v8192_v38 = vld [vmem:[%s13664_s8 + $0x98] sm:$0xff]  ;;  %v8177_v2 = vld [vmem:[%s13664_s8 + $0x20] sm:$0xff] }
 0x65f   : > { %8386 = vmatpush.xpose.msra.mxu3 %v8194_v24  ;;  %8367 = vmatpush.xpose.msra.mxu2 %v8177_v2 }
 0x660   : > { %8019 = vst.msk [vmem:[#allocation7 + $0x4] sm:$0x1] %vm13230_vm4, %v13306_v49  ;;  %v7937_v50 = vadd.f32 %v13189_v60, %v7917_v0  ;;  %8326 = vmatpush.xpose.msra.mxu0 %v8191_v32  ;;  %v8215_v32 = vld [vmem:[%s13664_s8 + $0x150] sm:$0xff] }
 0x661   : > { %8021 = vst [vmem:[#allocation1] sm:$0xff] %v13306_v49  ;;  %8346 = vmatpush.xpose.msra.mxu1 %v8192_v38  ;;  %v8198_v38 = vld [vmem:[%s13664_s8 + $0xc8] sm:$0xff] }
 0x662   : > { %v7953_v21 = vmax.f32 %v7937_v50, 0.0 }
 0x663   : > { %8387 = vmatpush.xpose.msra.mxu3 %v8178_v39  ;;  %v8199_v39 = vld [vmem:[%s13664_s8 + $0xd0] sm:$0xff] }
 0x664   : > { %7969 = vst [vmem:[#allocation4 + $0x40] sm:$0xff] %v7953_v21  ;;  %8327 = vmatpush.xpose.msra.mxu0 %v8175_v37  ;;  %v7438_v43 = vpop.f32.mrf.mxu0  ;;  %v7598_v37 = vpop.f32.mrf.mxu1 }
 0x665   : > { %v7888_v36 = vpop.f32.mrf.mxu3  ;;  %8347 = vmatpush.xpose.msra.mxu1 %v8176_v55  ;;  %v8182_v55 = vld [vmem:[%s13664_s8 + $0x48] sm:$0xff]  ;;  %v8235_v43 = vld [vmem:[%s13664_s8 + $0x1f0] sm:$0xff]  ;;  %v8599_v37 = vld [vmem:[%s13669_s13 + $0x18] sm:$0xff] }
 0x666   : > { %v7746_v36 = vpop.f32.mrf.mxu2 }
 0x668   : > { %v8023_v9 = vld [vmem:[#allocation1 + $0x1] ss:$9 sm:$0xff]  ;;  %8404 = vmatpush.xpose.msrb.mxu0 %v8227_v33 }
 0x669   : > { %8026 = vst [vmem:[#allocation1] sm:$0xff] %v13306_v49 }
 0x66a   : > { %8025 = vst.msk [vmem:[#allocation7 + $0x5] sm:$0x1] %vm13230_vm4, %v8023_v9 }
 0x66b   : > { %v8037_v19 = vld [vmem:[#allocation4 + $0x40] ss:$2 sm:$0xf]  ;;  %v8039_v21 = vld [vmem:[#allocation4 + $0x41] ss:$2 sm:$0xf] }
 0x66c   : > { %v8040_v48 = vmax.f32 %v8037_v19, %v8039_v21  ;;  %v7441_v41 = vpop.f32.mrf.mxu0  ;;  %v8236_v21 = vld [vmem:[%s13664_s8 + $0x1f8] sm:$0xff] }
 0x66d   : > { %v7891_v30 = vpop.f32.mrf.mxu3  ;;  %v7461_v14 = vadd.f32 %v7441_v41, %v13180_v7  ;;  %v8197_v7 = vld [vmem:[%s13664_s8 + $0xc0] sm:$0xff] }
 0x66e   : > { %v7919_v10 = vadd.f32 %v7891_v30, %v7765_v8  ;;  %v8232_v8 = vld [vmem:[%s13664_s8 + $0x1d8] sm:$0xff]  ;;  %v7749_v1 = vpop.f32.mrf.mxu2  ;;  %v8213_v30 = vld [vmem:[%s13664_s8 + $0x140] sm:$0xff] }
 0x670   : > { %v8028_v56 = vld [vmem:[#allocation1 + $0x2] ss:$9 sm:$0xff]  ;;  %v7939_v34 = vadd.f32 %v13189_v60, %v7919_v10 }
 0x671   : > { %8031 = vst [vmem:[#allocation1] sm:$0xff] %v13306_v49  ;;  %v7151_v49 = vadd.f32 %v13136_v35, %v6997_v45  ;;  %v8228_v35 = vld [vmem:[%s13664_s8 + $0x1b8] sm:$0xff] }
 0x672   : > { %8030 = vst.msk [vmem:[#allocation7 + $0x6] sm:$0x1] %vm13230_vm4, %v8028_v56  ;;  %v7955_v4 = vmax.f32 %v7939_v34, 0.0  ;;  %8424 = vmatpush.xpose.msrb.mxu1 %v8228_v35  ;;  %v7615_v56 = vadd.f32 %v7595_v23, %v7461_v14  ;;  %v8234_v35 = vld [vmem:[%s13664_s8 + $0x1e8] sm:$0xff] }
 0x673   : > { %v7305_v46 = vadd.f32 %v13174_v57, %v7151_v49  ;;  %v8211_v57 = vld [vmem:[%s13664_s8 + $0x130] sm:$0xff]  ;;  %v8200_v49 = vld [vmem:[%s13664_s8 + $0xd8] sm:$0xff] }
 0x674   : > { %7971 = vst [vmem:[#allocation4 + $0x50] sm:$0xff] %v7955_v4  ;;  %8405 = vmatpush.xpose.msrb.mxu0 %v8211_v57  ;;  %v7769_v45 = vadd.f32 %v7749_v1, %v7615_v56  ;;  %v7444_v4 = vpop.f32.mrf.mxu0  ;;  %v8217_v57 = vld [vmem:[%s13664_s8 + $0x160] sm:$0xff] }
 0x675   : > { %v7894_v0 = vpop.f32.mrf.mxu3  ;;  %v7459_v50 = vadd.f32 %v7435_v61, %v7305_v46  ;;  %v8233_v46 = vld [vmem:[%s13664_s8 + $0x1e0] sm:$0xff] }
 0x676   : > { %8425 = vmatpush.xpose.msrb.mxu1 %v8212_v40  ;;  %v8181_v0 = vld [vmem:[%s13664_s8 + $0x40] sm:$0xff] }
 0x677   : > { %v7613_v26 = vadd.f32 %v7589_v25, %v7459_v50  ;;  %v8216_v25 = vld [vmem:[%s13664_s8 + $0x158] sm:$0xff]  ;;  %v7752_v50 = vpop.f32.mrf.mxu2 }
 0x678   : > { %v8033_v18 = vld [vmem:[#allocation1 + $0x3] ss:$9 sm:$0xff]  ;;  %8406 = vmatpush.xpose.msrb.mxu0 %v8195_v16 }
 0x679   : > { %8035 = vst.msk [vmem:[#allocation7 + $0x7] sm:$0x1] %vm13230_vm4, %v8033_v18  ;;  %v7767_v27 = vadd.f32 %v7743_v12, %v7613_v26  ;;  %v8183_v18 = vld [vmem:[%s13664_s8 + $0x50] sm:$0xff]  ;;  %v8218_v26 = vld [vmem:[%s13664_s8 + $0x168] sm:$0xff] }
 0x67a   : > { %8426 = vmatpush.xpose.msrb.mxu1 %v8196_v44  ;;  %v8201_v44 = vld [vmem:[%s13664_s8 + $0xe0] sm:$0xff] }
 0x67b   : > { %v8042_v29 = vld [vmem:[#allocation4 + $0x50] ss:$2 sm:$0xf]  ;;  %v8044_v53 = vld [vmem:[#allocation4 + $0x51] ss:$2 sm:$0xf] }
 0x67c   : > { %v8045_v15 = vmax.f32 %v8042_v29, %v8044_v53  ;;  %8407 = vmatpush.xpose.msrb.mxu0 %v8179_v62  ;;  %v8219_v29 = vld [vmem:[%s13664_s8 + $0x170] sm:$0xff]  ;;  %v8220_v53 = vld [vmem:[%s13664_s8 + $0x178] sm:$0xff] }
 0x67d   : > { %v7897_v63 = vpop.f32.mrf.mxu3  ;;  %v8188_v62 = vld [vmem:[%s13664_s8 + $0x78] sm:$0xff] }
 0x67e   : > { %v13443_v3 = vmax.f32 %v8040_v48, %v8045_v15  ;;  %v7921_v58 = vadd.f32 %v7897_v63, %v7767_v27  ;;  %8427 = vmatpush.xpose.msrb.mxu1 %v8180_v22 }
 0x680   : > { %8047 = vst.msk [vmem:[#allocation7 + $0x8] sm:$0x1] %vm13230_vm4, %v13443_v3  ;;  %v7941_v47 = vadd.f32 %v13189_v60, %v7921_v58  ;;  %v8171_v51 = vld [vmem:[#allocation7] sm:$0xff] }
 0x681   : > { %8049 = vst [vmem:[#allocation1] sm:$0xff] %v13443_v3  ;;  %v8240_v20 = vperm.slane %v8171_v51, 0  ;;  %v8241_v6 = vperm.slane %v8171_v51, 1  ;;  %v8242_v54 = vperm.slane %v8171_v51, 2  ;;  %v8243_v9 = vperm.slane %v8171_v51, 3 }
 0x682   : > { %v7957_v52 = vmax.f32 %v7941_v47, 0.0  ;;  %v8244_v10 = vperm.slane %v8171_v51, 4  ;;  %v8245_v28 = vperm.slane %v8171_v51, 5  ;;  %v8246_v61 = vperm.slane %v8171_v51, 6  ;;  %v8202_v47 = vld [vmem:[%s13664_s8 + $0xe8] sm:$0xff] }
 0x683   : > { %8288 = vmatmul.f32.vlgmr.msrb.gmra.mxu2 %v8240_v20  ;;  %8308 = vmatmul.f32.vlgmr.msrb.gmra.mxu3 %v8241_v6  ;;  %v8247_v34 = vperm.slane %v8171_v51, 7  ;;  %v8203_v51 = vld [vmem:[%s13664_s8 + $0xf0] sm:$0xff]  ;;  %v8204_v20 = vld [vmem:[%s13664_s8 + $0xf8] sm:$0xff] }
 0x684   : > { %7973 = vst [vmem:[#allocation4 + $0x60] sm:$0xff] %v7957_v52  ;;  %8328 = vmatmul.f32.vlgmr.msra.gmra.mxu0 %v8242_v54  ;;  %8348 = vmatmul.f32.vlgmr.msra.gmra.mxu1 %v8243_v9  ;;  %v8185_v54 = vld [vmem:[%s13664_s8 + $0x60] sm:$0xff]  ;;  %v8186_v9 = vld [vmem:[%s13664_s8 + $0x68] sm:$0xff]  ;;  %v8187_v52 = vld [vmem:[%s13664_s8 + $0x70] sm:$0xff] }
 0x685   : > { %v7900_v59 = vpop.f32.mrf.mxu3  ;;  %8444 = vmatpush.xpose.msrb.mxu2 %v8229_v11  ;;  %8464 = vmatpush.xpose.msrb.mxu3 %v8230_v42 }
 0x686   : > { %8484 = vmatpush.xpose.msra.mxu0 %v8231_v31  ;;  %8504 = vmatpush.xpose.msra.mxu1 %v8232_v8 }
 0x688   : > { %v8051_v24 = vld [vmem:[#allocation1 + $0x1] ss:$9 sm:$0xff] }
 0x689   : > { %8445 = vmatpush.xpose.msrb.mxu2 %v8213_v30  ;;  %8465 = vmatpush.xpose.msrb.mxu3 %v8214_v17  ;;  %8053 = vst.msk [vmem:[#allocation7 + $0x9] sm:$0x1] %vm13230_vm4, %v8051_v24  ;;  %v8593_v24 = vld [vmem:[%s13668_s12 + $0x8] sm:$0xff] }
 0x68a   : > { %8485 = vmatpush.xpose.msra.mxu0 %v8215_v32  ;;  %8505 = vmatpush.xpose.msra.mxu1 %v8216_v25  ;;  %8054 = vst [vmem:[#allocation1] sm:$0xff] %v13443_v3  ;;  %v8592_v32 = vld [vmem:[%s13668_s12] sm:$0xff] }
 0x68b   : > { %8368 = vmatmul.f32.vlgmr.msra.gmra.mxu2 %v8244_v10  ;;  %8388 = vmatmul.f32.vlgmr.msra.gmra.mxu3 %v8245_v28  ;;  %v8065_v27 = vld [vmem:[#allocation4 + $0x60] ss:$2 sm:$0xf]  ;;  %v8067_v48 = vld [vmem:[#allocation4 + $0x61] ss:$2 sm:$0xf] }
 0x68c   : > { %8408 = vmatmul.f32.vlgmr.msrb.gmra.mxu0 %v8246_v61  ;;  %8428 = vmatmul.f32.vlgmr.msrb.gmra.mxu1 %v8247_v34  ;;  %v8068_v63 = vmax.f32 %v8065_v27, %v8067_v48  ;;  %v8595_v28 = vld [vmem:[%s13668_s12 + $0x18] sm:$0xff]  ;;  %v8594_v61 = vld [vmem:[%s13668_s12 + $0x10] sm:$0xff]  ;;  %v8237_v25 = vld [vmem:[%s13665_s9] sm:$0x1] }
 0x68d   : > { %v7903_v2 = vpop.f32.mrf.mxu3  ;;  %8446 = vmatpush.xpose.msrb.mxu2 %v8197_v7  ;;  %8466 = vmatpush.xpose.msrb.mxu3 %v8198_v38 }
 0x68e   : > { %v7923_v12 = vadd.f32 %v7903_v2, %v7769_v45  ;;  %8486 = vmatpush.xpose.msra.mxu0 %v8199_v39  ;;  %8506 = vmatpush.xpose.msra.mxu1 %v8200_v49 }
 0x690   : > { %v7943_v33 = vadd.f32 %v13189_v60, %v7923_v12  ;;  %v8184_v60 = vld [vmem:[%s13664_s8 + $0x58] sm:$0xff] }
 0x691   : > { %8447 = vmatpush.xpose.msrb.mxu2 %v8181_v0  ;;  %8467 = vmatpush.xpose.msrb.mxu3 %v8182_v55  ;;  %v8056_v40 = vld [vmem:[#allocation1 + $0x2] ss:$9 sm:$0xff] }
 0x692   : > { %v7959_v19 = vmax.f32 %v7943_v33, 0.0  ;;  %8487 = vmatpush.xpose.msra.mxu0 %v8183_v18  ;;  %8507 = vmatpush.xpose.msra.mxu1 %v8184_v60  ;;  %8058 = vst.msk [vmem:[#allocation7 + $0xa] sm:$0x1] %vm13230_vm4, %v8056_v40  ;;  %v8598_v0 = vld [vmem:[%s13669_s13 + $0x10] sm:$0xff]  ;;  %v8597_v33 = vld [vmem:[%s13669_s13 + $0x8] sm:$0xff] }
 0x693   : > { %8059 = vst [vmem:[#allocation1] sm:$0xff] %v13443_v3 }
 0x694   : > { %7975 = vst [vmem:[#allocation4 + $0x70] sm:$0xff] %v7959_v19 }
 0x695   : > { %8524 = vmatpush.xpose.msra.mxu2 %v8233_v46  ;;  %8544 = vmatpush.xpose.msra.mxu3 %v8234_v35  ;;  %v7906_v13 = vpop.f32.mrf.mxu3  ;;  %v8596_v35 = vld [vmem:[%s13669_s13] sm:$0xff] }
 0x696   : > { %8564 = vmatpush.xpose.msrb.mxu0 %v8235_v43  ;;  %8584 = vmatpush.xpose.msrb.mxu1 %v8236_v21 }
 0x699   : > { %8525 = vmatpush.xpose.msra.mxu2 %v8217_v57  ;;  %8545 = vmatpush.xpose.msra.mxu3 %v8218_v26 }
 0x69a   : > { %8565 = vmatpush.xpose.msrb.mxu0 %v8219_v29  ;;  %8585 = vmatpush.xpose.msrb.mxu1 %v8220_v53  ;;  %v8061_v58 = vld [vmem:[#allocation1 + $0x3] ss:$9 sm:$0xff] }
 0x69b   : > { %v8070_v15 = vld [vmem:[#allocation4 + $0x70] ss:$2 sm:$0xf]  ;;  %v8072_v36 = vld [vmem:[#allocation4 + $0x71] ss:$2 sm:$0xf] }
 0x69c   : > { %v8073_v16 = vmax.f32 %v8070_v15, %v8072_v36  ;;  %8063 = vst.msk [vmem:[#allocation7 + $0xb] sm:$0x1] %vm13230_vm4, %v8061_v58 }
 0x69d   : > { %8526 = vmatpush.xpose.msra.mxu2 %v8201_v44  ;;  %8546 = vmatpush.xpose.msra.mxu3 %v8202_v47 }
 0x69e   : > { %v8074_v3 = vmax.f32 %v8068_v63, %v8073_v16  ;;  %8566 = vmatpush.xpose.msrb.mxu0 %v8203_v51  ;;  %8586 = vmatpush.xpose.msrb.mxu1 %v8204_v20  ;;  %v8652_v51 = vld [vmem:[%s13671_s15 + $0x18] sm:$0xff]  ;;  %v8651_v20 = vld [vmem:[%s13671_s15 + $0x10] sm:$0xff] }
 0x6a0   : > { %8075 = vst.msk [vmem:[#allocation7 + $0xc] sm:$0x1] %vm13230_vm4, %v8074_v3 }
 0x6a1   : > { %8077 = vst [vmem:[#allocation1] sm:$0xff] %v8074_v3  ;;  %8527 = vmatpush.xpose.msra.mxu2 %v8185_v54  ;;  %8547 = vmatpush.xpose.msra.mxu3 %v8186_v9  ;;  %v8649_v54 = vld [vmem:[%s13671_s15] sm:$0xff] }
 0x6a2   : > { %8567 = vmatpush.xpose.msrb.mxu0 %v8187_v52  ;;  %8587 = vmatpush.xpose.msrb.mxu1 %v8188_v62  ;;  %v8646_v62 = vld [vmem:[%s13670_s14] sm:$0x1] }
 0x6a8   : > { %v8079_v6 = vld [vmem:[#allocation1 + $0x1] ss:$9 sm:$0xff] }
 0x6a9   : > { %8081 = vst.msk [vmem:[#allocation7 + $0xd] sm:$0x1] %vm13230_vm4, %v8079_v6  ;;  %v8650_v6 = vld [vmem:[%s13671_s15 + $0x8] sm:$0xff] }
 0x6aa   : > { %8082 = vst [vmem:[#allocation1] sm:$0xff] %v8074_v3 }
 0x6b1   : > { %v8084_v22 = vld [vmem:[#allocation1 + $0x2] ss:$9 sm:$0xff] }
 0x6b2   : > { %8086 = vst.msk [vmem:[#allocation7 + $0xe] sm:$0x1] %vm13230_vm4, %v8084_v22 }
 0x6b3   : > { %8087 = vst [vmem:[#allocation1] sm:$0xff] %v8074_v3 }
 0x6ba   : > { %v8089_v41 = vld [vmem:[#allocation1 + $0x3] ss:$9 sm:$0xff] }
 0x6bb   : > { %8091 = vst.msk [vmem:[#allocation7 + $0xf] sm:$0x1] %vm13230_vm4, %v8089_v41 }
 0x6c2   : > { %v8172_v11 = vld [vmem:[#allocation7 + $0x8] sm:$0xff] }
 0x6c3   : > { %v8248_v42 = vperm.slane %v8172_v11, 0  ;;  %v8249_v31 = vperm.slane %v8172_v11, 1  ;;  %v8250_v8 = vperm.slane %v8172_v11, 2  ;;  %v8251_v23 = vperm.slane %v8172_v11, 3 }
 0x6c4   : > { %v8252_v59 = vperm.slane %v8172_v11, 4  ;;  %v8253_v1 = vperm.slane %v8172_v11, 5  ;;  %v8254_v30 = vperm.slane %v8172_v11, 6  ;;  %v8255_v17 = vperm.slane %v8172_v11, 7 }
 0x6c5   : > { %8448 = vmatmul.f32.vlgmr.msrb.gmra.mxu2 %v8248_v42  ;;  %8468 = vmatmul.f32.vlgmr.msrb.gmra.mxu3 %v8249_v31  ;;  %v8653_v42 = vld [vmem:[%s13672_s16] sm:$0x1] }
 0x6c6   : > { %8488 = vmatmul.f32.vlgmr.msra.gmra.mxu0 %v8250_v8  ;;  %8508 = vmatmul.f32.vlgmr.msra.gmra.mxu1 %v8251_v23 }
 0x6c7   : > { %8638 = vmatpush.msrb.mxu3 %v8595_v28  ;;  %8615 = vmatpush.msrb.mxu2 %v8599_v37 }
 0x6c9   : > { %8639 = vmatpush.msrb.mxu3 %v8594_v61  ;;  %8616 = vmatpush.msrb.mxu2 %v8598_v0 }
 0x6cb   : > { %8640 = vmatpush.msrb.mxu3 %v8593_v24  ;;  %8617 = vmatpush.msrb.mxu2 %v8597_v33 }
 0x6cd   : > { %8528 = vmatmul.f32.vlgmr.msra.gmra.mxu2 %v8252_v59  ;;  %8548 = vmatmul.f32.vlgmr.msra.gmra.mxu3 %v8253_v1 }
 0x6ce   : > { %8568 = vmatmul.f32.vlgmr.msrb.gmra.mxu0 %v8254_v30  ;;  %8588 = vmatmul.f32.vlgmr.msrb.gmra.mxu1 %v8255_v17 }
 0x6cf   : > { %8641 = vmatpush.msrb.mxu3 %v8592_v32  ;;  %8618 = vmatpush.msrb.mxu2 %v8596_v35 }
 0x6d1   : > { %8669 = vmatpush.msra.mxu2 %v8652_v51 }
 0x6d3   : > { %8670 = vmatpush.msra.mxu2 %v8651_v20 }
 0x6d5   : > { %v8168_v56 = vpop.f32.mrf.mxu1  ;;  %8671 = vmatpush.msra.mxu2 %v8650_v6 }
 0x6d6   : > { %v8148_v14 = vpop.f32.mrf.mxu0 }
 0x6d7   : > { %v8149_v10 = vadd.f32 %v8148_v14, %v8125_v5  ;;  %8672 = vmatpush.msra.mxu2 %v8649_v54 }
 0x6d9   : > { %v8169_v34 = vadd.f32 %v8168_v56, %v8149_v10 }
 0x6db   : > { %9639 = vmatmul.msk.f32.vlgmr.msrb.gmra.mxu3 %vm719_vm2, %v8169_v34 }
 0x701   : > { %v8329_v2 = vpop.f32.mrf.mxu0  ;;  %v8349_v39 = vpop.f32.mrf.mxu1 }
 0x706   : > { %v8289_v7 = vpop.f32.mrf.mxu2  ;;  %v8309_v45 = vpop.f32.mrf.mxu3 }
 0x707   : > { %v8290_v38 = vadd.f32 %v8289_v7, %v8237_v25 }
 0x709   : > { %v8310_v4 = vadd.f32 %v8309_v45, %v8290_v38  ;;  %v8409_v18 = vpop.f32.mrf.mxu0  ;;  %v8429_v43 = vpop.f32.mrf.mxu1 }
 0x70b   : > { %v8330_v12 = vadd.f32 %v8329_v2, %v8310_v4 }
 0x70d   : > { %v8350_v49 = vadd.f32 %v8349_v39, %v8330_v12 }
 0x70e   : > { %v8369_v55 = vpop.f32.mrf.mxu2  ;;  %v8389_v50 = vpop.f32.mrf.mxu3 }
 0x70f   : > { %v8370_v46 = vadd.f32 %v8369_v55, %v8350_v49 }
 0x711   : > { %v8390_v19 = vadd.f32 %v8389_v50, %v8370_v46 }
 0x713   : > { %v8410_v60 = vadd.f32 %v8409_v18, %v8390_v19 }
 0x715   : > { %v8430_v21 = vadd.f32 %v8429_v43, %v8410_v60 }
 0x743   : > { %v8489_v13 = vpop.f32.mrf.mxu0  ;;  %v8509_v53 = vpop.f32.mrf.mxu1 }
 0x748   : > { %v8449_v57 = vpop.f32.mrf.mxu2  ;;  %v8469_v26 = vpop.f32.mrf.mxu3 }
 0x749   : > { %v8450_v40 = vadd.f32 %v8449_v57, %v8430_v21 }
 0x74b   : > { %v8470_v29 = vadd.f32 %v8469_v26, %v8450_v40  ;;  %v8569_v58 = vpop.f32.mrf.mxu0  ;;  %v8589_v44 = vpop.f32.mrf.mxu1 }
 0x74d   : > { %v8490_v27 = vadd.f32 %v8489_v13, %v8470_v29 }
 0x74f   : > { %v8510_v48 = vadd.f32 %v8509_v53, %v8490_v27 }
 0x750   : > { %v8529_v15 = vpop.f32.mrf.mxu2  ;;  %v8549_v63 = vpop.f32.mrf.mxu3 }
 0x751   : > { %v8530_v36 = vadd.f32 %v8529_v15, %v8510_v48 }
 0x753   : > { %v8550_v16 = vadd.f32 %v8549_v63, %v8530_v36 }
 0x755   : > { %v8570_v3 = vadd.f32 %v8569_v58, %v8550_v16 }
 0x757   : > { %v8590_v47 = vadd.f32 %v8589_v44, %v8570_v3 }
 0x759   : > { %9638 = vmatmul.msk.f32.vlgmr.msrb.gmra.mxu2 %vm719_vm2, %v8590_v47 }
 0x75e   : > { %v8643_v9 = vpop.f32.mrf.mxu3 }
 0x7dc   : > { %v8620_v52 = vpop.f32.mrf.mxu2 }
 0x7dd   : > { %v8644_v22 = vadd.f32 %v8643_v9, %v8620_v52 }
 0x7df   : > { %v8647_v41 = vadd.f32 %v8646_v62, %v8644_v22 }
 0x7e1   : > { %v8648_v11 = vmax.f32 %v8647_v41, 0.0 }
 0x7e3   : > { %9640 = vmatmul.msk.f32.vlgmr.msra.gmra.mxu2 %vm719_vm2, %v8648_v11 }
 0x866   : > { %v8674_v31 = vpop.f32.mrf.mxu2 }
 0x867   : > { %v8675_v8 = vadd.f32 %v8674_v31, %v8653_v42 }
 0x869   : > { %8678 = vst.msk [vmem:[%s553_s5] sm:$0x1] %vm8677_vm5, %v8675_v8 }
 0x86a   : > { %9725 = shalt.err (!%p9722_p3)
}
 0x86b   : > { %9644 = dma.vmem_to_hbm [thread:$0]  (%p9891_p5), %s8691_s2, 16, %s8693_s3, %s8680_s23  }
 0x86c PF: > { %p9650_p4 = scmp.ge.s32.totalorder %s9760_s27, 2  ;;  %s8704_s26 = sand.u32 1, %s9748_s24  }
 0x86d   : > { %s8705_s4 = scalar_lea.sflag [#allocation9], %s8704_s26 }
 0x86e   : > { %p9647_p7 = pnand %p9650_p4, %p9895_p6 }
 0x870   : > { %p9648_p8 = pneg %p9647_p7 }
 0x872   : > { %9743 = dma.done.wait (%p9648_p8), %s8705_s4, 16  }
 0x873   : > { %9745 = vsyncadd (%p9648_p8), %s8705_s4, 4294967280  ;;  %s13703_s27 = sld [smem:[#allocation12_spill]]  ;;  %s13706_s24 = smov %s9752_s25 }
 0x874   : > { %s13704_s22 = sld [smem:[#allocation11_spill]] }
 0x875   : > { %s13705_s26 = sld [smem:[#allocation13_spill]] }
 0x879   : > { %p27_p9 = scmp.ge.s32.totalorder %s13703_s27, 4  }
 0x87a   : > { %s13707_s25 = smov %s13704_s22 }
 0x87b   :  { %29 = sbr.rel (!%p27_p9) target bundleno = 10 (0xa), region = 327 }
 0x880   :  { %8710 = vsyncpa [#allocation9], 1 }
 0x881   :  { %8712 = vsyncpa [#allocation9 + $0x1], 1 }

</bundles_post_ra>
